<compile_context>
chip_gen: v5e
topology: v5e:2x2
jax: 0.10.0
libtpu: 0.0.40
codegen_flags: <defaults>
</compile_context>

<pallas_src>
import math

import jax
import jax.numpy as jnp
from jax.experimental import pallas as pl
from jax.experimental.pallas import tpu as pltpu

_VMEM = pl.BlockSpec(memory_space=pltpu.MemorySpace.VMEM)


# ----------------------------------------------------------------------------
# Fused forward kernel
# ----------------------------------------------------------------------------
def _fused_forward_kernel(
    x_ref,
    e1w0x_ref, e1w0h_ref, e1b0_ref,
    e1w1x_ref, e1w1h_ref, e1b1_ref,
    e1w2x_ref, e1w2h_ref, e1b2_ref,
    e23wx_ref, e23wh_mu_ref, e23wh_lv_ref, e23b_ref,
    d1wx_ref, d1wh_ref, d1b_ref,
    d2wx_ref, d2wh_ref, d2b_ref,
    lw_ref, lb_ref,
    c0_ref, h0_ref, c1_ref, h1_ref, eps_ref,
    xrec_ref, z_ref,
    buf_a_ref, buf_b_ref, buf_e_ref,
):
    S, B, F = x_ref.shape
    H = e1w0h_ref.shape[0]          # 2 * embedding_dim
    E = d1wh_ref.shape[0]           # embedding_dim

    def cell(gates, c, hc):
        # PyTorch gate order (i, f, g, o)
        i = jax.nn.sigmoid(gates[:, 0 * hc:1 * hc])
        f = jax.nn.sigmoid(gates[:, 1 * hc:2 * hc])
        g = jnp.tanh(gates[:, 2 * hc:3 * hc])
        o = jax.nn.sigmoid(gates[:, 3 * hc:4 * hc])
        c_new = f * c + i * g
        h_new = o * jnp.tanh(c_new)
        return h_new, c_new

    def input_proj(x_val, w_x, b):
        # Hoisted out of the recurrence: one (S*B, In) @ (In, 4H) matmul.
        s, bsz, in_dim = x_val.shape
        g = jnp.dot(x_val.reshape(s * bsz, in_dim), w_x,
                    preferred_element_type=jnp.float32) + b
        return g.reshape(s, bsz, w_x.shape[-1])

    def run_layer(x_val, wx_ref, wh_ref, b_ref, h, c, y_ref):
        w_h = wh_ref[...]
        gx = input_proj(x_val, wx_ref[...], b_ref[...])
        hc = w_h.shape[0]
        for t in range(x_val.shape[0]):            # static -> fully unrolled
            gates = gx[t] + jnp.dot(h, w_h, preferred_element_type=jnp.float32)
            h, c = cell(gates, c, hc)
            y_ref[t] = h
        return h, c

    # ---- Encoder.rnn1: 3 stacked LSTM layers (F->H, H->H, H->H) ----
    # PyTorch quirk preserved: rnn1(x, (c0, h0)) means h_0 = c0, c_0 = h0.
    run_layer(x_ref[...], e1w0x_ref, e1w0h_ref, e1b0_ref,
              c0_ref[0], h0_ref[0], buf_a_ref)
    run_layer(buf_a_ref[...], e1w1x_ref, e1w1h_ref, e1b1_ref,
              c0_ref[1], h0_ref[1], buf_b_ref)
    run_layer(buf_b_ref[...], e1w2x_ref, e1w2h_ref, e1b2_ref,
              c0_ref[2], h0_ref[2], buf_a_ref)
    seq = buf_a_ref[...]
    # TODO(synk): nn.LSTM inter-layer dropout (p=0.8) only applies in training
    # mode; eval-mode semantics (no dropout) are used here.

    # ---- Encoder.rnn2 / rnn3 fused (mu / logvar branches) ----
    # Shared time loop; one concatenated input projection (S*B, H) @ (H, 8E).
    gx23 = input_proj(seq, e23wx_ref[...], e23b_ref[...])        # (S, B, 8E)
    w_hh_mu = e23wh_mu_ref[...]
    w_hh_lv = e23wh_lv_ref[...]
    h_mu, c_mu = c1_ref[...], h1_ref[...]        # same (h, c) swap quirk
    h_lv, c_lv = c1_ref[...], h1_ref[...]
    for t in range(S):
        g_t = gx23[t]                                            # (B, 8E)
        g_mu = g_t[:, :4 * E] + jnp.dot(h_mu, w_hh_mu,
                                        preferred_element_type=jnp.float32)
        g_lv = g_t[:, 4 * E:] + jnp.dot(h_lv, w_hh_lv,
                                        preferred_element_type=jnp.float32)
        h_mu, c_mu = cell(g_mu, c_mu, E)
        h_lv, c_lv = cell(g_lv, c_lv, E)
    mu, logvar = h_mu, h_lv                    # PyTorch h_n of rnn2 / rnn3

    # ---- Reparameterize: z = mu + exp(0.5 * logvar) * eps ----
    z = mu + jnp.exp(0.5 * logvar) * eps_ref[...]
    z_ref[...] = z

    # ---- Decoder ----
    # TODO(synk): the Decoder class is not defined in the source module; the
    # canonical LSTM-VAE decoder is used: repeat z over seq_len -> LSTM(E->E)
    # -> LSTM(E->2E) -> Linear(2E->F), zero initial states.
    z_rep = jnp.broadcast_to(z[None, :, :], (S, B, E))
    zeros_e = jnp.zeros((B, E), jnp.float32)
    zeros_h = jnp.zeros((B, H), jnp.float32)
    run_layer(z_rep, d1wx_ref, d1wh_ref, d1b_ref, zeros_e, zeros_e, buf_e_ref)
    run_layer(buf_e_ref[...], d2wx_ref, d2wh_ref, d2b_ref,
              zeros_h, zeros_h, buf_b_ref)

    y = buf_b_ref[...].reshape(S * B, H)
    out = jnp.dot(y, lw_ref[...], preferred_element_type=jnp.float32) + lb_ref[...]
    xrec_ref[...] = out.reshape(S, B, F)


# ----------------------------------------------------------------------------
# Parameter init (PyTorch-style U(-1/sqrt(H), 1/sqrt(H))) and one-time packing
# ----------------------------------------------------------------------------
def _init_lstm(key, input_size, hidden_size):
    k = 1.0 / math.sqrt(hidden_size)
    k1, k2, k3, k4 = jax.random.split(key, 4)
    u = lambda kk, shape: jax.random.uniform(kk, shape, jnp.float32, -k, k)
    return {
        "w_ih": u(k1, (4 * hidden_size, input_size)),
        "w_hh": u(k2, (4 * hidden_size, hidden_size)),
        "b_ih": u(k3, (4 * hidden_size,)),
        "b_hh": u(k4, (4 * hidden_size,)),
    }


def init_params(key, n_features, embedding_dim):
    H = 2 * embedding_dim
    keys = jax.random.split(key, 9)
    return {
        # Encoder.rnn1: 3-layer LSTM, n_features -> H
        "enc_rnn1": [
            _init_lstm(keys[0], n_features, H),
            _init_lstm(keys[1], H, H),
            _init_lstm(keys[2], H, H),
        ],
        # Encoder.rnn2 / rnn3: 1-layer LSTM, H -> E
        "enc_rnn2": _init_lstm(keys[3], H, embedding_dim),
        "enc_rnn3": _init_lstm(keys[4], H, embedding_dim),
        # Decoder (canonical LSTM-VAE decoder, see TODO in kernel)
        "dec_rnn1": _init_lstm(keys[5], embedding_dim, embedding_dim),
        "dec_rnn2": _init_lstm(keys[6], embedding_dim, H),
        "dec_lin_w": jax.random.uniform(keys[7], (n_features, H), jnp.float32,
                                        -1.0 / math.sqrt(H), 1.0 / math.sqrt(H)),
        "dec_lin_b": jax.random.uniform(keys[8], (n_features,), jnp.float32,
                                        -1.0 / math.sqrt(H), 1.0 / math.sqrt(H)),
    }


def pack_params(raw):
    """Pre-transpose weights, pre-sum biases, concat the mu/logvar input proj."""
    def layer(p):
        return (jnp.asarray(p["w_ih"]).T,                 # (In, 4H)
                jnp.asarray(p["w_hh"]).T,                 # (H, 4H)
                (p["b_ih"] + p["b_hh"])[None, :])         # (1, 4H)

    w2x, w2h, b2 = layer(raw["enc_rnn2"])
    w3x, w3h, b3 = layer(raw["enc_rnn3"])
    return {
        "e1": [layer(p) for p in raw["enc_rnn1"]],
        "e23_wx": jnp.concatenate([w2x, w3x], axis=1),    # (H, 8E)
        "e23_b": jnp.concatenate([b2, b3], axis=1),       # (1, 8E)
        "e23_wh_mu": w2h,                                 # (E, 4E)
        "e23_wh_lv": w3h,                                 # (E, 4E)
        "d1": layer(raw["dec_rnn1"]),
        "d2": layer(raw["dec_rnn2"]),
        "lin_w": jnp.asarray(raw["dec_lin_w"]).T,         # (H, F)
        "lin_b": raw["dec_lin_b"][None, :],               # (1, F)
    }


# ----------------------------------------------------------------------------
# Full forward pass (one pallas_call)
# ----------------------------------------------------------------------------
def lstm_autoencoder_forward(packed, x, key):
    """x: (seq_len, batch, n_features). Returns (x_recon, z)."""
    S, B, F = x.shape
    H = packed["e1"][0][1].shape[0]     # w_hh.T is (H, 4H)
    E = packed["d1"][1].shape[0]        # dec rnn1 w_hh.T is (E, 4E)

    k_c0, k_h0, k_c1, k_h1, k_eps = jax.random.split(key, 5)
    # Fresh random states each forward (mirrors torch.randn in Encoder.forward).
    c0 = jax.random.normal(k_c0, (3, B, H), jnp.float32)
    h0 = jax.random.normal(k_h0, (3, B, H), jnp.float32)
    c1 = jax.random.normal(k_c1, (B, E), jnp.float32)
    h1 = jax.random.normal(k_h1, (B, E), jnp.float32)
    eps = jax.random.normal(k_eps, (B, E), jnp.float32)

    args = [x]
    for (wx, wh, b) in packed["e1"]:
        args += [wx, wh, b]
    args += [packed["e23_wx"], packed["e23_wh_mu"], packed["e23_wh_lv"],
             packed["e23_b"]]
    args += list(packed["d1"]) + list(packed["d2"])
    args += [packed["lin_w"], packed["lin_b"]]
    args += [c0, h0, c1, h1, eps]

    x_rec, z = pl.pallas_call(
        _fused_forward_kernel,
        out_shape=(jax.ShapeDtypeStruct((S, B, F), jnp.float32),
                   jax.ShapeDtypeStruct((B, E), jnp.float32)),
        in_specs=[_VMEM] * len(args),
        out_specs=(_VMEM, _VMEM),
        scratch_shapes=[pltpu.VMEM((S, B, H), jnp.float32),   # buf_a
                        pltpu.VMEM((S, B, H), jnp.float32),   # buf_b
                        pltpu.VMEM((S, B, E), jnp.float32)],  # buf_e
    )(*args)
    return x_rec, z.reshape(1, B, E)


# ----------------------------------------------------------------------------
if __name__ == "__main__":
    seq_len, batch, n_features, embedding_dim = 8, 2, 4, 32

    root = jax.random.PRNGKey(0)
    k_param, k_x, k_fwd = jax.random.split(root, 3)

    raw_params = init_params(k_param, n_features, embedding_dim)
    packed = pack_params(raw_params)
    x = jax.random.normal(k_x, (seq_len, batch, n_features), jnp.float32)

    fwd = jax.jit(lstm_autoencoder_forward)
    x_rec, z = fwd(packed, x, k_fwd)
    jax.block_until_ready((x_rec, z))

    assert x_rec.shape == (seq_len, batch, n_features)
    assert z.shape == (1, batch, embedding_dim)
    assert bool(jnp.all(jnp.isfinite(x_rec))) and bool(jnp.all(jnp.isfinite(z)))
    print("KERNEL_OK")
</pallas_src>

<mosaic_0001>
module attributes {stable_mosaic.version = 11 : i64} {
  func.func @_fused_forward_kernel(%arg0: memref<8x2x4xf32, #tpu.memory_space<vmem>>, %arg1: memref<4x256xf32, #tpu.memory_space<vmem>>, %arg2: memref<64x256xf32, #tpu.memory_space<vmem>>, %arg3: memref<1x256xf32, #tpu.memory_space<vmem>>, %arg4: memref<64x256xf32, #tpu.memory_space<vmem>>, %arg5: memref<64x256xf32, #tpu.memory_space<vmem>>, %arg6: memref<1x256xf32, #tpu.memory_space<vmem>>, %arg7: memref<64x256xf32, #tpu.memory_space<vmem>>, %arg8: memref<64x256xf32, #tpu.memory_space<vmem>>, %arg9: memref<1x256xf32, #tpu.memory_space<vmem>>, %arg10: memref<64x256xf32, #tpu.memory_space<vmem>>, %arg11: memref<32x128xf32, #tpu.memory_space<vmem>>, %arg12: memref<32x128xf32, #tpu.memory_space<vmem>>, %arg13: memref<1x256xf32, #tpu.memory_space<vmem>>, %arg14: memref<32x128xf32, #tpu.memory_space<vmem>>, %arg15: memref<32x128xf32, #tpu.memory_space<vmem>>, %arg16: memref<1x128xf32, #tpu.memory_space<vmem>>, %arg17: memref<32x256xf32, #tpu.memory_space<vmem>>, %arg18: memref<64x256xf32, #tpu.memory_space<vmem>>, %arg19: memref<1x256xf32, #tpu.memory_space<vmem>>, %arg20: memref<64x4xf32, #tpu.memory_space<vmem>>, %arg21: memref<1x4xf32, #tpu.memory_space<vmem>>, %arg22: memref<3x2x64xf32, #tpu.memory_space<vmem>>, %arg23: memref<3x2x64xf32, #tpu.memory_space<vmem>>, %arg24: memref<2x32xf32, #tpu.memory_space<vmem>>, %arg25: memref<2x32xf32, #tpu.memory_space<vmem>>, %arg26: memref<2x32xf32, #tpu.memory_space<vmem>>, %arg27: memref<8x2x4xf32, #tpu.memory_space<vmem>>, %arg28: memref<2x32xf32, #tpu.memory_space<vmem>>, %arg29: memref<8x2x64xf32, #tpu.memory_space<vmem>>, %arg30: memref<8x2x64xf32, #tpu.memory_space<vmem>>, %arg31: memref<8x2x32xf32, #tpu.memory_space<vmem>>) attributes {dimension_semantics = [], scalar_prefetch = 0 : i64, scratch_operands = 3 : i64, tpu.core_type = #tpu.core_type<tc>} {
    %c0 = arith.constant 0 : index
    %c0_0 = arith.constant 0 : index
    %c0_1 = arith.constant 0 : index
    %0 = vector.load %arg0[%c0, %c0_0, %c0_1] : memref<8x2x4xf32, #tpu.memory_space<vmem>>, vector<8x2x4xf32>
    %c0_2 = arith.constant 0 : index
    %c0_3 = arith.constant 0 : index
    %c0_4 = arith.constant 0 : index
    %1 = vector.load %arg22[%c0_2, %c0_3, %c0_4] : memref<3x2x64xf32, #tpu.memory_space<vmem>>, vector<1x2x64xf32>
    %2 = vector.shape_cast %1 : vector<1x2x64xf32> to vector<2x64xf32>
    %c0_5 = arith.constant 0 : index
    %c0_6 = arith.constant 0 : index
    %c0_7 = arith.constant 0 : index
    %3 = vector.load %arg23[%c0_5, %c0_6, %c0_7] : memref<3x2x64xf32, #tpu.memory_space<vmem>>, vector<1x2x64xf32>
    %4 = vector.shape_cast %3 : vector<1x2x64xf32> to vector<2x64xf32>
    %c0_8 = arith.constant 0 : index
    %c0_9 = arith.constant 0 : index
    %5 = vector.load %arg2[%c0_8, %c0_9] : memref<64x256xf32, #tpu.memory_space<vmem>>, vector<64x256xf32>
    %c0_10 = arith.constant 0 : index
    %c0_11 = arith.constant 0 : index
    %6 = vector.load %arg1[%c0_10, %c0_11] : memref<4x256xf32, #tpu.memory_space<vmem>>, vector<4x256xf32>
    %c0_12 = arith.constant 0 : index
    %c0_13 = arith.constant 0 : index
    %7 = vector.load %arg3[%c0_12, %c0_13] : memref<1x256xf32, #tpu.memory_space<vmem>>, vector<1x256xf32>
    %8 = vector.shape_cast %0 : vector<8x2x4xf32> to vector<16x4xf32>
    %cst = arith.constant dense<0.000000e+00> : vector<16x256xf32>
    %9 = tpu.matmul %8, %6, %cst {dimension_numbers = #tpu.dot_dimension_numbers<[1], [0], [0], [1], [0, 0, 1, 1], [], []>} : vector<16x4xf32>, vector<4x256xf32>, vector<16x256xf32> -> vector<16x256xf32>
    %10 = vector.broadcast %7 : vector<1x256xf32> to vector<16x256xf32>
    %11 = arith.addf %9, %10 : vector<16x256xf32>
    %12 = vector.shape_cast %11 : vector<16x256xf32> to vector<8x2x256xf32>
    %13 = vector.extract_strided_slice %12 {offsets = [0, 0, 0], sizes = [1, 2, 256], strides = [1, 1, 1]} : vector<8x2x256xf32> to vector<1x2x256xf32>
    %14 = vector.shape_cast %13 : vector<1x2x256xf32> to vector<2x256xf32>
    %cst_14 = arith.constant dense<0.000000e+00> : vector<2x256xf32>
    %15 = tpu.matmul %2, %5, %cst_14 {dimension_numbers = #tpu.dot_dimension_numbers<[1], [0], [0], [1], [0, 0, 1, 1], [], []>} : vector<2x64xf32>, vector<64x256xf32>, vector<2x256xf32> -> vector<2x256xf32>
    %16 = arith.addf %14, %15 : vector<2x256xf32>
    %17 = vector.extract_strided_slice %16 {offsets = [0, 0], sizes = [2, 64], strides = [1, 1]} : vector<2x256xf32> to vector<2x64xf32>
    %18 = arith.negf %17 : vector<2x64xf32>
    %19 = math.exp %18 : vector<2x64xf32>
    %cst_15 = arith.constant 1.000000e+00 : f32
    %20 = vector.broadcast %cst_15 : f32 to vector<2x64xf32>
    %21 = arith.addf %20, %19 : vector<2x64xf32>
    %22 = arith.divf %20, %21 : vector<2x64xf32>
    %23 = vector.extract_strided_slice %16 {offsets = [0, 64], sizes = [2, 64], strides = [1, 1]} : vector<2x256xf32> to vector<2x64xf32>
    %24 = arith.negf %23 : vector<2x64xf32>
    %25 = math.exp %24 : vector<2x64xf32>
    %cst_16 = arith.constant 1.000000e+00 : f32
    %26 = vector.broadcast %cst_16 : f32 to vector<2x64xf32>
    %27 = arith.addf %26, %25 : vector<2x64xf32>
    %28 = arith.divf %26, %27 : vector<2x64xf32>
    %29 = vector.extract_strided_slice %16 {offsets = [0, 128], sizes = [2, 64], strides = [1, 1]} : vector<2x256xf32> to vector<2x64xf32>
    %30 = math.tanh %29 : vector<2x64xf32>
    %31 = vector.extract_strided_slice %16 {offsets = [0, 192], sizes = [2, 64], strides = [1, 1]} : vector<2x256xf32> to vector<2x64xf32>
    %32 = arith.negf %31 : vector<2x64xf32>
    %33 = math.exp %32 : vector<2x64xf32>
    %cst_17 = arith.constant 1.000000e+00 : f32
    %34 = vector.broadcast %cst_17 : f32 to vector<2x64xf32>
    %35 = arith.addf %34, %33 : vector<2x64xf32>
    %36 = arith.divf %34, %35 : vector<2x64xf32>
    %37 = arith.mulf %28, %4 : vector<2x64xf32>
    %38 = arith.mulf %22, %30 : vector<2x64xf32>
    %39 = arith.addf %37, %38 : vector<2x64xf32>
    %40 = math.tanh %39 : vector<2x64xf32>
    %41 = arith.mulf %36, %40 : vector<2x64xf32>
    %c0_18 = arith.constant 0 : index
    %c0_19 = arith.constant 0 : index
    %c0_20 = arith.constant 0 : index
    %42 = vector.load %arg29[%c0_18, %c0_19, %c0_20] : memref<8x2x64xf32, #tpu.memory_space<vmem>>, vector<1x2x64xf32>
    %43 = vector.shape_cast %42 : vector<1x2x64xf32> to vector<2x64xf32>
    %44 = vector.shape_cast %41 : vector<2x64xf32> to vector<1x2x64xf32>
    tpu.vector_store %arg29[%c0_18, %c0_19, %c0_20], %44 {strides = array<i32>} : memref<8x2x64xf32, #tpu.memory_space<vmem>>, vector<1x2x64xf32>,
    %45 = vector.extract_strided_slice %12 {offsets = [1, 0, 0], sizes = [1, 2, 256], strides = [1, 1, 1]} : vector<8x2x256xf32> to vector<1x2x256xf32>
    %46 = vector.shape_cast %45 : vector<1x2x256xf32> to vector<2x256xf32>
    %cst_21 = arith.constant dense<0.000000e+00> : vector<2x256xf32>
    %47 = tpu.matmul %41, %5, %cst_21 {dimension_numbers = #tpu.dot_dimension_numbers<[1], [0], [0], [1], [0, 0, 1, 1], [], []>} : vector<2x64xf32>, vector<64x256xf32>, vector<2x256xf32> -> vector<2x256xf32>
    %48 = arith.addf %46, %47 : vector<2x256xf32>
    %49 = vector.extract_strided_slice %48 {offsets = [0, 0], sizes = [2, 64], strides = [1, 1]} : vector<2x256xf32> to vector<2x64xf32>
    %50 = arith.negf %49 : vector<2x64xf32>
    %51 = math.exp %50 : vector<2x64xf32>
    %cst_22 = arith.constant 1.000000e+00 : f32
    %52 = vector.broadcast %cst_22 : f32 to vector<2x64xf32>
    %53 = arith.addf %52, %51 : vector<2x64xf32>
    %54 = arith.divf %52, %53 : vector<2x64xf32>
    %55 = vector.extract_strided_slice %48 {offsets = [0, 64], sizes = [2, 64], strides = [1, 1]} : vector<2x256xf32> to vector<2x64xf32>
    %56 = arith.negf %55 : vector<2x64xf32>
    %57 = math.exp %56 : vector<2x64xf32>
    %cst_23 = arith.constant 1.000000e+00 : f32
    %58 = vector.broadcast %cst_23 : f32 to vector<2x64xf32>
    %59 = arith.addf %58, %57 : vector<2x64xf32>
    %60 = arith.divf %58, %59 : vector<2x64xf32>
    %61 = vector.extract_strided_slice %48 {offsets = [0, 128], sizes = [2, 64], strides = [1, 1]} : vector<2x256xf32> to vector<2x64xf32>
    %62 = math.tanh %61 : vector<2x64xf32>
    %63 = vector.extract_strided_slice %48 {offsets = [0, 192], sizes = [2, 64], strides = [1, 1]} : vector<2x256xf32> to vector<2x64xf32>
    %64 = arith.negf %63 : vector<2x64xf32>
    %65 = math.exp %64 : vector<2x64xf32>
    %cst_24 = arith.constant 1.000000e+00 : f32
    %66 = vector.broadcast %cst_24 : f32 to vector<2x64xf32>
    %67 = arith.addf %66, %65 : vector<2x64xf32>
    %68 = arith.divf %66, %67 : vector<2x64xf32>
    %69 = arith.mulf %60, %39 : vector<2x64xf32>
    %70 = arith.mulf %54, %62 : vector<2x64xf32>
    %71 = arith.addf %69, %70 : vector<2x64xf32>
    %72 = math.tanh %71 : vector<2x64xf32>
    %73 = arith.mulf %68, %72 : vector<2x64xf32>
    %c1 = arith.constant 1 : index
    %c0_25 = arith.constant 0 : index
    %c0_26 = arith.constant 0 : index
    %74 = vector.load %arg29[%c1, %c0_25, %c0_26] : memref<8x2x64xf32, #tpu.memory_space<vmem>>, vector<1x2x64xf32>
    %75 = vector.shape_cast %74 : vector<1x2x64xf32> to vector<2x64xf32>
    %76 = vector.shape_cast %73 : vector<2x64xf32> to vector<1x2x64xf32>
    tpu.vector_store %arg29[%c1, %c0_25, %c0_26], %76 {strides = array<i32>} : memref<8x2x64xf32, #tpu.memory_space<vmem>>, vector<1x2x64xf32>,
    %77 = vector.extract_strided_slice %12 {offsets = [2, 0, 0], sizes = [1, 2, 256], strides = [1, 1, 1]} : vector<8x2x256xf32> to vector<1x2x256xf32>
    %78 = vector.shape_cast %77 : vector<1x2x256xf32> to vector<2x256xf32>
    %cst_27 = arith.constant dense<0.000000e+00> : vector<2x256xf32>
    %79 = tpu.matmul %73, %5, %cst_27 {dimension_numbers = #tpu.dot_dimension_numbers<[1], [0], [0], [1], [0, 0, 1, 1], [], []>} : vector<2x64xf32>, vector<64x256xf32>, vector<2x256xf32> -> vector<2x256xf32>
    %80 = arith.addf %78, %79 : vector<2x256xf32>
    %81 = vector.extract_strided_slice %80 {offsets = [0, 0], sizes = [2, 64], strides = [1, 1]} : vector<2x256xf32> to vector<2x64xf32>
    %82 = arith.negf %81 : vector<2x64xf32>
    %83 = math.exp %82 : vector<2x64xf32>
    %cst_28 = arith.constant 1.000000e+00 : f32
    %84 = vector.broadcast %cst_28 : f32 to vector<2x64xf32>
    %85 = arith.addf %84, %83 : vector<2x64xf32>
    %86 = arith.divf %84, %85 : vector<2x64xf32>
    %87 = vector.extract_strided_slice %80 {offsets = [0, 64], sizes = [2, 64], strides = [1, 1]} : vector<2x256xf32> to vector<2x64xf32>
    %88 = arith.negf %87 : vector<2x64xf32>
    %89 = math.exp %88 : vector<2x64xf32>
    %cst_29 = arith.constant 1.000000e+00 : f32
    %90 = vector.broadcast %cst_29 : f32 to vector<2x64xf32>
    %91 = arith.addf %90, %89 : vector<2x64xf32>
    %92 = arith.divf %90, %91 : vector<2x64xf32>
    %93 = vector.extract_strided_slice %80 {offsets = [0, 128], sizes = [2, 64], strides = [1, 1]} : vector<2x256xf32> to vector<2x64xf32>
    %94 = math.tanh %93 : vector<2x64xf32>
    %95 = vector.extract_strided_slice %80 {offsets = [0, 192], sizes = [2, 64], strides = [1, 1]} : vector<2x256xf32> to vector<2x64xf32>
    %96 = arith.negf %95 : vector<2x64xf32>
    %97 = math.exp %96 : vector<2x64xf32>
    %cst_30 = arith.constant 1.000000e+00 : f32
    %98 = vector.broadcast %cst_30 : f32 to vector<2x64xf32>
    %99 = arith.addf %98, %97 : vector<2x64xf32>
    %100 = arith.divf %98, %99 : vector<2x64xf32>
    %101 = arith.mulf %92, %71 : vector<2x64xf32>
    %102 = arith.mulf %86, %94 : vector<2x64xf32>
    %103 = arith.addf %101, %102 : vector<2x64xf32>
    %104 = math.tanh %103 : vector<2x64xf32>
    %105 = arith.mulf %100, %104 : vector<2x64xf32>
    %c2 = arith.constant 2 : index
    %c0_31 = arith.constant 0 : index
    %c0_32 = arith.constant 0 : index
    %106 = vector.load %arg29[%c2, %c0_31, %c0_32] : memref<8x2x64xf32, #tpu.memory_space<vmem>>, vector<1x2x64xf32>
    %107 = vector.shape_cast %106 : vector<1x2x64xf32> to vector<2x64xf32>
    %108 = vector.shape_cast %105 : vector<2x64xf32> to vector<1x2x64xf32>
    tpu.vector_store %arg29[%c2, %c0_31, %c0_32], %108 {strides = array<i32>} : memref<8x2x64xf32, #tpu.memory_space<vmem>>, vector<1x2x64xf32>,
    %109 = vector.extract_strided_slice %12 {offsets = [3, 0, 0], sizes = [1, 2, 256], strides = [1, 1, 1]} : vector<8x2x256xf32> to vector<1x2x256xf32>
    %110 = vector.shape_cast %109 : vector<1x2x256xf32> to vector<2x256xf32>
    %cst_33 = arith.constant dense<0.000000e+00> : vector<2x256xf32>
    %111 = tpu.matmul %105, %5, %cst_33 {dimension_numbers = #tpu.dot_dimension_numbers<[1], [0], [0], [1], [0, 0, 1, 1], [], []>} : vector<2x64xf32>, vector<64x256xf32>, vector<2x256xf32> -> vector<2x256xf32>
    %112 = arith.addf %110, %111 : vector<2x256xf32>
    %113 = vector.extract_strided_slice %112 {offsets = [0, 0], sizes = [2, 64], strides = [1, 1]} : vector<2x256xf32> to vector<2x64xf32>
    %114 = arith.negf %113 : vector<2x64xf32>
    %115 = math.exp %114 : vector<2x64xf32>
    %cst_34 = arith.constant 1.000000e+00 : f32
    %116 = vector.broadcast %cst_34 : f32 to vector<2x64xf32>
    %117 = arith.addf %116, %115 : vector<2x64xf32>
    %118 = arith.divf %116, %117 : vector<2x64xf32>
    %119 = vector.extract_strided_slice %112 {offsets = [0, 64], sizes = [2, 64], strides = [1, 1]} : vector<2x256xf32> to vector<2x64xf32>
    %120 = arith.negf %119 : vector<2x64xf32>
    %121 = math.exp %120 : vector<2x64xf32>
    %cst_35 = arith.constant 1.000000e+00 : f32
    %122 = vector.broadcast %cst_35 : f32 to vector<2x64xf32>
    %123 = arith.addf %122, %121 : vector<2x64xf32>
    %124 = arith.divf %122, %123 : vector<2x64xf32>
    %125 = vector.extract_strided_slice %112 {offsets = [0, 128], sizes = [2, 64], strides = [1, 1]} : vector<2x256xf32> to vector<2x64xf32>
    %126 = math.tanh %125 : vector<2x64xf32>
    %127 = vector.extract_strided_slice %112 {offsets = [0, 192], sizes = [2, 64], strides = [1, 1]} : vector<2x256xf32> to vector<2x64xf32>
    %128 = arith.negf %127 : vector<2x64xf32>
    %129 = math.exp %128 : vector<2x64xf32>
    %cst_36 = arith.constant 1.000000e+00 : f32
    %130 = vector.broadcast %cst_36 : f32 to vector<2x64xf32>
    %131 = arith.addf %130, %129 : vector<2x64xf32>
    %132 = arith.divf %130, %131 : vector<2x64xf32>
    %133 = arith.mulf %124, %103 : vector<2x64xf32>
    %134 = arith.mulf %118, %126 : vector<2x64xf32>
    %135 = arith.addf %133, %134 : vector<2x64xf32>
    %136 = math.tanh %135 : vector<2x64xf32>
    %137 = arith.mulf %132, %136 : vector<2x64xf32>
    %c3 = arith.constant 3 : index
    %c0_37 = arith.constant 0 : index
    %c0_38 = arith.constant 0 : index
    %138 = vector.load %arg29[%c3, %c0_37, %c0_38] : memref<8x2x64xf32, #tpu.memory_space<vmem>>, vector<1x2x64xf32>
    %139 = vector.shape_cast %138 : vector<1x2x64xf32> to vector<2x64xf32>
    %140 = vector.shape_cast %137 : vector<2x64xf32> to vector<1x2x64xf32>
    tpu.vector_store %arg29[%c3, %c0_37, %c0_38], %140 {strides = array<i32>} : memref<8x2x64xf32, #tpu.memory_space<vmem>>, vector<1x2x64xf32>,
    %141 = vector.extract_strided_slice %12 {offsets = [4, 0, 0], sizes = [1, 2, 256], strides = [1, 1, 1]} : vector<8x2x256xf32> to vector<1x2x256xf32>
    %142 = vector.shape_cast %141 : vector<1x2x256xf32> to vector<2x256xf32>
    %cst_39 = arith.constant dense<0.000000e+00> : vector<2x256xf32>
    %143 = tpu.matmul %137, %5, %cst_39 {dimension_numbers = #tpu.dot_dimension_numbers<[1], [0], [0], [1], [0, 0, 1, 1], [], []>} : vector<2x64xf32>, vector<64x256xf32>, vector<2x256xf32> -> vector<2x256xf32>
    %144 = arith.addf %142, %143 : vector<2x256xf32>
    %145 = vector.extract_strided_slice %144 {offsets = [0, 0], sizes = [2, 64], strides = [1, 1]} : vector<2x256xf32> to vector<2x64xf32>
    %146 = arith.negf %145 : vector<2x64xf32>
    %147 = math.exp %146 : vector<2x64xf32>
    %cst_40 = arith.constant 1.000000e+00 : f32
    %148 = vector.broadcast %cst_40 : f32 to vector<2x64xf32>
    %149 = arith.addf %148, %147 : vector<2x64xf32>
    %150 = arith.divf %148, %149 : vector<2x64xf32>
    %151 = vector.extract_strided_slice %144 {offsets = [0, 64], sizes = [2, 64], strides = [1, 1]} : vector<2x256xf32> to vector<2x64xf32>
    %152 = arith.negf %151 : vector<2x64xf32>
    %153 = math.exp %152 : vector<2x64xf32>
    %cst_41 = arith.constant 1.000000e+00 : f32
    %154 = vector.broadcast %cst_41 : f32 to vector<2x64xf32>
    %155 = arith.addf %154, %153 : vector<2x64xf32>
    %156 = arith.divf %154, %155 : vector<2x64xf32>
    %157 = vector.extract_strided_slice %144 {offsets = [0, 128], sizes = [2, 64], strides = [1, 1]} : vector<2x256xf32> to vector<2x64xf32>
    %158 = math.tanh %157 : vector<2x64xf32>
    %159 = vector.extract_strided_slice %144 {offsets = [0, 192], sizes = [2, 64], strides = [1, 1]} : vector<2x256xf32> to vector<2x64xf32>
    %160 = arith.negf %159 : vector<2x64xf32>
    %161 = math.exp %160 : vector<2x64xf32>
    %cst_42 = arith.constant 1.000000e+00 : f32
    %162 = vector.broadcast %cst_42 : f32 to vector<2x64xf32>
    %163 = arith.addf %162, %161 : vector<2x64xf32>
    %164 = arith.divf %162, %163 : vector<2x64xf32>
    %165 = arith.mulf %156, %135 : vector<2x64xf32>
    %166 = arith.mulf %150, %158 : vector<2x64xf32>
    %167 = arith.addf %165, %166 : vector<2x64xf32>
    %168 = math.tanh %167 : vector<2x64xf32>
    %169 = arith.mulf %164, %168 : vector<2x64xf32>
    %c4 = arith.constant 4 : index
    %c0_43 = arith.constant 0 : index
    %c0_44 = arith.constant 0 : index
    %170 = vector.load %arg29[%c4, %c0_43, %c0_44] : memref<8x2x64xf32, #tpu.memory_space<vmem>>, vector<1x2x64xf32>
    %171 = vector.shape_cast %170 : vector<1x2x64xf32> to vector<2x64xf32>
    %172 = vector.shape_cast %169 : vector<2x64xf32> to vector<1x2x64xf32>
    tpu.vector_store %arg29[%c4, %c0_43, %c0_44], %172 {strides = array<i32>} : memref<8x2x64xf32, #tpu.memory_space<vmem>>, vector<1x2x64xf32>,
    %173 = vector.extract_strided_slice %12 {offsets = [5, 0, 0], sizes = [1, 2, 256], strides = [1, 1, 1]} : vector<8x2x256xf32> to vector<1x2x256xf32>
    %174 = vector.shape_cast %173 : vector<1x2x256xf32> to vector<2x256xf32>
    %cst_45 = arith.constant dense<0.000000e+00> : vector<2x256xf32>
    %175 = tpu.matmul %169, %5, %cst_45 {dimension_numbers = #tpu.dot_dimension_numbers<[1], [0], [0], [1], [0, 0, 1, 1], [], []>} : vector<2x64xf32>, vector<64x256xf32>, vector<2x256xf32> -> vector<2x256xf32>
    %176 = arith.addf %174, %175 : vector<2x256xf32>
    %177 = vector.extract_strided_slice %176 {offsets = [0, 0], sizes = [2, 64], strides = [1, 1]} : vector<2x256xf32> to vector<2x64xf32>
    %178 = arith.negf %177 : vector<2x64xf32>
    %179 = math.exp %178 : vector<2x64xf32>
    %cst_46 = arith.constant 1.000000e+00 : f32
    %180 = vector.broadcast %cst_46 : f32 to vector<2x64xf32>
    %181 = arith.addf %180, %179 : vector<2x64xf32>
    %182 = arith.divf %180, %181 : vector<2x64xf32>
    %183 = vector.extract_strided_slice %176 {offsets = [0, 64], sizes = [2, 64], strides = [1, 1]} : vector<2x256xf32> to vector<2x64xf32>
    %184 = arith.negf %183 : vector<2x64xf32>
    %185 = math.exp %184 : vector<2x64xf32>
    %cst_47 = arith.constant 1.000000e+00 : f32
    %186 = vector.broadcast %cst_47 : f32 to vector<2x64xf32>
    %187 = arith.addf %186, %185 : vector<2x64xf32>
    %188 = arith.divf %186, %187 : vector<2x64xf32>
    %189 = vector.extract_strided_slice %176 {offsets = [0, 128], sizes = [2, 64], strides = [1, 1]} : vector<2x256xf32> to vector<2x64xf32>
    %190 = math.tanh %189 : vector<2x64xf32>
    %191 = vector.extract_strided_slice %176 {offsets = [0, 192], sizes = [2, 64], strides = [1, 1]} : vector<2x256xf32> to vector<2x64xf32>
    %192 = arith.negf %191 : vector<2x64xf32>
    %193 = math.exp %192 : vector<2x64xf32>
    %cst_48 = arith.constant 1.000000e+00 : f32
    %194 = vector.broadcast %cst_48 : f32 to vector<2x64xf32>
    %195 = arith.addf %194, %193 : vector<2x64xf32>
    %196 = arith.divf %194, %195 : vector<2x64xf32>
    %197 = arith.mulf %188, %167 : vector<2x64xf32>
    %198 = arith.mulf %182, %190 : vector<2x64xf32>
    %199 = arith.addf %197, %198 : vector<2x64xf32>
    %200 = math.tanh %199 : vector<2x64xf32>
    %201 = arith.mulf %196, %200 : vector<2x64xf32>
    %c5 = arith.constant 5 : index
    %c0_49 = arith.constant 0 : index
    %c0_50 = arith.constant 0 : index
    %202 = vector.load %arg29[%c5, %c0_49, %c0_50] : memref<8x2x64xf32, #tpu.memory_space<vmem>>, vector<1x2x64xf32>
    %203 = vector.shape_cast %202 : vector<1x2x64xf32> to vector<2x64xf32>
    %204 = vector.shape_cast %201 : vector<2x64xf32> to vector<1x2x64xf32>
    tpu.vector_store %arg29[%c5, %c0_49, %c0_50], %204 {strides = array<i32>} : memref<8x2x64xf32, #tpu.memory_space<vmem>>, vector<1x2x64xf32>,
    %205 = vector.extract_strided_slice %12 {offsets = [6, 0, 0], sizes = [1, 2, 256], strides = [1, 1, 1]} : vector<8x2x256xf32> to vector<1x2x256xf32>
    %206 = vector.shape_cast %205 : vector<1x2x256xf32> to vector<2x256xf32>
    %cst_51 = arith.constant dense<0.000000e+00> : vector<2x256xf32>
    %207 = tpu.matmul %201, %5, %cst_51 {dimension_numbers = #tpu.dot_dimension_numbers<[1], [0], [0], [1], [0, 0, 1, 1], [], []>} : vector<2x64xf32>, vector<64x256xf32>, vector<2x256xf32> -> vector<2x256xf32>
    %208 = arith.addf %206, %207 : vector<2x256xf32>
    %209 = vector.extract_strided_slice %208 {offsets = [0, 0], sizes = [2, 64], strides = [1, 1]} : vector<2x256xf32> to vector<2x64xf32>
    %210 = arith.negf %209 : vector<2x64xf32>
    %211 = math.exp %210 : vector<2x64xf32>
    %cst_52 = arith.constant 1.000000e+00 : f32
    %212 = vector.broadcast %cst_52 : f32 to vector<2x64xf32>
    %213 = arith.addf %212, %211 : vector<2x64xf32>
    %214 = arith.divf %212, %213 : vector<2x64xf32>
    %215 = vector.extract_strided_slice %208 {offsets = [0, 64], sizes = [2, 64], strides = [1, 1]} : vector<2x256xf32> to vector<2x64xf32>
    %216 = arith.negf %215 : vector<2x64xf32>
    %217 = math.exp %216 : vector<2x64xf32>
    %cst_53 = arith.constant 1.000000e+00 : f32
    %218 = vector.broadcast %cst_53 : f32 to vector<2x64xf32>
    %219 = arith.addf %218, %217 : vector<2x64xf32>
    %220 = arith.divf %218, %219 : vector<2x64xf32>
    %221 = vector.extract_strided_slice %208 {offsets = [0, 128], sizes = [2, 64], strides = [1, 1]} : vector<2x256xf32> to vector<2x64xf32>
    %222 = math.tanh %221 : vector<2x64xf32>
    %223 = vector.extract_strided_slice %208 {offsets = [0, 192], sizes = [2, 64], strides = [1, 1]} : vector<2x256xf32> to vector<2x64xf32>
    %224 = arith.negf %223 : vector<2x64xf32>
    %225 = math.exp %224 : vector<2x64xf32>
    %cst_54 = arith.constant 1.000000e+00 : f32
    %226 = vector.broadcast %cst_54 : f32 to vector<2x64xf32>
    %227 = arith.addf %226, %225 : vector<2x64xf32>
    %228 = arith.divf %226, %227 : vector<2x64xf32>
    %229 = arith.mulf %220, %199 : vector<2x64xf32>
    %230 = arith.mulf %214, %222 : vector<2x64xf32>
    %231 = arith.addf %229, %230 : vector<2x64xf32>
    %232 = math.tanh %231 : vector<2x64xf32>
    %233 = arith.mulf %228, %232 : vector<2x64xf32>
    %c6 = arith.constant 6 : index
    %c0_55 = arith.constant 0 : index
    %c0_56 = arith.constant 0 : index
    %234 = vector.load %arg29[%c6, %c0_55, %c0_56] : memref<8x2x64xf32, #tpu.memory_space<vmem>>, vector<1x2x64xf32>
    %235 = vector.shape_cast %234 : vector<1x2x64xf32> to vector<2x64xf32>
    %236 = vector.shape_cast %233 : vector<2x64xf32> to vector<1x2x64xf32>
    tpu.vector_store %arg29[%c6, %c0_55, %c0_56], %236 {strides = array<i32>} : memref<8x2x64xf32, #tpu.memory_space<vmem>>, vector<1x2x64xf32>,
    %237 = vector.extract_strided_slice %12 {offsets = [7, 0, 0], sizes = [1, 2, 256], strides = [1, 1, 1]} : vector<8x2x256xf32> to vector<1x2x256xf32>
    %238 = vector.shape_cast %237 : vector<1x2x256xf32> to vector<2x256xf32>
    %cst_57 = arith.constant dense<0.000000e+00> : vector<2x256xf32>
    %239 = tpu.matmul %233, %5, %cst_57 {dimension_numbers = #tpu.dot_dimension_numbers<[1], [0], [0], [1], [0, 0, 1, 1], [], []>} : vector<2x64xf32>, vector<64x256xf32>, vector<2x256xf32> -> vector<2x256xf32>
    %240 = arith.addf %238, %239 : vector<2x256xf32>
    %241 = vector.extract_strided_slice %240 {offsets = [0, 0], sizes = [2, 64], strides = [1, 1]} : vector<2x256xf32> to vector<2x64xf32>
    %242 = arith.negf %241 : vector<2x64xf32>
    %243 = math.exp %242 : vector<2x64xf32>
    %cst_58 = arith.constant 1.000000e+00 : f32
    %244 = vector.broadcast %cst_58 : f32 to vector<2x64xf32>
    %245 = arith.addf %244, %243 : vector<2x64xf32>
    %246 = arith.divf %244, %245 : vector<2x64xf32>
    %247 = vector.extract_strided_slice %240 {offsets = [0, 64], sizes = [2, 64], strides = [1, 1]} : vector<2x256xf32> to vector<2x64xf32>
    %248 = arith.negf %247 : vector<2x64xf32>
    %249 = math.exp %248 : vector<2x64xf32>
    %cst_59 = arith.constant 1.000000e+00 : f32
    %250 = vector.broadcast %cst_59 : f32 to vector<2x64xf32>
    %251 = arith.addf %250, %249 : vector<2x64xf32>
    %252 = arith.divf %250, %251 : vector<2x64xf32>
    %253 = vector.extract_strided_slice %240 {offsets = [0, 128], sizes = [2, 64], strides = [1, 1]} : vector<2x256xf32> to vector<2x64xf32>
    %254 = math.tanh %253 : vector<2x64xf32>
    %255 = vector.extract_strided_slice %240 {offsets = [0, 192], sizes = [2, 64], strides = [1, 1]} : vector<2x256xf32> to vector<2x64xf32>
    %256 = arith.negf %255 : vector<2x64xf32>
    %257 = math.exp %256 : vector<2x64xf32>
    %cst_60 = arith.constant 1.000000e+00 : f32
    %258 = vector.broadcast %cst_60 : f32 to vector<2x64xf32>
    %259 = arith.addf %258, %257 : vector<2x64xf32>
    %260 = arith.divf %258, %259 : vector<2x64xf32>
    %261 = arith.mulf %252, %231 : vector<2x64xf32>
    %262 = arith.mulf %246, %254 : vector<2x64xf32>
    %263 = arith.addf %261, %262 : vector<2x64xf32>
    %264 = math.tanh %263 : vector<2x64xf32>
    %265 = arith.mulf %260, %264 : vector<2x64xf32>
    %c7 = arith.constant 7 : index
    %c0_61 = arith.constant 0 : index
    %c0_62 = arith.constant 0 : index
    %266 = vector.load %arg29[%c7, %c0_61, %c0_62] : memref<8x2x64xf32, #tpu.memory_space<vmem>>, vector<1x2x64xf32>
    %267 = vector.shape_cast %266 : vector<1x2x64xf32> to vector<2x64xf32>
    %268 = vector.shape_cast %265 : vector<2x64xf32> to vector<1x2x64xf32>
    tpu.vector_store %arg29[%c7, %c0_61, %c0_62], %268 {strides = array<i32>} : memref<8x2x64xf32, #tpu.memory_space<vmem>>, vector<1x2x64xf32>,
    %c0_63 = arith.constant 0 : index
    %c0_64 = arith.constant 0 : index
    %c0_65 = arith.constant 0 : index
    %269 = vector.load %arg29[%c0_63, %c0_64, %c0_65] : memref<8x2x64xf32, #tpu.memory_space<vmem>>, vector<8x2x64xf32>
    %c1_66 = arith.constant 1 : index
    %c0_67 = arith.constant 0 : index
    %c0_68 = arith.constant 0 : index
    %270 = vector.load %arg22[%c1_66, %c0_67, %c0_68] : memref<3x2x64xf32, #tpu.memory_space<vmem>>, vector<1x2x64xf32>
    %271 = vector.shape_cast %270 : vector<1x2x64xf32> to vector<2x64xf32>
    %c1_69 = arith.constant 1 : index
    %c0_70 = arith.constant 0 : index
    %c0_71 = arith.constant 0 : index
    %272 = vector.load %arg23[%c1_69, %c0_70, %c0_71] : memref<3x2x64xf32, #tpu.memory_space<vmem>>, vector<1x2x64xf32>
    %273 = vector.shape_cast %272 : vector<1x2x64xf32> to vector<2x64xf32>
    %c0_72 = arith.constant 0 : index
    %c0_73 = arith.constant 0 : index
    %274 = vector.load %arg5[%c0_72, %c0_73] : memref<64x256xf32, #tpu.memory_space<vmem>>, vector<64x256xf32>
    %c0_74 = arith.constant 0 : index
    %c0_75 = arith.constant 0 : index
    %275 = vector.load %arg4[%c0_74, %c0_75] : memref<64x256xf32, #tpu.memory_space<vmem>>, vector<64x256xf32>
    %c0_76 = arith.constant 0 : index
    %c0_77 = arith.constant 0 : index
    %276 = vector.load %arg6[%c0_76, %c0_77] : memref<1x256xf32, #tpu.memory_space<vmem>>, vector<1x256xf32>
    %277 = vector.shape_cast %269 : vector<8x2x64xf32> to vector<16x64xf32>
    %cst_78 = arith.constant dense<0.000000e+00> : vector<16x256xf32>
    %278 = tpu.matmul %277, %275, %cst_78 {dimension_numbers = #tpu.dot_dimension_numbers<[1], [0], [0], [1], [0, 0, 1, 1], [], []>} : vector<16x64xf32>, vector<64x256xf32>, vector<16x256xf32> -> vector<16x256xf32>
    %279 = vector.broadcast %276 : vector<1x256xf32> to vector<16x256xf32>
    %280 = arith.addf %278, %279 : vector<16x256xf32>
    %281 = vector.shape_cast %280 : vector<16x256xf32> to vector<8x2x256xf32>
    %282 = vector.extract_strided_slice %281 {offsets = [0, 0, 0], sizes = [1, 2, 256], strides = [1, 1, 1]} : vector<8x2x256xf32> to vector<1x2x256xf32>
    %283 = vector.shape_cast %282 : vector<1x2x256xf32> to vector<2x256xf32>
    %cst_79 = arith.constant dense<0.000000e+00> : vector<2x256xf32>
    %284 = tpu.matmul %271, %274, %cst_79 {dimension_numbers = #tpu.dot_dimension_numbers<[1], [0], [0], [1], [0, 0, 1, 1], [], []>} : vector<2x64xf32>, vector<64x256xf32>, vector<2x256xf32> -> vector<2x256xf32>
    %285 = arith.addf %283, %284 : vector<2x256xf32>
    %286 = vector.extract_strided_slice %285 {offsets = [0, 0], sizes = [2, 64], strides = [1, 1]} : vector<2x256xf32> to vector<2x64xf32>
    %287 = arith.negf %286 : vector<2x64xf32>
    %288 = math.exp %287 : vector<2x64xf32>
    %cst_80 = arith.constant 1.000000e+00 : f32
    %289 = vector.broadcast %cst_80 : f32 to vector<2x64xf32>
    %290 = arith.addf %289, %288 : vector<2x64xf32>
    %291 = arith.divf %289, %290 : vector<2x64xf32>
    %292 = vector.extract_strided_slice %285 {offsets = [0, 64], sizes = [2, 64], strides = [1, 1]} : vector<2x256xf32> to vector<2x64xf32>
    %293 = arith.negf %292 : vector<2x64xf32>
    %294 = math.exp %293 : vector<2x64xf32>
    %cst_81 = arith.constant 1.000000e+00 : f32
    %295 = vector.broadcast %cst_81 : f32 to vector<2x64xf32>
    %296 = arith.addf %295, %294 : vector<2x64xf32>
    %297 = arith.divf %295, %296 : vector<2x64xf32>
    %298 = vector.extract_strided_slice %285 {offsets = [0, 128], sizes = [2, 64], strides = [1, 1]} : vector<2x256xf32> to vector<2x64xf32>
    %299 = math.tanh %298 : vector<2x64xf32>
    %300 = vector.extract_strided_slice %285 {offsets = [0, 192], sizes = [2, 64], strides = [1, 1]} : vector<2x256xf32> to vector<2x64xf32>
    %301 = arith.negf %300 : vector<2x64xf32>
    %302 = math.exp %301 : vector<2x64xf32>
    %cst_82 = arith.constant 1.000000e+00 : f32
    %303 = vector.broadcast %cst_82 : f32 to vector<2x64xf32>
    %304 = arith.addf %303, %302 : vector<2x64xf32>
    %305 = arith.divf %303, %304 : vector<2x64xf32>
    %306 = arith.mulf %297, %273 : vector<2x64xf32>
    %307 = arith.mulf %291, %299 : vector<2x64xf32>
    %308 = arith.addf %306, %307 : vector<2x64xf32>
    %309 = math.tanh %308 : vector<2x64xf32>
    %310 = arith.mulf %305, %309 : vector<2x64xf32>
    %c0_83 = arith.constant 0 : index
    %c0_84 = arith.constant 0 : index
    %c0_85 = arith.constant 0 : index
    %311 = vector.load %arg30[%c0_83, %c0_84, %c0_85] : memref<8x2x64xf32, #tpu.memory_space<vmem>>, vector<1x2x64xf32>
    %312 = vector.shape_cast %311 : vector<1x2x64xf32> to vector<2x64xf32>
    %313 = vector.shape_cast %310 : vector<2x64xf32> to vector<1x2x64xf32>
    tpu.vector_store %arg30[%c0_83, %c0_84, %c0_85], %313 {strides = array<i32>} : memref<8x2x64xf32, #tpu.memory_space<vmem>>, vector<1x2x64xf32>,
    %314 = vector.extract_strided_slice %281 {offsets = [1, 0, 0], sizes = [1, 2, 256], strides = [1, 1, 1]} : vector<8x2x256xf32> to vector<1x2x256xf32>
    %315 = vector.shape_cast %314 : vector<1x2x256xf32> to vector<2x256xf32>
    %cst_86 = arith.constant dense<0.000000e+00> : vector<2x256xf32>
    %316 = tpu.matmul %310, %274, %cst_86 {dimension_numbers = #tpu.dot_dimension_numbers<[1], [0], [0], [1], [0, 0, 1, 1], [], []>} : vector<2x64xf32>, vector<64x256xf32>, vector<2x256xf32> -> vector<2x256xf32>
    %317 = arith.addf %315, %316 : vector<2x256xf32>
    %318 = vector.extract_strided_slice %317 {offsets = [0, 0], sizes = [2, 64], strides = [1, 1]} : vector<2x256xf32> to vector<2x64xf32>
    %319 = arith.negf %318 : vector<2x64xf32>
    %320 = math.exp %319 : vector<2x64xf32>
    %cst_87 = arith.constant 1.000000e+00 : f32
    %321 = vector.broadcast %cst_87 : f32 to vector<2x64xf32>
    %322 = arith.addf %321, %320 : vector<2x64xf32>
    %323 = arith.divf %321, %322 : vector<2x64xf32>
    %324 = vector.extract_strided_slice %317 {offsets = [0, 64], sizes = [2, 64], strides = [1, 1]} : vector<2x256xf32> to vector<2x64xf32>
    %325 = arith.negf %324 : vector<2x64xf32>
    %326 = math.exp %325 : vector<2x64xf32>
    %cst_88 = arith.constant 1.000000e+00 : f32
    %327 = vector.broadcast %cst_88 : f32 to vector<2x64xf32>
    %328 = arith.addf %327, %326 : vector<2x64xf32>
    %329 = arith.divf %327, %328 : vector<2x64xf32>
    %330 = vector.extract_strided_slice %317 {offsets = [0, 128], sizes = [2, 64], strides = [1, 1]} : vector<2x256xf32> to vector<2x64xf32>
    %331 = math.tanh %330 : vector<2x64xf32>
    %332 = vector.extract_strided_slice %317 {offsets = [0, 192], sizes = [2, 64], strides = [1, 1]} : vector<2x256xf32> to vector<2x64xf32>
    %333 = arith.negf %332 : vector<2x64xf32>
    %334 = math.exp %333 : vector<2x64xf32>
    %cst_89 = arith.constant 1.000000e+00 : f32
    %335 = vector.broadcast %cst_89 : f32 to vector<2x64xf32>
    %336 = arith.addf %335, %334 : vector<2x64xf32>
    %337 = arith.divf %335, %336 : vector<2x64xf32>
    %338 = arith.mulf %329, %308 : vector<2x64xf32>
    %339 = arith.mulf %323, %331 : vector<2x64xf32>
    %340 = arith.addf %338, %339 : vector<2x64xf32>
    %341 = math.tanh %340 : vector<2x64xf32>
    %342 = arith.mulf %337, %341 : vector<2x64xf32>
    %c1_90 = arith.constant 1 : index
    %c0_91 = arith.constant 0 : index
    %c0_92 = arith.constant 0 : index
    %343 = vector.load %arg30[%c1_90, %c0_91, %c0_92] : memref<8x2x64xf32, #tpu.memory_space<vmem>>, vector<1x2x64xf32>
    %344 = vector.shape_cast %343 : vector<1x2x64xf32> to vector<2x64xf32>
    %345 = vector.shape_cast %342 : vector<2x64xf32> to vector<1x2x64xf32>
    tpu.vector_store %arg30[%c1_90, %c0_91, %c0_92], %345 {strides = array<i32>} : memref<8x2x64xf32, #tpu.memory_space<vmem>>, vector<1x2x64xf32>,
    %346 = vector.extract_strided_slice %281 {offsets = [2, 0, 0], sizes = [1, 2, 256], strides = [1, 1, 1]} : vector<8x2x256xf32> to vector<1x2x256xf32>
    %347 = vector.shape_cast %346 : vector<1x2x256xf32> to vector<2x256xf32>
    %cst_93 = arith.constant dense<0.000000e+00> : vector<2x256xf32>
    %348 = tpu.matmul %342, %274, %cst_93 {dimension_numbers = #tpu.dot_dimension_numbers<[1], [0], [0], [1], [0, 0, 1, 1], [], []>} : vector<2x64xf32>, vector<64x256xf32>, vector<2x256xf32> -> vector<2x256xf32>
    %349 = arith.addf %347, %348 : vector<2x256xf32>
    %350 = vector.extract_strided_slice %349 {offsets = [0, 0], sizes = [2, 64], strides = [1, 1]} : vector<2x256xf32> to vector<2x64xf32>
    %351 = arith.negf %350 : vector<2x64xf32>
    %352 = math.exp %351 : vector<2x64xf32>
    %cst_94 = arith.constant 1.000000e+00 : f32
    %353 = vector.broadcast %cst_94 : f32 to vector<2x64xf32>
    %354 = arith.addf %353, %352 : vector<2x64xf32>
    %355 = arith.divf %353, %354 : vector<2x64xf32>
    %356 = vector.extract_strided_slice %349 {offsets = [0, 64], sizes = [2, 64], strides = [1, 1]} : vector<2x256xf32> to vector<2x64xf32>
    %357 = arith.negf %356 : vector<2x64xf32>
    %358 = math.exp %357 : vector<2x64xf32>
    %cst_95 = arith.constant 1.000000e+00 : f32
    %359 = vector.broadcast %cst_95 : f32 to vector<2x64xf32>
    %360 = arith.addf %359, %358 : vector<2x64xf32>
    %361 = arith.divf %359, %360 : vector<2x64xf32>
    %362 = vector.extract_strided_slice %349 {offsets = [0, 128], sizes = [2, 64], strides = [1, 1]} : vector<2x256xf32> to vector<2x64xf32>
    %363 = math.tanh %362 : vector<2x64xf32>
    %364 = vector.extract_strided_slice %349 {offsets = [0, 192], sizes = [2, 64], strides = [1, 1]} : vector<2x256xf32> to vector<2x64xf32>
    %365 = arith.negf %364 : vector<2x64xf32>
    %366 = math.exp %365 : vector<2x64xf32>
    %cst_96 = arith.constant 1.000000e+00 : f32
    %367 = vector.broadcast %cst_96 : f32 to vector<2x64xf32>
    %368 = arith.addf %367, %366 : vector<2x64xf32>
    %369 = arith.divf %367, %368 : vector<2x64xf32>
    %370 = arith.mulf %361, %340 : vector<2x64xf32>
    %371 = arith.mulf %355, %363 : vector<2x64xf32>
    %372 = arith.addf %370, %371 : vector<2x64xf32>
    %373 = math.tanh %372 : vector<2x64xf32>
    %374 = arith.mulf %369, %373 : vector<2x64xf32>
    %c2_97 = arith.constant 2 : index
    %c0_98 = arith.constant 0 : index
    %c0_99 = arith.constant 0 : index
    %375 = vector.load %arg30[%c2_97, %c0_98, %c0_99] : memref<8x2x64xf32, #tpu.memory_space<vmem>>, vector<1x2x64xf32>
    %376 = vector.shape_cast %375 : vector<1x2x64xf32> to vector<2x64xf32>
    %377 = vector.shape_cast %374 : vector<2x64xf32> to vector<1x2x64xf32>
    tpu.vector_store %arg30[%c2_97, %c0_98, %c0_99], %377 {strides = array<i32>} : memref<8x2x64xf32, #tpu.memory_space<vmem>>, vector<1x2x64xf32>,
    %378 = vector.extract_strided_slice %281 {offsets = [3, 0, 0], sizes = [1, 2, 256], strides = [1, 1, 1]} : vector<8x2x256xf32> to vector<1x2x256xf32>
    %379 = vector.shape_cast %378 : vector<1x2x256xf32> to vector<2x256xf32>
    %cst_100 = arith.constant dense<0.000000e+00> : vector<2x256xf32>
    %380 = tpu.matmul %374, %274, %cst_100 {dimension_numbers = #tpu.dot_dimension_numbers<[1], [0], [0], [1], [0, 0, 1, 1], [], []>} : vector<2x64xf32>, vector<64x256xf32>, vector<2x256xf32> -> vector<2x256xf32>
    %381 = arith.addf %379, %380 : vector<2x256xf32>
    %382 = vector.extract_strided_slice %381 {offsets = [0, 0], sizes = [2, 64], strides = [1, 1]} : vector<2x256xf32> to vector<2x64xf32>
    %383 = arith.negf %382 : vector<2x64xf32>
    %384 = math.exp %383 : vector<2x64xf32>
    %cst_101 = arith.constant 1.000000e+00 : f32
    %385 = vector.broadcast %cst_101 : f32 to vector<2x64xf32>
    %386 = arith.addf %385, %384 : vector<2x64xf32>
    %387 = arith.divf %385, %386 : vector<2x64xf32>
    %388 = vector.extract_strided_slice %381 {offsets = [0, 64], sizes = [2, 64], strides = [1, 1]} : vector<2x256xf32> to vector<2x64xf32>
    %389 = arith.negf %388 : vector<2x64xf32>
    %390 = math.exp %389 : vector<2x64xf32>
    %cst_102 = arith.constant 1.000000e+00 : f32
    %391 = vector.broadcast %cst_102 : f32 to vector<2x64xf32>
    %392 = arith.addf %391, %390 : vector<2x64xf32>
    %393 = arith.divf %391, %392 : vector<2x64xf32>
    %394 = vector.extract_strided_slice %381 {offsets = [0, 128], sizes = [2, 64], strides = [1, 1]} : vector<2x256xf32> to vector<2x64xf32>
    %395 = math.tanh %394 : vector<2x64xf32>
    %396 = vector.extract_strided_slice %381 {offsets = [0, 192], sizes = [2, 64], strides = [1, 1]} : vector<2x256xf32> to vector<2x64xf32>
    %397 = arith.negf %396 : vector<2x64xf32>
    %398 = math.exp %397 : vector<2x64xf32>
    %cst_103 = arith.constant 1.000000e+00 : f32
    %399 = vector.broadcast %cst_103 : f32 to vector<2x64xf32>
    %400 = arith.addf %399, %398 : vector<2x64xf32>
    %401 = arith.divf %399, %400 : vector<2x64xf32>
    %402 = arith.mulf %393, %372 : vector<2x64xf32>
    %403 = arith.mulf %387, %395 : vector<2x64xf32>
    %404 = arith.addf %402, %403 : vector<2x64xf32>
    %405 = math.tanh %404 : vector<2x64xf32>
    %406 = arith.mulf %401, %405 : vector<2x64xf32>
    %c3_104 = arith.constant 3 : index
    %c0_105 = arith.constant 0 : index
    %c0_106 = arith.constant 0 : index
    %407 = vector.load %arg30[%c3_104, %c0_105, %c0_106] : memref<8x2x64xf32, #tpu.memory_space<vmem>>, vector<1x2x64xf32>
    %408 = vector.shape_cast %407 : vector<1x2x64xf32> to vector<2x64xf32>
    %409 = vector.shape_cast %406 : vector<2x64xf32> to vector<1x2x64xf32>
    tpu.vector_store %arg30[%c3_104, %c0_105, %c0_106], %409 {strides = array<i32>} : memref<8x2x64xf32, #tpu.memory_space<vmem>>, vector<1x2x64xf32>,
    %410 = vector.extract_strided_slice %281 {offsets = [4, 0, 0], sizes = [1, 2, 256], strides = [1, 1, 1]} : vector<8x2x256xf32> to vector<1x2x256xf32>
    %411 = vector.shape_cast %410 : vector<1x2x256xf32> to vector<2x256xf32>
    %cst_107 = arith.constant dense<0.000000e+00> : vector<2x256xf32>
    %412 = tpu.matmul %406, %274, %cst_107 {dimension_numbers = #tpu.dot_dimension_numbers<[1], [0], [0], [1], [0, 0, 1, 1], [], []>} : vector<2x64xf32>, vector<64x256xf32>, vector<2x256xf32> -> vector<2x256xf32>
    %413 = arith.addf %411, %412 : vector<2x256xf32>
    %414 = vector.extract_strided_slice %413 {offsets = [0, 0], sizes = [2, 64], strides = [1, 1]} : vector<2x256xf32> to vector<2x64xf32>
    %415 = arith.negf %414 : vector<2x64xf32>
    %416 = math.exp %415 : vector<2x64xf32>
    %cst_108 = arith.constant 1.000000e+00 : f32
    %417 = vector.broadcast %cst_108 : f32 to vector<2x64xf32>
    %418 = arith.addf %417, %416 : vector<2x64xf32>
    %419 = arith.divf %417, %418 : vector<2x64xf32>
    %420 = vector.extract_strided_slice %413 {offsets = [0, 64], sizes = [2, 64], strides = [1, 1]} : vector<2x256xf32> to vector<2x64xf32>
    %421 = arith.negf %420 : vector<2x64xf32>
    %422 = math.exp %421 : vector<2x64xf32>
    %cst_109 = arith.constant 1.000000e+00 : f32
    %423 = vector.broadcast %cst_109 : f32 to vector<2x64xf32>
    %424 = arith.addf %423, %422 : vector<2x64xf32>
    %425 = arith.divf %423, %424 : vector<2x64xf32>
    %426 = vector.extract_strided_slice %413 {offsets = [0, 128], sizes = [2, 64], strides = [1, 1]} : vector<2x256xf32> to vector<2x64xf32>
    %427 = math.tanh %426 : vector<2x64xf32>
    %428 = vector.extract_strided_slice %413 {offsets = [0, 192], sizes = [2, 64], strides = [1, 1]} : vector<2x256xf32> to vector<2x64xf32>
    %429 = arith.negf %428 : vector<2x64xf32>
    %430 = math.exp %429 : vector<2x64xf32>
    %cst_110 = arith.constant 1.000000e+00 : f32
    %431 = vector.broadcast %cst_110 : f32 to vector<2x64xf32>
    %432 = arith.addf %431, %430 : vector<2x64xf32>
    %433 = arith.divf %431, %432 : vector<2x64xf32>
    %434 = arith.mulf %425, %404 : vector<2x64xf32>
    %435 = arith.mulf %419, %427 : vector<2x64xf32>
    %436 = arith.addf %434, %435 : vector<2x64xf32>
    %437 = math.tanh %436 : vector<2x64xf32>
    %438 = arith.mulf %433, %437 : vector<2x64xf32>
    %c4_111 = arith.constant 4 : index
    %c0_112 = arith.constant 0 : index
    %c0_113 = arith.constant 0 : index
    %439 = vector.load %arg30[%c4_111, %c0_112, %c0_113] : memref<8x2x64xf32, #tpu.memory_space<vmem>>, vector<1x2x64xf32>
    %440 = vector.shape_cast %439 : vector<1x2x64xf32> to vector<2x64xf32>
    %441 = vector.shape_cast %438 : vector<2x64xf32> to vector<1x2x64xf32>
    tpu.vector_store %arg30[%c4_111, %c0_112, %c0_113], %441 {strides = array<i32>} : memref<8x2x64xf32, #tpu.memory_space<vmem>>, vector<1x2x64xf32>,
    %442 = vector.extract_strided_slice %281 {offsets = [5, 0, 0], sizes = [1, 2, 256], strides = [1, 1, 1]} : vector<8x2x256xf32> to vector<1x2x256xf32>
    %443 = vector.shape_cast %442 : vector<1x2x256xf32> to vector<2x256xf32>
    %cst_114 = arith.constant dense<0.000000e+00> : vector<2x256xf32>
    %444 = tpu.matmul %438, %274, %cst_114 {dimension_numbers = #tpu.dot_dimension_numbers<[1], [0], [0], [1], [0, 0, 1, 1], [], []>} : vector<2x64xf32>, vector<64x256xf32>, vector<2x256xf32> -> vector<2x256xf32>
    %445 = arith.addf %443, %444 : vector<2x256xf32>
    %446 = vector.extract_strided_slice %445 {offsets = [0, 0], sizes = [2, 64], strides = [1, 1]} : vector<2x256xf32> to vector<2x64xf32>
    %447 = arith.negf %446 : vector<2x64xf32>
    %448 = math.exp %447 : vector<2x64xf32>
    %cst_115 = arith.constant 1.000000e+00 : f32
    %449 = vector.broadcast %cst_115 : f32 to vector<2x64xf32>
    %450 = arith.addf %449, %448 : vector<2x64xf32>
    %451 = arith.divf %449, %450 : vector<2x64xf32>
    %452 = vector.extract_strided_slice %445 {offsets = [0, 64], sizes = [2, 64], strides = [1, 1]} : vector<2x256xf32> to vector<2x64xf32>
    %453 = arith.negf %452 : vector<2x64xf32>
    %454 = math.exp %453 : vector<2x64xf32>
    %cst_116 = arith.constant 1.000000e+00 : f32
    %455 = vector.broadcast %cst_116 : f32 to vector<2x64xf32>
    %456 = arith.addf %455, %454 : vector<2x64xf32>
    %457 = arith.divf %455, %456 : vector<2x64xf32>
    %458 = vector.extract_strided_slice %445 {offsets = [0, 128], sizes = [2, 64], strides = [1, 1]} : vector<2x256xf32> to vector<2x64xf32>
    %459 = math.tanh %458 : vector<2x64xf32>
    %460 = vector.extract_strided_slice %445 {offsets = [0, 192], sizes = [2, 64], strides = [1, 1]} : vector<2x256xf32> to vector<2x64xf32>
    %461 = arith.negf %460 : vector<2x64xf32>
    %462 = math.exp %461 : vector<2x64xf32>
    %cst_117 = arith.constant 1.000000e+00 : f32
    %463 = vector.broadcast %cst_117 : f32 to vector<2x64xf32>
    %464 = arith.addf %463, %462 : vector<2x64xf32>
    %465 = arith.divf %463, %464 : vector<2x64xf32>
    %466 = arith.mulf %457, %436 : vector<2x64xf32>
    %467 = arith.mulf %451, %459 : vector<2x64xf32>
    %468 = arith.addf %466, %467 : vector<2x64xf32>
    %469 = math.tanh %468 : vector<2x64xf32>
    %470 = arith.mulf %465, %469 : vector<2x64xf32>
    %c5_118 = arith.constant 5 : index
    %c0_119 = arith.constant 0 : index
    %c0_120 = arith.constant 0 : index
    %471 = vector.load %arg30[%c5_118, %c0_119, %c0_120] : memref<8x2x64xf32, #tpu.memory_space<vmem>>, vector<1x2x64xf32>
    %472 = vector.shape_cast %471 : vector<1x2x64xf32> to vector<2x64xf32>
    %473 = vector.shape_cast %470 : vector<2x64xf32> to vector<1x2x64xf32>
    tpu.vector_store %arg30[%c5_118, %c0_119, %c0_120], %473 {strides = array<i32>} : memref<8x2x64xf32, #tpu.memory_space<vmem>>, vector<1x2x64xf32>,
    %474 = vector.extract_strided_slice %281 {offsets = [6, 0, 0], sizes = [1, 2, 256], strides = [1, 1, 1]} : vector<8x2x256xf32> to vector<1x2x256xf32>
    %475 = vector.shape_cast %474 : vector<1x2x256xf32> to vector<2x256xf32>
    %cst_121 = arith.constant dense<0.000000e+00> : vector<2x256xf32>
    %476 = tpu.matmul %470, %274, %cst_121 {dimension_numbers = #tpu.dot_dimension_numbers<[1], [0], [0], [1], [0, 0, 1, 1], [], []>} : vector<2x64xf32>, vector<64x256xf32>, vector<2x256xf32> -> vector<2x256xf32>
    %477 = arith.addf %475, %476 : vector<2x256xf32>
    %478 = vector.extract_strided_slice %477 {offsets = [0, 0], sizes = [2, 64], strides = [1, 1]} : vector<2x256xf32> to vector<2x64xf32>
    %479 = arith.negf %478 : vector<2x64xf32>
    %480 = math.exp %479 : vector<2x64xf32>
    %cst_122 = arith.constant 1.000000e+00 : f32
    %481 = vector.broadcast %cst_122 : f32 to vector<2x64xf32>
    %482 = arith.addf %481, %480 : vector<2x64xf32>
    %483 = arith.divf %481, %482 : vector<2x64xf32>
    %484 = vector.extract_strided_slice %477 {offsets = [0, 64], sizes = [2, 64], strides = [1, 1]} : vector<2x256xf32> to vector<2x64xf32>
    %485 = arith.negf %484 : vector<2x64xf32>
    %486 = math.exp %485 : vector<2x64xf32>
    %cst_123 = arith.constant 1.000000e+00 : f32
    %487 = vector.broadcast %cst_123 : f32 to vector<2x64xf32>
    %488 = arith.addf %487, %486 : vector<2x64xf32>
    %489 = arith.divf %487, %488 : vector<2x64xf32>
    %490 = vector.extract_strided_slice %477 {offsets = [0, 128], sizes = [2, 64], strides = [1, 1]} : vector<2x256xf32> to vector<2x64xf32>
    %491 = math.tanh %490 : vector<2x64xf32>
    %492 = vector.extract_strided_slice %477 {offsets = [0, 192], sizes = [2, 64], strides = [1, 1]} : vector<2x256xf32> to vector<2x64xf32>
    %493 = arith.negf %492 : vector<2x64xf32>
    %494 = math.exp %493 : vector<2x64xf32>
    %cst_124 = arith.constant 1.000000e+00 : f32
    %495 = vector.broadcast %cst_124 : f32 to vector<2x64xf32>
    %496 = arith.addf %495, %494 : vector<2x64xf32>
    %497 = arith.divf %495, %496 : vector<2x64xf32>
    %498 = arith.mulf %489, %468 : vector<2x64xf32>
    %499 = arith.mulf %483, %491 : vector<2x64xf32>
    %500 = arith.addf %498, %499 : vector<2x64xf32>
    %501 = math.tanh %500 : vector<2x64xf32>
    %502 = arith.mulf %497, %501 : vector<2x64xf32>
    %c6_125 = arith.constant 6 : index
    %c0_126 = arith.constant 0 : index
    %c0_127 = arith.constant 0 : index
    %503 = vector.load %arg30[%c6_125, %c0_126, %c0_127] : memref<8x2x64xf32, #tpu.memory_space<vmem>>, vector<1x2x64xf32>
    %504 = vector.shape_cast %503 : vector<1x2x64xf32> to vector<2x64xf32>
    %505 = vector.shape_cast %502 : vector<2x64xf32> to vector<1x2x64xf32>
    tpu.vector_store %arg30[%c6_125, %c0_126, %c0_127], %505 {strides = array<i32>} : memref<8x2x64xf32, #tpu.memory_space<vmem>>, vector<1x2x64xf32>,
    %506 = vector.extract_strided_slice %281 {offsets = [7, 0, 0], sizes = [1, 2, 256], strides = [1, 1, 1]} : vector<8x2x256xf32> to vector<1x2x256xf32>
    %507 = vector.shape_cast %506 : vector<1x2x256xf32> to vector<2x256xf32>
    %cst_128 = arith.constant dense<0.000000e+00> : vector<2x256xf32>
    %508 = tpu.matmul %502, %274, %cst_128 {dimension_numbers = #tpu.dot_dimension_numbers<[1], [0], [0], [1], [0, 0, 1, 1], [], []>} : vector<2x64xf32>, vector<64x256xf32>, vector<2x256xf32> -> vector<2x256xf32>
    %509 = arith.addf %507, %508 : vector<2x256xf32>
    %510 = vector.extract_strided_slice %509 {offsets = [0, 0], sizes = [2, 64], strides = [1, 1]} : vector<2x256xf32> to vector<2x64xf32>
    %511 = arith.negf %510 : vector<2x64xf32>
    %512 = math.exp %511 : vector<2x64xf32>
    %cst_129 = arith.constant 1.000000e+00 : f32
    %513 = vector.broadcast %cst_129 : f32 to vector<2x64xf32>
    %514 = arith.addf %513, %512 : vector<2x64xf32>
    %515 = arith.divf %513, %514 : vector<2x64xf32>
    %516 = vector.extract_strided_slice %509 {offsets = [0, 64], sizes = [2, 64], strides = [1, 1]} : vector<2x256xf32> to vector<2x64xf32>
    %517 = arith.negf %516 : vector<2x64xf32>
    %518 = math.exp %517 : vector<2x64xf32>
    %cst_130 = arith.constant 1.000000e+00 : f32
    %519 = vector.broadcast %cst_130 : f32 to vector<2x64xf32>
    %520 = arith.addf %519, %518 : vector<2x64xf32>
    %521 = arith.divf %519, %520 : vector<2x64xf32>
    %522 = vector.extract_strided_slice %509 {offsets = [0, 128], sizes = [2, 64], strides = [1, 1]} : vector<2x256xf32> to vector<2x64xf32>
    %523 = math.tanh %522 : vector<2x64xf32>
    %524 = vector.extract_strided_slice %509 {offsets = [0, 192], sizes = [2, 64], strides = [1, 1]} : vector<2x256xf32> to vector<2x64xf32>
    %525 = arith.negf %524 : vector<2x64xf32>
    %526 = math.exp %525 : vector<2x64xf32>
    %cst_131 = arith.constant 1.000000e+00 : f32
    %527 = vector.broadcast %cst_131 : f32 to vector<2x64xf32>
    %528 = arith.addf %527, %526 : vector<2x64xf32>
    %529 = arith.divf %527, %528 : vector<2x64xf32>
    %530 = arith.mulf %521, %500 : vector<2x64xf32>
    %531 = arith.mulf %515, %523 : vector<2x64xf32>
    %532 = arith.addf %530, %531 : vector<2x64xf32>
    %533 = math.tanh %532 : vector<2x64xf32>
    %534 = arith.mulf %529, %533 : vector<2x64xf32>
    %c7_132 = arith.constant 7 : index
    %c0_133 = arith.constant 0 : index
    %c0_134 = arith.constant 0 : index
    %535 = vector.load %arg30[%c7_132, %c0_133, %c0_134] : memref<8x2x64xf32, #tpu.memory_space<vmem>>, vector<1x2x64xf32>
    %536 = vector.shape_cast %535 : vector<1x2x64xf32> to vector<2x64xf32>
    %537 = vector.shape_cast %534 : vector<2x64xf32> to vector<1x2x64xf32>
    tpu.vector_store %arg30[%c7_132, %c0_133, %c0_134], %537 {strides = array<i32>} : memref<8x2x64xf32, #tpu.memory_space<vmem>>, vector<1x2x64xf32>,
    %c0_135 = arith.constant 0 : index
    %c0_136 = arith.constant 0 : index
    %c0_137 = arith.constant 0 : index
    %538 = vector.load %arg30[%c0_135, %c0_136, %c0_137] : memref<8x2x64xf32, #tpu.memory_space<vmem>>, vector<8x2x64xf32>
    %c2_138 = arith.constant 2 : index
    %c0_139 = arith.constant 0 : index
    %c0_140 = arith.constant 0 : index
    %539 = vector.load %arg22[%c2_138, %c0_139, %c0_140] : memref<3x2x64xf32, #tpu.memory_space<vmem>>, vector<1x2x64xf32>
    %540 = vector.shape_cast %539 : vector<1x2x64xf32> to vector<2x64xf32>
    %c2_141 = arith.constant 2 : index
    %c0_142 = arith.constant 0 : index
    %c0_143 = arith.constant 0 : index
    %541 = vector.load %arg23[%c2_141, %c0_142, %c0_143] : memref<3x2x64xf32, #tpu.memory_space<vmem>>, vector<1x2x64xf32>
    %542 = vector.shape_cast %541 : vector<1x2x64xf32> to vector<2x64xf32>
    %c0_144 = arith.constant 0 : index
    %c0_145 = arith.constant 0 : index
    %543 = vector.load %arg8[%c0_144, %c0_145] : memref<64x256xf32, #tpu.memory_space<vmem>>, vector<64x256xf32>
    %c0_146 = arith.constant 0 : index
    %c0_147 = arith.constant 0 : index
    %544 = vector.load %arg7[%c0_146, %c0_147] : memref<64x256xf32, #tpu.memory_space<vmem>>, vector<64x256xf32>
    %c0_148 = arith.constant 0 : index
    %c0_149 = arith.constant 0 : index
    %545 = vector.load %arg9[%c0_148, %c0_149] : memref<1x256xf32, #tpu.memory_space<vmem>>, vector<1x256xf32>
    %546 = vector.shape_cast %538 : vector<8x2x64xf32> to vector<16x64xf32>
    %cst_150 = arith.constant dense<0.000000e+00> : vector<16x256xf32>
    %547 = tpu.matmul %546, %544, %cst_150 {dimension_numbers = #tpu.dot_dimension_numbers<[1], [0], [0], [1], [0, 0, 1, 1], [], []>} : vector<16x64xf32>, vector<64x256xf32>, vector<16x256xf32> -> vector<16x256xf32>
    %548 = vector.broadcast %545 : vector<1x256xf32> to vector<16x256xf32>
    %549 = arith.addf %547, %548 : vector<16x256xf32>
    %550 = vector.shape_cast %549 : vector<16x256xf32> to vector<8x2x256xf32>
    %551 = vector.extract_strided_slice %550 {offsets = [0, 0, 0], sizes = [1, 2, 256], strides = [1, 1, 1]} : vector<8x2x256xf32> to vector<1x2x256xf32>
    %552 = vector.shape_cast %551 : vector<1x2x256xf32> to vector<2x256xf32>
    %cst_151 = arith.constant dense<0.000000e+00> : vector<2x256xf32>
    %553 = tpu.matmul %540, %543, %cst_151 {dimension_numbers = #tpu.dot_dimension_numbers<[1], [0], [0], [1], [0, 0, 1, 1], [], []>} : vector<2x64xf32>, vector<64x256xf32>, vector<2x256xf32> -> vector<2x256xf32>
    %554 = arith.addf %552, %553 : vector<2x256xf32>
    %555 = vector.extract_strided_slice %554 {offsets = [0, 0], sizes = [2, 64], strides = [1, 1]} : vector<2x256xf32> to vector<2x64xf32>
    %556 = arith.negf %555 : vector<2x64xf32>
    %557 = math.exp %556 : vector<2x64xf32>
    %cst_152 = arith.constant 1.000000e+00 : f32
    %558 = vector.broadcast %cst_152 : f32 to vector<2x64xf32>
    %559 = arith.addf %558, %557 : vector<2x64xf32>
    %560 = arith.divf %558, %559 : vector<2x64xf32>
    %561 = vector.extract_strided_slice %554 {offsets = [0, 64], sizes = [2, 64], strides = [1, 1]} : vector<2x256xf32> to vector<2x64xf32>
    %562 = arith.negf %561 : vector<2x64xf32>
    %563 = math.exp %562 : vector<2x64xf32>
    %cst_153 = arith.constant 1.000000e+00 : f32
    %564 = vector.broadcast %cst_153 : f32 to vector<2x64xf32>
    %565 = arith.addf %564, %563 : vector<2x64xf32>
    %566 = arith.divf %564, %565 : vector<2x64xf32>
    %567 = vector.extract_strided_slice %554 {offsets = [0, 128], sizes = [2, 64], strides = [1, 1]} : vector<2x256xf32> to vector<2x64xf32>
    %568 = math.tanh %567 : vector<2x64xf32>
    %569 = vector.extract_strided_slice %554 {offsets = [0, 192], sizes = [2, 64], strides = [1, 1]} : vector<2x256xf32> to vector<2x64xf32>
    %570 = arith.negf %569 : vector<2x64xf32>
    %571 = math.exp %570 : vector<2x64xf32>
    %cst_154 = arith.constant 1.000000e+00 : f32
    %572 = vector.broadcast %cst_154 : f32 to vector<2x64xf32>
    %573 = arith.addf %572, %571 : vector<2x64xf32>
    %574 = arith.divf %572, %573 : vector<2x64xf32>
    %575 = arith.mulf %566, %542 : vector<2x64xf32>
    %576 = arith.mulf %560, %568 : vector<2x64xf32>
    %577 = arith.addf %575, %576 : vector<2x64xf32>
    %578 = math.tanh %577 : vector<2x64xf32>
    %579 = arith.mulf %574, %578 : vector<2x64xf32>
    %c0_155 = arith.constant 0 : index
    %c0_156 = arith.constant 0 : index
    %c0_157 = arith.constant 0 : index
    %580 = vector.load %arg29[%c0_155, %c0_156, %c0_157] : memref<8x2x64xf32, #tpu.memory_space<vmem>>, vector<1x2x64xf32>
    %581 = vector.shape_cast %580 : vector<1x2x64xf32> to vector<2x64xf32>
    %582 = vector.shape_cast %579 : vector<2x64xf32> to vector<1x2x64xf32>
    tpu.vector_store %arg29[%c0_155, %c0_156, %c0_157], %582 {strides = array<i32>} : memref<8x2x64xf32, #tpu.memory_space<vmem>>, vector<1x2x64xf32>,
    %583 = vector.extract_strided_slice %550 {offsets = [1, 0, 0], sizes = [1, 2, 256], strides = [1, 1, 1]} : vector<8x2x256xf32> to vector<1x2x256xf32>
    %584 = vector.shape_cast %583 : vector<1x2x256xf32> to vector<2x256xf32>
    %cst_158 = arith.constant dense<0.000000e+00> : vector<2x256xf32>
    %585 = tpu.matmul %579, %543, %cst_158 {dimension_numbers = #tpu.dot_dimension_numbers<[1], [0], [0], [1], [0, 0, 1, 1], [], []>} : vector<2x64xf32>, vector<64x256xf32>, vector<2x256xf32> -> vector<2x256xf32>
    %586 = arith.addf %584, %585 : vector<2x256xf32>
    %587 = vector.extract_strided_slice %586 {offsets = [0, 0], sizes = [2, 64], strides = [1, 1]} : vector<2x256xf32> to vector<2x64xf32>
    %588 = arith.negf %587 : vector<2x64xf32>
    %589 = math.exp %588 : vector<2x64xf32>
    %cst_159 = arith.constant 1.000000e+00 : f32
    %590 = vector.broadcast %cst_159 : f32 to vector<2x64xf32>
    %591 = arith.addf %590, %589 : vector<2x64xf32>
    %592 = arith.divf %590, %591 : vector<2x64xf32>
    %593 = vector.extract_strided_slice %586 {offsets = [0, 64], sizes = [2, 64], strides = [1, 1]} : vector<2x256xf32> to vector<2x64xf32>
    %594 = arith.negf %593 : vector<2x64xf32>
    %595 = math.exp %594 : vector<2x64xf32>
    %cst_160 = arith.constant 1.000000e+00 : f32
    %596 = vector.broadcast %cst_160 : f32 to vector<2x64xf32>
    %597 = arith.addf %596, %595 : vector<2x64xf32>
    %598 = arith.divf %596, %597 : vector<2x64xf32>
    %599 = vector.extract_strided_slice %586 {offsets = [0, 128], sizes = [2, 64], strides = [1, 1]} : vector<2x256xf32> to vector<2x64xf32>
    %600 = math.tanh %599 : vector<2x64xf32>
    %601 = vector.extract_strided_slice %586 {offsets = [0, 192], sizes = [2, 64], strides = [1, 1]} : vector<2x256xf32> to vector<2x64xf32>
    %602 = arith.negf %601 : vector<2x64xf32>
    %603 = math.exp %602 : vector<2x64xf32>
    %cst_161 = arith.constant 1.000000e+00 : f32
    %604 = vector.broadcast %cst_161 : f32 to vector<2x64xf32>
    %605 = arith.addf %604, %603 : vector<2x64xf32>
    %606 = arith.divf %604, %605 : vector<2x64xf32>
    %607 = arith.mulf %598, %577 : vector<2x64xf32>
    %608 = arith.mulf %592, %600 : vector<2x64xf32>
    %609 = arith.addf %607, %608 : vector<2x64xf32>
    %610 = math.tanh %609 : vector<2x64xf32>
    %611 = arith.mulf %606, %610 : vector<2x64xf32>
    %c1_162 = arith.constant 1 : index
    %c0_163 = arith.constant 0 : index
    %c0_164 = arith.constant 0 : index
    %612 = vector.load %arg29[%c1_162, %c0_163, %c0_164] : memref<8x2x64xf32, #tpu.memory_space<vmem>>, vector<1x2x64xf32>
    %613 = vector.shape_cast %612 : vector<1x2x64xf32> to vector<2x64xf32>
    %614 = vector.shape_cast %611 : vector<2x64xf32> to vector<1x2x64xf32>
    tpu.vector_store %arg29[%c1_162, %c0_163, %c0_164], %614 {strides = array<i32>} : memref<8x2x64xf32, #tpu.memory_space<vmem>>, vector<1x2x64xf32>,
    %615 = vector.extract_strided_slice %550 {offsets = [2, 0, 0], sizes = [1, 2, 256], strides = [1, 1, 1]} : vector<8x2x256xf32> to vector<1x2x256xf32>
    %616 = vector.shape_cast %615 : vector<1x2x256xf32> to vector<2x256xf32>
    %cst_165 = arith.constant dense<0.000000e+00> : vector<2x256xf32>
    %617 = tpu.matmul %611, %543, %cst_165 {dimension_numbers = #tpu.dot_dimension_numbers<[1], [0], [0], [1], [0, 0, 1, 1], [], []>} : vector<2x64xf32>, vector<64x256xf32>, vector<2x256xf32> -> vector<2x256xf32>
    %618 = arith.addf %616, %617 : vector<2x256xf32>
    %619 = vector.extract_strided_slice %618 {offsets = [0, 0], sizes = [2, 64], strides = [1, 1]} : vector<2x256xf32> to vector<2x64xf32>
    %620 = arith.negf %619 : vector<2x64xf32>
    %621 = math.exp %620 : vector<2x64xf32>
    %cst_166 = arith.constant 1.000000e+00 : f32
    %622 = vector.broadcast %cst_166 : f32 to vector<2x64xf32>
    %623 = arith.addf %622, %621 : vector<2x64xf32>
    %624 = arith.divf %622, %623 : vector<2x64xf32>
    %625 = vector.extract_strided_slice %618 {offsets = [0, 64], sizes = [2, 64], strides = [1, 1]} : vector<2x256xf32> to vector<2x64xf32>
    %626 = arith.negf %625 : vector<2x64xf32>
    %627 = math.exp %626 : vector<2x64xf32>
    %cst_167 = arith.constant 1.000000e+00 : f32
    %628 = vector.broadcast %cst_167 : f32 to vector<2x64xf32>
    %629 = arith.addf %628, %627 : vector<2x64xf32>
    %630 = arith.divf %628, %629 : vector<2x64xf32>
    %631 = vector.extract_strided_slice %618 {offsets = [0, 128], sizes = [2, 64], strides = [1, 1]} : vector<2x256xf32> to vector<2x64xf32>
    %632 = math.tanh %631 : vector<2x64xf32>
    %633 = vector.extract_strided_slice %618 {offsets = [0, 192], sizes = [2, 64], strides = [1, 1]} : vector<2x256xf32> to vector<2x64xf32>
    %634 = arith.negf %633 : vector<2x64xf32>
    %635 = math.exp %634 : vector<2x64xf32>
    %cst_168 = arith.constant 1.000000e+00 : f32
    %636 = vector.broadcast %cst_168 : f32 to vector<2x64xf32>
    %637 = arith.addf %636, %635 : vector<2x64xf32>
    %638 = arith.divf %636, %637 : vector<2x64xf32>
    %639 = arith.mulf %630, %609 : vector<2x64xf32>
    %640 = arith.mulf %624, %632 : vector<2x64xf32>
    %641 = arith.addf %639, %640 : vector<2x64xf32>
    %642 = math.tanh %641 : vector<2x64xf32>
    %643 = arith.mulf %638, %642 : vector<2x64xf32>
    %c2_169 = arith.constant 2 : index
    %c0_170 = arith.constant 0 : index
    %c0_171 = arith.constant 0 : index
    %644 = vector.load %arg29[%c2_169, %c0_170, %c0_171] : memref<8x2x64xf32, #tpu.memory_space<vmem>>, vector<1x2x64xf32>
    %645 = vector.shape_cast %644 : vector<1x2x64xf32> to vector<2x64xf32>
    %646 = vector.shape_cast %643 : vector<2x64xf32> to vector<1x2x64xf32>
    tpu.vector_store %arg29[%c2_169, %c0_170, %c0_171], %646 {strides = array<i32>} : memref<8x2x64xf32, #tpu.memory_space<vmem>>, vector<1x2x64xf32>,
    %647 = vector.extract_strided_slice %550 {offsets = [3, 0, 0], sizes = [1, 2, 256], strides = [1, 1, 1]} : vector<8x2x256xf32> to vector<1x2x256xf32>
    %648 = vector.shape_cast %647 : vector<1x2x256xf32> to vector<2x256xf32>
    %cst_172 = arith.constant dense<0.000000e+00> : vector<2x256xf32>
    %649 = tpu.matmul %643, %543, %cst_172 {dimension_numbers = #tpu.dot_dimension_numbers<[1], [0], [0], [1], [0, 0, 1, 1], [], []>} : vector<2x64xf32>, vector<64x256xf32>, vector<2x256xf32> -> vector<2x256xf32>
    %650 = arith.addf %648, %649 : vector<2x256xf32>
    %651 = vector.extract_strided_slice %650 {offsets = [0, 0], sizes = [2, 64], strides = [1, 1]} : vector<2x256xf32> to vector<2x64xf32>
    %652 = arith.negf %651 : vector<2x64xf32>
    %653 = math.exp %652 : vector<2x64xf32>
    %cst_173 = arith.constant 1.000000e+00 : f32
    %654 = vector.broadcast %cst_173 : f32 to vector<2x64xf32>
    %655 = arith.addf %654, %653 : vector<2x64xf32>
    %656 = arith.divf %654, %655 : vector<2x64xf32>
    %657 = vector.extract_strided_slice %650 {offsets = [0, 64], sizes = [2, 64], strides = [1, 1]} : vector<2x256xf32> to vector<2x64xf32>
    %658 = arith.negf %657 : vector<2x64xf32>
    %659 = math.exp %658 : vector<2x64xf32>
    %cst_174 = arith.constant 1.000000e+00 : f32
    %660 = vector.broadcast %cst_174 : f32 to vector<2x64xf32>
    %661 = arith.addf %660, %659 : vector<2x64xf32>
    %662 = arith.divf %660, %661 : vector<2x64xf32>
    %663 = vector.extract_strided_slice %650 {offsets = [0, 128], sizes = [2, 64], strides = [1, 1]} : vector<2x256xf32> to vector<2x64xf32>
    %664 = math.tanh %663 : vector<2x64xf32>
    %665 = vector.extract_strided_slice %650 {offsets = [0, 192], sizes = [2, 64], strides = [1, 1]} : vector<2x256xf32> to vector<2x64xf32>
    %666 = arith.negf %665 : vector<2x64xf32>
    %667 = math.exp %666 : vector<2x64xf32>
    %cst_175 = arith.constant 1.000000e+00 : f32
    %668 = vector.broadcast %cst_175 : f32 to vector<2x64xf32>
    %669 = arith.addf %668, %667 : vector<2x64xf32>
    %670 = arith.divf %668, %669 : vector<2x64xf32>
    %671 = arith.mulf %662, %641 : vector<2x64xf32>
    %672 = arith.mulf %656, %664 : vector<2x64xf32>
    %673 = arith.addf %671, %672 : vector<2x64xf32>
    %674 = math.tanh %673 : vector<2x64xf32>
    %675 = arith.mulf %670, %674 : vector<2x64xf32>
    %c3_176 = arith.constant 3 : index
    %c0_177 = arith.constant 0 : index
    %c0_178 = arith.constant 0 : index
    %676 = vector.load %arg29[%c3_176, %c0_177, %c0_178] : memref<8x2x64xf32, #tpu.memory_space<vmem>>, vector<1x2x64xf32>
    %677 = vector.shape_cast %676 : vector<1x2x64xf32> to vector<2x64xf32>
    %678 = vector.shape_cast %675 : vector<2x64xf32> to vector<1x2x64xf32>
    tpu.vector_store %arg29[%c3_176, %c0_177, %c0_178], %678 {strides = array<i32>} : memref<8x2x64xf32, #tpu.memory_space<vmem>>, vector<1x2x64xf32>,
    %679 = vector.extract_strided_slice %550 {offsets = [4, 0, 0], sizes = [1, 2, 256], strides = [1, 1, 1]} : vector<8x2x256xf32> to vector<1x2x256xf32>
    %680 = vector.shape_cast %679 : vector<1x2x256xf32> to vector<2x256xf32>
    %cst_179 = arith.constant dense<0.000000e+00> : vector<2x256xf32>
    %681 = tpu.matmul %675, %543, %cst_179 {dimension_numbers = #tpu.dot_dimension_numbers<[1], [0], [0], [1], [0, 0, 1, 1], [], []>} : vector<2x64xf32>, vector<64x256xf32>, vector<2x256xf32> -> vector<2x256xf32>
    %682 = arith.addf %680, %681 : vector<2x256xf32>
    %683 = vector.extract_strided_slice %682 {offsets = [0, 0], sizes = [2, 64], strides = [1, 1]} : vector<2x256xf32> to vector<2x64xf32>
    %684 = arith.negf %683 : vector<2x64xf32>
    %685 = math.exp %684 : vector<2x64xf32>
    %cst_180 = arith.constant 1.000000e+00 : f32
    %686 = vector.broadcast %cst_180 : f32 to vector<2x64xf32>
    %687 = arith.addf %686, %685 : vector<2x64xf32>
    %688 = arith.divf %686, %687 : vector<2x64xf32>
    %689 = vector.extract_strided_slice %682 {offsets = [0, 64], sizes = [2, 64], strides = [1, 1]} : vector<2x256xf32> to vector<2x64xf32>
    %690 = arith.negf %689 : vector<2x64xf32>
    %691 = math.exp %690 : vector<2x64xf32>
    %cst_181 = arith.constant 1.000000e+00 : f32
    %692 = vector.broadcast %cst_181 : f32 to vector<2x64xf32>
    %693 = arith.addf %692, %691 : vector<2x64xf32>
    %694 = arith.divf %692, %693 : vector<2x64xf32>
    %695 = vector.extract_strided_slice %682 {offsets = [0, 128], sizes = [2, 64], strides = [1, 1]} : vector<2x256xf32> to vector<2x64xf32>
    %696 = math.tanh %695 : vector<2x64xf32>
    %697 = vector.extract_strided_slice %682 {offsets = [0, 192], sizes = [2, 64], strides = [1, 1]} : vector<2x256xf32> to vector<2x64xf32>
    %698 = arith.negf %697 : vector<2x64xf32>
    %699 = math.exp %698 : vector<2x64xf32>
    %cst_182 = arith.constant 1.000000e+00 : f32
    %700 = vector.broadcast %cst_182 : f32 to vector<2x64xf32>
    %701 = arith.addf %700, %699 : vector<2x64xf32>
    %702 = arith.divf %700, %701 : vector<2x64xf32>
    %703 = arith.mulf %694, %673 : vector<2x64xf32>
    %704 = arith.mulf %688, %696 : vector<2x64xf32>
    %705 = arith.addf %703, %704 : vector<2x64xf32>
    %706 = math.tanh %705 : vector<2x64xf32>
    %707 = arith.mulf %702, %706 : vector<2x64xf32>
    %c4_183 = arith.constant 4 : index
    %c0_184 = arith.constant 0 : index
    %c0_185 = arith.constant 0 : index
    %708 = vector.load %arg29[%c4_183, %c0_184, %c0_185] : memref<8x2x64xf32, #tpu.memory_space<vmem>>, vector<1x2x64xf32>
    %709 = vector.shape_cast %708 : vector<1x2x64xf32> to vector<2x64xf32>
    %710 = vector.shape_cast %707 : vector<2x64xf32> to vector<1x2x64xf32>
    tpu.vector_store %arg29[%c4_183, %c0_184, %c0_185], %710 {strides = array<i32>} : memref<8x2x64xf32, #tpu.memory_space<vmem>>, vector<1x2x64xf32>,
    %711 = vector.extract_strided_slice %550 {offsets = [5, 0, 0], sizes = [1, 2, 256], strides = [1, 1, 1]} : vector<8x2x256xf32> to vector<1x2x256xf32>
    %712 = vector.shape_cast %711 : vector<1x2x256xf32> to vector<2x256xf32>
    %cst_186 = arith.constant dense<0.000000e+00> : vector<2x256xf32>
    %713 = tpu.matmul %707, %543, %cst_186 {dimension_numbers = #tpu.dot_dimension_numbers<[1], [0], [0], [1], [0, 0, 1, 1], [], []>} : vector<2x64xf32>, vector<64x256xf32>, vector<2x256xf32> -> vector<2x256xf32>
    %714 = arith.addf %712, %713 : vector<2x256xf32>
    %715 = vector.extract_strided_slice %714 {offsets = [0, 0], sizes = [2, 64], strides = [1, 1]} : vector<2x256xf32> to vector<2x64xf32>
    %716 = arith.negf %715 : vector<2x64xf32>
    %717 = math.exp %716 : vector<2x64xf32>
    %cst_187 = arith.constant 1.000000e+00 : f32
    %718 = vector.broadcast %cst_187 : f32 to vector<2x64xf32>
    %719 = arith.addf %718, %717 : vector<2x64xf32>
    %720 = arith.divf %718, %719 : vector<2x64xf32>
    %721 = vector.extract_strided_slice %714 {offsets = [0, 64], sizes = [2, 64], strides = [1, 1]} : vector<2x256xf32> to vector<2x64xf32>
    %722 = arith.negf %721 : vector<2x64xf32>
    %723 = math.exp %722 : vector<2x64xf32>
    %cst_188 = arith.constant 1.000000e+00 : f32
    %724 = vector.broadcast %cst_188 : f32 to vector<2x64xf32>
    %725 = arith.addf %724, %723 : vector<2x64xf32>
    %726 = arith.divf %724, %725 : vector<2x64xf32>
    %727 = vector.extract_strided_slice %714 {offsets = [0, 128], sizes = [2, 64], strides = [1, 1]} : vector<2x256xf32> to vector<2x64xf32>
    %728 = math.tanh %727 : vector<2x64xf32>
    %729 = vector.extract_strided_slice %714 {offsets = [0, 192], sizes = [2, 64], strides = [1, 1]} : vector<2x256xf32> to vector<2x64xf32>
    %730 = arith.negf %729 : vector<2x64xf32>
    %731 = math.exp %730 : vector<2x64xf32>
    %cst_189 = arith.constant 1.000000e+00 : f32
    %732 = vector.broadcast %cst_189 : f32 to vector<2x64xf32>
    %733 = arith.addf %732, %731 : vector<2x64xf32>
    %734 = arith.divf %732, %733 : vector<2x64xf32>
    %735 = arith.mulf %726, %705 : vector<2x64xf32>
    %736 = arith.mulf %720, %728 : vector<2x64xf32>
    %737 = arith.addf %735, %736 : vector<2x64xf32>
    %738 = math.tanh %737 : vector<2x64xf32>
    %739 = arith.mulf %734, %738 : vector<2x64xf32>
    %c5_190 = arith.constant 5 : index
    %c0_191 = arith.constant 0 : index
    %c0_192 = arith.constant 0 : index
    %740 = vector.load %arg29[%c5_190, %c0_191, %c0_192] : memref<8x2x64xf32, #tpu.memory_space<vmem>>, vector<1x2x64xf32>
    %741 = vector.shape_cast %740 : vector<1x2x64xf32> to vector<2x64xf32>
    %742 = vector.shape_cast %739 : vector<2x64xf32> to vector<1x2x64xf32>
    tpu.vector_store %arg29[%c5_190, %c0_191, %c0_192], %742 {strides = array<i32>} : memref<8x2x64xf32, #tpu.memory_space<vmem>>, vector<1x2x64xf32>,
    %743 = vector.extract_strided_slice %550 {offsets = [6, 0, 0], sizes = [1, 2, 256], strides = [1, 1, 1]} : vector<8x2x256xf32> to vector<1x2x256xf32>
    %744 = vector.shape_cast %743 : vector<1x2x256xf32> to vector<2x256xf32>
    %cst_193 = arith.constant dense<0.000000e+00> : vector<2x256xf32>
    %745 = tpu.matmul %739, %543, %cst_193 {dimension_numbers = #tpu.dot_dimension_numbers<[1], [0], [0], [1], [0, 0, 1, 1], [], []>} : vector<2x64xf32>, vector<64x256xf32>, vector<2x256xf32> -> vector<2x256xf32>
    %746 = arith.addf %744, %745 : vector<2x256xf32>
    %747 = vector.extract_strided_slice %746 {offsets = [0, 0], sizes = [2, 64], strides = [1, 1]} : vector<2x256xf32> to vector<2x64xf32>
    %748 = arith.negf %747 : vector<2x64xf32>
    %749 = math.exp %748 : vector<2x64xf32>
    %cst_194 = arith.constant 1.000000e+00 : f32
    %750 = vector.broadcast %cst_194 : f32 to vector<2x64xf32>
    %751 = arith.addf %750, %749 : vector<2x64xf32>
    %752 = arith.divf %750, %751 : vector<2x64xf32>
    %753 = vector.extract_strided_slice %746 {offsets = [0, 64], sizes = [2, 64], strides = [1, 1]} : vector<2x256xf32> to vector<2x64xf32>
    %754 = arith.negf %753 : vector<2x64xf32>
    %755 = math.exp %754 : vector<2x64xf32>
    %cst_195 = arith.constant 1.000000e+00 : f32
    %756 = vector.broadcast %cst_195 : f32 to vector<2x64xf32>
    %757 = arith.addf %756, %755 : vector<2x64xf32>
    %758 = arith.divf %756, %757 : vector<2x64xf32>
    %759 = vector.extract_strided_slice %746 {offsets = [0, 128], sizes = [2, 64], strides = [1, 1]} : vector<2x256xf32> to vector<2x64xf32>
    %760 = math.tanh %759 : vector<2x64xf32>
    %761 = vector.extract_strided_slice %746 {offsets = [0, 192], sizes = [2, 64], strides = [1, 1]} : vector<2x256xf32> to vector<2x64xf32>
    %762 = arith.negf %761 : vector<2x64xf32>
    %763 = math.exp %762 : vector<2x64xf32>
    %cst_196 = arith.constant 1.000000e+00 : f32
    %764 = vector.broadcast %cst_196 : f32 to vector<2x64xf32>
    %765 = arith.addf %764, %763 : vector<2x64xf32>
    %766 = arith.divf %764, %765 : vector<2x64xf32>
    %767 = arith.mulf %758, %737 : vector<2x64xf32>
    %768 = arith.mulf %752, %760 : vector<2x64xf32>
    %769 = arith.addf %767, %768 : vector<2x64xf32>
    %770 = math.tanh %769 : vector<2x64xf32>
    %771 = arith.mulf %766, %770 : vector<2x64xf32>
    %c6_197 = arith.constant 6 : index
    %c0_198 = arith.constant 0 : index
    %c0_199 = arith.constant 0 : index
    %772 = vector.load %arg29[%c6_197, %c0_198, %c0_199] : memref<8x2x64xf32, #tpu.memory_space<vmem>>, vector<1x2x64xf32>
    %773 = vector.shape_cast %772 : vector<1x2x64xf32> to vector<2x64xf32>
    %774 = vector.shape_cast %771 : vector<2x64xf32> to vector<1x2x64xf32>
    tpu.vector_store %arg29[%c6_197, %c0_198, %c0_199], %774 {strides = array<i32>} : memref<8x2x64xf32, #tpu.memory_space<vmem>>, vector<1x2x64xf32>,
    %775 = vector.extract_strided_slice %550 {offsets = [7, 0, 0], sizes = [1, 2, 256], strides = [1, 1, 1]} : vector<8x2x256xf32> to vector<1x2x256xf32>
    %776 = vector.shape_cast %775 : vector<1x2x256xf32> to vector<2x256xf32>
    %cst_200 = arith.constant dense<0.000000e+00> : vector<2x256xf32>
    %777 = tpu.matmul %771, %543, %cst_200 {dimension_numbers = #tpu.dot_dimension_numbers<[1], [0], [0], [1], [0, 0, 1, 1], [], []>} : vector<2x64xf32>, vector<64x256xf32>, vector<2x256xf32> -> vector<2x256xf32>
    %778 = arith.addf %776, %777 : vector<2x256xf32>
    %779 = vector.extract_strided_slice %778 {offsets = [0, 0], sizes = [2, 64], strides = [1, 1]} : vector<2x256xf32> to vector<2x64xf32>
    %780 = arith.negf %779 : vector<2x64xf32>
    %781 = math.exp %780 : vector<2x64xf32>
    %cst_201 = arith.constant 1.000000e+00 : f32
    %782 = vector.broadcast %cst_201 : f32 to vector<2x64xf32>
    %783 = arith.addf %782, %781 : vector<2x64xf32>
    %784 = arith.divf %782, %783 : vector<2x64xf32>
    %785 = vector.extract_strided_slice %778 {offsets = [0, 64], sizes = [2, 64], strides = [1, 1]} : vector<2x256xf32> to vector<2x64xf32>
    %786 = arith.negf %785 : vector<2x64xf32>
    %787 = math.exp %786 : vector<2x64xf32>
    %cst_202 = arith.constant 1.000000e+00 : f32
    %788 = vector.broadcast %cst_202 : f32 to vector<2x64xf32>
    %789 = arith.addf %788, %787 : vector<2x64xf32>
    %790 = arith.divf %788, %789 : vector<2x64xf32>
    %791 = vector.extract_strided_slice %778 {offsets = [0, 128], sizes = [2, 64], strides = [1, 1]} : vector<2x256xf32> to vector<2x64xf32>
    %792 = math.tanh %791 : vector<2x64xf32>
    %793 = vector.extract_strided_slice %778 {offsets = [0, 192], sizes = [2, 64], strides = [1, 1]} : vector<2x256xf32> to vector<2x64xf32>
    %794 = arith.negf %793 : vector<2x64xf32>
    %795 = math.exp %794 : vector<2x64xf32>
    %cst_203 = arith.constant 1.000000e+00 : f32
    %796 = vector.broadcast %cst_203 : f32 to vector<2x64xf32>
    %797 = arith.addf %796, %795 : vector<2x64xf32>
    %798 = arith.divf %796, %797 : vector<2x64xf32>
    %799 = arith.mulf %790, %769 : vector<2x64xf32>
    %800 = arith.mulf %784, %792 : vector<2x64xf32>
    %801 = arith.addf %799, %800 : vector<2x64xf32>
    %802 = math.tanh %801 : vector<2x64xf32>
    %803 = arith.mulf %798, %802 : vector<2x64xf32>
    %c7_204 = arith.constant 7 : index
    %c0_205 = arith.constant 0 : index
    %c0_206 = arith.constant 0 : index
    %804 = vector.load %arg29[%c7_204, %c0_205, %c0_206] : memref<8x2x64xf32, #tpu.memory_space<vmem>>, vector<1x2x64xf32>
    %805 = vector.shape_cast %804 : vector<1x2x64xf32> to vector<2x64xf32>
    %806 = vector.shape_cast %803 : vector<2x64xf32> to vector<1x2x64xf32>
    tpu.vector_store %arg29[%c7_204, %c0_205, %c0_206], %806 {strides = array<i32>} : memref<8x2x64xf32, #tpu.memory_space<vmem>>, vector<1x2x64xf32>,
    %c0_207 = arith.constant 0 : index
    %c0_208 = arith.constant 0 : index
    %c0_209 = arith.constant 0 : index
    %807 = vector.load %arg29[%c0_207, %c0_208, %c0_209] : memref<8x2x64xf32, #tpu.memory_space<vmem>>, vector<8x2x64xf32>
    %c0_210 = arith.constant 0 : index
    %c0_211 = arith.constant 0 : index
    %808 = vector.load %arg10[%c0_210, %c0_211] : memref<64x256xf32, #tpu.memory_space<vmem>>, vector<64x256xf32>
    %c0_212 = arith.constant 0 : index
    %c0_213 = arith.constant 0 : index
    %809 = vector.load %arg13[%c0_212, %c0_213] : memref<1x256xf32, #tpu.memory_space<vmem>>, vector<1x256xf32>
    %810 = vector.shape_cast %807 : vector<8x2x64xf32> to vector<16x64xf32>
    %cst_214 = arith.constant dense<0.000000e+00> : vector<16x256xf32>
    %811 = tpu.matmul %810, %808, %cst_214 {dimension_numbers = #tpu.dot_dimension_numbers<[1], [0], [0], [1], [0, 0, 1, 1], [], []>} : vector<16x64xf32>, vector<64x256xf32>, vector<16x256xf32> -> vector<16x256xf32>
    %812 = vector.broadcast %809 : vector<1x256xf32> to vector<16x256xf32>
    %813 = arith.addf %811, %812 : vector<16x256xf32>
    %814 = vector.shape_cast %813 : vector<16x256xf32> to vector<8x2x256xf32>
    %c0_215 = arith.constant 0 : index
    %c0_216 = arith.constant 0 : index
    %815 = vector.load %arg11[%c0_215, %c0_216] : memref<32x128xf32, #tpu.memory_space<vmem>>, vector<32x128xf32>
    %c0_217 = arith.constant 0 : index
    %c0_218 = arith.constant 0 : index
    %816 = vector.load %arg12[%c0_217, %c0_218] : memref<32x128xf32, #tpu.memory_space<vmem>>, vector<32x128xf32>
    %c0_219 = arith.constant 0 : index
    %c0_220 = arith.constant 0 : index
    %817 = vector.load %arg24[%c0_219, %c0_220] : memref<2x32xf32, #tpu.memory_space<vmem>>, vector<2x32xf32>
    %c0_221 = arith.constant 0 : index
    %c0_222 = arith.constant 0 : index
    %818 = vector.load %arg25[%c0_221, %c0_222] : memref<2x32xf32, #tpu.memory_space<vmem>>, vector<2x32xf32>
    %c0_223 = arith.constant 0 : index
    %c0_224 = arith.constant 0 : index
    %819 = vector.load %arg24[%c0_223, %c0_224] : memref<2x32xf32, #tpu.memory_space<vmem>>, vector<2x32xf32>
    %c0_225 = arith.constant 0 : index
    %c0_226 = arith.constant 0 : index
    %820 = vector.load %arg25[%c0_225, %c0_226] : memref<2x32xf32, #tpu.memory_space<vmem>>, vector<2x32xf32>
    %821 = vector.extract_strided_slice %814 {offsets = [0, 0, 0], sizes = [1, 2, 256], strides = [1, 1, 1]} : vector<8x2x256xf32> to vector<1x2x256xf32>
    %822 = vector.shape_cast %821 : vector<1x2x256xf32> to vector<2x256xf32>
    %823 = vector.extract_strided_slice %822 {offsets = [0, 0], sizes = [2, 128], strides = [1, 1]} : vector<2x256xf32> to vector<2x128xf32>
    %cst_227 = arith.constant dense<0.000000e+00> : vector<2x128xf32>
    %824 = tpu.matmul %817, %815, %cst_227 {dimension_numbers = #tpu.dot_dimension_numbers<[1], [0], [0], [1], [0, 0, 1, 1], [], []>} : vector<2x32xf32>, vector<32x128xf32>, vector<2x128xf32> -> vector<2x128xf32>
    %825 = arith.addf %823, %824 : vector<2x128xf32>
    %826 = vector.extract_strided_slice %822 {offsets = [0, 128], sizes = [2, 128], strides = [1, 1]} : vector<2x256xf32> to vector<2x128xf32>
    %cst_228 = arith.constant dense<0.000000e+00> : vector<2x128xf32>
    %827 = tpu.matmul %819, %816, %cst_228 {dimension_numbers = #tpu.dot_dimension_numbers<[1], [0], [0], [1], [0, 0, 1, 1], [], []>} : vector<2x32xf32>, vector<32x128xf32>, vector<2x128xf32> -> vector<2x128xf32>
    %828 = arith.addf %826, %827 : vector<2x128xf32>
    %829 = vector.extract_strided_slice %825 {offsets = [0, 0], sizes = [2, 32], strides = [1, 1]} : vector<2x128xf32> to vector<2x32xf32>
    %830 = arith.negf %829 : vector<2x32xf32>
    %831 = math.exp %830 : vector<2x32xf32>
    %cst_229 = arith.constant 1.000000e+00 : f32
    %832 = vector.broadcast %cst_229 : f32 to vector<2x32xf32>
    %833 = arith.addf %832, %831 : vector<2x32xf32>
    %834 = arith.divf %832, %833 : vector<2x32xf32>
    %835 = vector.extract_strided_slice %825 {offsets = [0, 32], sizes = [2, 32], strides = [1, 1]} : vector<2x128xf32> to vector<2x32xf32>
    %836 = arith.negf %835 : vector<2x32xf32>
    %837 = math.exp %836 : vector<2x32xf32>
    %cst_230 = arith.constant 1.000000e+00 : f32
    %838 = vector.broadcast %cst_230 : f32 to vector<2x32xf32>
    %839 = arith.addf %838, %837 : vector<2x32xf32>
    %840 = arith.divf %838, %839 : vector<2x32xf32>
    %841 = vector.extract_strided_slice %825 {offsets = [0, 64], sizes = [2, 32], strides = [1, 1]} : vector<2x128xf32> to vector<2x32xf32>
    %842 = math.tanh %841 : vector<2x32xf32>
    %843 = vector.extract_strided_slice %825 {offsets = [0, 96], sizes = [2, 32], strides = [1, 1]} : vector<2x128xf32> to vector<2x32xf32>
    %844 = arith.negf %843 : vector<2x32xf32>
    %845 = math.exp %844 : vector<2x32xf32>
    %cst_231 = arith.constant 1.000000e+00 : f32
    %846 = vector.broadcast %cst_231 : f32 to vector<2x32xf32>
    %847 = arith.addf %846, %845 : vector<2x32xf32>
    %848 = arith.divf %846, %847 : vector<2x32xf32>
    %849 = arith.mulf %840, %818 : vector<2x32xf32>
    %850 = arith.mulf %834, %842 : vector<2x32xf32>
    %851 = arith.addf %849, %850 : vector<2x32xf32>
    %852 = math.tanh %851 : vector<2x32xf32>
    %853 = arith.mulf %848, %852 : vector<2x32xf32>
    %854 = vector.extract_strided_slice %828 {offsets = [0, 0], sizes = [2, 32], strides = [1, 1]} : vector<2x128xf32> to vector<2x32xf32>
    %855 = arith.negf %854 : vector<2x32xf32>
    %856 = math.exp %855 : vector<2x32xf32>
    %cst_232 = arith.constant 1.000000e+00 : f32
    %857 = vector.broadcast %cst_232 : f32 to vector<2x32xf32>
    %858 = arith.addf %857, %856 : vector<2x32xf32>
    %859 = arith.divf %857, %858 : vector<2x32xf32>
    %860 = vector.extract_strided_slice %828 {offsets = [0, 32], sizes = [2, 32], strides = [1, 1]} : vector<2x128xf32> to vector<2x32xf32>
    %861 = arith.negf %860 : vector<2x32xf32>
    %862 = math.exp %861 : vector<2x32xf32>
    %cst_233 = arith.constant 1.000000e+00 : f32
    %863 = vector.broadcast %cst_233 : f32 to vector<2x32xf32>
    %864 = arith.addf %863, %862 : vector<2x32xf32>
    %865 = arith.divf %863, %864 : vector<2x32xf32>
    %866 = vector.extract_strided_slice %828 {offsets = [0, 64], sizes = [2, 32], strides = [1, 1]} : vector<2x128xf32> to vector<2x32xf32>
    %867 = math.tanh %866 : vector<2x32xf32>
    %868 = vector.extract_strided_slice %828 {offsets = [0, 96], sizes = [2, 32], strides = [1, 1]} : vector<2x128xf32> to vector<2x32xf32>
    %869 = arith.negf %868 : vector<2x32xf32>
    %870 = math.exp %869 : vector<2x32xf32>
    %cst_234 = arith.constant 1.000000e+00 : f32
    %871 = vector.broadcast %cst_234 : f32 to vector<2x32xf32>
    %872 = arith.addf %871, %870 : vector<2x32xf32>
    %873 = arith.divf %871, %872 : vector<2x32xf32>
    %874 = arith.mulf %865, %820 : vector<2x32xf32>
    %875 = arith.mulf %859, %867 : vector<2x32xf32>
    %876 = arith.addf %874, %875 : vector<2x32xf32>
    %877 = math.tanh %876 : vector<2x32xf32>
    %878 = arith.mulf %873, %877 : vector<2x32xf32>
    %879 = vector.extract_strided_slice %814 {offsets = [1, 0, 0], sizes = [1, 2, 256], strides = [1, 1, 1]} : vector<8x2x256xf32> to vector<1x2x256xf32>
    %880 = vector.shape_cast %879 : vector<1x2x256xf32> to vector<2x256xf32>
    %881 = vector.extract_strided_slice %880 {offsets = [0, 0], sizes = [2, 128], strides = [1, 1]} : vector<2x256xf32> to vector<2x128xf32>
    %cst_235 = arith.constant dense<0.000000e+00> : vector<2x128xf32>
    %882 = tpu.matmul %853, %815, %cst_235 {dimension_numbers = #tpu.dot_dimension_numbers<[1], [0], [0], [1], [0, 0, 1, 1], [], []>} : vector<2x32xf32>, vector<32x128xf32>, vector<2x128xf32> -> vector<2x128xf32>
    %883 = arith.addf %881, %882 : vector<2x128xf32>
    %884 = vector.extract_strided_slice %880 {offsets = [0, 128], sizes = [2, 128], strides = [1, 1]} : vector<2x256xf32> to vector<2x128xf32>
    %cst_236 = arith.constant dense<0.000000e+00> : vector<2x128xf32>
    %885 = tpu.matmul %878, %816, %cst_236 {dimension_numbers = #tpu.dot_dimension_numbers<[1], [0], [0], [1], [0, 0, 1, 1], [], []>} : vector<2x32xf32>, vector<32x128xf32>, vector<2x128xf32> -> vector<2x128xf32>
    %886 = arith.addf %884, %885 : vector<2x128xf32>
    %887 = vector.extract_strided_slice %883 {offsets = [0, 0], sizes = [2, 32], strides = [1, 1]} : vector<2x128xf32> to vector<2x32xf32>
    %888 = arith.negf %887 : vector<2x32xf32>
    %889 = math.exp %888 : vector<2x32xf32>
    %cst_237 = arith.constant 1.000000e+00 : f32
    %890 = vector.broadcast %cst_237 : f32 to vector<2x32xf32>
    %891 = arith.addf %890, %889 : vector<2x32xf32>
    %892 = arith.divf %890, %891 : vector<2x32xf32>
    %893 = vector.extract_strided_slice %883 {offsets = [0, 32], sizes = [2, 32], strides = [1, 1]} : vector<2x128xf32> to vector<2x32xf32>
    %894 = arith.negf %893 : vector<2x32xf32>
    %895 = math.exp %894 : vector<2x32xf32>
    %cst_238 = arith.constant 1.000000e+00 : f32
    %896 = vector.broadcast %cst_238 : f32 to vector<2x32xf32>
    %897 = arith.addf %896, %895 : vector<2x32xf32>
    %898 = arith.divf %896, %897 : vector<2x32xf32>
    %899 = vector.extract_strided_slice %883 {offsets = [0, 64], sizes = [2, 32], strides = [1, 1]} : vector<2x128xf32> to vector<2x32xf32>
    %900 = math.tanh %899 : vector<2x32xf32>
    %901 = vector.extract_strided_slice %883 {offsets = [0, 96], sizes = [2, 32], strides = [1, 1]} : vector<2x128xf32> to vector<2x32xf32>
    %902 = arith.negf %901 : vector<2x32xf32>
    %903 = math.exp %902 : vector<2x32xf32>
    %cst_239 = arith.constant 1.000000e+00 : f32
    %904 = vector.broadcast %cst_239 : f32 to vector<2x32xf32>
    %905 = arith.addf %904, %903 : vector<2x32xf32>
    %906 = arith.divf %904, %905 : vector<2x32xf32>
    %907 = arith.mulf %898, %851 : vector<2x32xf32>
    %908 = arith.mulf %892, %900 : vector<2x32xf32>
    %909 = arith.addf %907, %908 : vector<2x32xf32>
    %910 = math.tanh %909 : vector<2x32xf32>
    %911 = arith.mulf %906, %910 : vector<2x32xf32>
    %912 = vector.extract_strided_slice %886 {offsets = [0, 0], sizes = [2, 32], strides = [1, 1]} : vector<2x128xf32> to vector<2x32xf32>
    %913 = arith.negf %912 : vector<2x32xf32>
    %914 = math.exp %913 : vector<2x32xf32>
    %cst_240 = arith.constant 1.000000e+00 : f32
    %915 = vector.broadcast %cst_240 : f32 to vector<2x32xf32>
    %916 = arith.addf %915, %914 : vector<2x32xf32>
    %917 = arith.divf %915, %916 : vector<2x32xf32>
    %918 = vector.extract_strided_slice %886 {offsets = [0, 32], sizes = [2, 32], strides = [1, 1]} : vector<2x128xf32> to vector<2x32xf32>
    %919 = arith.negf %918 : vector<2x32xf32>
    %920 = math.exp %919 : vector<2x32xf32>
    %cst_241 = arith.constant 1.000000e+00 : f32
    %921 = vector.broadcast %cst_241 : f32 to vector<2x32xf32>
    %922 = arith.addf %921, %920 : vector<2x32xf32>
    %923 = arith.divf %921, %922 : vector<2x32xf32>
    %924 = vector.extract_strided_slice %886 {offsets = [0, 64], sizes = [2, 32], strides = [1, 1]} : vector<2x128xf32> to vector<2x32xf32>
    %925 = math.tanh %924 : vector<2x32xf32>
    %926 = vector.extract_strided_slice %886 {offsets = [0, 96], sizes = [2, 32], strides = [1, 1]} : vector<2x128xf32> to vector<2x32xf32>
    %927 = arith.negf %926 : vector<2x32xf32>
    %928 = math.exp %927 : vector<2x32xf32>
    %cst_242 = arith.constant 1.000000e+00 : f32
    %929 = vector.broadcast %cst_242 : f32 to vector<2x32xf32>
    %930 = arith.addf %929, %928 : vector<2x32xf32>
    %931 = arith.divf %929, %930 : vector<2x32xf32>
    %932 = arith.mulf %923, %876 : vector<2x32xf32>
    %933 = arith.mulf %917, %925 : vector<2x32xf32>
    %934 = arith.addf %932, %933 : vector<2x32xf32>
    %935 = math.tanh %934 : vector<2x32xf32>
    %936 = arith.mulf %931, %935 : vector<2x32xf32>
    %937 = vector.extract_strided_slice %814 {offsets = [2, 0, 0], sizes = [1, 2, 256], strides = [1, 1, 1]} : vector<8x2x256xf32> to vector<1x2x256xf32>
    %938 = vector.shape_cast %937 : vector<1x2x256xf32> to vector<2x256xf32>
    %939 = vector.extract_strided_slice %938 {offsets = [0, 0], sizes = [2, 128], strides = [1, 1]} : vector<2x256xf32> to vector<2x128xf32>
    %cst_243 = arith.constant dense<0.000000e+00> : vector<2x128xf32>
    %940 = tpu.matmul %911, %815, %cst_243 {dimension_numbers = #tpu.dot_dimension_numbers<[1], [0], [0], [1], [0, 0, 1, 1], [], []>} : vector<2x32xf32>, vector<32x128xf32>, vector<2x128xf32> -> vector<2x128xf32>
    %941 = arith.addf %939, %940 : vector<2x128xf32>
    %942 = vector.extract_strided_slice %938 {offsets = [0, 128], sizes = [2, 128], strides = [1, 1]} : vector<2x256xf32> to vector<2x128xf32>
    %cst_244 = arith.constant dense<0.000000e+00> : vector<2x128xf32>
    %943 = tpu.matmul %936, %816, %cst_244 {dimension_numbers = #tpu.dot_dimension_numbers<[1], [0], [0], [1], [0, 0, 1, 1], [], []>} : vector<2x32xf32>, vector<32x128xf32>, vector<2x128xf32> -> vector<2x128xf32>
    %944 = arith.addf %942, %943 : vector<2x128xf32>
    %945 = vector.extract_strided_slice %941 {offsets = [0, 0], sizes = [2, 32], strides = [1, 1]} : vector<2x128xf32> to vector<2x32xf32>
    %946 = arith.negf %945 : vector<2x32xf32>
    %947 = math.exp %946 : vector<2x32xf32>
    %cst_245 = arith.constant 1.000000e+00 : f32
    %948 = vector.broadcast %cst_245 : f32 to vector<2x32xf32>
    %949 = arith.addf %948, %947 : vector<2x32xf32>
    %950 = arith.divf %948, %949 : vector<2x32xf32>
    %951 = vector.extract_strided_slice %941 {offsets = [0, 32], sizes = [2, 32], strides = [1, 1]} : vector<2x128xf32> to vector<2x32xf32>
    %952 = arith.negf %951 : vector<2x32xf32>
    %953 = math.exp %952 : vector<2x32xf32>
    %cst_246 = arith.constant 1.000000e+00 : f32
    %954 = vector.broadcast %cst_246 : f32 to vector<2x32xf32>
    %955 = arith.addf %954, %953 : vector<2x32xf32>
    %956 = arith.divf %954, %955 : vector<2x32xf32>
    %957 = vector.extract_strided_slice %941 {offsets = [0, 64], sizes = [2, 32], strides = [1, 1]} : vector<2x128xf32> to vector<2x32xf32>
    %958 = math.tanh %957 : vector<2x32xf32>
    %959 = vector.extract_strided_slice %941 {offsets = [0, 96], sizes = [2, 32], strides = [1, 1]} : vector<2x128xf32> to vector<2x32xf32>
    %960 = arith.negf %959 : vector<2x32xf32>
    %961 = math.exp %960 : vector<2x32xf32>
    %cst_247 = arith.constant 1.000000e+00 : f32
    %962 = vector.broadcast %cst_247 : f32 to vector<2x32xf32>
    %963 = arith.addf %962, %961 : vector<2x32xf32>
    %964 = arith.divf %962, %963 : vector<2x32xf32>
    %965 = arith.mulf %956, %909 : vector<2x32xf32>
    %966 = arith.mulf %950, %958 : vector<2x32xf32>
    %967 = arith.addf %965, %966 : vector<2x32xf32>
    %968 = math.tanh %967 : vector<2x32xf32>
    %969 = arith.mulf %964, %968 : vector<2x32xf32>
    %970 = vector.extract_strided_slice %944 {offsets = [0, 0], sizes = [2, 32], strides = [1, 1]} : vector<2x128xf32> to vector<2x32xf32>
    %971 = arith.negf %970 : vector<2x32xf32>
    %972 = math.exp %971 : vector<2x32xf32>
    %cst_248 = arith.constant 1.000000e+00 : f32
    %973 = vector.broadcast %cst_248 : f32 to vector<2x32xf32>
    %974 = arith.addf %973, %972 : vector<2x32xf32>
    %975 = arith.divf %973, %974 : vector<2x32xf32>
    %976 = vector.extract_strided_slice %944 {offsets = [0, 32], sizes = [2, 32], strides = [1, 1]} : vector<2x128xf32> to vector<2x32xf32>
    %977 = arith.negf %976 : vector<2x32xf32>
    %978 = math.exp %977 : vector<2x32xf32>
    %cst_249 = arith.constant 1.000000e+00 : f32
    %979 = vector.broadcast %cst_249 : f32 to vector<2x32xf32>
    %980 = arith.addf %979, %978 : vector<2x32xf32>
    %981 = arith.divf %979, %980 : vector<2x32xf32>
    %982 = vector.extract_strided_slice %944 {offsets = [0, 64], sizes = [2, 32], strides = [1, 1]} : vector<2x128xf32> to vector<2x32xf32>
    %983 = math.tanh %982 : vector<2x32xf32>
    %984 = vector.extract_strided_slice %944 {offsets = [0, 96], sizes = [2, 32], strides = [1, 1]} : vector<2x128xf32> to vector<2x32xf32>
    %985 = arith.negf %984 : vector<2x32xf32>
    %986 = math.exp %985 : vector<2x32xf32>
    %cst_250 = arith.constant 1.000000e+00 : f32
    %987 = vector.broadcast %cst_250 : f32 to vector<2x32xf32>
    %988 = arith.addf %987, %986 : vector<2x32xf32>
    %989 = arith.divf %987, %988 : vector<2x32xf32>
    %990 = arith.mulf %981, %934 : vector<2x32xf32>
    %991 = arith.mulf %975, %983 : vector<2x32xf32>
    %992 = arith.addf %990, %991 : vector<2x32xf32>
    %993 = math.tanh %992 : vector<2x32xf32>
    %994 = arith.mulf %989, %993 : vector<2x32xf32>
    %995 = vector.extract_strided_slice %814 {offsets = [3, 0, 0], sizes = [1, 2, 256], strides = [1, 1, 1]} : vector<8x2x256xf32> to vector<1x2x256xf32>
    %996 = vector.shape_cast %995 : vector<1x2x256xf32> to vector<2x256xf32>
    %997 = vector.extract_strided_slice %996 {offsets = [0, 0], sizes = [2, 128], strides = [1, 1]} : vector<2x256xf32> to vector<2x128xf32>
    %cst_251 = arith.constant dense<0.000000e+00> : vector<2x128xf32>
    %998 = tpu.matmul %969, %815, %cst_251 {dimension_numbers = #tpu.dot_dimension_numbers<[1], [0], [0], [1], [0, 0, 1, 1], [], []>} : vector<2x32xf32>, vector<32x128xf32>, vector<2x128xf32> -> vector<2x128xf32>
    %999 = arith.addf %997, %998 : vector<2x128xf32>
    %1000 = vector.extract_strided_slice %996 {offsets = [0, 128], sizes = [2, 128], strides = [1, 1]} : vector<2x256xf32> to vector<2x128xf32>
    %cst_252 = arith.constant dense<0.000000e+00> : vector<2x128xf32>
    %1001 = tpu.matmul %994, %816, %cst_252 {dimension_numbers = #tpu.dot_dimension_numbers<[1], [0], [0], [1], [0, 0, 1, 1], [], []>} : vector<2x32xf32>, vector<32x128xf32>, vector<2x128xf32> -> vector<2x128xf32>
    %1002 = arith.addf %1000, %1001 : vector<2x128xf32>
    %1003 = vector.extract_strided_slice %999 {offsets = [0, 0], sizes = [2, 32], strides = [1, 1]} : vector<2x128xf32> to vector<2x32xf32>
    %1004 = arith.negf %1003 : vector<2x32xf32>
    %1005 = math.exp %1004 : vector<2x32xf32>
    %cst_253 = arith.constant 1.000000e+00 : f32
    %1006 = vector.broadcast %cst_253 : f32 to vector<2x32xf32>
    %1007 = arith.addf %1006, %1005 : vector<2x32xf32>
    %1008 = arith.divf %1006, %1007 : vector<2x32xf32>
    %1009 = vector.extract_strided_slice %999 {offsets = [0, 32], sizes = [2, 32], strides = [1, 1]} : vector<2x128xf32> to vector<2x32xf32>
    %1010 = arith.negf %1009 : vector<2x32xf32>
    %1011 = math.exp %1010 : vector<2x32xf32>
    %cst_254 = arith.constant 1.000000e+00 : f32
    %1012 = vector.broadcast %cst_254 : f32 to vector<2x32xf32>
    %1013 = arith.addf %1012, %1011 : vector<2x32xf32>
    %1014 = arith.divf %1012, %1013 : vector<2x32xf32>
    %1015 = vector.extract_strided_slice %999 {offsets = [0, 64], sizes = [2, 32], strides = [1, 1]} : vector<2x128xf32> to vector<2x32xf32>
    %1016 = math.tanh %1015 : vector<2x32xf32>
    %1017 = vector.extract_strided_slice %999 {offsets = [0, 96], sizes = [2, 32], strides = [1, 1]} : vector<2x128xf32> to vector<2x32xf32>
    %1018 = arith.negf %1017 : vector<2x32xf32>
    %1019 = math.exp %1018 : vector<2x32xf32>
    %cst_255 = arith.constant 1.000000e+00 : f32
    %1020 = vector.broadcast %cst_255 : f32 to vector<2x32xf32>
    %1021 = arith.addf %1020, %1019 : vector<2x32xf32>
    %1022 = arith.divf %1020, %1021 : vector<2x32xf32>
    %1023 = arith.mulf %1014, %967 : vector<2x32xf32>
    %1024 = arith.mulf %1008, %1016 : vector<2x32xf32>
    %1025 = arith.addf %1023, %1024 : vector<2x32xf32>
    %1026 = math.tanh %1025 : vector<2x32xf32>
    %1027 = arith.mulf %1022, %1026 : vector<2x32xf32>
    %1028 = vector.extract_strided_slice %1002 {offsets = [0, 0], sizes = [2, 32], strides = [1, 1]} : vector<2x128xf32> to vector<2x32xf32>
    %1029 = arith.negf %1028 : vector<2x32xf32>
    %1030 = math.exp %1029 : vector<2x32xf32>
    %cst_256 = arith.constant 1.000000e+00 : f32
    %1031 = vector.broadcast %cst_256 : f32 to vector<2x32xf32>
    %1032 = arith.addf %1031, %1030 : vector<2x32xf32>
    %1033 = arith.divf %1031, %1032 : vector<2x32xf32>
    %1034 = vector.extract_strided_slice %1002 {offsets = [0, 32], sizes = [2, 32], strides = [1, 1]} : vector<2x128xf32> to vector<2x32xf32>
    %1035 = arith.negf %1034 : vector<2x32xf32>
    %1036 = math.exp %1035 : vector<2x32xf32>
    %cst_257 = arith.constant 1.000000e+00 : f32
    %1037 = vector.broadcast %cst_257 : f32 to vector<2x32xf32>
    %1038 = arith.addf %1037, %1036 : vector<2x32xf32>
    %1039 = arith.divf %1037, %1038 : vector<2x32xf32>
    %1040 = vector.extract_strided_slice %1002 {offsets = [0, 64], sizes = [2, 32], strides = [1, 1]} : vector<2x128xf32> to vector<2x32xf32>
    %1041 = math.tanh %1040 : vector<2x32xf32>
    %1042 = vector.extract_strided_slice %1002 {offsets = [0, 96], sizes = [2, 32], strides = [1, 1]} : vector<2x128xf32> to vector<2x32xf32>
    %1043 = arith.negf %1042 : vector<2x32xf32>
    %1044 = math.exp %1043 : vector<2x32xf32>
    %cst_258 = arith.constant 1.000000e+00 : f32
    %1045 = vector.broadcast %cst_258 : f32 to vector<2x32xf32>
    %1046 = arith.addf %1045, %1044 : vector<2x32xf32>
    %1047 = arith.divf %1045, %1046 : vector<2x32xf32>
    %1048 = arith.mulf %1039, %992 : vector<2x32xf32>
    %1049 = arith.mulf %1033, %1041 : vector<2x32xf32>
    %1050 = arith.addf %1048, %1049 : vector<2x32xf32>
    %1051 = math.tanh %1050 : vector<2x32xf32>
    %1052 = arith.mulf %1047, %1051 : vector<2x32xf32>
    %1053 = vector.extract_strided_slice %814 {offsets = [4, 0, 0], sizes = [1, 2, 256], strides = [1, 1, 1]} : vector<8x2x256xf32> to vector<1x2x256xf32>
    %1054 = vector.shape_cast %1053 : vector<1x2x256xf32> to vector<2x256xf32>
    %1055 = vector.extract_strided_slice %1054 {offsets = [0, 0], sizes = [2, 128], strides = [1, 1]} : vector<2x256xf32> to vector<2x128xf32>
    %cst_259 = arith.constant dense<0.000000e+00> : vector<2x128xf32>
    %1056 = tpu.matmul %1027, %815, %cst_259 {dimension_numbers = #tpu.dot_dimension_numbers<[1], [0], [0], [1], [0, 0, 1, 1], [], []>} : vector<2x32xf32>, vector<32x128xf32>, vector<2x128xf32> -> vector<2x128xf32>
    %1057 = arith.addf %1055, %1056 : vector<2x128xf32>
    %1058 = vector.extract_strided_slice %1054 {offsets = [0, 128], sizes = [2, 128], strides = [1, 1]} : vector<2x256xf32> to vector<2x128xf32>
    %cst_260 = arith.constant dense<0.000000e+00> : vector<2x128xf32>
    %1059 = tpu.matmul %1052, %816, %cst_260 {dimension_numbers = #tpu.dot_dimension_numbers<[1], [0], [0], [1], [0, 0, 1, 1], [], []>} : vector<2x32xf32>, vector<32x128xf32>, vector<2x128xf32> -> vector<2x128xf32>
    %1060 = arith.addf %1058, %1059 : vector<2x128xf32>
    %1061 = vector.extract_strided_slice %1057 {offsets = [0, 0], sizes = [2, 32], strides = [1, 1]} : vector<2x128xf32> to vector<2x32xf32>
    %1062 = arith.negf %1061 : vector<2x32xf32>
    %1063 = math.exp %1062 : vector<2x32xf32>
    %cst_261 = arith.constant 1.000000e+00 : f32
    %1064 = vector.broadcast %cst_261 : f32 to vector<2x32xf32>
    %1065 = arith.addf %1064, %1063 : vector<2x32xf32>
    %1066 = arith.divf %1064, %1065 : vector<2x32xf32>
    %1067 = vector.extract_strided_slice %1057 {offsets = [0, 32], sizes = [2, 32], strides = [1, 1]} : vector<2x128xf32> to vector<2x32xf32>
    %1068 = arith.negf %1067 : vector<2x32xf32>
    %1069 = math.exp %1068 : vector<2x32xf32>
    %cst_262 = arith.constant 1.000000e+00 : f32
    %1070 = vector.broadcast %cst_262 : f32 to vector<2x32xf32>
    %1071 = arith.addf %1070, %1069 : vector<2x32xf32>
    %1072 = arith.divf %1070, %1071 : vector<2x32xf32>
    %1073 = vector.extract_strided_slice %1057 {offsets = [0, 64], sizes = [2, 32], strides = [1, 1]} : vector<2x128xf32> to vector<2x32xf32>
    %1074 = math.tanh %1073 : vector<2x32xf32>
    %1075 = vector.extract_strided_slice %1057 {offsets = [0, 96], sizes = [2, 32], strides = [1, 1]} : vector<2x128xf32> to vector<2x32xf32>
    %1076 = arith.negf %1075 : vector<2x32xf32>
    %1077 = math.exp %1076 : vector<2x32xf32>
    %cst_263 = arith.constant 1.000000e+00 : f32
    %1078 = vector.broadcast %cst_263 : f32 to vector<2x32xf32>
    %1079 = arith.addf %1078, %1077 : vector<2x32xf32>
    %1080 = arith.divf %1078, %1079 : vector<2x32xf32>
    %1081 = arith.mulf %1072, %1025 : vector<2x32xf32>
    %1082 = arith.mulf %1066, %1074 : vector<2x32xf32>
    %1083 = arith.addf %1081, %1082 : vector<2x32xf32>
    %1084 = math.tanh %1083 : vector<2x32xf32>
    %1085 = arith.mulf %1080, %1084 : vector<2x32xf32>
    %1086 = vector.extract_strided_slice %1060 {offsets = [0, 0], sizes = [2, 32], strides = [1, 1]} : vector<2x128xf32> to vector<2x32xf32>
    %1087 = arith.negf %1086 : vector<2x32xf32>
    %1088 = math.exp %1087 : vector<2x32xf32>
    %cst_264 = arith.constant 1.000000e+00 : f32
    %1089 = vector.broadcast %cst_264 : f32 to vector<2x32xf32>
    %1090 = arith.addf %1089, %1088 : vector<2x32xf32>
    %1091 = arith.divf %1089, %1090 : vector<2x32xf32>
    %1092 = vector.extract_strided_slice %1060 {offsets = [0, 32], sizes = [2, 32], strides = [1, 1]} : vector<2x128xf32> to vector<2x32xf32>
    %1093 = arith.negf %1092 : vector<2x32xf32>
    %1094 = math.exp %1093 : vector<2x32xf32>
    %cst_265 = arith.constant 1.000000e+00 : f32
    %1095 = vector.broadcast %cst_265 : f32 to vector<2x32xf32>
    %1096 = arith.addf %1095, %1094 : vector<2x32xf32>
    %1097 = arith.divf %1095, %1096 : vector<2x32xf32>
    %1098 = vector.extract_strided_slice %1060 {offsets = [0, 64], sizes = [2, 32], strides = [1, 1]} : vector<2x128xf32> to vector<2x32xf32>
    %1099 = math.tanh %1098 : vector<2x32xf32>
    %1100 = vector.extract_strided_slice %1060 {offsets = [0, 96], sizes = [2, 32], strides = [1, 1]} : vector<2x128xf32> to vector<2x32xf32>
    %1101 = arith.negf %1100 : vector<2x32xf32>
    %1102 = math.exp %1101 : vector<2x32xf32>
    %cst_266 = arith.constant 1.000000e+00 : f32
    %1103 = vector.broadcast %cst_266 : f32 to vector<2x32xf32>
    %1104 = arith.addf %1103, %1102 : vector<2x32xf32>
    %1105 = arith.divf %1103, %1104 : vector<2x32xf32>
    %1106 = arith.mulf %1097, %1050 : vector<2x32xf32>
    %1107 = arith.mulf %1091, %1099 : vector<2x32xf32>
    %1108 = arith.addf %1106, %1107 : vector<2x32xf32>
    %1109 = math.tanh %1108 : vector<2x32xf32>
    %1110 = arith.mulf %1105, %1109 : vector<2x32xf32>
    %1111 = vector.extract_strided_slice %814 {offsets = [5, 0, 0], sizes = [1, 2, 256], strides = [1, 1, 1]} : vector<8x2x256xf32> to vector<1x2x256xf32>
    %1112 = vector.shape_cast %1111 : vector<1x2x256xf32> to vector<2x256xf32>
    %1113 = vector.extract_strided_slice %1112 {offsets = [0, 0], sizes = [2, 128], strides = [1, 1]} : vector<2x256xf32> to vector<2x128xf32>
    %cst_267 = arith.constant dense<0.000000e+00> : vector<2x128xf32>
    %1114 = tpu.matmul %1085, %815, %cst_267 {dimension_numbers = #tpu.dot_dimension_numbers<[1], [0], [0], [1], [0, 0, 1, 1], [], []>} : vector<2x32xf32>, vector<32x128xf32>, vector<2x128xf32> -> vector<2x128xf32>
    %1115 = arith.addf %1113, %1114 : vector<2x128xf32>
    %1116 = vector.extract_strided_slice %1112 {offsets = [0, 128], sizes = [2, 128], strides = [1, 1]} : vector<2x256xf32> to vector<2x128xf32>
    %cst_268 = arith.constant dense<0.000000e+00> : vector<2x128xf32>
    %1117 = tpu.matmul %1110, %816, %cst_268 {dimension_numbers = #tpu.dot_dimension_numbers<[1], [0], [0], [1], [0, 0, 1, 1], [], []>} : vector<2x32xf32>, vector<32x128xf32>, vector<2x128xf32> -> vector<2x128xf32>
    %1118 = arith.addf %1116, %1117 : vector<2x128xf32>
    %1119 = vector.extract_strided_slice %1115 {offsets = [0, 0], sizes = [2, 32], strides = [1, 1]} : vector<2x128xf32> to vector<2x32xf32>
    %1120 = arith.negf %1119 : vector<2x32xf32>
    %1121 = math.exp %1120 : vector<2x32xf32>
    %cst_269 = arith.constant 1.000000e+00 : f32
    %1122 = vector.broadcast %cst_269 : f32 to vector<2x32xf32>
    %1123 = arith.addf %1122, %1121 : vector<2x32xf32>
    %1124 = arith.divf %1122, %1123 : vector<2x32xf32>
    %1125 = vector.extract_strided_slice %1115 {offsets = [0, 32], sizes = [2, 32], strides = [1, 1]} : vector<2x128xf32> to vector<2x32xf32>
    %1126 = arith.negf %1125 : vector<2x32xf32>
    %1127 = math.exp %1126 : vector<2x32xf32>
    %cst_270 = arith.constant 1.000000e+00 : f32
    %1128 = vector.broadcast %cst_270 : f32 to vector<2x32xf32>
    %1129 = arith.addf %1128, %1127 : vector<2x32xf32>
    %1130 = arith.divf %1128, %1129 : vector<2x32xf32>
    %1131 = vector.extract_strided_slice %1115 {offsets = [0, 64], sizes = [2, 32], strides = [1, 1]} : vector<2x128xf32> to vector<2x32xf32>
    %1132 = math.tanh %1131 : vector<2x32xf32>
    %1133 = vector.extract_strided_slice %1115 {offsets = [0, 96], sizes = [2, 32], strides = [1, 1]} : vector<2x128xf32> to vector<2x32xf32>
    %1134 = arith.negf %1133 : vector<2x32xf32>
    %1135 = math.exp %1134 : vector<2x32xf32>
    %cst_271 = arith.constant 1.000000e+00 : f32
    %1136 = vector.broadcast %cst_271 : f32 to vector<2x32xf32>
    %1137 = arith.addf %1136, %1135 : vector<2x32xf32>
    %1138 = arith.divf %1136, %1137 : vector<2x32xf32>
    %1139 = arith.mulf %1130, %1083 : vector<2x32xf32>
    %1140 = arith.mulf %1124, %1132 : vector<2x32xf32>
    %1141 = arith.addf %1139, %1140 : vector<2x32xf32>
    %1142 = math.tanh %1141 : vector<2x32xf32>
    %1143 = arith.mulf %1138, %1142 : vector<2x32xf32>
    %1144 = vector.extract_strided_slice %1118 {offsets = [0, 0], sizes = [2, 32], strides = [1, 1]} : vector<2x128xf32> to vector<2x32xf32>
    %1145 = arith.negf %1144 : vector<2x32xf32>
    %1146 = math.exp %1145 : vector<2x32xf32>
    %cst_272 = arith.constant 1.000000e+00 : f32
    %1147 = vector.broadcast %cst_272 : f32 to vector<2x32xf32>
    %1148 = arith.addf %1147, %1146 : vector<2x32xf32>
    %1149 = arith.divf %1147, %1148 : vector<2x32xf32>
    %1150 = vector.extract_strided_slice %1118 {offsets = [0, 32], sizes = [2, 32], strides = [1, 1]} : vector<2x128xf32> to vector<2x32xf32>
    %1151 = arith.negf %1150 : vector<2x32xf32>
    %1152 = math.exp %1151 : vector<2x32xf32>
    %cst_273 = arith.constant 1.000000e+00 : f32
    %1153 = vector.broadcast %cst_273 : f32 to vector<2x32xf32>
    %1154 = arith.addf %1153, %1152 : vector<2x32xf32>
    %1155 = arith.divf %1153, %1154 : vector<2x32xf32>
    %1156 = vector.extract_strided_slice %1118 {offsets = [0, 64], sizes = [2, 32], strides = [1, 1]} : vector<2x128xf32> to vector<2x32xf32>
    %1157 = math.tanh %1156 : vector<2x32xf32>
    %1158 = vector.extract_strided_slice %1118 {offsets = [0, 96], sizes = [2, 32], strides = [1, 1]} : vector<2x128xf32> to vector<2x32xf32>
    %1159 = arith.negf %1158 : vector<2x32xf32>
    %1160 = math.exp %1159 : vector<2x32xf32>
    %cst_274 = arith.constant 1.000000e+00 : f32
    %1161 = vector.broadcast %cst_274 : f32 to vector<2x32xf32>
    %1162 = arith.addf %1161, %1160 : vector<2x32xf32>
    %1163 = arith.divf %1161, %1162 : vector<2x32xf32>
    %1164 = arith.mulf %1155, %1108 : vector<2x32xf32>
    %1165 = arith.mulf %1149, %1157 : vector<2x32xf32>
    %1166 = arith.addf %1164, %1165 : vector<2x32xf32>
    %1167 = math.tanh %1166 : vector<2x32xf32>
    %1168 = arith.mulf %1163, %1167 : vector<2x32xf32>
    %1169 = vector.extract_strided_slice %814 {offsets = [6, 0, 0], sizes = [1, 2, 256], strides = [1, 1, 1]} : vector<8x2x256xf32> to vector<1x2x256xf32>
    %1170 = vector.shape_cast %1169 : vector<1x2x256xf32> to vector<2x256xf32>
    %1171 = vector.extract_strided_slice %1170 {offsets = [0, 0], sizes = [2, 128], strides = [1, 1]} : vector<2x256xf32> to vector<2x128xf32>
    %cst_275 = arith.constant dense<0.000000e+00> : vector<2x128xf32>
    %1172 = tpu.matmul %1143, %815, %cst_275 {dimension_numbers = #tpu.dot_dimension_numbers<[1], [0], [0], [1], [0, 0, 1, 1], [], []>} : vector<2x32xf32>, vector<32x128xf32>, vector<2x128xf32> -> vector<2x128xf32>
    %1173 = arith.addf %1171, %1172 : vector<2x128xf32>
    %1174 = vector.extract_strided_slice %1170 {offsets = [0, 128], sizes = [2, 128], strides = [1, 1]} : vector<2x256xf32> to vector<2x128xf32>
    %cst_276 = arith.constant dense<0.000000e+00> : vector<2x128xf32>
    %1175 = tpu.matmul %1168, %816, %cst_276 {dimension_numbers = #tpu.dot_dimension_numbers<[1], [0], [0], [1], [0, 0, 1, 1], [], []>} : vector<2x32xf32>, vector<32x128xf32>, vector<2x128xf32> -> vector<2x128xf32>
    %1176 = arith.addf %1174, %1175 : vector<2x128xf32>
    %1177 = vector.extract_strided_slice %1173 {offsets = [0, 0], sizes = [2, 32], strides = [1, 1]} : vector<2x128xf32> to vector<2x32xf32>
    %1178 = arith.negf %1177 : vector<2x32xf32>
    %1179 = math.exp %1178 : vector<2x32xf32>
    %cst_277 = arith.constant 1.000000e+00 : f32
    %1180 = vector.broadcast %cst_277 : f32 to vector<2x32xf32>
    %1181 = arith.addf %1180, %1179 : vector<2x32xf32>
    %1182 = arith.divf %1180, %1181 : vector<2x32xf32>
    %1183 = vector.extract_strided_slice %1173 {offsets = [0, 32], sizes = [2, 32], strides = [1, 1]} : vector<2x128xf32> to vector<2x32xf32>
    %1184 = arith.negf %1183 : vector<2x32xf32>
    %1185 = math.exp %1184 : vector<2x32xf32>
    %cst_278 = arith.constant 1.000000e+00 : f32
    %1186 = vector.broadcast %cst_278 : f32 to vector<2x32xf32>
    %1187 = arith.addf %1186, %1185 : vector<2x32xf32>
    %1188 = arith.divf %1186, %1187 : vector<2x32xf32>
    %1189 = vector.extract_strided_slice %1173 {offsets = [0, 64], sizes = [2, 32], strides = [1, 1]} : vector<2x128xf32> to vector<2x32xf32>
    %1190 = math.tanh %1189 : vector<2x32xf32>
    %1191 = vector.extract_strided_slice %1173 {offsets = [0, 96], sizes = [2, 32], strides = [1, 1]} : vector<2x128xf32> to vector<2x32xf32>
    %1192 = arith.negf %1191 : vector<2x32xf32>
    %1193 = math.exp %1192 : vector<2x32xf32>
    %cst_279 = arith.constant 1.000000e+00 : f32
    %1194 = vector.broadcast %cst_279 : f32 to vector<2x32xf32>
    %1195 = arith.addf %1194, %1193 : vector<2x32xf32>
    %1196 = arith.divf %1194, %1195 : vector<2x32xf32>
    %1197 = arith.mulf %1188, %1141 : vector<2x32xf32>
    %1198 = arith.mulf %1182, %1190 : vector<2x32xf32>
    %1199 = arith.addf %1197, %1198 : vector<2x32xf32>
    %1200 = math.tanh %1199 : vector<2x32xf32>
    %1201 = arith.mulf %1196, %1200 : vector<2x32xf32>
    %1202 = vector.extract_strided_slice %1176 {offsets = [0, 0], sizes = [2, 32], strides = [1, 1]} : vector<2x128xf32> to vector<2x32xf32>
    %1203 = arith.negf %1202 : vector<2x32xf32>
    %1204 = math.exp %1203 : vector<2x32xf32>
    %cst_280 = arith.constant 1.000000e+00 : f32
    %1205 = vector.broadcast %cst_280 : f32 to vector<2x32xf32>
    %1206 = arith.addf %1205, %1204 : vector<2x32xf32>
    %1207 = arith.divf %1205, %1206 : vector<2x32xf32>
    %1208 = vector.extract_strided_slice %1176 {offsets = [0, 32], sizes = [2, 32], strides = [1, 1]} : vector<2x128xf32> to vector<2x32xf32>
    %1209 = arith.negf %1208 : vector<2x32xf32>
    %1210 = math.exp %1209 : vector<2x32xf32>
    %cst_281 = arith.constant 1.000000e+00 : f32
    %1211 = vector.broadcast %cst_281 : f32 to vector<2x32xf32>
    %1212 = arith.addf %1211, %1210 : vector<2x32xf32>
    %1213 = arith.divf %1211, %1212 : vector<2x32xf32>
    %1214 = vector.extract_strided_slice %1176 {offsets = [0, 64], sizes = [2, 32], strides = [1, 1]} : vector<2x128xf32> to vector<2x32xf32>
    %1215 = math.tanh %1214 : vector<2x32xf32>
    %1216 = vector.extract_strided_slice %1176 {offsets = [0, 96], sizes = [2, 32], strides = [1, 1]} : vector<2x128xf32> to vector<2x32xf32>
    %1217 = arith.negf %1216 : vector<2x32xf32>
    %1218 = math.exp %1217 : vector<2x32xf32>
    %cst_282 = arith.constant 1.000000e+00 : f32
    %1219 = vector.broadcast %cst_282 : f32 to vector<2x32xf32>
    %1220 = arith.addf %1219, %1218 : vector<2x32xf32>
    %1221 = arith.divf %1219, %1220 : vector<2x32xf32>
    %1222 = arith.mulf %1213, %1166 : vector<2x32xf32>
    %1223 = arith.mulf %1207, %1215 : vector<2x32xf32>
    %1224 = arith.addf %1222, %1223 : vector<2x32xf32>
    %1225 = math.tanh %1224 : vector<2x32xf32>
    %1226 = arith.mulf %1221, %1225 : vector<2x32xf32>
    %1227 = vector.extract_strided_slice %814 {offsets = [7, 0, 0], sizes = [1, 2, 256], strides = [1, 1, 1]} : vector<8x2x256xf32> to vector<1x2x256xf32>
    %1228 = vector.shape_cast %1227 : vector<1x2x256xf32> to vector<2x256xf32>
    %1229 = vector.extract_strided_slice %1228 {offsets = [0, 0], sizes = [2, 128], strides = [1, 1]} : vector<2x256xf32> to vector<2x128xf32>
    %cst_283 = arith.constant dense<0.000000e+00> : vector<2x128xf32>
    %1230 = tpu.matmul %1201, %815, %cst_283 {dimension_numbers = #tpu.dot_dimension_numbers<[1], [0], [0], [1], [0, 0, 1, 1], [], []>} : vector<2x32xf32>, vector<32x128xf32>, vector<2x128xf32> -> vector<2x128xf32>
    %1231 = arith.addf %1229, %1230 : vector<2x128xf32>
    %1232 = vector.extract_strided_slice %1228 {offsets = [0, 128], sizes = [2, 128], strides = [1, 1]} : vector<2x256xf32> to vector<2x128xf32>
    %cst_284 = arith.constant dense<0.000000e+00> : vector<2x128xf32>
    %1233 = tpu.matmul %1226, %816, %cst_284 {dimension_numbers = #tpu.dot_dimension_numbers<[1], [0], [0], [1], [0, 0, 1, 1], [], []>} : vector<2x32xf32>, vector<32x128xf32>, vector<2x128xf32> -> vector<2x128xf32>
    %1234 = arith.addf %1232, %1233 : vector<2x128xf32>
    %1235 = vector.extract_strided_slice %1231 {offsets = [0, 0], sizes = [2, 32], strides = [1, 1]} : vector<2x128xf32> to vector<2x32xf32>
    %1236 = arith.negf %1235 : vector<2x32xf32>
    %1237 = math.exp %1236 : vector<2x32xf32>
    %cst_285 = arith.constant 1.000000e+00 : f32
    %1238 = vector.broadcast %cst_285 : f32 to vector<2x32xf32>
    %1239 = arith.addf %1238, %1237 : vector<2x32xf32>
    %1240 = arith.divf %1238, %1239 : vector<2x32xf32>
    %1241 = vector.extract_strided_slice %1231 {offsets = [0, 32], sizes = [2, 32], strides = [1, 1]} : vector<2x128xf32> to vector<2x32xf32>
    %1242 = arith.negf %1241 : vector<2x32xf32>
    %1243 = math.exp %1242 : vector<2x32xf32>
    %cst_286 = arith.constant 1.000000e+00 : f32
    %1244 = vector.broadcast %cst_286 : f32 to vector<2x32xf32>
    %1245 = arith.addf %1244, %1243 : vector<2x32xf32>
    %1246 = arith.divf %1244, %1245 : vector<2x32xf32>
    %1247 = vector.extract_strided_slice %1231 {offsets = [0, 64], sizes = [2, 32], strides = [1, 1]} : vector<2x128xf32> to vector<2x32xf32>
    %1248 = math.tanh %1247 : vector<2x32xf32>
    %1249 = vector.extract_strided_slice %1231 {offsets = [0, 96], sizes = [2, 32], strides = [1, 1]} : vector<2x128xf32> to vector<2x32xf32>
    %1250 = arith.negf %1249 : vector<2x32xf32>
    %1251 = math.exp %1250 : vector<2x32xf32>
    %cst_287 = arith.constant 1.000000e+00 : f32
    %1252 = vector.broadcast %cst_287 : f32 to vector<2x32xf32>
    %1253 = arith.addf %1252, %1251 : vector<2x32xf32>
    %1254 = arith.divf %1252, %1253 : vector<2x32xf32>
    %1255 = arith.mulf %1246, %1199 : vector<2x32xf32>
    %1256 = arith.mulf %1240, %1248 : vector<2x32xf32>
    %1257 = arith.addf %1255, %1256 : vector<2x32xf32>
    %1258 = math.tanh %1257 : vector<2x32xf32>
    %1259 = arith.mulf %1254, %1258 : vector<2x32xf32>
    %1260 = vector.extract_strided_slice %1234 {offsets = [0, 0], sizes = [2, 32], strides = [1, 1]} : vector<2x128xf32> to vector<2x32xf32>
    %1261 = arith.negf %1260 : vector<2x32xf32>
    %1262 = math.exp %1261 : vector<2x32xf32>
    %cst_288 = arith.constant 1.000000e+00 : f32
    %1263 = vector.broadcast %cst_288 : f32 to vector<2x32xf32>
    %1264 = arith.addf %1263, %1262 : vector<2x32xf32>
    %1265 = arith.divf %1263, %1264 : vector<2x32xf32>
    %1266 = vector.extract_strided_slice %1234 {offsets = [0, 32], sizes = [2, 32], strides = [1, 1]} : vector<2x128xf32> to vector<2x32xf32>
    %1267 = arith.negf %1266 : vector<2x32xf32>
    %1268 = math.exp %1267 : vector<2x32xf32>
    %cst_289 = arith.constant 1.000000e+00 : f32
    %1269 = vector.broadcast %cst_289 : f32 to vector<2x32xf32>
    %1270 = arith.addf %1269, %1268 : vector<2x32xf32>
    %1271 = arith.divf %1269, %1270 : vector<2x32xf32>
    %1272 = vector.extract_strided_slice %1234 {offsets = [0, 64], sizes = [2, 32], strides = [1, 1]} : vector<2x128xf32> to vector<2x32xf32>
    %1273 = math.tanh %1272 : vector<2x32xf32>
    %1274 = vector.extract_strided_slice %1234 {offsets = [0, 96], sizes = [2, 32], strides = [1, 1]} : vector<2x128xf32> to vector<2x32xf32>
    %1275 = arith.negf %1274 : vector<2x32xf32>
    %1276 = math.exp %1275 : vector<2x32xf32>
    %cst_290 = arith.constant 1.000000e+00 : f32
    %1277 = vector.broadcast %cst_290 : f32 to vector<2x32xf32>
    %1278 = arith.addf %1277, %1276 : vector<2x32xf32>
    %1279 = arith.divf %1277, %1278 : vector<2x32xf32>
    %1280 = arith.mulf %1271, %1224 : vector<2x32xf32>
    %1281 = arith.mulf %1265, %1273 : vector<2x32xf32>
    %1282 = arith.addf %1280, %1281 : vector<2x32xf32>
    %1283 = math.tanh %1282 : vector<2x32xf32>
    %1284 = arith.mulf %1279, %1283 : vector<2x32xf32>
    %cst_291 = arith.constant 5.000000e-01 : f32
    %1285 = vector.broadcast %cst_291 : f32 to vector<2x32xf32>
    %1286 = arith.mulf %1285, %1284 : vector<2x32xf32>
    %1287 = math.exp %1286 : vector<2x32xf32>
    %c0_292 = arith.constant 0 : index
    %c0_293 = arith.constant 0 : index
    %1288 = vector.load %arg26[%c0_292, %c0_293] : memref<2x32xf32, #tpu.memory_space<vmem>>, vector<2x32xf32>
    %1289 = arith.mulf %1287, %1288 : vector<2x32xf32>
    %1290 = arith.addf %1259, %1289 : vector<2x32xf32>
    %c0_294 = arith.constant 0 : index
    %c0_295 = arith.constant 0 : index
    %1291 = vector.load %arg28[%c0_294, %c0_295] : memref<2x32xf32, #tpu.memory_space<vmem>>, vector<2x32xf32>
    tpu.vector_store %arg28[%c0_294, %c0_295], %1290 {strides = array<i32>} : memref<2x32xf32, #tpu.memory_space<vmem>>, vector<2x32xf32>,
    %1292 = vector.shape_cast %1290 : vector<2x32xf32> to vector<1x2x32xf32>
    %1293 = vector.shape_cast %1292 : vector<1x2x32xf32> to vector<1x2x32xf32>
    %1294 = vector.broadcast %1293 : vector<1x2x32xf32> to vector<8x2x32xf32>
    %cst_296 = arith.constant 0.000000e+00 : f32
    %1295 = vector.broadcast %cst_296 : f32 to vector<2x32xf32>
    %cst_297 = arith.constant 0.000000e+00 : f32
    %1296 = vector.broadcast %cst_297 : f32 to vector<2x64xf32>
    %c0_298 = arith.constant 0 : index
    %c0_299 = arith.constant 0 : index
    %1297 = vector.load %arg15[%c0_298, %c0_299] : memref<32x128xf32, #tpu.memory_space<vmem>>, vector<32x128xf32>
    %c0_300 = arith.constant 0 : index
    %c0_301 = arith.constant 0 : index
    %1298 = vector.load %arg14[%c0_300, %c0_301] : memref<32x128xf32, #tpu.memory_space<vmem>>, vector<32x128xf32>
    %c0_302 = arith.constant 0 : index
    %c0_303 = arith.constant 0 : index
    %1299 = vector.load %arg16[%c0_302, %c0_303] : memref<1x128xf32, #tpu.memory_space<vmem>>, vector<1x128xf32>
    %1300 = vector.shape_cast %1294 : vector<8x2x32xf32> to vector<16x32xf32>
    %cst_304 = arith.constant dense<0.000000e+00> : vector<16x128xf32>
    %1301 = tpu.matmul %1300, %1298, %cst_304 {dimension_numbers = #tpu.dot_dimension_numbers<[1], [0], [0], [1], [0, 0, 1, 1], [], []>} : vector<16x32xf32>, vector<32x128xf32>, vector<16x128xf32> -> vector<16x128xf32>
    %1302 = vector.broadcast %1299 : vector<1x128xf32> to vector<16x128xf32>
    %1303 = arith.addf %1301, %1302 : vector<16x128xf32>
    %1304 = vector.shape_cast %1303 : vector<16x128xf32> to vector<8x2x128xf32>
    %1305 = vector.extract_strided_slice %1304 {offsets = [0, 0, 0], sizes = [1, 2, 128], strides = [1, 1, 1]} : vector<8x2x128xf32> to vector<1x2x128xf32>
    %1306 = vector.shape_cast %1305 : vector<1x2x128xf32> to vector<2x128xf32>
    %cst_305 = arith.constant dense<0.000000e+00> : vector<2x128xf32>
    %1307 = tpu.matmul %1295, %1297, %cst_305 {dimension_numbers = #tpu.dot_dimension_numbers<[1], [0], [0], [1], [0, 0, 1, 1], [], []>} : vector<2x32xf32>, vector<32x128xf32>, vector<2x128xf32> -> vector<2x128xf32>
    %1308 = arith.addf %1306, %1307 : vector<2x128xf32>
    %1309 = vector.extract_strided_slice %1308 {offsets = [0, 0], sizes = [2, 32], strides = [1, 1]} : vector<2x128xf32> to vector<2x32xf32>
    %1310 = arith.negf %1309 : vector<2x32xf32>
    %1311 = math.exp %1310 : vector<2x32xf32>
    %cst_306 = arith.constant 1.000000e+00 : f32
    %1312 = vector.broadcast %cst_306 : f32 to vector<2x32xf32>
    %1313 = arith.addf %1312, %1311 : vector<2x32xf32>
    %1314 = arith.divf %1312, %1313 : vector<2x32xf32>
    %1315 = vector.extract_strided_slice %1308 {offsets = [0, 32], sizes = [2, 32], strides = [1, 1]} : vector<2x128xf32> to vector<2x32xf32>
    %1316 = arith.negf %1315 : vector<2x32xf32>
    %1317 = math.exp %1316 : vector<2x32xf32>
    %cst_307 = arith.constant 1.000000e+00 : f32
    %1318 = vector.broadcast %cst_307 : f32 to vector<2x32xf32>
    %1319 = arith.addf %1318, %1317 : vector<2x32xf32>
    %1320 = arith.divf %1318, %1319 : vector<2x32xf32>
    %1321 = vector.extract_strided_slice %1308 {offsets = [0, 64], sizes = [2, 32], strides = [1, 1]} : vector<2x128xf32> to vector<2x32xf32>
    %1322 = math.tanh %1321 : vector<2x32xf32>
    %1323 = vector.extract_strided_slice %1308 {offsets = [0, 96], sizes = [2, 32], strides = [1, 1]} : vector<2x128xf32> to vector<2x32xf32>
    %1324 = arith.negf %1323 : vector<2x32xf32>
    %1325 = math.exp %1324 : vector<2x32xf32>
    %cst_308 = arith.constant 1.000000e+00 : f32
    %1326 = vector.broadcast %cst_308 : f32 to vector<2x32xf32>
    %1327 = arith.addf %1326, %1325 : vector<2x32xf32>
    %1328 = arith.divf %1326, %1327 : vector<2x32xf32>
    %1329 = arith.mulf %1320, %1295 : vector<2x32xf32>
    %1330 = arith.mulf %1314, %1322 : vector<2x32xf32>
    %1331 = arith.addf %1329, %1330 : vector<2x32xf32>
    %1332 = math.tanh %1331 : vector<2x32xf32>
    %1333 = arith.mulf %1328, %1332 : vector<2x32xf32>
    %c0_309 = arith.constant 0 : index
    %c0_310 = arith.constant 0 : index
    %c0_311 = arith.constant 0 : index
    %1334 = vector.load %arg31[%c0_309, %c0_310, %c0_311] : memref<8x2x32xf32, #tpu.memory_space<vmem>>, vector<1x2x32xf32>
    %1335 = vector.shape_cast %1334 : vector<1x2x32xf32> to vector<2x32xf32>
    %1336 = vector.shape_cast %1333 : vector<2x32xf32> to vector<1x2x32xf32>
    tpu.vector_store %arg31[%c0_309, %c0_310, %c0_311], %1336 {strides = array<i32>} : memref<8x2x32xf32, #tpu.memory_space<vmem>>, vector<1x2x32xf32>,
    %1337 = vector.extract_strided_slice %1304 {offsets = [1, 0, 0], sizes = [1, 2, 128], strides = [1, 1, 1]} : vector<8x2x128xf32> to vector<1x2x128xf32>
    %1338 = vector.shape_cast %1337 : vector<1x2x128xf32> to vector<2x128xf32>
    %cst_312 = arith.constant dense<0.000000e+00> : vector<2x128xf32>
    %1339 = tpu.matmul %1333, %1297, %cst_312 {dimension_numbers = #tpu.dot_dimension_numbers<[1], [0], [0], [1], [0, 0, 1, 1], [], []>} : vector<2x32xf32>, vector<32x128xf32>, vector<2x128xf32> -> vector<2x128xf32>
    %1340 = arith.addf %1338, %1339 : vector<2x128xf32>
    %1341 = vector.extract_strided_slice %1340 {offsets = [0, 0], sizes = [2, 32], strides = [1, 1]} : vector<2x128xf32> to vector<2x32xf32>
    %1342 = arith.negf %1341 : vector<2x32xf32>
    %1343 = math.exp %1342 : vector<2x32xf32>
    %cst_313 = arith.constant 1.000000e+00 : f32
    %1344 = vector.broadcast %cst_313 : f32 to vector<2x32xf32>
    %1345 = arith.addf %1344, %1343 : vector<2x32xf32>
    %1346 = arith.divf %1344, %1345 : vector<2x32xf32>
    %1347 = vector.extract_strided_slice %1340 {offsets = [0, 32], sizes = [2, 32], strides = [1, 1]} : vector<2x128xf32> to vector<2x32xf32>
    %1348 = arith.negf %1347 : vector<2x32xf32>
    %1349 = math.exp %1348 : vector<2x32xf32>
    %cst_314 = arith.constant 1.000000e+00 : f32
    %1350 = vector.broadcast %cst_314 : f32 to vector<2x32xf32>
    %1351 = arith.addf %1350, %1349 : vector<2x32xf32>
    %1352 = arith.divf %1350, %1351 : vector<2x32xf32>
    %1353 = vector.extract_strided_slice %1340 {offsets = [0, 64], sizes = [2, 32], strides = [1, 1]} : vector<2x128xf32> to vector<2x32xf32>
    %1354 = math.tanh %1353 : vector<2x32xf32>
    %1355 = vector.extract_strided_slice %1340 {offsets = [0, 96], sizes = [2, 32], strides = [1, 1]} : vector<2x128xf32> to vector<2x32xf32>
    %1356 = arith.negf %1355 : vector<2x32xf32>
    %1357 = math.exp %1356 : vector<2x32xf32>
    %cst_315 = arith.constant 1.000000e+00 : f32
    %1358 = vector.broadcast %cst_315 : f32 to vector<2x32xf32>
    %1359 = arith.addf %1358, %1357 : vector<2x32xf32>
    %1360 = arith.divf %1358, %1359 : vector<2x32xf32>
    %1361 = arith.mulf %1352, %1331 : vector<2x32xf32>
    %1362 = arith.mulf %1346, %1354 : vector<2x32xf32>
    %1363 = arith.addf %1361, %1362 : vector<2x32xf32>
    %1364 = math.tanh %1363 : vector<2x32xf32>
    %1365 = arith.mulf %1360, %1364 : vector<2x32xf32>
    %c1_316 = arith.constant 1 : index
    %c0_317 = arith.constant 0 : index
    %c0_318 = arith.constant 0 : index
    %1366 = vector.load %arg31[%c1_316, %c0_317, %c0_318] : memref<8x2x32xf32, #tpu.memory_space<vmem>>, vector<1x2x32xf32>
    %1367 = vector.shape_cast %1366 : vector<1x2x32xf32> to vector<2x32xf32>
    %1368 = vector.shape_cast %1365 : vector<2x32xf32> to vector<1x2x32xf32>
    tpu.vector_store %arg31[%c1_316, %c0_317, %c0_318], %1368 {strides = array<i32>} : memref<8x2x32xf32, #tpu.memory_space<vmem>>, vector<1x2x32xf32>,
    %1369 = vector.extract_strided_slice %1304 {offsets = [2, 0, 0], sizes = [1, 2, 128], strides = [1, 1, 1]} : vector<8x2x128xf32> to vector<1x2x128xf32>
    %1370 = vector.shape_cast %1369 : vector<1x2x128xf32> to vector<2x128xf32>
    %cst_319 = arith.constant dense<0.000000e+00> : vector<2x128xf32>
    %1371 = tpu.matmul %1365, %1297, %cst_319 {dimension_numbers = #tpu.dot_dimension_numbers<[1], [0], [0], [1], [0, 0, 1, 1], [], []>} : vector<2x32xf32>, vector<32x128xf32>, vector<2x128xf32> -> vector<2x128xf32>
    %1372 = arith.addf %1370, %1371 : vector<2x128xf32>
    %1373 = vector.extract_strided_slice %1372 {offsets = [0, 0], sizes = [2, 32], strides = [1, 1]} : vector<2x128xf32> to vector<2x32xf32>
    %1374 = arith.negf %1373 : vector<2x32xf32>
    %1375 = math.exp %1374 : vector<2x32xf32>
    %cst_320 = arith.constant 1.000000e+00 : f32
    %1376 = vector.broadcast %cst_320 : f32 to vector<2x32xf32>
    %1377 = arith.addf %1376, %1375 : vector<2x32xf32>
    %1378 = arith.divf %1376, %1377 : vector<2x32xf32>
    %1379 = vector.extract_strided_slice %1372 {offsets = [0, 32], sizes = [2, 32], strides = [1, 1]} : vector<2x128xf32> to vector<2x32xf32>
    %1380 = arith.negf %1379 : vector<2x32xf32>
    %1381 = math.exp %1380 : vector<2x32xf32>
    %cst_321 = arith.constant 1.000000e+00 : f32
    %1382 = vector.broadcast %cst_321 : f32 to vector<2x32xf32>
    %1383 = arith.addf %1382, %1381 : vector<2x32xf32>
    %1384 = arith.divf %1382, %1383 : vector<2x32xf32>
    %1385 = vector.extract_strided_slice %1372 {offsets = [0, 64], sizes = [2, 32], strides = [1, 1]} : vector<2x128xf32> to vector<2x32xf32>
    %1386 = math.tanh %1385 : vector<2x32xf32>
    %1387 = vector.extract_strided_slice %1372 {offsets = [0, 96], sizes = [2, 32], strides = [1, 1]} : vector<2x128xf32> to vector<2x32xf32>
    %1388 = arith.negf %1387 : vector<2x32xf32>
    %1389 = math.exp %1388 : vector<2x32xf32>
    %cst_322 = arith.constant 1.000000e+00 : f32
    %1390 = vector.broadcast %cst_322 : f32 to vector<2x32xf32>
    %1391 = arith.addf %1390, %1389 : vector<2x32xf32>
    %1392 = arith.divf %1390, %1391 : vector<2x32xf32>
    %1393 = arith.mulf %1384, %1363 : vector<2x32xf32>
    %1394 = arith.mulf %1378, %1386 : vector<2x32xf32>
    %1395 = arith.addf %1393, %1394 : vector<2x32xf32>
    %1396 = math.tanh %1395 : vector<2x32xf32>
    %1397 = arith.mulf %1392, %1396 : vector<2x32xf32>
    %c2_323 = arith.constant 2 : index
    %c0_324 = arith.constant 0 : index
    %c0_325 = arith.constant 0 : index
    %1398 = vector.load %arg31[%c2_323, %c0_324, %c0_325] : memref<8x2x32xf32, #tpu.memory_space<vmem>>, vector<1x2x32xf32>
    %1399 = vector.shape_cast %1398 : vector<1x2x32xf32> to vector<2x32xf32>
    %1400 = vector.shape_cast %1397 : vector<2x32xf32> to vector<1x2x32xf32>
    tpu.vector_store %arg31[%c2_323, %c0_324, %c0_325], %1400 {strides = array<i32>} : memref<8x2x32xf32, #tpu.memory_space<vmem>>, vector<1x2x32xf32>,
    %1401 = vector.extract_strided_slice %1304 {offsets = [3, 0, 0], sizes = [1, 2, 128], strides = [1, 1, 1]} : vector<8x2x128xf32> to vector<1x2x128xf32>
    %1402 = vector.shape_cast %1401 : vector<1x2x128xf32> to vector<2x128xf32>
    %cst_326 = arith.constant dense<0.000000e+00> : vector<2x128xf32>
    %1403 = tpu.matmul %1397, %1297, %cst_326 {dimension_numbers = #tpu.dot_dimension_numbers<[1], [0], [0], [1], [0, 0, 1, 1], [], []>} : vector<2x32xf32>, vector<32x128xf32>, vector<2x128xf32> -> vector<2x128xf32>
    %1404 = arith.addf %1402, %1403 : vector<2x128xf32>
    %1405 = vector.extract_strided_slice %1404 {offsets = [0, 0], sizes = [2, 32], strides = [1, 1]} : vector<2x128xf32> to vector<2x32xf32>
    %1406 = arith.negf %1405 : vector<2x32xf32>
    %1407 = math.exp %1406 : vector<2x32xf32>
    %cst_327 = arith.constant 1.000000e+00 : f32
    %1408 = vector.broadcast %cst_327 : f32 to vector<2x32xf32>
    %1409 = arith.addf %1408, %1407 : vector<2x32xf32>
    %1410 = arith.divf %1408, %1409 : vector<2x32xf32>
    %1411 = vector.extract_strided_slice %1404 {offsets = [0, 32], sizes = [2, 32], strides = [1, 1]} : vector<2x128xf32> to vector<2x32xf32>
    %1412 = arith.negf %1411 : vector<2x32xf32>
    %1413 = math.exp %1412 : vector<2x32xf32>
    %cst_328 = arith.constant 1.000000e+00 : f32
    %1414 = vector.broadcast %cst_328 : f32 to vector<2x32xf32>
    %1415 = arith.addf %1414, %1413 : vector<2x32xf32>
    %1416 = arith.divf %1414, %1415 : vector<2x32xf32>
    %1417 = vector.extract_strided_slice %1404 {offsets = [0, 64], sizes = [2, 32], strides = [1, 1]} : vector<2x128xf32> to vector<2x32xf32>
    %1418 = math.tanh %1417 : vector<2x32xf32>
    %1419 = vector.extract_strided_slice %1404 {offsets = [0, 96], sizes = [2, 32], strides = [1, 1]} : vector<2x128xf32> to vector<2x32xf32>
    %1420 = arith.negf %1419 : vector<2x32xf32>
    %1421 = math.exp %1420 : vector<2x32xf32>
    %cst_329 = arith.constant 1.000000e+00 : f32
    %1422 = vector.broadcast %cst_329 : f32 to vector<2x32xf32>
    %1423 = arith.addf %1422, %1421 : vector<2x32xf32>
    %1424 = arith.divf %1422, %1423 : vector<2x32xf32>
    %1425 = arith.mulf %1416, %1395 : vector<2x32xf32>
    %1426 = arith.mulf %1410, %1418 : vector<2x32xf32>
    %1427 = arith.addf %1425, %1426 : vector<2x32xf32>
    %1428 = math.tanh %1427 : vector<2x32xf32>
    %1429 = arith.mulf %1424, %1428 : vector<2x32xf32>
    %c3_330 = arith.constant 3 : index
    %c0_331 = arith.constant 0 : index
    %c0_332 = arith.constant 0 : index
    %1430 = vector.load %arg31[%c3_330, %c0_331, %c0_332] : memref<8x2x32xf32, #tpu.memory_space<vmem>>, vector<1x2x32xf32>
    %1431 = vector.shape_cast %1430 : vector<1x2x32xf32> to vector<2x32xf32>
    %1432 = vector.shape_cast %1429 : vector<2x32xf32> to vector<1x2x32xf32>
    tpu.vector_store %arg31[%c3_330, %c0_331, %c0_332], %1432 {strides = array<i32>} : memref<8x2x32xf32, #tpu.memory_space<vmem>>, vector<1x2x32xf32>,
    %1433 = vector.extract_strided_slice %1304 {offsets = [4, 0, 0], sizes = [1, 2, 128], strides = [1, 1, 1]} : vector<8x2x128xf32> to vector<1x2x128xf32>
    %1434 = vector.shape_cast %1433 : vector<1x2x128xf32> to vector<2x128xf32>
    %cst_333 = arith.constant dense<0.000000e+00> : vector<2x128xf32>
    %1435 = tpu.matmul %1429, %1297, %cst_333 {dimension_numbers = #tpu.dot_dimension_numbers<[1], [0], [0], [1], [0, 0, 1, 1], [], []>} : vector<2x32xf32>, vector<32x128xf32>, vector<2x128xf32> -> vector<2x128xf32>
    %1436 = arith.addf %1434, %1435 : vector<2x128xf32>
    %1437 = vector.extract_strided_slice %1436 {offsets = [0, 0], sizes = [2, 32], strides = [1, 1]} : vector<2x128xf32> to vector<2x32xf32>
    %1438 = arith.negf %1437 : vector<2x32xf32>
    %1439 = math.exp %1438 : vector<2x32xf32>
    %cst_334 = arith.constant 1.000000e+00 : f32
    %1440 = vector.broadcast %cst_334 : f32 to vector<2x32xf32>
    %1441 = arith.addf %1440, %1439 : vector<2x32xf32>
    %1442 = arith.divf %1440, %1441 : vector<2x32xf32>
    %1443 = vector.extract_strided_slice %1436 {offsets = [0, 32], sizes = [2, 32], strides = [1, 1]} : vector<2x128xf32> to vector<2x32xf32>
    %1444 = arith.negf %1443 : vector<2x32xf32>
    %1445 = math.exp %1444 : vector<2x32xf32>
    %cst_335 = arith.constant 1.000000e+00 : f32
    %1446 = vector.broadcast %cst_335 : f32 to vector<2x32xf32>
    %1447 = arith.addf %1446, %1445 : vector<2x32xf32>
    %1448 = arith.divf %1446, %1447 : vector<2x32xf32>
    %1449 = vector.extract_strided_slice %1436 {offsets = [0, 64], sizes = [2, 32], strides = [1, 1]} : vector<2x128xf32> to vector<2x32xf32>
    %1450 = math.tanh %1449 : vector<2x32xf32>
    %1451 = vector.extract_strided_slice %1436 {offsets = [0, 96], sizes = [2, 32], strides = [1, 1]} : vector<2x128xf32> to vector<2x32xf32>
    %1452 = arith.negf %1451 : vector<2x32xf32>
    %1453 = math.exp %1452 : vector<2x32xf32>
    %cst_336 = arith.constant 1.000000e+00 : f32
    %1454 = vector.broadcast %cst_336 : f32 to vector<2x32xf32>
    %1455 = arith.addf %1454, %1453 : vector<2x32xf32>
    %1456 = arith.divf %1454, %1455 : vector<2x32xf32>
    %1457 = arith.mulf %1448, %1427 : vector<2x32xf32>
    %1458 = arith.mulf %1442, %1450 : vector<2x32xf32>
    %1459 = arith.addf %1457, %1458 : vector<2x32xf32>
    %1460 = math.tanh %1459 : vector<2x32xf32>
    %1461 = arith.mulf %1456, %1460 : vector<2x32xf32>
    %c4_337 = arith.constant 4 : index
    %c0_338 = arith.constant 0 : index
    %c0_339 = arith.constant 0 : index
    %1462 = vector.load %arg31[%c4_337, %c0_338, %c0_339] : memref<8x2x32xf32, #tpu.memory_space<vmem>>, vector<1x2x32xf32>
    %1463 = vector.shape_cast %1462 : vector<1x2x32xf32> to vector<2x32xf32>
    %1464 = vector.shape_cast %1461 : vector<2x32xf32> to vector<1x2x32xf32>
    tpu.vector_store %arg31[%c4_337, %c0_338, %c0_339], %1464 {strides = array<i32>} : memref<8x2x32xf32, #tpu.memory_space<vmem>>, vector<1x2x32xf32>,
    %1465 = vector.extract_strided_slice %1304 {offsets = [5, 0, 0], sizes = [1, 2, 128], strides = [1, 1, 1]} : vector<8x2x128xf32> to vector<1x2x128xf32>
    %1466 = vector.shape_cast %1465 : vector<1x2x128xf32> to vector<2x128xf32>
    %cst_340 = arith.constant dense<0.000000e+00> : vector<2x128xf32>
    %1467 = tpu.matmul %1461, %1297, %cst_340 {dimension_numbers = #tpu.dot_dimension_numbers<[1], [0], [0], [1], [0, 0, 1, 1], [], []>} : vector<2x32xf32>, vector<32x128xf32>, vector<2x128xf32> -> vector<2x128xf32>
    %1468 = arith.addf %1466, %1467 : vector<2x128xf32>
    %1469 = vector.extract_strided_slice %1468 {offsets = [0, 0], sizes = [2, 32], strides = [1, 1]} : vector<2x128xf32> to vector<2x32xf32>
    %1470 = arith.negf %1469 : vector<2x32xf32>
    %1471 = math.exp %1470 : vector<2x32xf32>
    %cst_341 = arith.constant 1.000000e+00 : f32
    %1472 = vector.broadcast %cst_341 : f32 to vector<2x32xf32>
    %1473 = arith.addf %1472, %1471 : vector<2x32xf32>
    %1474 = arith.divf %1472, %1473 : vector<2x32xf32>
    %1475 = vector.extract_strided_slice %1468 {offsets = [0, 32], sizes = [2, 32], strides = [1, 1]} : vector<2x128xf32> to vector<2x32xf32>
    %1476 = arith.negf %1475 : vector<2x32xf32>
    %1477 = math.exp %1476 : vector<2x32xf32>
    %cst_342 = arith.constant 1.000000e+00 : f32
    %1478 = vector.broadcast %cst_342 : f32 to vector<2x32xf32>
    %1479 = arith.addf %1478, %1477 : vector<2x32xf32>
    %1480 = arith.divf %1478, %1479 : vector<2x32xf32>
    %1481 = vector.extract_strided_slice %1468 {offsets = [0, 64], sizes = [2, 32], strides = [1, 1]} : vector<2x128xf32> to vector<2x32xf32>
    %1482 = math.tanh %1481 : vector<2x32xf32>
    %1483 = vector.extract_strided_slice %1468 {offsets = [0, 96], sizes = [2, 32], strides = [1, 1]} : vector<2x128xf32> to vector<2x32xf32>
    %1484 = arith.negf %1483 : vector<2x32xf32>
    %1485 = math.exp %1484 : vector<2x32xf32>
    %cst_343 = arith.constant 1.000000e+00 : f32
    %1486 = vector.broadcast %cst_343 : f32 to vector<2x32xf32>
    %1487 = arith.addf %1486, %1485 : vector<2x32xf32>
    %1488 = arith.divf %1486, %1487 : vector<2x32xf32>
    %1489 = arith.mulf %1480, %1459 : vector<2x32xf32>
    %1490 = arith.mulf %1474, %1482 : vector<2x32xf32>
    %1491 = arith.addf %1489, %1490 : vector<2x32xf32>
    %1492 = math.tanh %1491 : vector<2x32xf32>
    %1493 = arith.mulf %1488, %1492 : vector<2x32xf32>
    %c5_344 = arith.constant 5 : index
    %c0_345 = arith.constant 0 : index
    %c0_346 = arith.constant 0 : index
    %1494 = vector.load %arg31[%c5_344, %c0_345, %c0_346] : memref<8x2x32xf32, #tpu.memory_space<vmem>>, vector<1x2x32xf32>
    %1495 = vector.shape_cast %1494 : vector<1x2x32xf32> to vector<2x32xf32>
    %1496 = vector.shape_cast %1493 : vector<2x32xf32> to vector<1x2x32xf32>
    tpu.vector_store %arg31[%c5_344, %c0_345, %c0_346], %1496 {strides = array<i32>} : memref<8x2x32xf32, #tpu.memory_space<vmem>>, vector<1x2x32xf32>,
    %1497 = vector.extract_strided_slice %1304 {offsets = [6, 0, 0], sizes = [1, 2, 128], strides = [1, 1, 1]} : vector<8x2x128xf32> to vector<1x2x128xf32>
    %1498 = vector.shape_cast %1497 : vector<1x2x128xf32> to vector<2x128xf32>
    %cst_347 = arith.constant dense<0.000000e+00> : vector<2x128xf32>
    %1499 = tpu.matmul %1493, %1297, %cst_347 {dimension_numbers = #tpu.dot_dimension_numbers<[1], [0], [0], [1], [0, 0, 1, 1], [], []>} : vector<2x32xf32>, vector<32x128xf32>, vector<2x128xf32> -> vector<2x128xf32>
    %1500 = arith.addf %1498, %1499 : vector<2x128xf32>
    %1501 = vector.extract_strided_slice %1500 {offsets = [0, 0], sizes = [2, 32], strides = [1, 1]} : vector<2x128xf32> to vector<2x32xf32>
    %1502 = arith.negf %1501 : vector<2x32xf32>
    %1503 = math.exp %1502 : vector<2x32xf32>
    %cst_348 = arith.constant 1.000000e+00 : f32
    %1504 = vector.broadcast %cst_348 : f32 to vector<2x32xf32>
    %1505 = arith.addf %1504, %1503 : vector<2x32xf32>
    %1506 = arith.divf %1504, %1505 : vector<2x32xf32>
    %1507 = vector.extract_strided_slice %1500 {offsets = [0, 32], sizes = [2, 32], strides = [1, 1]} : vector<2x128xf32> to vector<2x32xf32>
    %1508 = arith.negf %1507 : vector<2x32xf32>
    %1509 = math.exp %1508 : vector<2x32xf32>
    %cst_349 = arith.constant 1.000000e+00 : f32
    %1510 = vector.broadcast %cst_349 : f32 to vector<2x32xf32>
    %1511 = arith.addf %1510, %1509 : vector<2x32xf32>
    %1512 = arith.divf %1510, %1511 : vector<2x32xf32>
    %1513 = vector.extract_strided_slice %1500 {offsets = [0, 64], sizes = [2, 32], strides = [1, 1]} : vector<2x128xf32> to vector<2x32xf32>
    %1514 = math.tanh %1513 : vector<2x32xf32>
    %1515 = vector.extract_strided_slice %1500 {offsets = [0, 96], sizes = [2, 32], strides = [1, 1]} : vector<2x128xf32> to vector<2x32xf32>
    %1516 = arith.negf %1515 : vector<2x32xf32>
    %1517 = math.exp %1516 : vector<2x32xf32>
    %cst_350 = arith.constant 1.000000e+00 : f32
    %1518 = vector.broadcast %cst_350 : f32 to vector<2x32xf32>
    %1519 = arith.addf %1518, %1517 : vector<2x32xf32>
    %1520 = arith.divf %1518, %1519 : vector<2x32xf32>
    %1521 = arith.mulf %1512, %1491 : vector<2x32xf32>
    %1522 = arith.mulf %1506, %1514 : vector<2x32xf32>
    %1523 = arith.addf %1521, %1522 : vector<2x32xf32>
    %1524 = math.tanh %1523 : vector<2x32xf32>
    %1525 = arith.mulf %1520, %1524 : vector<2x32xf32>
    %c6_351 = arith.constant 6 : index
    %c0_352 = arith.constant 0 : index
    %c0_353 = arith.constant 0 : index
    %1526 = vector.load %arg31[%c6_351, %c0_352, %c0_353] : memref<8x2x32xf32, #tpu.memory_space<vmem>>, vector<1x2x32xf32>
    %1527 = vector.shape_cast %1526 : vector<1x2x32xf32> to vector<2x32xf32>
    %1528 = vector.shape_cast %1525 : vector<2x32xf32> to vector<1x2x32xf32>
    tpu.vector_store %arg31[%c6_351, %c0_352, %c0_353], %1528 {strides = array<i32>} : memref<8x2x32xf32, #tpu.memory_space<vmem>>, vector<1x2x32xf32>,
    %1529 = vector.extract_strided_slice %1304 {offsets = [7, 0, 0], sizes = [1, 2, 128], strides = [1, 1, 1]} : vector<8x2x128xf32> to vector<1x2x128xf32>
    %1530 = vector.shape_cast %1529 : vector<1x2x128xf32> to vector<2x128xf32>
    %cst_354 = arith.constant dense<0.000000e+00> : vector<2x128xf32>
    %1531 = tpu.matmul %1525, %1297, %cst_354 {dimension_numbers = #tpu.dot_dimension_numbers<[1], [0], [0], [1], [0, 0, 1, 1], [], []>} : vector<2x32xf32>, vector<32x128xf32>, vector<2x128xf32> -> vector<2x128xf32>
    %1532 = arith.addf %1530, %1531 : vector<2x128xf32>
    %1533 = vector.extract_strided_slice %1532 {offsets = [0, 0], sizes = [2, 32], strides = [1, 1]} : vector<2x128xf32> to vector<2x32xf32>
    %1534 = arith.negf %1533 : vector<2x32xf32>
    %1535 = math.exp %1534 : vector<2x32xf32>
    %cst_355 = arith.constant 1.000000e+00 : f32
    %1536 = vector.broadcast %cst_355 : f32 to vector<2x32xf32>
    %1537 = arith.addf %1536, %1535 : vector<2x32xf32>
    %1538 = arith.divf %1536, %1537 : vector<2x32xf32>
    %1539 = vector.extract_strided_slice %1532 {offsets = [0, 32], sizes = [2, 32], strides = [1, 1]} : vector<2x128xf32> to vector<2x32xf32>
    %1540 = arith.negf %1539 : vector<2x32xf32>
    %1541 = math.exp %1540 : vector<2x32xf32>
    %cst_356 = arith.constant 1.000000e+00 : f32
    %1542 = vector.broadcast %cst_356 : f32 to vector<2x32xf32>
    %1543 = arith.addf %1542, %1541 : vector<2x32xf32>
    %1544 = arith.divf %1542, %1543 : vector<2x32xf32>
    %1545 = vector.extract_strided_slice %1532 {offsets = [0, 64], sizes = [2, 32], strides = [1, 1]} : vector<2x128xf32> to vector<2x32xf32>
    %1546 = math.tanh %1545 : vector<2x32xf32>
    %1547 = vector.extract_strided_slice %1532 {offsets = [0, 96], sizes = [2, 32], strides = [1, 1]} : vector<2x128xf32> to vector<2x32xf32>
    %1548 = arith.negf %1547 : vector<2x32xf32>
    %1549 = math.exp %1548 : vector<2x32xf32>
    %cst_357 = arith.constant 1.000000e+00 : f32
    %1550 = vector.broadcast %cst_357 : f32 to vector<2x32xf32>
    %1551 = arith.addf %1550, %1549 : vector<2x32xf32>
    %1552 = arith.divf %1550, %1551 : vector<2x32xf32>
    %1553 = arith.mulf %1544, %1523 : vector<2x32xf32>
    %1554 = arith.mulf %1538, %1546 : vector<2x32xf32>
    %1555 = arith.addf %1553, %1554 : vector<2x32xf32>
    %1556 = math.tanh %1555 : vector<2x32xf32>
    %1557 = arith.mulf %1552, %1556 : vector<2x32xf32>
    %c7_358 = arith.constant 7 : index
    %c0_359 = arith.constant 0 : index
    %c0_360 = arith.constant 0 : index
    %1558 = vector.load %arg31[%c7_358, %c0_359, %c0_360] : memref<8x2x32xf32, #tpu.memory_space<vmem>>, vector<1x2x32xf32>
    %1559 = vector.shape_cast %1558 : vector<1x2x32xf32> to vector<2x32xf32>
    %1560 = vector.shape_cast %1557 : vector<2x32xf32> to vector<1x2x32xf32>
    tpu.vector_store %arg31[%c7_358, %c0_359, %c0_360], %1560 {strides = array<i32>} : memref<8x2x32xf32, #tpu.memory_space<vmem>>, vector<1x2x32xf32>,
    %c0_361 = arith.constant 0 : index
    %c0_362 = arith.constant 0 : index
    %c0_363 = arith.constant 0 : index
    %1561 = vector.load %arg31[%c0_361, %c0_362, %c0_363] : memref<8x2x32xf32, #tpu.memory_space<vmem>>, vector<8x2x32xf32>
    %c0_364 = arith.constant 0 : index
    %c0_365 = arith.constant 0 : index
    %1562 = vector.load %arg18[%c0_364, %c0_365] : memref<64x256xf32, #tpu.memory_space<vmem>>, vector<64x256xf32>
    %c0_366 = arith.constant 0 : index
    %c0_367 = arith.constant 0 : index
    %1563 = vector.load %arg17[%c0_366, %c0_367] : memref<32x256xf32, #tpu.memory_space<vmem>>, vector<32x256xf32>
    %c0_368 = arith.constant 0 : index
    %c0_369 = arith.constant 0 : index
    %1564 = vector.load %arg19[%c0_368, %c0_369] : memref<1x256xf32, #tpu.memory_space<vmem>>, vector<1x256xf32>
    %1565 = vector.shape_cast %1561 : vector<8x2x32xf32> to vector<16x32xf32>
    %cst_370 = arith.constant dense<0.000000e+00> : vector<16x256xf32>
    %1566 = tpu.matmul %1565, %1563, %cst_370 {dimension_numbers = #tpu.dot_dimension_numbers<[1], [0], [0], [1], [0, 0, 1, 1], [], []>} : vector<16x32xf32>, vector<32x256xf32>, vector<16x256xf32> -> vector<16x256xf32>
    %1567 = vector.broadcast %1564 : vector<1x256xf32> to vector<16x256xf32>
    %1568 = arith.addf %1566, %1567 : vector<16x256xf32>
    %1569 = vector.shape_cast %1568 : vector<16x256xf32> to vector<8x2x256xf32>
    %1570 = vector.extract_strided_slice %1569 {offsets = [0, 0, 0], sizes = [1, 2, 256], strides = [1, 1, 1]} : vector<8x2x256xf32> to vector<1x2x256xf32>
    %1571 = vector.shape_cast %1570 : vector<1x2x256xf32> to vector<2x256xf32>
    %cst_371 = arith.constant dense<0.000000e+00> : vector<2x256xf32>
    %1572 = tpu.matmul %1296, %1562, %cst_371 {dimension_numbers = #tpu.dot_dimension_numbers<[1], [0], [0], [1], [0, 0, 1, 1], [], []>} : vector<2x64xf32>, vector<64x256xf32>, vector<2x256xf32> -> vector<2x256xf32>
    %1573 = arith.addf %1571, %1572 : vector<2x256xf32>
    %1574 = vector.extract_strided_slice %1573 {offsets = [0, 0], sizes = [2, 64], strides = [1, 1]} : vector<2x256xf32> to vector<2x64xf32>
    %1575 = arith.negf %1574 : vector<2x64xf32>
    %1576 = math.exp %1575 : vector<2x64xf32>
    %cst_372 = arith.constant 1.000000e+00 : f32
    %1577 = vector.broadcast %cst_372 : f32 to vector<2x64xf32>
    %1578 = arith.addf %1577, %1576 : vector<2x64xf32>
    %1579 = arith.divf %1577, %1578 : vector<2x64xf32>
    %1580 = vector.extract_strided_slice %1573 {offsets = [0, 64], sizes = [2, 64], strides = [1, 1]} : vector<2x256xf32> to vector<2x64xf32>
    %1581 = arith.negf %1580 : vector<2x64xf32>
    %1582 = math.exp %1581 : vector<2x64xf32>
    %cst_373 = arith.constant 1.000000e+00 : f32
    %1583 = vector.broadcast %cst_373 : f32 to vector<2x64xf32>
    %1584 = arith.addf %1583, %1582 : vector<2x64xf32>
    %1585 = arith.divf %1583, %1584 : vector<2x64xf32>
    %1586 = vector.extract_strided_slice %1573 {offsets = [0, 128], sizes = [2, 64], strides = [1, 1]} : vector<2x256xf32> to vector<2x64xf32>
    %1587 = math.tanh %1586 : vector<2x64xf32>
    %1588 = vector.extract_strided_slice %1573 {offsets = [0, 192], sizes = [2, 64], strides = [1, 1]} : vector<2x256xf32> to vector<2x64xf32>
    %1589 = arith.negf %1588 : vector<2x64xf32>
    %1590 = math.exp %1589 : vector<2x64xf32>
    %cst_374 = arith.constant 1.000000e+00 : f32
    %1591 = vector.broadcast %cst_374 : f32 to vector<2x64xf32>
    %1592 = arith.addf %1591, %1590 : vector<2x64xf32>
    %1593 = arith.divf %1591, %1592 : vector<2x64xf32>
    %1594 = arith.mulf %1585, %1296 : vector<2x64xf32>
    %1595 = arith.mulf %1579, %1587 : vector<2x64xf32>
    %1596 = arith.addf %1594, %1595 : vector<2x64xf32>
    %1597 = math.tanh %1596 : vector<2x64xf32>
    %1598 = arith.mulf %1593, %1597 : vector<2x64xf32>
    %c0_375 = arith.constant 0 : index
    %c0_376 = arith.constant 0 : index
    %c0_377 = arith.constant 0 : index
    %1599 = vector.load %arg30[%c0_375, %c0_376, %c0_377] : memref<8x2x64xf32, #tpu.memory_space<vmem>>, vector<1x2x64xf32>
    %1600 = vector.shape_cast %1599 : vector<1x2x64xf32> to vector<2x64xf32>
    %1601 = vector.shape_cast %1598 : vector<2x64xf32> to vector<1x2x64xf32>
    tpu.vector_store %arg30[%c0_375, %c0_376, %c0_377], %1601 {strides = array<i32>} : memref<8x2x64xf32, #tpu.memory_space<vmem>>, vector<1x2x64xf32>,
    %1602 = vector.extract_strided_slice %1569 {offsets = [1, 0, 0], sizes = [1, 2, 256], strides = [1, 1, 1]} : vector<8x2x256xf32> to vector<1x2x256xf32>
    %1603 = vector.shape_cast %1602 : vector<1x2x256xf32> to vector<2x256xf32>
    %cst_378 = arith.constant dense<0.000000e+00> : vector<2x256xf32>
    %1604 = tpu.matmul %1598, %1562, %cst_378 {dimension_numbers = #tpu.dot_dimension_numbers<[1], [0], [0], [1], [0, 0, 1, 1], [], []>} : vector<2x64xf32>, vector<64x256xf32>, vector<2x256xf32> -> vector<2x256xf32>
    %1605 = arith.addf %1603, %1604 : vector<2x256xf32>
    %1606 = vector.extract_strided_slice %1605 {offsets = [0, 0], sizes = [2, 64], strides = [1, 1]} : vector<2x256xf32> to vector<2x64xf32>
    %1607 = arith.negf %1606 : vector<2x64xf32>
    %1608 = math.exp %1607 : vector<2x64xf32>
    %cst_379 = arith.constant 1.000000e+00 : f32
    %1609 = vector.broadcast %cst_379 : f32 to vector<2x64xf32>
    %1610 = arith.addf %1609, %1608 : vector<2x64xf32>
    %1611 = arith.divf %1609, %1610 : vector<2x64xf32>
    %1612 = vector.extract_strided_slice %1605 {offsets = [0, 64], sizes = [2, 64], strides = [1, 1]} : vector<2x256xf32> to vector<2x64xf32>
    %1613 = arith.negf %1612 : vector<2x64xf32>
    %1614 = math.exp %1613 : vector<2x64xf32>
    %cst_380 = arith.constant 1.000000e+00 : f32
    %1615 = vector.broadcast %cst_380 : f32 to vector<2x64xf32>
    %1616 = arith.addf %1615, %1614 : vector<2x64xf32>
    %1617 = arith.divf %1615, %1616 : vector<2x64xf32>
    %1618 = vector.extract_strided_slice %1605 {offsets = [0, 128], sizes = [2, 64], strides = [1, 1]} : vector<2x256xf32> to vector<2x64xf32>
    %1619 = math.tanh %1618 : vector<2x64xf32>
    %1620 = vector.extract_strided_slice %1605 {offsets = [0, 192], sizes = [2, 64], strides = [1, 1]} : vector<2x256xf32> to vector<2x64xf32>
    %1621 = arith.negf %1620 : vector<2x64xf32>
    %1622 = math.exp %1621 : vector<2x64xf32>
    %cst_381 = arith.constant 1.000000e+00 : f32
    %1623 = vector.broadcast %cst_381 : f32 to vector<2x64xf32>
    %1624 = arith.addf %1623, %1622 : vector<2x64xf32>
    %1625 = arith.divf %1623, %1624 : vector<2x64xf32>
    %1626 = arith.mulf %1617, %1596 : vector<2x64xf32>
    %1627 = arith.mulf %1611, %1619 : vector<2x64xf32>
    %1628 = arith.addf %1626, %1627 : vector<2x64xf32>
    %1629 = math.tanh %1628 : vector<2x64xf32>
    %1630 = arith.mulf %1625, %1629 : vector<2x64xf32>
    %c1_382 = arith.constant 1 : index
    %c0_383 = arith.constant 0 : index
    %c0_384 = arith.constant 0 : index
    %1631 = vector.load %arg30[%c1_382, %c0_383, %c0_384] : memref<8x2x64xf32, #tpu.memory_space<vmem>>, vector<1x2x64xf32>
    %1632 = vector.shape_cast %1631 : vector<1x2x64xf32> to vector<2x64xf32>
    %1633 = vector.shape_cast %1630 : vector<2x64xf32> to vector<1x2x64xf32>
    tpu.vector_store %arg30[%c1_382, %c0_383, %c0_384], %1633 {strides = array<i32>} : memref<8x2x64xf32, #tpu.memory_space<vmem>>, vector<1x2x64xf32>,
    %1634 = vector.extract_strided_slice %1569 {offsets = [2, 0, 0], sizes = [1, 2, 256], strides = [1, 1, 1]} : vector<8x2x256xf32> to vector<1x2x256xf32>
    %1635 = vector.shape_cast %1634 : vector<1x2x256xf32> to vector<2x256xf32>
    %cst_385 = arith.constant dense<0.000000e+00> : vector<2x256xf32>
    %1636 = tpu.matmul %1630, %1562, %cst_385 {dimension_numbers = #tpu.dot_dimension_numbers<[1], [0], [0], [1], [0, 0, 1, 1], [], []>} : vector<2x64xf32>, vector<64x256xf32>, vector<2x256xf32> -> vector<2x256xf32>
    %1637 = arith.addf %1635, %1636 : vector<2x256xf32>
    %1638 = vector.extract_strided_slice %1637 {offsets = [0, 0], sizes = [2, 64], strides = [1, 1]} : vector<2x256xf32> to vector<2x64xf32>
    %1639 = arith.negf %1638 : vector<2x64xf32>
    %1640 = math.exp %1639 : vector<2x64xf32>
    %cst_386 = arith.constant 1.000000e+00 : f32
    %1641 = vector.broadcast %cst_386 : f32 to vector<2x64xf32>
    %1642 = arith.addf %1641, %1640 : vector<2x64xf32>
    %1643 = arith.divf %1641, %1642 : vector<2x64xf32>
    %1644 = vector.extract_strided_slice %1637 {offsets = [0, 64], sizes = [2, 64], strides = [1, 1]} : vector<2x256xf32> to vector<2x64xf32>
    %1645 = arith.negf %1644 : vector<2x64xf32>
    %1646 = math.exp %1645 : vector<2x64xf32>
    %cst_387 = arith.constant 1.000000e+00 : f32
    %1647 = vector.broadcast %cst_387 : f32 to vector<2x64xf32>
    %1648 = arith.addf %1647, %1646 : vector<2x64xf32>
    %1649 = arith.divf %1647, %1648 : vector<2x64xf32>
    %1650 = vector.extract_strided_slice %1637 {offsets = [0, 128], sizes = [2, 64], strides = [1, 1]} : vector<2x256xf32> to vector<2x64xf32>
    %1651 = math.tanh %1650 : vector<2x64xf32>
    %1652 = vector.extract_strided_slice %1637 {offsets = [0, 192], sizes = [2, 64], strides = [1, 1]} : vector<2x256xf32> to vector<2x64xf32>
    %1653 = arith.negf %1652 : vector<2x64xf32>
    %1654 = math.exp %1653 : vector<2x64xf32>
    %cst_388 = arith.constant 1.000000e+00 : f32
    %1655 = vector.broadcast %cst_388 : f32 to vector<2x64xf32>
    %1656 = arith.addf %1655, %1654 : vector<2x64xf32>
    %1657 = arith.divf %1655, %1656 : vector<2x64xf32>
    %1658 = arith.mulf %1649, %1628 : vector<2x64xf32>
    %1659 = arith.mulf %1643, %1651 : vector<2x64xf32>
    %1660 = arith.addf %1658, %1659 : vector<2x64xf32>
    %1661 = math.tanh %1660 : vector<2x64xf32>
    %1662 = arith.mulf %1657, %1661 : vector<2x64xf32>
    %c2_389 = arith.constant 2 : index
    %c0_390 = arith.constant 0 : index
    %c0_391 = arith.constant 0 : index
    %1663 = vector.load %arg30[%c2_389, %c0_390, %c0_391] : memref<8x2x64xf32, #tpu.memory_space<vmem>>, vector<1x2x64xf32>
    %1664 = vector.shape_cast %1663 : vector<1x2x64xf32> to vector<2x64xf32>
    %1665 = vector.shape_cast %1662 : vector<2x64xf32> to vector<1x2x64xf32>
    tpu.vector_store %arg30[%c2_389, %c0_390, %c0_391], %1665 {strides = array<i32>} : memref<8x2x64xf32, #tpu.memory_space<vmem>>, vector<1x2x64xf32>,
    %1666 = vector.extract_strided_slice %1569 {offsets = [3, 0, 0], sizes = [1, 2, 256], strides = [1, 1, 1]} : vector<8x2x256xf32> to vector<1x2x256xf32>
    %1667 = vector.shape_cast %1666 : vector<1x2x256xf32> to vector<2x256xf32>
    %cst_392 = arith.constant dense<0.000000e+00> : vector<2x256xf32>
    %1668 = tpu.matmul %1662, %1562, %cst_392 {dimension_numbers = #tpu.dot_dimension_numbers<[1], [0], [0], [1], [0, 0, 1, 1], [], []>} : vector<2x64xf32>, vector<64x256xf32>, vector<2x256xf32> -> vector<2x256xf32>
    %1669 = arith.addf %1667, %1668 : vector<2x256xf32>
    %1670 = vector.extract_strided_slice %1669 {offsets = [0, 0], sizes = [2, 64], strides = [1, 1]} : vector<2x256xf32> to vector<2x64xf32>
    %1671 = arith.negf %1670 : vector<2x64xf32>
    %1672 = math.exp %1671 : vector<2x64xf32>
    %cst_393 = arith.constant 1.000000e+00 : f32
    %1673 = vector.broadcast %cst_393 : f32 to vector<2x64xf32>
    %1674 = arith.addf %1673, %1672 : vector<2x64xf32>
    %1675 = arith.divf %1673, %1674 : vector<2x64xf32>
    %1676 = vector.extract_strided_slice %1669 {offsets = [0, 64], sizes = [2, 64], strides = [1, 1]} : vector<2x256xf32> to vector<2x64xf32>
    %1677 = arith.negf %1676 : vector<2x64xf32>
    %1678 = math.exp %1677 : vector<2x64xf32>
    %cst_394 = arith.constant 1.000000e+00 : f32
    %1679 = vector.broadcast %cst_394 : f32 to vector<2x64xf32>
    %1680 = arith.addf %1679, %1678 : vector<2x64xf32>
    %1681 = arith.divf %1679, %1680 : vector<2x64xf32>
    %1682 = vector.extract_strided_slice %1669 {offsets = [0, 128], sizes = [2, 64], strides = [1, 1]} : vector<2x256xf32> to vector<2x64xf32>
    %1683 = math.tanh %1682 : vector<2x64xf32>
    %1684 = vector.extract_strided_slice %1669 {offsets = [0, 192], sizes = [2, 64], strides = [1, 1]} : vector<2x256xf32> to vector<2x64xf32>
    %1685 = arith.negf %1684 : vector<2x64xf32>
    %1686 = math.exp %1685 : vector<2x64xf32>
    %cst_395 = arith.constant 1.000000e+00 : f32
    %1687 = vector.broadcast %cst_395 : f32 to vector<2x64xf32>
    %1688 = arith.addf %1687, %1686 : vector<2x64xf32>
    %1689 = arith.divf %1687, %1688 : vector<2x64xf32>
    %1690 = arith.mulf %1681, %1660 : vector<2x64xf32>
    %1691 = arith.mulf %1675, %1683 : vector<2x64xf32>
    %1692 = arith.addf %1690, %1691 : vector<2x64xf32>
    %1693 = math.tanh %1692 : vector<2x64xf32>
    %1694 = arith.mulf %1689, %1693 : vector<2x64xf32>
    %c3_396 = arith.constant 3 : index
    %c0_397 = arith.constant 0 : index
    %c0_398 = arith.constant 0 : index
    %1695 = vector.load %arg30[%c3_396, %c0_397, %c0_398] : memref<8x2x64xf32, #tpu.memory_space<vmem>>, vector<1x2x64xf32>
    %1696 = vector.shape_cast %1695 : vector<1x2x64xf32> to vector<2x64xf32>
    %1697 = vector.shape_cast %1694 : vector<2x64xf32> to vector<1x2x64xf32>
    tpu.vector_store %arg30[%c3_396, %c0_397, %c0_398], %1697 {strides = array<i32>} : memref<8x2x64xf32, #tpu.memory_space<vmem>>, vector<1x2x64xf32>,
    %1698 = vector.extract_strided_slice %1569 {offsets = [4, 0, 0], sizes = [1, 2, 256], strides = [1, 1, 1]} : vector<8x2x256xf32> to vector<1x2x256xf32>
    %1699 = vector.shape_cast %1698 : vector<1x2x256xf32> to vector<2x256xf32>
    %cst_399 = arith.constant dense<0.000000e+00> : vector<2x256xf32>
    %1700 = tpu.matmul %1694, %1562, %cst_399 {dimension_numbers = #tpu.dot_dimension_numbers<[1], [0], [0], [1], [0, 0, 1, 1], [], []>} : vector<2x64xf32>, vector<64x256xf32>, vector<2x256xf32> -> vector<2x256xf32>
    %1701 = arith.addf %1699, %1700 : vector<2x256xf32>
    %1702 = vector.extract_strided_slice %1701 {offsets = [0, 0], sizes = [2, 64], strides = [1, 1]} : vector<2x256xf32> to vector<2x64xf32>
    %1703 = arith.negf %1702 : vector<2x64xf32>
    %1704 = math.exp %1703 : vector<2x64xf32>
    %cst_400 = arith.constant 1.000000e+00 : f32
    %1705 = vector.broadcast %cst_400 : f32 to vector<2x64xf32>
    %1706 = arith.addf %1705, %1704 : vector<2x64xf32>
    %1707 = arith.divf %1705, %1706 : vector<2x64xf32>
    %1708 = vector.extract_strided_slice %1701 {offsets = [0, 64], sizes = [2, 64], strides = [1, 1]} : vector<2x256xf32> to vector<2x64xf32>
    %1709 = arith.negf %1708 : vector<2x64xf32>
    %1710 = math.exp %1709 : vector<2x64xf32>
    %cst_401 = arith.constant 1.000000e+00 : f32
    %1711 = vector.broadcast %cst_401 : f32 to vector<2x64xf32>
    %1712 = arith.addf %1711, %1710 : vector<2x64xf32>
    %1713 = arith.divf %1711, %1712 : vector<2x64xf32>
    %1714 = vector.extract_strided_slice %1701 {offsets = [0, 128], sizes = [2, 64], strides = [1, 1]} : vector<2x256xf32> to vector<2x64xf32>
    %1715 = math.tanh %1714 : vector<2x64xf32>
    %1716 = vector.extract_strided_slice %1701 {offsets = [0, 192], sizes = [2, 64], strides = [1, 1]} : vector<2x256xf32> to vector<2x64xf32>
    %1717 = arith.negf %1716 : vector<2x64xf32>
    %1718 = math.exp %1717 : vector<2x64xf32>
    %cst_402 = arith.constant 1.000000e+00 : f32
    %1719 = vector.broadcast %cst_402 : f32 to vector<2x64xf32>
    %1720 = arith.addf %1719, %1718 : vector<2x64xf32>
    %1721 = arith.divf %1719, %1720 : vector<2x64xf32>
    %1722 = arith.mulf %1713, %1692 : vector<2x64xf32>
    %1723 = arith.mulf %1707, %1715 : vector<2x64xf32>
    %1724 = arith.addf %1722, %1723 : vector<2x64xf32>
    %1725 = math.tanh %1724 : vector<2x64xf32>
    %1726 = arith.mulf %1721, %1725 : vector<2x64xf32>
    %c4_403 = arith.constant 4 : index
    %c0_404 = arith.constant 0 : index
    %c0_405 = arith.constant 0 : index
    %1727 = vector.load %arg30[%c4_403, %c0_404, %c0_405] : memref<8x2x64xf32, #tpu.memory_space<vmem>>, vector<1x2x64xf32>
    %1728 = vector.shape_cast %1727 : vector<1x2x64xf32> to vector<2x64xf32>
    %1729 = vector.shape_cast %1726 : vector<2x64xf32> to vector<1x2x64xf32>
    tpu.vector_store %arg30[%c4_403, %c0_404, %c0_405], %1729 {strides = array<i32>} : memref<8x2x64xf32, #tpu.memory_space<vmem>>, vector<1x2x64xf32>,
    %1730 = vector.extract_strided_slice %1569 {offsets = [5, 0, 0], sizes = [1, 2, 256], strides = [1, 1, 1]} : vector<8x2x256xf32> to vector<1x2x256xf32>
    %1731 = vector.shape_cast %1730 : vector<1x2x256xf32> to vector<2x256xf32>
    %cst_406 = arith.constant dense<0.000000e+00> : vector<2x256xf32>
    %1732 = tpu.matmul %1726, %1562, %cst_406 {dimension_numbers = #tpu.dot_dimension_numbers<[1], [0], [0], [1], [0, 0, 1, 1], [], []>} : vector<2x64xf32>, vector<64x256xf32>, vector<2x256xf32> -> vector<2x256xf32>
    %1733 = arith.addf %1731, %1732 : vector<2x256xf32>
    %1734 = vector.extract_strided_slice %1733 {offsets = [0, 0], sizes = [2, 64], strides = [1, 1]} : vector<2x256xf32> to vector<2x64xf32>
    %1735 = arith.negf %1734 : vector<2x64xf32>
    %1736 = math.exp %1735 : vector<2x64xf32>
    %cst_407 = arith.constant 1.000000e+00 : f32
    %1737 = vector.broadcast %cst_407 : f32 to vector<2x64xf32>
    %1738 = arith.addf %1737, %1736 : vector<2x64xf32>
    %1739 = arith.divf %1737, %1738 : vector<2x64xf32>
    %1740 = vector.extract_strided_slice %1733 {offsets = [0, 64], sizes = [2, 64], strides = [1, 1]} : vector<2x256xf32> to vector<2x64xf32>
    %1741 = arith.negf %1740 : vector<2x64xf32>
    %1742 = math.exp %1741 : vector<2x64xf32>
    %cst_408 = arith.constant 1.000000e+00 : f32
    %1743 = vector.broadcast %cst_408 : f32 to vector<2x64xf32>
    %1744 = arith.addf %1743, %1742 : vector<2x64xf32>
    %1745 = arith.divf %1743, %1744 : vector<2x64xf32>
    %1746 = vector.extract_strided_slice %1733 {offsets = [0, 128], sizes = [2, 64], strides = [1, 1]} : vector<2x256xf32> to vector<2x64xf32>
    %1747 = math.tanh %1746 : vector<2x64xf32>
    %1748 = vector.extract_strided_slice %1733 {offsets = [0, 192], sizes = [2, 64], strides = [1, 1]} : vector<2x256xf32> to vector<2x64xf32>
    %1749 = arith.negf %1748 : vector<2x64xf32>
    %1750 = math.exp %1749 : vector<2x64xf32>
    %cst_409 = arith.constant 1.000000e+00 : f32
    %1751 = vector.broadcast %cst_409 : f32 to vector<2x64xf32>
    %1752 = arith.addf %1751, %1750 : vector<2x64xf32>
    %1753 = arith.divf %1751, %1752 : vector<2x64xf32>
    %1754 = arith.mulf %1745, %1724 : vector<2x64xf32>
    %1755 = arith.mulf %1739, %1747 : vector<2x64xf32>
    %1756 = arith.addf %1754, %1755 : vector<2x64xf32>
    %1757 = math.tanh %1756 : vector<2x64xf32>
    %1758 = arith.mulf %1753, %1757 : vector<2x64xf32>
    %c5_410 = arith.constant 5 : index
    %c0_411 = arith.constant 0 : index
    %c0_412 = arith.constant 0 : index
    %1759 = vector.load %arg30[%c5_410, %c0_411, %c0_412] : memref<8x2x64xf32, #tpu.memory_space<vmem>>, vector<1x2x64xf32>
    %1760 = vector.shape_cast %1759 : vector<1x2x64xf32> to vector<2x64xf32>
    %1761 = vector.shape_cast %1758 : vector<2x64xf32> to vector<1x2x64xf32>
    tpu.vector_store %arg30[%c5_410, %c0_411, %c0_412], %1761 {strides = array<i32>} : memref<8x2x64xf32, #tpu.memory_space<vmem>>, vector<1x2x64xf32>,
    %1762 = vector.extract_strided_slice %1569 {offsets = [6, 0, 0], sizes = [1, 2, 256], strides = [1, 1, 1]} : vector<8x2x256xf32> to vector<1x2x256xf32>
    %1763 = vector.shape_cast %1762 : vector<1x2x256xf32> to vector<2x256xf32>
    %cst_413 = arith.constant dense<0.000000e+00> : vector<2x256xf32>
    %1764 = tpu.matmul %1758, %1562, %cst_413 {dimension_numbers = #tpu.dot_dimension_numbers<[1], [0], [0], [1], [0, 0, 1, 1], [], []>} : vector<2x64xf32>, vector<64x256xf32>, vector<2x256xf32> -> vector<2x256xf32>
    %1765 = arith.addf %1763, %1764 : vector<2x256xf32>
    %1766 = vector.extract_strided_slice %1765 {offsets = [0, 0], sizes = [2, 64], strides = [1, 1]} : vector<2x256xf32> to vector<2x64xf32>
    %1767 = arith.negf %1766 : vector<2x64xf32>
    %1768 = math.exp %1767 : vector<2x64xf32>
    %cst_414 = arith.constant 1.000000e+00 : f32
    %1769 = vector.broadcast %cst_414 : f32 to vector<2x64xf32>
    %1770 = arith.addf %1769, %1768 : vector<2x64xf32>
    %1771 = arith.divf %1769, %1770 : vector<2x64xf32>
    %1772 = vector.extract_strided_slice %1765 {offsets = [0, 64], sizes = [2, 64], strides = [1, 1]} : vector<2x256xf32> to vector<2x64xf32>
    %1773 = arith.negf %1772 : vector<2x64xf32>
    %1774 = math.exp %1773 : vector<2x64xf32>
    %cst_415 = arith.constant 1.000000e+00 : f32
    %1775 = vector.broadcast %cst_415 : f32 to vector<2x64xf32>
    %1776 = arith.addf %1775, %1774 : vector<2x64xf32>
    %1777 = arith.divf %1775, %1776 : vector<2x64xf32>
    %1778 = vector.extract_strided_slice %1765 {offsets = [0, 128], sizes = [2, 64], strides = [1, 1]} : vector<2x256xf32> to vector<2x64xf32>
    %1779 = math.tanh %1778 : vector<2x64xf32>
    %1780 = vector.extract_strided_slice %1765 {offsets = [0, 192], sizes = [2, 64], strides = [1, 1]} : vector<2x256xf32> to vector<2x64xf32>
    %1781 = arith.negf %1780 : vector<2x64xf32>
    %1782 = math.exp %1781 : vector<2x64xf32>
    %cst_416 = arith.constant 1.000000e+00 : f32
    %1783 = vector.broadcast %cst_416 : f32 to vector<2x64xf32>
    %1784 = arith.addf %1783, %1782 : vector<2x64xf32>
    %1785 = arith.divf %1783, %1784 : vector<2x64xf32>
    %1786 = arith.mulf %1777, %1756 : vector<2x64xf32>
    %1787 = arith.mulf %1771, %1779 : vector<2x64xf32>
    %1788 = arith.addf %1786, %1787 : vector<2x64xf32>
    %1789 = math.tanh %1788 : vector<2x64xf32>
    %1790 = arith.mulf %1785, %1789 : vector<2x64xf32>
    %c6_417 = arith.constant 6 : index
    %c0_418 = arith.constant 0 : index
    %c0_419 = arith.constant 0 : index
    %1791 = vector.load %arg30[%c6_417, %c0_418, %c0_419] : memref<8x2x64xf32, #tpu.memory_space<vmem>>, vector<1x2x64xf32>
    %1792 = vector.shape_cast %1791 : vector<1x2x64xf32> to vector<2x64xf32>
    %1793 = vector.shape_cast %1790 : vector<2x64xf32> to vector<1x2x64xf32>
    tpu.vector_store %arg30[%c6_417, %c0_418, %c0_419], %1793 {strides = array<i32>} : memref<8x2x64xf32, #tpu.memory_space<vmem>>, vector<1x2x64xf32>,
    %1794 = vector.extract_strided_slice %1569 {offsets = [7, 0, 0], sizes = [1, 2, 256], strides = [1, 1, 1]} : vector<8x2x256xf32> to vector<1x2x256xf32>
    %1795 = vector.shape_cast %1794 : vector<1x2x256xf32> to vector<2x256xf32>
    %cst_420 = arith.constant dense<0.000000e+00> : vector<2x256xf32>
    %1796 = tpu.matmul %1790, %1562, %cst_420 {dimension_numbers = #tpu.dot_dimension_numbers<[1], [0], [0], [1], [0, 0, 1, 1], [], []>} : vector<2x64xf32>, vector<64x256xf32>, vector<2x256xf32> -> vector<2x256xf32>
    %1797 = arith.addf %1795, %1796 : vector<2x256xf32>
    %1798 = vector.extract_strided_slice %1797 {offsets = [0, 0], sizes = [2, 64], strides = [1, 1]} : vector<2x256xf32> to vector<2x64xf32>
    %1799 = arith.negf %1798 : vector<2x64xf32>
    %1800 = math.exp %1799 : vector<2x64xf32>
    %cst_421 = arith.constant 1.000000e+00 : f32
    %1801 = vector.broadcast %cst_421 : f32 to vector<2x64xf32>
    %1802 = arith.addf %1801, %1800 : vector<2x64xf32>
    %1803 = arith.divf %1801, %1802 : vector<2x64xf32>
    %1804 = vector.extract_strided_slice %1797 {offsets = [0, 64], sizes = [2, 64], strides = [1, 1]} : vector<2x256xf32> to vector<2x64xf32>
    %1805 = arith.negf %1804 : vector<2x64xf32>
    %1806 = math.exp %1805 : vector<2x64xf32>
    %cst_422 = arith.constant 1.000000e+00 : f32
    %1807 = vector.broadcast %cst_422 : f32 to vector<2x64xf32>
    %1808 = arith.addf %1807, %1806 : vector<2x64xf32>
    %1809 = arith.divf %1807, %1808 : vector<2x64xf32>
    %1810 = vector.extract_strided_slice %1797 {offsets = [0, 128], sizes = [2, 64], strides = [1, 1]} : vector<2x256xf32> to vector<2x64xf32>
    %1811 = math.tanh %1810 : vector<2x64xf32>
    %1812 = vector.extract_strided_slice %1797 {offsets = [0, 192], sizes = [2, 64], strides = [1, 1]} : vector<2x256xf32> to vector<2x64xf32>
    %1813 = arith.negf %1812 : vector<2x64xf32>
    %1814 = math.exp %1813 : vector<2x64xf32>
    %cst_423 = arith.constant 1.000000e+00 : f32
    %1815 = vector.broadcast %cst_423 : f32 to vector<2x64xf32>
    %1816 = arith.addf %1815, %1814 : vector<2x64xf32>
    %1817 = arith.divf %1815, %1816 : vector<2x64xf32>
    %1818 = arith.mulf %1809, %1788 : vector<2x64xf32>
    %1819 = arith.mulf %1803, %1811 : vector<2x64xf32>
    %1820 = arith.addf %1818, %1819 : vector<2x64xf32>
    %1821 = math.tanh %1820 : vector<2x64xf32>
    %1822 = arith.mulf %1817, %1821 : vector<2x64xf32>
    %c7_424 = arith.constant 7 : index
    %c0_425 = arith.constant 0 : index
    %c0_426 = arith.constant 0 : index
    %1823 = vector.load %arg30[%c7_424, %c0_425, %c0_426] : memref<8x2x64xf32, #tpu.memory_space<vmem>>, vector<1x2x64xf32>
    %1824 = vector.shape_cast %1823 : vector<1x2x64xf32> to vector<2x64xf32>
    %1825 = vector.shape_cast %1822 : vector<2x64xf32> to vector<1x2x64xf32>
    tpu.vector_store %arg30[%c7_424, %c0_425, %c0_426], %1825 {strides = array<i32>} : memref<8x2x64xf32, #tpu.memory_space<vmem>>, vector<1x2x64xf32>,
    %c0_427 = arith.constant 0 : index
    %c0_428 = arith.constant 0 : index
    %c0_429 = arith.constant 0 : index
    %1826 = vector.load %arg30[%c0_427, %c0_428, %c0_429] : memref<8x2x64xf32, #tpu.memory_space<vmem>>, vector<8x2x64xf32>
    %1827 = vector.shape_cast %1826 : vector<8x2x64xf32> to vector<16x64xf32>
    %c0_430 = arith.constant 0 : index
    %c0_431 = arith.constant 0 : index
    %1828 = vector.load %arg20[%c0_430, %c0_431] : memref<64x4xf32, #tpu.memory_space<vmem>>, vector<64x4xf32>
    %cst_432 = arith.constant dense<0.000000e+00> : vector<16x4xf32>
    %1829 = tpu.matmul %1827, %1828, %cst_432 {dimension_numbers = #tpu.dot_dimension_numbers<[1], [0], [0], [1], [0, 0, 1, 1], [], []>} : vector<16x64xf32>, vector<64x4xf32>, vector<16x4xf32> -> vector<16x4xf32>
    %c0_433 = arith.constant 0 : index
    %c0_434 = arith.constant 0 : index
    %1830 = vector.load %arg21[%c0_433, %c0_434] : memref<1x4xf32, #tpu.memory_space<vmem>>, vector<1x4xf32>
    %1831 = vector.broadcast %1830 : vector<1x4xf32> to vector<16x4xf32>
    %1832 = arith.addf %1829, %1831 : vector<16x4xf32>
    %1833 = vector.shape_cast %1832 : vector<16x4xf32> to vector<8x2x4xf32>
    %c0_435 = arith.constant 0 : index
    %c0_436 = arith.constant 0 : index
    %c0_437 = arith.constant 0 : index
    %1834 = vector.load %arg27[%c0_435, %c0_436, %c0_437] : memref<8x2x4xf32, #tpu.memory_space<vmem>>, vector<8x2x4xf32>
    tpu.vector_store %arg27[%c0_435, %c0_436, %c0_437], %1833 {strides = array<i32>} : memref<8x2x4xf32, #tpu.memory_space<vmem>>, vector<8x2x4xf32>,
    return
  }
}

</mosaic_0001>

<bundles_post_ra>
// kernel: lstm_autoencoder_forward.3
= control target key start
LH: loop header
LB: loop body
LE: loop exit
PB: predicated region body
PF: predicated region fallthrough
CT: control target
= control target key end

     0   :  { %s9461_s0 = inlined_call_operand.vmem [shape: f32[8,2,4], index: 0, kind: input, shape index: {}]   ;;  %s9462_s1 = inlined_call_operand.vmem [shape: f32[4,256], index: 1, kind: input, shape index: {}]   ;;  %s9463_s2 = inlined_call_operand.vmem [shape: f32[64,256], index: 2, kind: input, shape index: {}]   ;;  %s9464_s3 = inlined_call_operand.vmem [shape: f32[1,256], index: 3, kind: input, shape index: {}]   ;;  %s9465_s4 = inlined_call_operand.hbm [shape: f32[64,256], index: 4, kind: input, shape index: {}]   ;;  %s9466_s5 = inlined_call_operand.hbm [shape: f32[64,256], index: 5, kind: input, shape index: {}]   ;;  %s9467_s6 = inlined_call_operand.vmem [shape: f32[1,256], index: 6, kind: input, shape index: {}]   ;;  %s9468_s7 = inlined_call_operand.hbm [shape: f32[64,256], index: 7, kind: input, shape index: {}]   ;;  %s9469_s8 = inlined_call_operand.hbm [shape: f32[64,256], index: 8, kind: input, shape index: {}]   ;;  %s9470_s9 = inlined_call_operand.vmem [shape: f32[1,256], index: 9, kind: input, shape index: {}]   ;;  %s9471_s10 = inlined_call_operand.hbm [shape: f32[64,256], index: 10, kind: input, shape index: {}]   ;;  %s9472_s11 = inlined_call_operand.vmem [shape: f32[32,128], index: 11, kind: input, shape index: {}]   ;;  %s9473_s12 = inlined_call_operand.hbm [shape: f32[32,128], index: 12, kind: input, shape index: {}]   ;;  %s9474_s13 = inlined_call_operand.vmem [shape: f32[1,256], index: 13, kind: input, shape index: {}]   ;;  %s9475_s14 = inlined_call_operand.hbm [shape: f32[32,128], index: 14, kind: input, shape index: {}]   ;;  %s9476_s15 = inlined_call_operand.hbm [shape: f32[32,128], index: 15, kind: input, shape index: {}]   ;;  %s9477_s16 = inlined_call_operand.vmem [shape: f32[1,128], index: 16, kind: input, shape index: {}]   ;;  %s9478_s17 = inlined_call_operand.vmem [shape: f32[32,256], index: 17, kind: input, shape index: {}]   ;;  %s9479_s18 = inlined_call_operand.hbm [shape: f32[64,256], index: 18, kind: input, shape index: {}]   ;;  %s9480_s19 = inlined_call_operand.vmem [shape: f32[1,256], index: 19, kind: input, shape index: {}]   ;;  %s9481_s20 = inlined_call_operand.vmem [shape: f32[64,4], index: 20, kind: input, shape index: {}]   ;;  %s9482_s21 = inlined_call_operand.vmem [shape: f32[1,4], index: 21, kind: input, shape index: {}]   ;;  %s9483_s22 = inlined_call_operand.vmem [shape: f32[3,2,64], index: 22, kind: input, shape index: {}]   ;;  %s9484_s23 = inlined_call_operand.vmem [shape: f32[3,2,64], index: 23, kind: input, shape index: {}]   ;;  %s9485_s24 = inlined_call_operand.vmem [shape: f32[2,32], index: 24, kind: input, shape index: {}]   ;;  %s9486_s25 = inlined_call_operand.vmem [shape: f32[2,32], index: 25, kind: input, shape index: {}]   ;;  %s9487_s26 = inlined_call_operand.vmem [shape: f32[2,32], index: 26, kind: input, shape index: {}]   ;;  %s9488_s27 = inlined_call_operand.vmem [shape: f32[8,2,4], index: 27, kind: output, shape index: {0}]   ;;  %s9489_s28 = inlined_call_operand.hbm [shape: f32[2,32], index: 28, kind: output, shape index: {1}]  }
   0x1   :  { %9496 = sst [smem:[#allocation27_spill]] %s9461_s0 }
   0x2   :  { %9497 = sst [smem:[#allocation28_spill]] %s9462_s1 }
   0x3   :  { %9498 = sst [smem:[#allocation29_spill]] %s9463_s2 }
   0x4   :  { %9499 = sst [smem:[#allocation30_spill]] %s9464_s3 }
   0x5   :  { %9500 = sst [smem:[#allocation31_spill]] %s9465_s4 }
   0x6   :  { %9501 = sst [smem:[#allocation32_spill]] %s9466_s5 }
   0x7   :  { %9502 = sst [smem:[#allocation33_spill]] %s9467_s6 }
   0x8   :  { %9503 = sst [smem:[#allocation34_spill]] %s9468_s7 }
   0x9   :  { %9504 = sst [smem:[#allocation35_spill]] %s9469_s8 }
   0xa   :  { %9505 = sst [smem:[#allocation36_spill]] %s9470_s9 }
   0xb   :  { %9506 = sst [smem:[#allocation37_spill]] %s9471_s10 }
   0xc   :  { %9507 = sst [smem:[#allocation38_spill]] %s9472_s11 }
   0xd   :  { %9508 = sst [smem:[#allocation39_spill]] %s9473_s12 }
   0xe   :  { %9509 = sst [smem:[#allocation40_spill]] %s9482_s21 }
   0xf   :  { %9510 = sst [smem:[#allocation41_spill]] %s9488_s27 }
  0x10   :  { %9511 = sst [smem:[#allocation42_spill]] %s9489_s28 }
  0x11   :  { %34 = vsyncpa [#allocation6], 0 }
  0x12   :  { %35 = vsyncpa [#allocation9], 0 }
  0x13   :  { %36 = vsyncpa [#allocation12], 0 }
  0x14   :  { %37 = vsyncpa [#allocation15], 0 }
  0x15   :  { %38 = vsyncpa [#allocation18], 0 }
  0x16   :  { %39 = vsyncpa [#allocation7], 0  ;;  %s9512_s9 = sld [smem:[#allocation32_spill]]  ;;  %s7371_s3 = smov [#allocation8]  }
  0x17   :  { %s67_s6 = sshll.u32 %s7371_s3, 4  ;;  %s9513_s11 = sld [smem:[#allocation35_spill]]  ;;  %s68_s6 = int_to_ptr.vmem [resolvable:$true] %s67_s6 }
  0x18   :  { %s9494_s2 = smov 256   ;;  %s7373_s7 = smov 16  }
  0x19   :  { %s7374_s12 = smov [#allocation11]   ;;  %s9514_s5 = sld [smem:[#allocation39_spill]] }
  0x1a   :  { %s95_s1 = sshll.u32 %s7374_s12, 4  ;;  %s7375_s3 = smov [#allocation14]   ;;  %s96_s1 = int_to_ptr.vmem [resolvable:$true] %s95_s1 }
  0x1b   :  { %s125_s10 = sshll.u32 %s7375_s3, 4  ;;  %s7377_s28 = smov 8   ;;  %s126_s10 = int_to_ptr.vmem [resolvable:$true] %s125_s10 }
  0x1c   :  { %s65_s30 = sshll.u32 %s9512_s9, 4  ;;  %s7378_s12 = smov [#allocation17]   ;;  %s66_s30 = int_to_ptr.hbm [resolvable:$true] %s65_s30 }
  0x1d   :  { %s93_s29 = sshll.u32 %s9513_s11, 4  ;;  %s153_s4 = sshll.u32 %s7378_s12, 4  ;;  %s94_s29 = int_to_ptr.hbm [resolvable:$true] %s93_s29  ;;  %s154_s4 = int_to_ptr.vmem [resolvable:$true] %s153_s4 }
  0x1e   :  { %73 = dma.hbm_to_vmem [thread:$0]  %s66_s30, 2048, %s68_s6, [#allocation9], %s9494_s2, %s9494_s2, %s7373_s7  }
  0x1f   :  { %s123_s9 = sshll.u32 %s9514_s5, 4  ;;  %s151_s30 = sshll.u32 %s9476_s15, 4  ;;  %s124_s9 = int_to_ptr.hbm [resolvable:$true] %s123_s9  ;;  %s152_s30 = int_to_ptr.hbm [resolvable:$true] %s151_s30 }
  0x20   :  { %101 = dma.hbm_to_vmem [thread:$0]  %s94_s29, 2048, %s96_s1, [#allocation12], %s9494_s2, %s9494_s2, %s7373_s7  }
  0x21   :  { %s7376_s6 = smov 128   ;;  %s9515_s27 = sld [smem:[#allocation31_spill]] }
  0x22   :  { %131 = dma.hbm_to_vmem [thread:$0]  %s124_s9, 512, %s126_s10, [#allocation15], %s7376_s6, %s7376_s6, %s7377_s28  }
  0x23   :  { %159 = dma.hbm_to_vmem [thread:$0]  %s152_s30, 512, %s154_s4, [#allocation18], %s7376_s6, %s7376_s6, %s7377_s28  }
  0x24   :  { %s9516_s3 = sld [smem:[#allocation34_spill]]  ;;  %s7379_s11 = smov [#allocation5]  }
  0x25   :  { %s54_s2 = sshll.u32 %s7379_s11, 4  ;;  %s9517_s9 = smov 256   ;;  %s55_s2 = int_to_ptr.vmem [resolvable:$true] %s54_s2 }
  0x26   :  { %s7380_s10 = smov [#allocation10]   ;;  %s9518_s5 = sld [smem:[#allocation37_spill]] }
  0x27   :  { %s52_s29 = sshll.u32 %s9515_s27, 4  ;;  %s82_s27 = sshll.u32 %s7380_s10, 4  ;;  %s53_s29 = int_to_ptr.hbm [resolvable:$true] %s52_s29  ;;  %s83_s27 = int_to_ptr.vmem [resolvable:$true] %s82_s27 }
  0x28   :  { %60 = dma.hbm_to_vmem [thread:$0]  %s53_s29, 2048, %s55_s2, [#allocation6], %s9517_s9, %s9517_s9, %s7373_s7  }
  0x29   :  { %s138_s15 = sshll.u32 %s9475_s14, 4  ;;  %s7381_s1 = smov [#allocation13]   ;;  %s139_s15 = int_to_ptr.hbm [resolvable:$true] %s138_s15 }
  0x2a   :  { %s80_s0 = sshll.u32 %s9516_s3, 4  ;;  %s110_s3 = sshll.u32 %s7381_s1, 4  ;;  %s81_s0 = int_to_ptr.hbm [resolvable:$true] %s80_s0  ;;  %s111_s3 = int_to_ptr.vmem [resolvable:$true] %s110_s3 }
  0x2b   :  { %88 = dma.hbm_to_vmem [thread:$0]  %s81_s0, 2048, %s83_s27, [#allocation9], %s9517_s9, %s9517_s9, %s7373_s7  }
  0x2c   :  { %s108_s21 = sshll.u32 %s9518_s5, 4  ;;  %s7382_s2 = smov [#allocation16]   ;;  %s109_s21 = int_to_ptr.hbm [resolvable:$true] %s108_s21 }
  0x2d   :  { %116 = dma.hbm_to_vmem [thread:$0]  %s109_s21, 2048, %s111_s3, [#allocation12], %s9517_s9, %s9517_s9, %s7373_s7  }
  0x2e   :  { %s140_s29 = sshll.u32 %s7382_s2, 4  ;;  %s168_s12 = sshll.u32 %s9479_s18, 4  ;;  %s141_s29 = int_to_ptr.vmem [resolvable:$true] %s140_s29  ;;  %s169_s12 = int_to_ptr.hbm [resolvable:$true] %s168_s12 }
  0x2f   :  { %146 = dma.hbm_to_vmem [thread:$0]  %s139_s15, 512, %s141_s29, [#allocation15], %s7376_s6, %s7376_s6, %s7377_s28  }
  0x30   :  { %s7383_s14 = smov [#allocation19]  }
  0x31   :  { %s170_s0 = sshll.u32 %s7383_s14, 4  ;;  %s171_s0 = int_to_ptr.vmem [resolvable:$true] %s170_s0 }
  0x32   :  { %176 = dma.hbm_to_vmem [thread:$0]  %s169_s12, 2048, %s171_s0, [#allocation18], %s9517_s9, %s9517_s9, %s7373_s7  }
  0x33   :  { %7359 = dma.done.wait [#allocation6], 2048  }
  0x34   :  { %7360 = vsyncadd [#allocation6], 4294965248 }
  0x35   :  { %7361 = dma.done.wait [#allocation9], 4096  }
  0x36   :  { %7362 = vsyncadd [#allocation9], 4294963200 }
  0x37   :  { %7363 = dma.done.wait [#allocation12], 4096  }
  0x38   :  { %7364 = vsyncadd [#allocation12], 4294963200 }
  0x39   :  { %7365 = dma.done.wait [#allocation15], 1024  }
  0x3a   :  { %7366 = vsyncadd [#allocation15], 4294966272 }
  0x3b   :  { %7367 = dma.done.wait [#allocation18], 2560  }
  0x3c   :  { %7368 = vsyncadd [#allocation18], 4294964736  ;;  %s9519_s28 = sld [smem:[#allocation29_spill]]  ;;  %v238_v14 = vld [vmem:[%s9484_s23] sm:$0x3]  ;;  %s7384_s11 = smov 64  }
  0x3d   :  { %s9520_s18 = sld [smem:[#allocation27_spill]]  ;;  %476 = vrot.lane.b32.xlu0 %v238_v14, %s7384_s11  ;;  %v237_v21 = vld [vmem:[%s9483_s22] sm:$0x3]  ;;  %vm379_vm0 = vcmask 523264   ;;  %vm296_vm1 = vcmask 1043456   ;;  %vm291_vm2 = vcmask 31744  }
  0x3e   :  { %s9521_s4 = sld [smem:[#allocation28_spill]]  ;;  %vm353_vm3 = vcmask 1041408   ;;  %vm355_vm4 = vcmask 1043458   ;;  %vm358_vm5 = vcmask 1045508   ;;  %vm361_vm6 = vcmask 1045504   ;;  %s7385_s9 = smov 32  }
  0x3f   :  { %s9522_s1 = sld [smem:[#allocation30_spill]]  ;;  %vm492_vm15 = vcmask 517120   ;;  %s7386_s30 = smov 96  }
  0x40   :  { %s9523_s27 = sld [smem:[#allocation33_spill]] }
  0x41   :  { %s9525_s10 = sld [smem:[#allocation38_spill]] }
  0x42   :  { %v7591_v0 = vld [vmem:[%s9519_s28 + $0x78] sm:$0xff]  ;;  %v7596_v1 = vld [vmem:[%s9519_s28 + $0x70] sm:$0xff]  ;;  %v7601_v2 = vld [vmem:[%s9519_s28 + $0x68] sm:$0xff]  ;;  %s9526_s2 = sld [smem:[#allocation40_spill]] }
  0x43   :  { %411 = vmatpush.msra.mxu3 %v7591_v0  ;;  %391 = vmatpush.msra.mxu2 %v7596_v1  ;;  %v7608_v3 = vld [vmem:[%s9519_s28 + $0x60] sm:$0xff]  ;;  %v7613_v4 = vld [vmem:[%s9519_s28 + $0x58] sm:$0xff]  ;;  %v7618_v5 = vld [vmem:[%s9519_s28 + $0x50] sm:$0xff] }
  0x44   :  { %v7625_v6 = vld [vmem:[%s9519_s28 + $0x48] sm:$0xff]  ;;  %v7630_v7 = vld [vmem:[%s9519_s28 + $0x40] sm:$0xff]  ;;  %v7637_v8 = vld [vmem:[%s9519_s28 + $0x38] sm:$0xff] }
  0x45   :  { %412 = vmatpush.msra.mxu3 %v7601_v2  ;;  %392 = vmatpush.msra.mxu2 %v7608_v3  ;;  %v229_v9 = vld [vmem:[%s9520_s18] sm:$0x3]  ;;  %v7645_v10 = vld [vmem:[%s9519_s28 + $0x30] sm:$0xff]  ;;  %v230_v11 = vld [vmem:[%s9520_s18 + $0x2] sm:$0x3] }
  0x46   :  { %v231_v12 = vld [vmem:[%s9520_s18 + $0x4] sm:$0x3]  ;;  %v232_v13 = vld [vmem:[%s9520_s18 + $0x6] sm:$0x3]  ;;  %270 = vst [vmem:[#allocation1] ss:$4 sm:$0xff] %v229_v9 }
  0x47   :  { %413 = vmatpush.msra.mxu3 %v7613_v4  ;;  %393 = vmatpush.msra.mxu2 %v7618_v5  ;;  %v7664_v15 = vld [vmem:[%s9519_s28 + $0x28] sm:$0xff]  ;;  %v7669_v16 = vld [vmem:[%s9519_s28 + $0x20] sm:$0xff]  ;;  %272 = vst [vmem:[#allocation1 + $0x1] ss:$4 sm:$0xff] %v230_v11  ;;  %v7677_v17 = vld [vmem:[%s9519_s28 + $0x18] sm:$0xff] }
  0x48   :  { %274 = vst [vmem:[#allocation1 + $0x2] ss:$4 sm:$0xff] %v231_v12  ;;  %v7682_v18 = vld [vmem:[%s9519_s28 + $0x10] sm:$0xff]  ;;  %v7689_v19 = vld [vmem:[%s9519_s28 + $0x8] sm:$0xff]  ;;  %v7694_v20 = vld [vmem:[%s9519_s28] sm:$0xff]  ;;  %s9524_s28 = sld [smem:[#allocation36_spill]] }
  0x49   :  { %414 = vmatpush.msra.mxu3 %v7625_v6  ;;  %394 = vmatpush.msra.mxu2 %v7630_v7  ;;  %276 = vst [vmem:[#allocation1 + $0x3] ss:$4 sm:$0xff] %v232_v13  ;;  %v255_v22 = vld [vmem:[%s9521_s4] sm:$0xff]  ;;  %v233_v59 = vld [vmem:[%s9520_s18 + $0x8] sm:$0x3] }
  0x4a   :  { %v7777_v26 = vld [vmem:[%s9522_s1] sm:$0x3]  ;;  %v234_v60 = vld [vmem:[%s9520_s18 + $0xa] sm:$0x3]  ;;  %v235_v61 = vld [vmem:[%s9520_s18 + $0xc] sm:$0x3] }
  0x4b   :  { %415 = vmatpush.msra.mxu3 %v7637_v8  ;;  %395 = vmatpush.msra.mxu2 %v7645_v10  ;;  %v259_v28 = vperm.slane %v7777_v26, 1  ;;  %v258_v29 = vperm.slane %v7777_v26, 0  ;;  %v236_v62 = vld [vmem:[%s9520_s18 + $0xe] sm:$0x3]  ;;  %278 = vst [vmem:[#allocation1 + $0x20] ss:$4 sm:$0xff] %v233_v59 }
  0x4c   :  { %280 = vst [vmem:[#allocation1 + $0x21] ss:$4 sm:$0xff] %v234_v60 }
  0x4d   :  { %416 = vmatpush.msra.mxu3 %v7664_v15  ;;  %396 = vmatpush.msra.mxu2 %v7669_v16  ;;  %282 = vst [vmem:[#allocation1 + $0x22] ss:$4 sm:$0xff] %v235_v61 }
  0x4e   :  { %284 = vst [vmem:[#allocation1 + $0x23] ss:$4 sm:$0xff] %v236_v62 }
  0x4f   :  { %417 = vmatpush.msra.mxu3 %v7677_v17  ;;  %397 = vmatpush.msra.mxu2 %v7682_v18 }
  0x50   :  { %v285_v23 = vld.sshfl [vmem:[#allocation1] sm:$0xff pattern:$0x73625140] }
  0x51   :  { %418 = vmatpush.msra.mxu3 %v7689_v19  ;;  %398 = vmatpush.msra.mxu2 %v7694_v20  ;;  %288 = vst [vmem:[#allocation1] ss:$2 sm:$0xff] %v255_v22 }
  0x52   :  { %6325 = vmatmul.msk.f32.vlgmr.msra.gmra.mxu3 %vm379_vm0, %v237_v21  ;;  %6324 = vmatmul.msk.f32.vlgmr.msra.gmra.mxu2 %vm379_vm0, %v237_v21 }
  0x53   :  { %615 = vmatpush.msrb.mxu2 %v7596_v1  ;;  %635 = vmatpush.msrb.mxu3 %v7591_v0 }
  0x55   :  { %616 = vmatpush.msrb.mxu2 %v7608_v3  ;;  %636 = vmatpush.msrb.mxu3 %v7601_v2  ;;  %v286_v63 = vld.sshfl [vmem:[#allocation1 + $0x20] sm:$0xff pattern:$0x73625140] }
  0x57   :  { %617 = vmatpush.msrb.mxu2 %v7618_v5  ;;  %637 = vmatpush.msrb.mxu3 %v7613_v4 }
  0x58   :  { %v290_v24 = vld.sshfl [vmem:[#allocation1 + $0x8] sm:$0xff pattern:$0x75316420]  ;;  %v289_v25 = vld.sshfl [vmem:[#allocation1] sm:$0xff pattern:$0x75316420] }
  0x59   :  { %618 = vmatpush.msrb.mxu2 %v7630_v7  ;;  %638 = vmatpush.msrb.mxu3 %v7625_v6 }
  0x5a   :  { %6321 = vmatpush.msk.msra.mxu1 %vm296_vm1, %v290_v24  ;;  %6318 = vmatpush.msk.msra.mxu0 %vm296_vm1, %v289_v25 }
  0x5b   :  { %619 = vmatpush.msrb.mxu2 %v7645_v10  ;;  %639 = vmatpush.msrb.mxu3 %v7637_v8 }
  0x5c   :  { %6322 = vmatmul.msk.f32.vlgmr.msra.gmra.mxu1 %vm291_vm2, %v285_v23  ;;  %6319 = vmatmul.msk.f32.vlgmr.msra.gmra.mxu0 %vm291_vm2, %v285_v23 }
  0x5d   :  { %525 = vmatpush.msrb.mxu1 %v7591_v0  ;;  %505 = vmatpush.msrb.mxu0 %v7596_v1 }
  0x5e   :  { %620 = vmatpush.msrb.mxu2 %v7669_v16  ;;  %640 = vmatpush.msrb.mxu3 %v7664_v15 }
  0x5f   :  { %526 = vmatpush.msrb.mxu1 %v7601_v2  ;;  %506 = vmatpush.msrb.mxu0 %v7608_v3 }
  0x60   :  { %621 = vmatpush.msrb.mxu2 %v7682_v18  ;;  %641 = vmatpush.msrb.mxu3 %v7677_v17 }
  0x61   :  { %527 = vmatpush.msrb.mxu1 %v7613_v4  ;;  %507 = vmatpush.msrb.mxu0 %v7618_v5 }
  0x62   :  { %622 = vmatpush.msrb.mxu2 %v7694_v20  ;;  %642 = vmatpush.msrb.mxu3 %v7689_v19 }
  0x63   :  { %528 = vmatpush.msrb.mxu1 %v7625_v6  ;;  %508 = vmatpush.msrb.mxu0 %v7630_v7 }
  0x64   :  { %835 = vmatpush.msra.mxu2 %v7596_v1  ;;  %855 = vmatpush.msra.mxu3 %v7591_v0 }
  0x65   :  { %529 = vmatpush.msrb.mxu1 %v7637_v8  ;;  %509 = vmatpush.msrb.mxu0 %v7645_v10 }
  0x66   :  { %836 = vmatpush.msra.mxu2 %v7608_v3  ;;  %856 = vmatpush.msra.mxu3 %v7601_v2 }
  0x67   :  { %530 = vmatpush.msrb.mxu1 %v7664_v15  ;;  %510 = vmatpush.msrb.mxu0 %v7669_v16 }
  0x68   :  { %837 = vmatpush.msra.mxu2 %v7618_v5  ;;  %857 = vmatpush.msra.mxu3 %v7613_v4 }
  0x69   :  { %531 = vmatpush.msrb.mxu1 %v7677_v17  ;;  %511 = vmatpush.msrb.mxu0 %v7682_v18 }
  0x6a   :  { %838 = vmatpush.msra.mxu2 %v7630_v7  ;;  %858 = vmatpush.msra.mxu3 %v7625_v6 }
  0x6b   :  { %532 = vmatpush.msrb.mxu1 %v7689_v19  ;;  %512 = vmatpush.msrb.mxu0 %v7694_v20 }
  0x6c   :  { %839 = vmatpush.msra.mxu2 %v7645_v10  ;;  %859 = vmatpush.msra.mxu3 %v7637_v8 }
  0x6d   :  { %725 = vmatpush.msra.mxu0 %v7596_v1  ;;  %745 = vmatpush.msra.mxu1 %v7591_v0 }
  0x6e   :  { %840 = vmatpush.msra.mxu2 %v7669_v16  ;;  %860 = vmatpush.msra.mxu3 %v7664_v15 }
  0x6f   :  { %726 = vmatpush.msra.mxu0 %v7608_v3  ;;  %746 = vmatpush.msra.mxu1 %v7601_v2 }
  0x70   :  { %841 = vmatpush.msra.mxu2 %v7682_v18  ;;  %861 = vmatpush.msra.mxu3 %v7677_v17 }
  0x71   :  { %727 = vmatpush.msra.mxu0 %v7618_v5  ;;  %747 = vmatpush.msra.mxu1 %v7613_v4 }
  0x72   :  { %842 = vmatpush.msra.mxu2 %v7694_v20  ;;  %862 = vmatpush.msra.mxu3 %v7689_v19 }
  0x73   :  { %728 = vmatpush.msra.mxu0 %v7630_v7  ;;  %748 = vmatpush.msra.mxu1 %v7625_v6 }
  0x74   :  { %6320 = vmatmul.msk.f32.gmra.mxu0 %vm291_vm2, %v286_v63  ;;  %6323 = vmatmul.msk.f32.gmra.mxu1 %vm291_vm2, %v286_v63 }
  0x75   :  { %729 = vmatpush.msra.mxu0 %v7645_v10  ;;  %749 = vmatpush.msra.mxu1 %v7637_v8 }
  0x77   :  { %730 = vmatpush.msra.mxu0 %v7669_v16  ;;  %750 = vmatpush.msra.mxu1 %v7664_v15 }
  0x79   :  { %731 = vmatpush.msra.mxu0 %v7682_v18  ;;  %751 = vmatpush.msra.mxu1 %v7677_v17 }
  0x7b   :  { %732 = vmatpush.msra.mxu0 %v7694_v20  ;;  %752 = vmatpush.msra.mxu1 %v7689_v19 }
  0xaf   :  { %v477_v9 = vpop.permute.xlu0 %476 }
  0xd5   :  { %v420_v27 = vpop.f32.mrf.mxu3  ;;  %v400_v31 = vpop.f32.mrf.mxu2 }
  0xd6   :  { %v425_v30 = vrot.slane %v420_v27, 6 }
  0xd8   :  { %v426_v37 = vsel %vm353_vm3, %v400_v31, %v425_v30 }
  0xd9   :  { %v341_v32 = vpop.f32.mrf.mxu1  ;;  %v318_v33 = vpop.f32.mrf.mxu0 }
  0xda   :  { %v342_v34 = vadd.f32 %v341_v32, %v259_v28  ;;  %v319_v35 = vadd.f32 %v318_v33, %v258_v29 }
  0xdc   :  { %v351_v36 = vrot.slane %v342_v34, 6 }
  0xde   :  { %v354_v38 = vsel %vm353_vm3, %v319_v35, %v351_v36  ;;  %v7788_v39 = vsel %vm355_vm4, %v319_v35, %v351_v36  ;;  %v7791_v40 = vsel %vm358_vm5, %v319_v35, %v351_v36  ;;  %v7794_v41 = vsel %vm361_vm6, %v351_v36, %v319_v35 }
  0xdf   :  { %v428_v42 = vadd.f32 %v426_v37, %v354_v38 }
  0xe1   :  { %v6326_v43 = vmul.f32 -1.442695, %v428_v42  ;;  %452 = vrot.lane.b32.xlu1 %v428_v42, %s7384_s11  ;;  %v449_v47 = vrot.slane %v428_v42, 2 }
  0xe3   :  { %6541 = vpow2.f32 %v6326_v43 }
  0xe9   :  { %v6542_v44 = vpop.eup %6541 }
  0xea   :  { %v432_v45 = vadd.f32 1.0, %v6542_v44 }
  0xec   :  { %6543 = vrcp.f32 %v432_v45  ;;  %v444_v50 = vand.u32 2147483648, %v432_v45  ;;  %v442_v52 = vand.u32 2147483647, %v432_v45  ;;  %vm438_vm8 = vweird.f32 %v432_v45 }
  0xed   :  { %6545 = vtanh.f32 %v449_v47 }
  0xee   :  { %v445_v54 = vor.u32 1.1754944e-38, %v444_v50  ;;  %vm443_vm10 = vcmp.eq.f32.partialorder %v442_v52, 8.507059e+37 }
  0xf1   :  { %v321_v47 = vpop.f32.mrf.mxu0 }
  0xf2   :  { %v6544_v46 = vpop.eup %6543 }
  0xf3   :  { %v434_v48 = vmul.f32 %v6544_v46, %v432_v45  ;;  %vm439_vm7 = vweird.f32 %v6544_v46  ;;  %v6546_v56 = vpop.eup %6545  ;;  %v344_v45 = vpop.f32.mrf.mxu1 }
  0xf4   :  { %vm440_vm9 = vmor %vm438_vm8, %vm439_vm7 }
  0xf5   :  { %v435_v49 = vsub.f32 1.0, %v434_v48  ;;  %v7839_v48 = vadd.f32 %v321_v47, %v258_v29 }
  0xf7   :  { %v436_v51 = vmul.f32 %v6544_v46, %v435_v49 }
  0xf9   :  { %v437_v53 = vadd.f32 %v6544_v46, %v436_v51 }
  0xfb   :  { %v441_v55 = vsel %vm440_vm9, %v6544_v46, %v437_v53  ;;  %v345_v46 = vadd.f32 %v344_v45, %v259_v28  ;;  %v357_v53 = vrot.slane %v7788_v39, 2 }
  0xfc   :  { %v446_v57 = vsel %vm443_vm10, %v445_v54, %v441_v55 }
  0xfd   :  { %v480_v58 = vmul.f32 %v6546_v56, %v446_v57  ;;  %v479_v11 = vmul.f32 %v477_v9, %v446_v57  ;;  %v7841_v49 = vrot.slane %v345_v46, 6 }
  0xff   :  { %482 = vrot.lane.b32.xlu0 %v480_v58, %s7384_s11  ;;  %v7846_v50 = vsel %vm355_vm4, %v7839_v48, %v7841_v49  ;;  %v7851_v51 = vsel %vm358_vm5, %v7839_v48, %v7841_v49  ;;  %v7856_v28 = vsel %vm361_vm6, %v7841_v49, %v7839_v48 }
 0x153   :  { %v453_v21 = vpop.permute.xlu1 %452 }
 0x154   :  { %v454_v22 = vrot.slane %v453_v21, 2 }
 0x156   :  { %v6327_v23 = vmul.f32 -1.442695, %v454_v22 }
 0x171   :  { %v483_v12 = vpop.permute.xlu0 %482 }
 0x172   :  { %v7812_v13 = vadd.f32 %v483_v12, %v479_v11 }
 0x174   :  { %6547 = vtanh.f32 %v7812_v13 }
 0x175   :  { %6549 = vpow2.f32 %v6327_v23 }
 0x17a   :  { %v6548_v14 = vpop.eup %6547 }
 0x17b   :  { %488 = vrot.lane.b32.xlu1 %v6548_v14, %s7384_s11  ;;  %v6550_v24 = vpop.eup %6549 }
 0x17c   :  { %v459_v25 = vadd.f32 1.0, %v6550_v24 }
 0x17e   :  { %6551 = vrcp.f32 %v459_v25  ;;  %v471_v34 = vand.u32 2147483648, %v459_v25  ;;  %vm465_vm12 = vweird.f32 %v459_v25  ;;  %v469_v35 = vand.u32 2147483647, %v459_v25 }
 0x180   :  { %v472_v37 = vor.u32 1.1754944e-38, %v471_v34  ;;  %vm470_vm14 = vcmp.eq.f32.partialorder %v469_v35, 8.507059e+37 }
 0x184   :  { %v6552_v27 = vpop.eup %6551 }
 0x185   :  { %v461_v30 = vmul.f32 %v6552_v27, %v459_v25  ;;  %vm466_vm11 = vweird.f32 %v6552_v27 }
 0x186   :  { %vm467_vm13 = vmor %vm465_vm12, %vm466_vm11 }
 0x187   :  { %v462_v31 = vsub.f32 1.0, %v461_v30 }
 0x189   :  { %v463_v32 = vmul.f32 %v6552_v27, %v462_v31 }
 0x18b   :  { %v464_v33 = vadd.f32 %v6552_v27, %v463_v32 }
 0x18d   :  { %v468_v36 = vsel %vm467_vm13, %v6552_v27, %v464_v33 }
 0x18e   :  { %v473_v38 = vsel %vm470_vm14, %v472_v37, %v468_v36 }
 0x1ed   :  { %v489_v42 = vpop.permute.xlu1 %488 }
 0x1ee   :  { %v491_v43 = vmul.f32 %v489_v42, %v473_v38 }
 0x1f0   :  { %493 = vst.msk [vmem:[#allocation2] sm:$0x3] %vm492_vm15, %v491_v43  ;;  %6328 = vmatmul.msk.f32.vlgmr.msrb.gmra.mxu0 %vm379_vm0, %v491_v43  ;;  %6329 = vmatmul.msk.f32.vlgmr.msrb.gmra.mxu1 %vm379_vm0, %v491_v43 }
 0x1f1   :  { %945 = vmatpush.msrb.mxu0 %v7596_v1  ;;  %965 = vmatpush.msrb.mxu1 %v7591_v0 }
 0x1f3   :  { %946 = vmatpush.msrb.mxu0 %v7608_v3  ;;  %966 = vmatpush.msrb.mxu1 %v7601_v2 }
 0x1f5   :  { %947 = vmatpush.msrb.mxu0 %v7618_v5  ;;  %967 = vmatpush.msrb.mxu1 %v7613_v4 }
 0x1f7   :  { %v1264_v44 = vld [vmem:[#allocation2] sm:$0x3]  ;;  %948 = vmatpush.msrb.mxu0 %v7630_v7  ;;  %968 = vmatpush.msrb.mxu1 %v7625_v6 }
 0x1f8   :  { %1322 = vst [vmem:[#allocation1] ss:$4 sm:$0xff] %v1264_v44 }
 0x1f9   :  { %949 = vmatpush.msrb.mxu0 %v7645_v10  ;;  %969 = vmatpush.msrb.mxu1 %v7637_v8 }
 0x1fb   :  { %950 = vmatpush.msrb.mxu0 %v7669_v16  ;;  %970 = vmatpush.msrb.mxu1 %v7664_v15 }
 0x1fd   :  { %951 = vmatpush.msrb.mxu0 %v7682_v18  ;;  %971 = vmatpush.msrb.mxu1 %v7677_v17 }
 0x1ff   :  { %952 = vmatpush.msrb.mxu0 %v7694_v20  ;;  %972 = vmatpush.msrb.mxu1 %v7689_v19 }
 0x26d   :  { %v534_v26 = vpop.f32.mrf.mxu1  ;;  %v514_v52 = vpop.f32.mrf.mxu0 }
 0x26e   :  { %v539_v29 = vrot.slane %v534_v26, 6 }
 0x270   :  { %v540_v54 = vsel %vm353_vm3, %v514_v52, %v539_v29 }
 0x271   :  { %v542_v55 = vadd.f32 %v540_v54, %v357_v53 }
 0x273   :  { %v6330_v56 = vmul.f32 -1.442695, %v542_v55  ;;  %v563_v60 = vrot.slane %v542_v55, 2 }
 0x275   :  { %6553 = vpow2.f32 %v6330_v56  ;;  %v360_v56 = vrot.slane %v7791_v40, 4 }
 0x27b   :  { %v6554_v57 = vpop.eup %6553 }
 0x27c   :  { %v546_v58 = vadd.f32 1.0, %v6554_v57 }
 0x27e   :  { %6555 = vrcp.f32 %v546_v58  ;;  %v558_v63 = vand.u32 2147483648, %v546_v58  ;;  %v556_v11 = vand.u32 2147483647, %v546_v58  ;;  %vm552_vm2 = vweird.f32 %v546_v58 }
 0x27f   :  { %6557 = vtanh.f32 %v563_v60 }
 0x280   :  { %v559_v39 = vor.u32 1.1754944e-38, %v558_v63  ;;  %vm557_vm8 = vcmp.eq.f32.partialorder %v556_v11, 8.507059e+37 }
 0x284   :  { %v6556_v59 = vpop.eup %6555 }
 0x285   :  { %v548_v61 = vmul.f32 %v6556_v59, %v546_v58  ;;  %vm553_vm1 = vweird.f32 %v6556_v59  ;;  %v6558_v21 = vpop.eup %6557 }
 0x286   :  { %vm554_vm7 = vmor %vm552_vm2, %vm553_vm1 }
 0x287   :  { %v549_v62 = vsub.f32 1.0, %v548_v61 }
 0x289   :  { %v550_v9 = vmul.f32 %v6556_v59, %v549_v62 }
 0x28b   :  { %v551_v12 = vadd.f32 %v6556_v59, %v550_v9 }
 0x28d   :  { %v555_v14 = vsel %vm554_vm7, %v6556_v59, %v551_v12 }
 0x28e   :  { %v560_v22 = vsel %vm557_vm8, %v559_v39, %v555_v14 }
 0x28f   :  { %v590_v23 = vmul.f32 %v6558_v21, %v560_v22  ;;  %v589_v24 = vmul.f32 %v560_v22, %v7812_v13 }
 0x291   :  { %592 = vrot.lane.b32.xlu2 %v590_v23, %s7384_s11 }
 0x299   :  { %566 = vrot.lane.b32.xlu2 %v542_v55, %s7384_s11 }
 0x2eb   :  { %v593_v25 = vpop.permute.xlu2 %592 }
 0x2ec   :  { %v7863_v27 = vadd.f32 %v593_v25, %v589_v24 }
 0x2ee   :  { %6559 = vtanh.f32 %v7863_v27 }
 0x2f3   :  { %v567_v31 = vpop.permute.xlu2 %566 }
 0x2f4   :  { %v6560_v30 = vpop.eup %6559  ;;  %v568_v32 = vrot.slane %v567_v31, 2 }
 0x2f5   :  { %598 = vrot.lane.b32.xlu0 %v6560_v30, %s7384_s11 }
 0x2f6   :  { %v6331_v33 = vmul.f32 -1.442695, %v568_v32 }
 0x2f8   :  { %6561 = vpow2.f32 %v6331_v33 }
 0x2fe   :  { %v6562_v34 = vpop.eup %6561 }
 0x2ff   :  { %v573_v35 = vadd.f32 1.0, %v6562_v34 }
 0x301   :  { %6563 = vrcp.f32 %v573_v35  ;;  %v585_v43 = vand.u32 2147483648, %v573_v35  ;;  %vm579_vm10 = vweird.f32 %v573_v35  ;;  %v583_v44 = vand.u32 2147483647, %v573_v35 }
 0x303   :  { %v586_v46 = vor.u32 1.1754944e-38, %v585_v43  ;;  %vm584_vm12 = vcmp.eq.f32.partialorder %v583_v44, 8.507059e+37 }
 0x307   :  { %v6564_v36 = vpop.eup %6563 }
 0x308   :  { %v575_v37 = vmul.f32 %v6564_v36, %v573_v35  ;;  %vm580_vm9 = vweird.f32 %v6564_v36 }
 0x309   :  { %vm581_vm11 = vmor %vm579_vm10, %vm580_vm9 }
 0x30a   :  { %v576_v38 = vsub.f32 1.0, %v575_v37 }
 0x30c   :  { %v577_v42 = vmul.f32 %v6564_v36, %v576_v38 }
 0x30e   :  { %v578_v13 = vadd.f32 %v6564_v36, %v577_v42 }
 0x310   :  { %v582_v45 = vsel %vm581_vm11, %v6564_v36, %v578_v13 }
 0x311   :  { %v587_v47 = vsel %vm584_vm12, %v586_v46, %v582_v45 }
 0x367   :  { %v599_v26 = vpop.permute.xlu0 %598 }
 0x368   :  { %v601_v29 = vmul.f32 %v599_v26, %v587_v47 }
 0x36a   :  { %603 = vst.msk [vmem:[#allocation2 + $0x2] sm:$0x3] %vm492_vm15, %v601_v29  ;;  %6332 = vmatmul.msk.f32.vlgmr.msrb.gmra.mxu2 %vm379_vm0, %v601_v29  ;;  %6333 = vmatmul.msk.f32.vlgmr.msrb.gmra.mxu3 %vm379_vm0, %v601_v29 }
 0x36b   :  { %1055 = vmatpush.msrb.mxu2 %v7596_v1  ;;  %1075 = vmatpush.msrb.mxu3 %v7591_v0 }
 0x36d   :  { %1056 = vmatpush.msrb.mxu2 %v7608_v3  ;;  %1076 = vmatpush.msrb.mxu3 %v7601_v2 }
 0x36f   :  { %1057 = vmatpush.msrb.mxu2 %v7618_v5  ;;  %1077 = vmatpush.msrb.mxu3 %v7613_v4 }
 0x371   :  { %v1265_v52 = vld [vmem:[#allocation2 + $0x2] sm:$0x3]  ;;  %1058 = vmatpush.msrb.mxu2 %v7630_v7  ;;  %1078 = vmatpush.msrb.mxu3 %v7625_v6 }
 0x372   :  { %1324 = vst [vmem:[#allocation1 + $0x1] ss:$4 sm:$0xff] %v1265_v52 }
 0x373   :  { %1059 = vmatpush.msrb.mxu2 %v7645_v10  ;;  %1079 = vmatpush.msrb.mxu3 %v7637_v8 }
 0x375   :  { %1060 = vmatpush.msrb.mxu2 %v7669_v16  ;;  %1080 = vmatpush.msrb.mxu3 %v7664_v15 }
 0x377   :  { %1061 = vmatpush.msrb.mxu2 %v7682_v18  ;;  %1081 = vmatpush.msrb.mxu3 %v7677_v17 }
 0x379   :  { %1062 = vmatpush.msrb.mxu2 %v7694_v20  ;;  %1082 = vmatpush.msrb.mxu3 %v7689_v19 }
 0x3ed   :  { %v644_v53 = vpop.f32.mrf.mxu3  ;;  %v624_v55 = vpop.f32.mrf.mxu2 }
 0x3ee   :  { %v649_v54 = vrot.slane %v644_v53, 6 }
 0x3f0   :  { %v650_v57 = vsel %vm353_vm3, %v624_v55, %v649_v54 }
 0x3f1   :  { %v652_v58 = vadd.f32 %v650_v57, %v360_v56 }
 0x3f3   :  { %676 = vrot.lane.b32.xlu2 %v652_v58, %s7384_s11  ;;  %v6334_v59 = vmul.f32 -1.442695, %v652_v58  ;;  %v673_v63 = vrot.slane %v652_v58, 2 }
 0x3f5   :  { %6565 = vpow2.f32 %v6334_v59 }
 0x3fb   :  { %v6566_v60 = vpop.eup %6565 }
 0x3fc   :  { %v656_v61 = vadd.f32 1.0, %v6566_v60 }
 0x3fe   :  { %6567 = vrcp.f32 %v656_v61  ;;  %v668_v12 = vand.u32 2147483648, %v656_v61  ;;  %v666_v14 = vand.u32 2147483647, %v656_v61  ;;  %vm662_vm14 = vweird.f32 %v656_v61 }
 0x3ff   :  { %6569 = vtanh.f32 %v673_v63 }
 0x400   :  { %v669_v21 = vor.u32 1.1754944e-38, %v668_v12  ;;  %vm667_vm2 = vcmp.eq.f32.partialorder %v666_v14, 8.507059e+37 }
 0x404   :  { %v6568_v62 = vpop.eup %6567 }
 0x405   :  { %v658_v9 = vmul.f32 %v6568_v62, %v656_v61  ;;  %vm663_vm13 = vweird.f32 %v6568_v62  ;;  %v6570_v23 = vpop.eup %6569 }
 0x406   :  { %vm664_vm1 = vmor %vm662_vm14, %vm663_vm13 }
 0x407   :  { %v659_v11 = vsub.f32 1.0, %v658_v9 }
 0x409   :  { %v660_v39 = vmul.f32 %v6568_v62, %v659_v11 }
 0x40b   :  { %v661_v40 = vadd.f32 %v6568_v62, %v660_v39 }
 0x40d   :  { %v665_v22 = vsel %vm664_vm1, %v6568_v62, %v661_v40 }
 0x40e   :  { %v670_v24 = vsel %vm667_vm2, %v669_v21, %v665_v22 }
 0x40f   :  { %v700_v25 = vmul.f32 %v6570_v23, %v670_v24  ;;  %v699_v30 = vmul.f32 %v670_v24, %v7863_v27 }
 0x411   :  { %702 = vrot.lane.b32.xlu1 %v700_v25, %s7384_s11 }
 0x44d   :  { %v677_v34 = vpop.permute.xlu2 %676 }
 0x44e   :  { %v678_v35 = vrot.slane %v677_v34, 2 }
 0x450   :  { %v6335_v36 = vmul.f32 -1.442695, %v678_v35 }
 0x483   :  { %v703_v31 = vpop.permute.xlu1 %702 }
 0x484   :  { %v7891_v32 = vadd.f32 %v703_v31, %v699_v30 }
 0x486   :  { %6571 = vtanh.f32 %v7891_v32 }
 0x487   :  { %6573 = vpow2.f32 %v6335_v36 }
 0x48c   :  { %v6572_v33 = vpop.eup %6571 }
 0x48d   :  { %708 = vrot.lane.b32.xlu0 %v6572_v33, %s7384_s11  ;;  %v6574_v37 = vpop.eup %6573 }
 0x48e   :  { %v683_v38 = vadd.f32 1.0, %v6574_v37 }
 0x490   :  { %6575 = vrcp.f32 %v683_v38  ;;  %v695_v45 = vand.u32 2147483648, %v683_v38  ;;  %vm689_vm8 = vweird.f32 %v683_v38  ;;  %v693_v46 = vand.u32 2147483647, %v683_v38 }
 0x492   :  { %v696_v26 = vor.u32 1.1754944e-38, %v695_v45  ;;  %vm694_vm10 = vcmp.eq.f32.partialorder %v693_v46, 8.507059e+37 }
 0x496   :  { %v6576_v42 = vpop.eup %6575 }
 0x497   :  { %v685_v13 = vmul.f32 %v6576_v42, %v683_v38  ;;  %vm690_vm7 = vweird.f32 %v6576_v42 }
 0x498   :  { %vm691_vm9 = vmor %vm689_vm8, %vm690_vm7 }
 0x499   :  { %v686_v43 = vsub.f32 1.0, %v685_v13  ;;  %v364_v13 = vsel %vm353_vm3, %v7839_v48, %v7841_v49 }
 0x49b   :  { %v687_v44 = vmul.f32 %v6576_v42, %v686_v43 }
 0x49d   :  { %v688_v27 = vadd.f32 %v6576_v42, %v687_v44 }
 0x49f   :  { %v692_v47 = vsel %vm691_vm9, %v6576_v42, %v688_v27 }
 0x4a0   :  { %v697_v29 = vsel %vm694_vm10, %v696_v26, %v692_v47 }
 0x4ff   :  { %v709_v52 = vpop.permute.xlu0 %708 }
 0x500   :  { %v711_v53 = vmul.f32 %v709_v52, %v697_v29 }
 0x502   :  { %713 = vst.msk [vmem:[#allocation2 + $0x4] sm:$0x3] %vm492_vm15, %v711_v53  ;;  %6336 = vmatmul.msk.f32.vlgmr.msra.gmra.mxu0 %vm379_vm0, %v711_v53  ;;  %6337 = vmatmul.msk.f32.vlgmr.msra.gmra.mxu1 %vm379_vm0, %v711_v53 }
 0x503   :  { %1185 = vmatpush.msra.mxu1 %v7591_v0  ;;  %1165 = vmatpush.msra.mxu0 %v7596_v1 }
 0x505   :  { %1186 = vmatpush.msra.mxu1 %v7601_v2  ;;  %1166 = vmatpush.msra.mxu0 %v7608_v3  ;;  %v363_v3 = vrot.slane %v7794_v41, 6 }
 0x507   :  { %1187 = vmatpush.msra.mxu1 %v7613_v4  ;;  %1167 = vmatpush.msra.mxu0 %v7618_v5 }
 0x509   :  { %v1266_v54 = vld [vmem:[#allocation2 + $0x4] sm:$0x3]  ;;  %1188 = vmatpush.msra.mxu1 %v7625_v6  ;;  %1168 = vmatpush.msra.mxu0 %v7630_v7 }
 0x50a   :  { %1326 = vst [vmem:[#allocation1 + $0x2] ss:$4 sm:$0xff] %v1266_v54 }
 0x50b   :  { %1189 = vmatpush.msra.mxu1 %v7637_v8  ;;  %1169 = vmatpush.msra.mxu0 %v7645_v10 }
 0x50d   :  { %1190 = vmatpush.msra.mxu1 %v7664_v15  ;;  %1170 = vmatpush.msra.mxu0 %v7669_v16 }
 0x50f   :  { %1191 = vmatpush.msra.mxu1 %v7677_v17  ;;  %1171 = vmatpush.msra.mxu0 %v7682_v18 }
 0x511   :  { %1192 = vmatpush.msra.mxu1 %v7689_v19  ;;  %1172 = vmatpush.msra.mxu0 %v7694_v20 }
 0x57f   :  { %v754_v0 = vpop.f32.mrf.mxu1  ;;  %v734_v2 = vpop.f32.mrf.mxu0 }
 0x580   :  { %v759_v1 = vrot.slane %v754_v0, 6 }
 0x582   :  { %v760_v4 = vsel %vm353_vm3, %v734_v2, %v759_v1 }
 0x583   :  { %v762_v5 = vadd.f32 %v760_v4, %v363_v3 }
 0x585   :  { %786 = vrot.lane.b32.xlu2 %v762_v5, %s7384_s11  ;;  %v6338_v6 = vmul.f32 -1.442695, %v762_v5  ;;  %v783_v15 = vrot.slane %v762_v5, 2 }
 0x587   :  { %6577 = vpow2.f32 %v6338_v6 }
 0x58d   :  { %v6578_v7 = vpop.eup %6577 }
 0x58e   :  { %v766_v8 = vadd.f32 1.0, %v6578_v7 }
 0x590   :  { %6579 = vrcp.f32 %v766_v8  ;;  %v778_v18 = vand.u32 2147483648, %v766_v8  ;;  %v776_v20 = vand.u32 2147483647, %v766_v8  ;;  %vm772_vm12 = vweird.f32 %v766_v8 }
 0x591   :  { %6581 = vtanh.f32 %v783_v15 }
 0x592   :  { %v779_v55 = vor.u32 1.1754944e-38, %v778_v18  ;;  %vm777_vm14 = vcmp.eq.f32.partialorder %v776_v20, 8.507059e+37 }
 0x596   :  { %v6580_v10 = vpop.eup %6579 }
 0x597   :  { %v768_v16 = vmul.f32 %v6580_v10, %v766_v8  ;;  %vm773_vm11 = vweird.f32 %v6580_v10  ;;  %v6582_v57 = vpop.eup %6581 }
 0x598   :  { %vm774_vm13 = vmor %vm772_vm12, %vm773_vm11 }
 0x599   :  { %v769_v17 = vsub.f32 1.0, %v768_v16 }
 0x59b   :  { %v770_v19 = vmul.f32 %v6580_v10, %v769_v17 }
 0x59d   :  { %v771_v41 = vadd.f32 %v6580_v10, %v770_v19 }
 0x59f   :  { %v775_v56 = vsel %vm774_vm13, %v6580_v10, %v771_v41 }
 0x5a0   :  { %v780_v58 = vsel %vm777_vm14, %v779_v55, %v775_v56 }
 0x5a1   :  { %v810_v59 = vmul.f32 %v6582_v57, %v780_v58  ;;  %v809_v60 = vmul.f32 %v780_v58, %v7891_v32 }
 0x5a3   :  { %812 = vrot.lane.b32.xlu1 %v810_v59, %s7384_s11 }
 0x5df   :  { %v787_v9 = vpop.permute.xlu2 %786 }
 0x5e0   :  { %v788_v11 = vrot.slane %v787_v9, 2 }
 0x5e2   :  { %v6339_v12 = vmul.f32 -1.442695, %v788_v11 }
 0x615   :  { %v813_v61 = vpop.permute.xlu1 %812 }
 0x616   :  { %v7919_v62 = vadd.f32 %v813_v61, %v809_v60 }
 0x618   :  { %6583 = vtanh.f32 %v7919_v62 }
 0x619   :  { %6585 = vpow2.f32 %v6339_v12 }
 0x61e   :  { %v6584_v63 = vpop.eup %6583 }
 0x61f   :  { %818 = vrot.lane.b32.xlu0 %v6584_v63, %s7384_s11  ;;  %v6586_v39 = vpop.eup %6585 }
 0x620   :  { %v793_v14 = vadd.f32 1.0, %v6586_v39 }
 0x622   :  { %6587 = vrcp.f32 %v793_v14  ;;  %v805_v25 = vand.u32 2147483648, %v793_v14  ;;  %vm799_vm2 = vweird.f32 %v793_v14  ;;  %v803_v30 = vand.u32 2147483647, %v793_v14 }
 0x624   :  { %v806_v32 = vor.u32 1.1754944e-38, %v805_v25  ;;  %vm804_vm8 = vcmp.eq.f32.partialorder %v803_v30, 8.507059e+37 }
 0x628   :  { %v6588_v40 = vpop.eup %6587 }
 0x629   :  { %v795_v21 = vmul.f32 %v6588_v40, %v793_v14  ;;  %vm800_vm1 = vweird.f32 %v6588_v40  ;;  %v366_v14 = vrot.slane %v7846_v50, 2 }
 0x62a   :  { %vm801_vm7 = vmor %vm799_vm2, %vm800_vm1 }
 0x62b   :  { %v796_v22 = vsub.f32 1.0, %v795_v21 }
 0x62d   :  { %v797_v23 = vmul.f32 %v6588_v40, %v796_v22 }
 0x62f   :  { %v798_v24 = vadd.f32 %v6588_v40, %v797_v23 }
 0x631   :  { %v802_v31 = vsel %vm801_vm7, %v6588_v40, %v798_v24 }
 0x632   :  { %v807_v33 = vsel %vm804_vm8, %v806_v32, %v802_v31 }
 0x691   :  { %v819_v34 = vpop.permute.xlu0 %818 }
 0x692   :  { %v821_v35 = vmul.f32 %v819_v34, %v807_v33 }
 0x694   :  { %823 = vst.msk [vmem:[#allocation2 + $0x6] sm:$0x3] %vm492_vm15, %v821_v35  ;;  %6340 = vmatmul.msk.f32.vlgmr.msra.gmra.mxu2 %vm379_vm0, %v821_v35  ;;  %6341 = vmatmul.msk.f32.vlgmr.msra.gmra.mxu3 %vm379_vm0, %v821_v35 }
 0x69b   :  { %v1267_v36 = vld [vmem:[#allocation2 + $0x6] sm:$0x3] }
 0x69c   :  { %1328 = vst [vmem:[#allocation1 + $0x3] ss:$4 sm:$0xff] %v1267_v36 }
 0x717   :  { %v864_v37 = vpop.f32.mrf.mxu3  ;;  %v844_v42 = vpop.f32.mrf.mxu2 }
 0x718   :  { %v869_v38 = vrot.slane %v864_v37, 6 }
 0x71a   :  { %v870_v43 = vsel %vm353_vm3, %v844_v42, %v869_v38 }
 0x71b   :  { %v872_v44 = vadd.f32 %v870_v43, %v364_v13  ;;  %v1306_v43 = vld [vmem:[#allocation5 + $0x70] sm:$0xff] }
 0x71c   :  { %1351 = vmatpush.msra.mxu2 %v1306_v43 }
 0x71d   :  { %896 = vrot.lane.b32.xlu2 %v872_v44, %s7384_s11  ;;  %v6342_v27 = vmul.f32 -1.442695, %v872_v44  ;;  %v893_v26 = vrot.slane %v872_v44, 2  ;;  %v1307_v44 = vld [vmem:[#allocation5 + $0x78] sm:$0xff] }
 0x71e   :  { %1374 = vmatpush.msra.mxu3 %v1307_v44 }
 0x71f   :  { %6589 = vpow2.f32 %v6342_v27  ;;  %v1304_v27 = vld [vmem:[#allocation5 + $0x60] sm:$0xff] }
 0x720   :  { %1352 = vmatpush.msra.mxu2 %v1304_v27 }
 0x725   :  { %v6590_v45 = vpop.eup %6589 }
 0x726   :  { %v876_v46 = vadd.f32 1.0, %v6590_v45  ;;  %v1305_v45 = vld [vmem:[#allocation5 + $0x68] sm:$0xff] }
 0x727   :  { %1375 = vmatpush.msra.mxu3 %v1305_v45 }
 0x728   :  { %6591 = vrcp.f32 %v876_v46  ;;  %v888_v53 = vand.u32 2147483648, %v876_v46  ;;  %v886_v0 = vand.u32 2147483647, %v876_v46  ;;  %vm882_vm10 = vweird.f32 %v876_v46 }
 0x729   :  { %6593 = vtanh.f32 %v893_v26 }
 0x72a   :  { %v889_v49 = vor.u32 1.1754944e-38, %v888_v53  ;;  %vm887_vm12 = vcmp.eq.f32.partialorder %v886_v0, 8.507059e+37 }
 0x72e   :  { %v6592_v47 = vpop.eup %6591 }
 0x72f   :  { %v878_v29 = vmul.f32 %v6592_v47, %v876_v46  ;;  %vm883_vm9 = vweird.f32 %v6592_v47  ;;  %v6594_v2 = vpop.eup %6593  ;;  %v1302_v46 = vld [vmem:[#allocation5 + $0x50] sm:$0xff] }
 0x730   :  { %vm884_vm11 = vmor %vm882_vm10, %vm883_vm9  ;;  %1353 = vmatpush.msra.mxu2 %v1302_v46 }
 0x731   :  { %v879_v52 = vsub.f32 1.0, %v878_v29 }
 0x733   :  { %v880_v54 = vmul.f32 %v6592_v47, %v879_v52 }
 0x735   :  { %v881_v48 = vadd.f32 %v6592_v47, %v880_v54 }
 0x737   :  { %v885_v1 = vsel %vm884_vm11, %v6592_v47, %v881_v48  ;;  %v1303_v47 = vld [vmem:[#allocation5 + $0x58] sm:$0xff] }
 0x738   :  { %v890_v3 = vsel %vm887_vm12, %v889_v49, %v885_v1  ;;  %1376 = vmatpush.msra.mxu3 %v1303_v47 }
 0x739   :  { %v920_v4 = vmul.f32 %v6594_v2, %v890_v3  ;;  %v919_v5 = vmul.f32 %v890_v3, %v7919_v62  ;;  %v1300_v2 = vld [vmem:[#allocation5 + $0x40] sm:$0xff]  ;;  %v1301_v3 = vld [vmem:[#allocation5 + $0x48] sm:$0xff] }
 0x73a   :  { %1354 = vmatpush.msra.mxu2 %v1300_v2  ;;  %1377 = vmatpush.msra.mxu3 %v1301_v3 }
 0x73b   :  { %922 = vrot.lane.b32.xlu1 %v920_v4, %s7384_s11  ;;  %v1298_v4 = vld [vmem:[#allocation5 + $0x30] sm:$0xff] }
 0x73c   :  { %1355 = vmatpush.msra.mxu2 %v1298_v4 }
 0x777   :  { %v897_v10 = vpop.permute.xlu2 %896 }
 0x778   :  { %v898_v15 = vrot.slane %v897_v10, 2  ;;  %v1295_v10 = vld [vmem:[#allocation5 + $0x18] sm:$0xff] }
 0x77a   :  { %v6343_v16 = vmul.f32 -1.442695, %v898_v15 }
 0x7ad   :  { %v923_v6 = vpop.permute.xlu1 %922 }
 0x7ae   :  { %v7933_v7 = vadd.f32 %v923_v6, %v919_v5  ;;  %v1299_v5 = vld [vmem:[#allocation5 + $0x38] sm:$0xff]  ;;  %v1296_v6 = vld [vmem:[#allocation5 + $0x20] sm:$0xff] }
 0x7af   :  { %1378 = vmatpush.msra.mxu3 %v1299_v5  ;;  %1356 = vmatpush.msra.mxu2 %v1296_v6 }
 0x7b0   :  { %6595 = vtanh.f32 %v7933_v7 }
 0x7b1   :  { %6597 = vpow2.f32 %v6343_v16  ;;  %v1292_v16 = vld [vmem:[#allocation5] sm:$0xff] }
 0x7b6   :  { %v6596_v8 = vpop.eup %6595 }
 0x7b7   :  { %928 = vrot.lane.b32.xlu0 %v6596_v8, %s7384_s11  ;;  %v6598_v17 = vpop.eup %6597  ;;  %v1294_v8 = vld [vmem:[#allocation5 + $0x10] sm:$0xff] }
 0x7b8   :  { %v903_v18 = vadd.f32 1.0, %v6598_v17  ;;  %1357 = vmatpush.msra.mxu2 %v1294_v8  ;;  %v1293_v17 = vld [vmem:[#allocation5 + $0x8] sm:$0xff] }
 0x7ba   :  { %6599 = vrcp.f32 %v903_v18  ;;  %v915_v57 = vand.u32 2147483648, %v903_v18  ;;  %vm909_vm14 = vweird.f32 %v903_v18  ;;  %v913_v58 = vand.u32 2147483647, %v903_v18  ;;  %1358 = vmatpush.msra.mxu2 %v1292_v16  ;;  %v8015_v16 = vld [vmem:[#allocation8 + $0x50] sm:$0xff] }
 0x7bc   :  { %v916_v60 = vor.u32 1.1754944e-38, %v915_v57  ;;  %vm914_vm2 = vcmp.eq.f32.partialorder %v913_v58, 8.507059e+37 }
 0x7c0   :  { %v6600_v19 = vpop.eup %6599 }
 0x7c1   :  { %v905_v20 = vmul.f32 %v6600_v19, %v903_v18  ;;  %vm910_vm13 = vweird.f32 %v6600_v19 }
 0x7c2   :  { %vm911_vm1 = vmor %vm909_vm14, %vm910_vm13 }
 0x7c3   :  { %v906_v41 = vsub.f32 1.0, %v905_v20 }
 0x7c5   :  { %v907_v55 = vmul.f32 %v6600_v19, %v906_v41 }
 0x7c7   :  { %v908_v56 = vadd.f32 %v6600_v19, %v907_v55 }
 0x7c9   :  { %v912_v59 = vsel %vm911_vm1, %v6600_v19, %v908_v56 }
 0x7ca   :  { %v917_v61 = vsel %vm914_vm2, %v916_v60, %v912_v59 }
 0x829   :  { %v929_v62 = vpop.permute.xlu0 %928 }
 0x82a   :  { %v931_v63 = vmul.f32 %v929_v62, %v917_v61  ;;  %v1337_v62 = vld.sshfl [vmem:[#allocation1] sm:$0xff pattern:$0x73625140] }
 0x82c   :  { %933 = vst.msk [vmem:[#allocation2 + $0x8] sm:$0x3] %vm492_vm15, %v931_v63  ;;  %6344 = vmatmul.msk.f32.vlgmr.msrb.gmra.mxu0 %vm379_vm0, %v931_v63  ;;  %6345 = vmatmul.msk.f32.vlgmr.msrb.gmra.mxu1 %vm379_vm0, %v931_v63 }
 0x833   :  { %v1268_v9 = vld [vmem:[#allocation2 + $0x8] sm:$0x3] }
 0x834   :  { %1330 = vst [vmem:[#allocation1 + $0x20] ss:$4 sm:$0xff] %v1268_v9 }
 0x8a9   :  { %v974_v11 = vpop.f32.mrf.mxu1  ;;  %v954_v39 = vpop.f32.mrf.mxu0 }
 0x8aa   :  { %v979_v12 = vrot.slane %v974_v11, 6 }
 0x8ac   :  { %v980_v40 = vsel %vm353_vm3, %v954_v39, %v979_v12  ;;  %v368_v39 = vrot.slane %v7851_v51, 4 }
 0x8ad   :  { %v982_v21 = vadd.f32 %v980_v40, %v366_v14  ;;  %v7958_v14 = vld [vmem:[%s9523_s27] sm:$0x3]  ;;  %s9528_s27 = sld [smem:[#allocation42_spill]] }
 0x8af   :  { %1006 = vrot.lane.b32.xlu2 %v982_v21, %s7384_s11  ;;  %v6346_v22 = vmul.f32 -1.442695, %v982_v21  ;;  %v1003_v30 = vrot.slane %v982_v21, 2 }
 0x8b1   :  { %6601 = vpow2.f32 %v6346_v22  ;;  %v1311_v22 = vperm.slane %v7958_v14, 1 }
 0x8b3   :  { %s6302_s7 = sshll.u32 %s9528_s27, 4  ;;  %s6303_s7 = int_to_ptr.hbm [resolvable:$true] %s6302_s7 }
 0x8b7   :  { %v6602_v23 = vpop.eup %6601 }
 0x8b8   :  { %v986_v24 = vadd.f32 1.0, %v6602_v23 }
 0x8ba   :  { %6603 = vrcp.f32 %v986_v24  ;;  %v998_v33 = vand.u32 2147483648, %v986_v24  ;;  %v996_v35 = vand.u32 2147483647, %v986_v24  ;;  %vm992_vm8 = vweird.f32 %v986_v24 }
 0x8bb   :  { %6605 = vtanh.f32 %v1003_v30 }
 0x8bc   :  { %v999_v36 = vor.u32 1.1754944e-38, %v998_v33  ;;  %vm997_vm10 = vcmp.eq.f32.partialorder %v996_v35, 8.507059e+37 }
 0x8c0   :  { %v6604_v25 = vpop.eup %6603 }
 0x8c1   :  { %v988_v31 = vmul.f32 %v6604_v25, %v986_v24  ;;  %vm993_vm7 = vweird.f32 %v6604_v25  ;;  %v6606_v38 = vpop.eup %6605  ;;  %v1310_v24 = vperm.slane %v7958_v14, 0 }
 0x8c2   :  { %vm994_vm9 = vmor %vm992_vm8, %vm993_vm7 }
 0x8c3   :  { %v989_v32 = vsub.f32 1.0, %v988_v31 }
 0x8c5   :  { %v990_v34 = vmul.f32 %v6604_v25, %v989_v32 }
 0x8c7   :  { %v991_v50 = vadd.f32 %v6604_v25, %v990_v34 }
 0x8c9   :  { %v995_v37 = vsel %vm994_vm9, %v6604_v25, %v991_v50 }
 0x8ca   :  { %v1000_v42 = vsel %vm997_vm10, %v999_v36, %v995_v37 }
 0x8cb   :  { %v1030_v13 = vmul.f32 %v6606_v38, %v1000_v42  ;;  %v1029_v26 = vmul.f32 %v1000_v42, %v7933_v7  ;;  %v1297_v7 = vld [vmem:[#allocation5 + $0x28] sm:$0xff] }
 0x8cc   :  { %1379 = vmatpush.msra.mxu3 %v1297_v7 }
 0x8cd   :  { %1032 = vrot.lane.b32.xlu1 %v1030_v13, %s7384_s11 }
 0x8ce   :  { %1380 = vmatpush.msra.mxu3 %v1295_v10 }
 0x8d0   :  { %1381 = vmatpush.msra.mxu3 %v1293_v17  ;;  %v8017_v17 = vld [vmem:[#allocation8 + $0x48] sm:$0xff] }
 0x909   :  { %v1007_v54 = vpop.permute.xlu2 %1006 }
 0x90a   :  { %v1008_v0 = vrot.slane %v1007_v54, 2  ;;  %v7988_v54 = vld [vmem:[#allocation8 + $0x78] sm:$0xff] }
 0x90b   :  { %1448 = vmatpush.msrb.mxu1 %v7988_v54 }
 0x90c   :  { %v6347_v48 = vmul.f32 -1.442695, %v1008_v0  ;;  %v7990_v0 = vld [vmem:[#allocation8 + $0x70] sm:$0xff] }
 0x90d   :  { %1428 = vmatpush.msrb.mxu0 %v7990_v0 }
 0x93f   :  { %v1033_v29 = vpop.permute.xlu1 %1032 }
 0x940   :  { %v7945_v52 = vadd.f32 %v1033_v29, %v1029_v26 }
 0x942   :  { %6607 = vtanh.f32 %v7945_v52 }
 0x943   :  { %6609 = vpow2.f32 %v6347_v48  ;;  %v7992_v48 = vld [vmem:[#allocation8 + $0x68] sm:$0xff] }
 0x944   :  { %1449 = vmatpush.msrb.mxu1 %v7992_v48 }
 0x948   :  { %v6608_v53 = vpop.eup %6607 }
 0x949   :  { %1038 = vrot.lane.b32.xlu0 %v6608_v53, %s7384_s11  ;;  %v6610_v49 = vpop.eup %6609 }
 0x94a   :  { %v1013_v1 = vadd.f32 1.0, %v6610_v49  ;;  %v7996_v49 = vld [vmem:[#allocation8 + $0x60] sm:$0xff] }
 0x94b   :  { %1429 = vmatpush.msrb.mxu0 %v7996_v49 }
 0x94c   :  { %6611 = vrcp.f32 %v1013_v1  ;;  %v1025_v55 = vand.u32 2147483648, %v1013_v1  ;;  %vm1019_vm12 = vweird.f32 %v1013_v1  ;;  %v1023_v56 = vand.u32 2147483647, %v1013_v1 }
 0x94d   :  { %1430 = vmatpush.msrb.mxu0 %v8015_v16 }
 0x94e   :  { %v1026_v58 = vor.u32 1.1754944e-38, %v1025_v55  ;;  %vm1024_vm14 = vcmp.eq.f32.partialorder %v1023_v56, 8.507059e+37  ;;  %v8040_v55 = vld [vmem:[#allocation8 + $0x18] sm:$0xff] }
 0x952   :  { %v6612_v15 = vpop.eup %6611 }
 0x953   :  { %v1015_v18 = vmul.f32 %v6612_v15, %v1013_v1  ;;  %vm1020_vm11 = vweird.f32 %v6612_v15  ;;  %v7998_v1 = vld [vmem:[#allocation8 + $0x58] sm:$0xff] }
 0x954   :  { %vm1021_vm13 = vmor %vm1019_vm12, %vm1020_vm11  ;;  %1450 = vmatpush.msrb.mxu1 %v7998_v1 }
 0x955   :  { %v1016_v19 = vsub.f32 1.0, %v1015_v18  ;;  %v8024_v18 = vld [vmem:[#allocation8 + $0x38] sm:$0xff] }
 0x956   :  { %1451 = vmatpush.msrb.mxu1 %v8017_v17 }
 0x957   :  { %v1017_v20 = vmul.f32 %v6612_v15, %v1016_v19  ;;  %v8030_v19 = vld [vmem:[#allocation8 + $0x30] sm:$0xff] }
 0x958   :  { %1452 = vmatpush.msrb.mxu1 %v8024_v18 }
 0x959   :  { %v1018_v41 = vadd.f32 %v6612_v15, %v1017_v20  ;;  %v8032_v20 = vld [vmem:[#allocation8 + $0x28] sm:$0xff] }
 0x95a   :  { %1453 = vmatpush.msrb.mxu1 %v8032_v20 }
 0x95b   :  { %v1022_v57 = vsel %vm1021_vm13, %v6612_v15, %v1018_v41  ;;  %v8038_v41 = vld [vmem:[#allocation8 + $0x20] sm:$0xff] }
 0x95c   :  { %v1027_v59 = vsel %vm1024_vm14, %v1026_v58, %v1022_v57  ;;  %1454 = vmatpush.msrb.mxu1 %v8040_v55  ;;  %v8046_v57 = vld [vmem:[#allocation8 + $0x10] sm:$0xff]  ;;  %v8048_v58 = vld [vmem:[#allocation8 + $0x8] sm:$0xff] }
 0x95e   :  { %1455 = vmatpush.msrb.mxu1 %v8048_v58 }
 0x9bb   :  { %v1039_v60 = vpop.permute.xlu0 %1038 }
 0x9bc   :  { %v1041_v61 = vmul.f32 %v1039_v60, %v1027_v59  ;;  %v8054_v59 = vld [vmem:[#allocation8] sm:$0xff]  ;;  %v6357_v60 = vld [vmem:[%s9484_s23 + $0x2] sm:$0x3] }
 0x9be   :  { %1043 = vst.msk [vmem:[#allocation2 + $0xa] sm:$0x3] %vm492_vm15, %v1041_v61  ;;  %6348 = vmatmul.msk.f32.vlgmr.msrb.gmra.mxu2 %vm379_vm0, %v1041_v61  ;;  %6349 = vmatmul.msk.f32.vlgmr.msrb.gmra.mxu3 %vm379_vm0, %v1041_v61 }
 0x9bf   :  { %1561 = vmatpush.msrb.mxu3 %v7988_v54  ;;  %1541 = vmatpush.msrb.mxu2 %v7990_v0 }
 0x9c1   :  { %1562 = vmatpush.msrb.mxu3 %v7992_v48  ;;  %1542 = vmatpush.msrb.mxu2 %v7996_v49 }
 0x9c3   :  { %1563 = vmatpush.msrb.mxu3 %v7998_v1  ;;  %1543 = vmatpush.msrb.mxu2 %v8015_v16 }
 0x9c5   :  { %v1269_v63 = vld [vmem:[#allocation2 + $0xa] sm:$0x3]  ;;  %1564 = vmatpush.msrb.mxu3 %v8017_v17 }
 0x9c6   :  { %1332 = vst [vmem:[#allocation1 + $0x21] ss:$4 sm:$0xff] %v1269_v63  ;;  %6358 = vmatmul.msk.f32.vlgmr.msra.gmra.mxu2 %vm379_vm0, %v1337_v62  ;;  %6360 = vmatmul.msk.f32.vlgmr.msra.gmra.mxu3 %vm379_vm0, %v1337_v62 }
 0x9c7   :  { %1565 = vmatpush.msrb.mxu3 %v8024_v18 }
 0x9c9   :  { %1566 = vmatpush.msrb.mxu3 %v8032_v20 }
 0x9cb   :  { %1567 = vmatpush.msrb.mxu3 %v8040_v55 }
 0x9cd   :  { %1568 = vmatpush.msrb.mxu3 %v8048_v58 }
 0x9cf   :  { %1781 = vmatpush.msra.mxu3 %v7988_v54 }
 0x9d1   :  { %1782 = vmatpush.msra.mxu3 %v7992_v48 }
 0x9d3   :  { %1783 = vmatpush.msra.mxu3 %v7998_v1 }
 0x9d5   :  { %1784 = vmatpush.msra.mxu3 %v8017_v17 }
 0x9d7   :  { %1785 = vmatpush.msra.mxu3 %v8024_v18 }
 0x9d9   :  { %1786 = vmatpush.msra.mxu3 %v8032_v20 }
 0x9db   :  { %1787 = vmatpush.msra.mxu3 %v8040_v55 }
 0x9dd   :  { %1788 = vmatpush.msra.mxu3 %v8048_v58 }
 0xa41   :  { %v1064_v9 = vpop.f32.mrf.mxu2  ;;  %v1084_v11 = vpop.f32.mrf.mxu3 }
 0xa42   :  { %v1089_v12 = vrot.slane %v1084_v11, 6 }
 0xa44   :  { %v1090_v40 = vsel %vm353_vm3, %v1064_v9, %v1089_v12 }
 0xa45   :  { %v1092_v21 = vadd.f32 %v1090_v40, %v368_v39 }
 0xa47   :  { %1116 = vrot.lane.b32.xlu2 %v1092_v21, %s7384_s11  ;;  %v6350_v23 = vmul.f32 -1.442695, %v1092_v21  ;;  %v1113_v38 = vrot.slane %v1092_v21, 2 }
 0xa49   :  { %6613 = vpow2.f32 %v6350_v23  ;;  %v1360_v25 = vpop.f32.mrf.mxu2  ;;  %v1383_v30 = vpop.f32.mrf.mxu3 }
 0xa4a   :  { %v1384_v51 = vadd.f32 %v1383_v30, %v1311_v22  ;;  %v7968_v31 = vadd.f32 %v1360_v25, %v1310_v24  ;;  %v6356_v30 = vld [vmem:[%s9483_s22 + $0x2] sm:$0x3] }
 0xa4c   :  { %v7970_v32 = vrot.slane %v1384_v51, 6 }
 0xa4e   :  { %v7975_v33 = vsel %vm355_vm4, %v7968_v31, %v7970_v32  ;;  %v7980_v34 = vsel %vm358_vm5, %v7968_v31, %v7970_v32  ;;  %v7985_v35 = vsel %vm361_vm6, %v7970_v32, %v7968_v31 }
 0xa4f   :  { %v6614_v50 = vpop.eup %6613 }
 0xa50   :  { %v1096_v36 = vadd.f32 1.0, %v6614_v50 }
 0xa52   :  { %6615 = vrcp.f32 %v1096_v36  ;;  %v1108_v43 = vand.u32 2147483648, %v1096_v36  ;;  %v1106_v27 = vand.u32 2147483647, %v1096_v36  ;;  %vm1102_vm2 = vweird.f32 %v1096_v36 }
 0xa53   :  { %6617 = vtanh.f32 %v1113_v38  ;;  %v370_v38 = vrot.slane %v7856_v28, 6 }
 0xa54   :  { %v1109_v46 = vor.u32 1.1754944e-38, %v1108_v43  ;;  %vm1107_vm8 = vcmp.eq.f32.partialorder %v1106_v27, 8.507059e+37 }
 0xa58   :  { %v6616_v37 = vpop.eup %6615 }
 0xa59   :  { %v1098_v42 = vmul.f32 %v6616_v37, %v1096_v36  ;;  %vm1103_vm1 = vweird.f32 %v6616_v37  ;;  %v6618_v26 = vpop.eup %6617 }
 0xa5a   :  { %vm1104_vm7 = vmor %vm1102_vm2, %vm1103_vm1 }
 0xa5b   :  { %v1099_v13 = vsub.f32 1.0, %v1098_v42 }
 0xa5d   :  { %v1100_v44 = vmul.f32 %v6616_v37, %v1099_v13 }
 0xa5f   :  { %v1101_v45 = vadd.f32 %v6616_v37, %v1100_v44 }
 0xa61   :  { %v1105_v47 = vsel %vm1104_vm7, %v6616_v37, %v1101_v45 }
 0xa62   :  { %v1110_v29 = vsel %vm1107_vm8, %v1109_v46, %v1105_v47  ;;  %v1395_v46 = vsel %vm353_vm3, %v7968_v31, %v7970_v32 }
 0xa63   :  { %v1140_v53 = vmul.f32 %v6618_v26, %v1110_v29  ;;  %v1139_v2 = vmul.f32 %v1110_v29, %v7945_v52  ;;  %v8022_v52 = vld [vmem:[#allocation8 + $0x40] sm:$0xff] }
 0xa64   :  { %1431 = vmatpush.msrb.mxu0 %v8022_v52  ;;  %1544 = vmatpush.msrb.mxu2 %v8022_v52 }
 0xa65   :  { %1142 = vrot.lane.b32.xlu1 %v1140_v53, %s7384_s11 }
 0xa66   :  { %1432 = vmatpush.msrb.mxu0 %v8030_v19  ;;  %1545 = vmatpush.msrb.mxu2 %v8030_v19 }
 0xa68   :  { %1433 = vmatpush.msrb.mxu0 %v8038_v41  ;;  %1546 = vmatpush.msrb.mxu2 %v8038_v41 }
 0xa6a   :  { %1434 = vmatpush.msrb.mxu0 %v8046_v57  ;;  %1547 = vmatpush.msrb.mxu2 %v8046_v57 }
 0xa6c   :  { %1435 = vmatpush.msrb.mxu0 %v8054_v59  ;;  %1548 = vmatpush.msrb.mxu2 %v8054_v59 }
 0xa6e   :  { %1761 = vmatpush.msra.mxu2 %v7990_v0 }
 0xa70   :  { %1762 = vmatpush.msra.mxu2 %v7996_v49 }
 0xa72   :  { %1763 = vmatpush.msra.mxu2 %v8015_v16 }
 0xa74   :  { %1764 = vmatpush.msra.mxu2 %v8022_v52 }
 0xa76   :  { %1765 = vmatpush.msra.mxu2 %v8030_v19 }
 0xa78   :  { %1766 = vmatpush.msra.mxu2 %v8038_v41 }
 0xa7a   :  { %1767 = vmatpush.msra.mxu2 %v8046_v57 }
 0xa7c   :  { %1768 = vmatpush.msra.mxu2 %v8054_v59 }
 0xaa1   :  { %v1117_v6 = vpop.permute.xlu2 %1116 }
 0xaa2   :  { %v1118_v7 = vrot.slane %v1117_v6, 2 }
 0xaa4   :  { %v6351_v8 = vmul.f32 -1.442695, %v1118_v7 }
 0xad7   :  { %v1143_v3 = vpop.permute.xlu1 %1142 }
 0xad8   :  { %v8009_v4 = vadd.f32 %v1143_v3, %v1139_v2 }
 0xada   :  { %6619 = vtanh.f32 %v8009_v4 }
 0xadb   :  { %6621 = vpow2.f32 %v6351_v8 }
 0xae0   :  { %v6620_v5 = vpop.eup %6619 }
 0xae1   :  { %1148 = vrot.lane.b32.xlu0 %v6620_v5, %s7384_s11  ;;  %v6622_v10 = vpop.eup %6621 }
 0xae2   :  { %v8013_v15 = vadd.f32 1.0, %v6622_v10 }
 0xae4   :  { %6623 = vrcp.f32 %v8013_v15  ;;  %v1135_v11 = vand.u32 2147483648, %v8013_v15  ;;  %vm1129_vm10 = vweird.f32 %v8013_v15  ;;  %v1133_v12 = vand.u32 2147483647, %v8013_v15 }
 0xae6   :  { %v1136_v40 = vor.u32 1.1754944e-38, %v1135_v11  ;;  %vm1134_vm12 = vcmp.eq.f32.partialorder %v1133_v12, 8.507059e+37 }
 0xae9   :  { %1513 = vrot.lane.b32.xlu0 %v6357_v60, %s7384_s11 }
 0xaea   :  { %v6624_v56 = vpop.eup %6623 }
 0xaeb   :  { %v1125_v61 = vmul.f32 %v6624_v56, %v8013_v15  ;;  %vm1130_vm9 = vweird.f32 %v6624_v56 }
 0xaec   :  { %vm1131_vm11 = vmor %vm1129_vm10, %vm1130_vm9 }
 0xaed   :  { %v1126_v62 = vsub.f32 1.0, %v1125_v61 }
 0xaef   :  { %v1127_v63 = vmul.f32 %v6624_v56, %v1126_v62 }
 0xaf1   :  { %v1128_v9 = vadd.f32 %v6624_v56, %v1127_v63 }
 0xaf3   :  { %v1132_v39 = vsel %vm1131_vm11, %v6624_v56, %v1128_v9 }
 0xaf4   :  { %v1137_v21 = vsel %vm1134_vm12, %v1136_v40, %v1132_v39 }
 0xb53   :  { %v1149_v23 = vpop.permute.xlu0 %1148 }
 0xb54   :  { %v1151_v25 = vmul.f32 %v1149_v23, %v1137_v21 }
 0xb56   :  { %1153 = vst.msk [vmem:[#allocation2 + $0xc] sm:$0x3] %vm492_vm15, %v1151_v25  ;;  %6352 = vmatmul.msk.f32.vlgmr.msra.gmra.mxu0 %vm379_vm0, %v1151_v25  ;;  %6353 = vmatmul.msk.f32.vlgmr.msra.gmra.mxu1 %vm379_vm0, %v1151_v25 }
 0xb57   :  { %1651 = vmatpush.msra.mxu0 %v7990_v0  ;;  %1671 = vmatpush.msra.mxu1 %v7988_v54 }
 0xb59   :  { %1652 = vmatpush.msra.mxu0 %v7996_v49  ;;  %1672 = vmatpush.msra.mxu1 %v7992_v48 }
 0xb5b   :  { %1653 = vmatpush.msra.mxu0 %v8015_v16  ;;  %1673 = vmatpush.msra.mxu1 %v7998_v1 }
 0xb5d   :  { %v1270_v51 = vld [vmem:[#allocation2 + $0xc] sm:$0x3]  ;;  %1654 = vmatpush.msra.mxu0 %v8022_v52  ;;  %1674 = vmatpush.msra.mxu1 %v8017_v17 }
 0xb5e   :  { %1334 = vst [vmem:[#allocation1 + $0x22] ss:$4 sm:$0xff] %v1270_v51  ;;  %6363 = vmatmul.msk.f32.vlgmr.msrb.gmra.mxu1 %vm379_vm0, %v6356_v30  ;;  %6362 = vmatmul.msk.f32.vlgmr.msrb.gmra.mxu0 %vm379_vm0, %v6356_v30 }
 0xb5f   :  { %1655 = vmatpush.msra.mxu0 %v8030_v19  ;;  %1675 = vmatpush.msra.mxu1 %v8024_v18 }
 0xb61   :  { %1656 = vmatpush.msra.mxu0 %v8038_v41  ;;  %1676 = vmatpush.msra.mxu1 %v8032_v20 }
 0xb63   :  { %1657 = vmatpush.msra.mxu0 %v8046_v57  ;;  %1677 = vmatpush.msra.mxu1 %v8040_v55 }
 0xb65   :  { %1658 = vmatpush.msra.mxu0 %v8054_v59  ;;  %1678 = vmatpush.msra.mxu1 %v8048_v58 }
 0xb67   :  { %1871 = vmatpush.msrb.mxu0 %v7990_v0  ;;  %1891 = vmatpush.msrb.mxu1 %v7988_v54 }
 0xb69   :  { %1872 = vmatpush.msrb.mxu0 %v7996_v49  ;;  %1892 = vmatpush.msrb.mxu1 %v7992_v48 }
 0xb6b   :  { %1873 = vmatpush.msrb.mxu0 %v8015_v16  ;;  %1893 = vmatpush.msrb.mxu1 %v7998_v1 }
 0xb6d   :  { %1874 = vmatpush.msrb.mxu0 %v8022_v52  ;;  %1894 = vmatpush.msrb.mxu1 %v8017_v17 }
 0xb6f   :  { %1875 = vmatpush.msrb.mxu0 %v8030_v19  ;;  %1895 = vmatpush.msrb.mxu1 %v8024_v18 }
 0xb71   :  { %1876 = vmatpush.msrb.mxu0 %v8038_v41  ;;  %1896 = vmatpush.msrb.mxu1 %v8032_v20 }
 0xb73   :  { %1877 = vmatpush.msrb.mxu0 %v8046_v57  ;;  %1897 = vmatpush.msrb.mxu1 %v8040_v55 }
 0xb75   :  { %1878 = vmatpush.msrb.mxu0 %v8054_v59  ;;  %1898 = vmatpush.msrb.mxu1 %v8048_v58 }
 0xbd3   :  { %v1174_v50 = vpop.f32.mrf.mxu0  ;;  %v1194_v36 = vpop.f32.mrf.mxu1 }
 0xbd4   :  { %v1199_v37 = vrot.slane %v1194_v36, 6 }
 0xbd6   :  { %v1200_v42 = vsel %vm353_vm3, %v1174_v50, %v1199_v37 }
 0xbd7   :  { %v1202_v13 = vadd.f32 %v1200_v42, %v370_v38 }
 0xbd9   :  { %1226 = vrot.lane.b32.xlu2 %v1202_v13, %s7384_s11  ;;  %v6354_v43 = vmul.f32 -1.442695, %v1202_v13  ;;  %v1223_v5 = vrot.slane %v1202_v13, 2 }
 0xbdb   :  { %6625 = vpow2.f32 %v6354_v43  ;;  %v1457_v44 = vpop.f32.mrf.mxu1  ;;  %v1437_v27 = vpop.f32.mrf.mxu0 }
 0xbdc   :  { %v1462_v45 = vrot.slane %v1457_v44, 6  ;;  %v1514_v43 = vpop.permute.xlu0 %1513 }
 0xbde   :  { %v1463_v47 = vsel %vm353_vm3, %v1437_v27, %v1462_v45 }
 0xbdf   :  { %v1465_v26 = vadd.f32 %v1463_v47, %v1395_v46 }
 0xbe1   :  { %v6626_v29 = vpop.eup %6625  ;;  %v6364_v53 = vmul.f32 -1.442695, %v1465_v26  ;;  %1489 = vrot.lane.b32.xlu2 %v1465_v26, %s7384_s11  ;;  %v1486_v60 = vrot.slane %v1465_v26, 2 }
 0xbe2   :  { %v1206_v28 = vadd.f32 1.0, %v6626_v29 }
 0xbe3   :  { %6627 = vpow2.f32 %v6364_v53 }
 0xbe4   :  { %6629 = vrcp.f32 %v1206_v28  ;;  %v1218_v10 = vand.u32 2147483648, %v1206_v28  ;;  %v1216_v32 = vand.u32 2147483647, %v1206_v28  ;;  %vm1212_vm14 = vweird.f32 %v1206_v28 }
 0xbe6   :  { %v1219_v61 = vor.u32 1.1754944e-38, %v1218_v10  ;;  %vm1217_vm2 = vcmp.eq.f32.partialorder %v1216_v32, 8.507059e+37 }
 0xbe9   :  { %v6628_v2 = vpop.eup %6627 }
 0xbea   :  { %v6630_v3 = vpop.eup %6629  ;;  %v1469_v6 = vadd.f32 1.0, %v6628_v2 }
 0xbeb   :  { %v1208_v7 = vmul.f32 %v6630_v3, %v1206_v28  ;;  %vm1213_vm13 = vweird.f32 %v6630_v3 }
 0xbec   :  { %6631 = vrcp.f32 %v1469_v6  ;;  %vm1214_vm1 = vmor %vm1212_vm14, %vm1213_vm13  ;;  %v1481_v40 = vand.u32 2147483648, %v1469_v6  ;;  %v1479_v23 = vand.u32 2147483647, %v1469_v6  ;;  %vm1475_vm8 = vweird.f32 %v1469_v6 }
 0xbed   :  { %v1209_v8 = vsub.f32 1.0, %v1208_v7  ;;  %6633 = vtanh.f32 %v1223_v5 }
 0xbee   :  { %6635 = vtanh.f32 %v1486_v60  ;;  %v1482_v30 = vor.u32 1.1754944e-38, %v1481_v40  ;;  %vm1480_vm10 = vcmp.eq.f32.partialorder %v1479_v23, 8.507059e+37 }
 0xbef   :  { %v1210_v31 = vmul.f32 %v6630_v3, %v1209_v8 }
 0xbf1   :  { %v1211_v15 = vadd.f32 %v6630_v3, %v1210_v31 }
 0xbf2   :  { %v6632_v56 = vpop.eup %6631 }
 0xbf3   :  { %v1215_v62 = vsel %vm1214_vm1, %v6630_v3, %v1211_v15  ;;  %v1471_v63 = vmul.f32 %v6632_v56, %v1469_v6  ;;  %v6634_v9 = vpop.eup %6633  ;;  %vm1476_vm7 = vweird.f32 %v6632_v56 }
 0xbf4   :  { %v1220_v11 = vsel %vm1217_vm2, %v1219_v61, %v1215_v62  ;;  %vm1477_vm9 = vmor %vm1475_vm8, %vm1476_vm7  ;;  %v6636_v50 = vpop.eup %6635 }
 0xbf5   :  { %v1250_v12 = vmul.f32 %v6634_v9, %v1220_v11  ;;  %v1472_v39 = vsub.f32 1.0, %v1471_v63  ;;  %v1249_v38 = vmul.f32 %v1220_v11, %v8009_v4 }
 0xbf7   :  { %1252 = vrot.lane.b32.xlu1 %v1250_v12, %s7384_s11  ;;  %v1473_v21 = vmul.f32 %v6632_v56, %v1472_v39 }
 0xbf9   :  { %v1474_v25 = vadd.f32 %v6632_v56, %v1473_v21 }
 0xbfb   :  { %v1478_v51 = vsel %vm1477_vm9, %v6632_v56, %v1474_v25 }
 0xbfc   :  { %v1483_v36 = vsel %vm1480_vm10, %v1482_v30, %v1478_v51 }
 0xbfd   :  { %v1517_v37 = vmul.f32 %v6636_v50, %v1483_v36  ;;  %v1516_v44 = vmul.f32 %v1514_v43, %v1483_v36 }
 0xbff   :  { %1519 = vrot.lane.b32.xlu1 %v1517_v37, %s7384_s11 }
 0xc33   :  { %v1227_v26 = vpop.permute.xlu2 %1226 }
 0xc34   :  { %v1228_v29 = vrot.slane %v1227_v26, 2 }
 0xc36   :  { %v6355_v53 = vmul.f32 -1.442695, %v1228_v29 }
 0xc3b   :  { %v1490_v4 = vpop.permute.xlu2 %1489 }
 0xc3c   :  { %v1491_v28 = vrot.slane %v1490_v4, 2 }
 0xc3e   :  { %v6365_v2 = vmul.f32 -1.442695, %v1491_v28 }
 0xc69   :  { %v1253_v42 = vpop.permute.xlu1 %1252 }
 0xc6a   :  { %v1255_v13 = vadd.f32 %v1253_v42, %v1249_v38 }
 0xc6c   :  { %6637 = vtanh.f32 %v1255_v13 }
 0xc71   :  { %v1520_v27 = vpop.permute.xlu1 %1519 }
 0xc72   :  { %v6638_v45 = vpop.eup %6637  ;;  %v8135_v46 = vadd.f32 %v1520_v27, %v1516_v44 }
 0xc73   :  { %1258 = vrot.lane.b32.xlu0 %v6638_v45, %s7384_s11 }
 0xc74   :  { %6639 = vtanh.f32 %v8135_v46 }
 0xc75   :  { %6641 = vpow2.f32 %v6355_v53 }
 0xc76   :  { %6643 = vpow2.f32 %v6365_v2 }
 0xc7a   :  { %v6640_v47 = vpop.eup %6639 }
 0xc7b   :  { %1525 = vrot.lane.b32.xlu1 %v6640_v47, %s7384_s11  ;;  %v6642_v3 = vpop.eup %6641 }
 0xc7c   :  { %v1233_v5 = vadd.f32 1.0, %v6642_v3  ;;  %v6644_v6 = vpop.eup %6643 }
 0xc7d   :  { %v1496_v7 = vadd.f32 1.0, %v6644_v6 }
 0xc7e   :  { %6645 = vrcp.f32 %v1233_v5  ;;  %v1245_v62 = vand.u32 2147483648, %v1233_v5  ;;  %vm1239_vm12 = vweird.f32 %v1233_v5  ;;  %v1243_v63 = vand.u32 2147483647, %v1233_v5 }
 0xc7f   :  { %6647 = vrcp.f32 %v1496_v7  ;;  %v1508_v25 = vand.u32 2147483648, %v1496_v7  ;;  %vm1502_vm2 = vweird.f32 %v1496_v7  ;;  %v1506_v30 = vand.u32 2147483647, %v1496_v7 }
 0xc80   :  { %v1246_v12 = vor.u32 1.1754944e-38, %v1245_v62  ;;  %vm1244_vm14 = vcmp.eq.f32.partialorder %v1243_v63, 8.507059e+37 }
 0xc81   :  { %v1509_v50 = vor.u32 1.1754944e-38, %v1508_v25  ;;  %vm1507_vm8 = vcmp.eq.f32.partialorder %v1506_v30, 8.507059e+37 }
 0xc84   :  { %v6646_v8 = vpop.eup %6645 }
 0xc85   :  { %v1235_v10 = vmul.f32 %v6646_v8, %v1233_v5  ;;  %v6648_v32 = vpop.eup %6647  ;;  %vm1240_vm11 = vweird.f32 %v6646_v8 }
 0xc86   :  { %v1498_v56 = vmul.f32 %v6648_v32, %v1496_v7  ;;  %vm1241_vm13 = vmor %vm1239_vm12, %vm1240_vm11  ;;  %vm1503_vm1 = vweird.f32 %v6648_v32 }
 0xc87   :  { %v1236_v31 = vsub.f32 1.0, %v1235_v10  ;;  %vm1504_vm7 = vmor %vm1502_vm2, %vm1503_vm1 }
 0xc88   :  { %v1499_v61 = vsub.f32 1.0, %v1498_v56 }
 0xc89   :  { %v1237_v15 = vmul.f32 %v6646_v8, %v1236_v31 }
 0xc8a   :  { %v1500_v11 = vmul.f32 %v6648_v32, %v1499_v61 }
 0xc8b   :  { %v1238_v60 = vadd.f32 %v6646_v8, %v1237_v15 }
 0xc8c   :  { %v1501_v23 = vadd.f32 %v6648_v32, %v1500_v11 }
 0xc8d   :  { %v1242_v9 = vsel %vm1241_vm13, %v6646_v8, %v1238_v60 }
 0xc8e   :  { %v1247_v39 = vsel %vm1244_vm14, %v1246_v12, %v1242_v9  ;;  %v1505_v51 = vsel %vm1504_vm7, %v6648_v32, %v1501_v23 }
 0xc8f   :  { %v1510_v36 = vsel %vm1507_vm8, %v1509_v50, %v1505_v51 }
 0xce5   :  { %v1259_v40 = vpop.permute.xlu0 %1258 }
 0xce6   :  { %v1261_v21 = vmul.f32 %v1259_v40, %v1247_v39 }
 0xce8   :  { %1263 = vst.msk [vmem:[#allocation2 + $0xe] sm:$0x3] %vm492_vm15, %v1261_v21 }
 0xced   :  { %v1526_v37 = vpop.permute.xlu1 %1525 }
 0xcee   :  { %v1528_v38 = vmul.f32 %v1526_v37, %v1510_v36 }
 0xcef   :  { %v1271_v42 = vld [vmem:[#allocation2 + $0xe] sm:$0x3] }
 0xcf0   :  { %1336 = vst [vmem:[#allocation1 + $0x23] ss:$4 sm:$0xff] %v1271_v42 }
 0xcf1   :  { %1529 = vst.msk [vmem:[#allocation3] sm:$0x3] %vm492_vm15, %v1528_v38 }
 0xcf7   :  { %v1338_v13 = vld.sshfl [vmem:[#allocation1 + $0x20] sm:$0xff pattern:$0x73625140] }
 0xcf8   :  { %v2300_v43 = vld [vmem:[#allocation3] sm:$0x3]  ;;  %6359 = vmatmul.msk.f32.gmra.mxu2 %vm379_vm0, %v1338_v13  ;;  %6361 = vmatmul.msk.f32.gmra.mxu3 %vm379_vm0, %v1338_v13 }
 0xcf9   :  { %2358 = vst [vmem:[#allocation1] ss:$4 sm:$0xff] %v2300_v43 }
 0xd00   :  { %6366 = vmatmul.msk.f32.vlgmr.msrb.gmra.mxu2 %vm379_vm0, %v1528_v38  ;;  %6367 = vmatmul.msk.f32.vlgmr.msrb.gmra.mxu3 %vm379_vm0, %v1528_v38 }
 0xd01   :  { %1981 = vmatpush.msrb.mxu2 %v7990_v0  ;;  %2001 = vmatpush.msrb.mxu3 %v7988_v54 }
 0xd03   :  { %1982 = vmatpush.msrb.mxu2 %v7996_v49  ;;  %2002 = vmatpush.msrb.mxu3 %v7992_v48 }
 0xd05   :  { %1983 = vmatpush.msrb.mxu2 %v8015_v16  ;;  %2003 = vmatpush.msrb.mxu3 %v7998_v1 }
 0xd07   :  { %1984 = vmatpush.msrb.mxu2 %v8022_v52  ;;  %2004 = vmatpush.msrb.mxu3 %v8017_v17 }
 0xd09   :  { %1985 = vmatpush.msrb.mxu2 %v8030_v19  ;;  %2005 = vmatpush.msrb.mxu3 %v8024_v18 }
 0xd0b   :  { %1986 = vmatpush.msrb.mxu2 %v8038_v41  ;;  %2006 = vmatpush.msrb.mxu3 %v8032_v20 }
 0xd0d   :  { %1987 = vmatpush.msrb.mxu2 %v8046_v57  ;;  %2007 = vmatpush.msrb.mxu3 %v8040_v55 }
 0xd0f   :  { %1988 = vmatpush.msrb.mxu2 %v8054_v59  ;;  %2008 = vmatpush.msrb.mxu3 %v8048_v58 }
 0xd7b   :  { %v1363_v44 = vpop.f32.mrf.mxu2  ;;  %v1386_v27 = vpop.f32.mrf.mxu3 }
 0xd7c   :  { %v1387_v45 = vadd.f32 %v1386_v27, %v1311_v22  ;;  %v1364_v47 = vadd.f32 %v1363_v44, %v1310_v24  ;;  %v1397_v22 = vrot.slane %v7975_v33, 2 }
 0xd7e   :  { %v1394_v26 = vrot.slane %v1387_v45, 6 }
 0xd80   :  { %v8167_v29 = vsel %vm353_vm3, %v1364_v47, %v1394_v26  ;;  %v8170_v53 = vsel %vm355_vm4, %v1364_v47, %v1394_v26  ;;  %v8173_v4 = vsel %vm358_vm5, %v1364_v47, %v1394_v26  ;;  %v8176_v28 = vsel %vm361_vm6, %v1394_v26, %v1364_v47 }
 0xd83   :  { %v1570_v2 = vpop.f32.mrf.mxu3  ;;  %v1550_v5 = vpop.f32.mrf.mxu2 }
 0xd84   :  { %v1575_v3 = vrot.slane %v1570_v2, 6 }
 0xd86   :  { %v1576_v14 = vsel %vm353_vm3, %v1550_v5, %v1575_v3 }
 0xd87   :  { %v1578_v24 = vadd.f32 %v1576_v14, %v1397_v22 }
 0xd89   :  { %1602 = vrot.lane.b32.xlu0 %v1578_v24, %s7384_s11  ;;  %v6368_v6 = vmul.f32 -1.442695, %v1578_v24  ;;  %v1599_v31 = vrot.slane %v1578_v24, 2  ;;  %v1399_v24 = vrot.slane %v7980_v34, 4 }
 0xd8b   :  { %6649 = vpow2.f32 %v6368_v6 }
 0xd91   :  { %v6650_v7 = vpop.eup %6649 }
 0xd92   :  { %v1582_v8 = vadd.f32 1.0, %v6650_v7 }
 0xd94   :  { %6651 = vrcp.f32 %v1582_v8  ;;  %v1594_v56 = vand.u32 2147483648, %v1582_v8  ;;  %v1592_v61 = vand.u32 2147483647, %v1582_v8  ;;  %vm1588_vm10 = vweird.f32 %v1582_v8 }
 0xd95   :  { %6653 = vtanh.f32 %v1599_v31 }
 0xd96   :  { %v1595_v62 = vor.u32 1.1754944e-38, %v1594_v56  ;;  %vm1593_vm12 = vcmp.eq.f32.partialorder %v1592_v61, 8.507059e+37 }
 0xd9a   :  { %v6652_v10 = vpop.eup %6651 }
 0xd9b   :  { %v1584_v32 = vmul.f32 %v6652_v10, %v1582_v8  ;;  %vm1589_vm9 = vweird.f32 %v6652_v10  ;;  %v6654_v9 = vpop.eup %6653 }
 0xd9c   :  { %vm1590_vm11 = vmor %vm1588_vm10, %vm1589_vm9 }
 0xd9d   :  { %v1585_v15 = vsub.f32 1.0, %v1584_v32 }
 0xd9f   :  { %v1586_v60 = vmul.f32 %v6652_v10, %v1585_v15 }
 0xda1   :  { %v1587_v33 = vadd.f32 %v6652_v10, %v1586_v60 }
 0xda3   :  { %v1591_v63 = vsel %vm1590_vm11, %v6652_v10, %v1587_v33 }
 0xda4   :  { %v1596_v11 = vsel %vm1593_vm12, %v1595_v62, %v1591_v63 }
 0xda5   :  { %v1626_v12 = vmul.f32 %v6654_v9, %v1596_v11  ;;  %v1625_v39 = vmul.f32 %v1596_v11, %v8135_v46 }
 0xda7   :  { %1628 = vrot.lane.b32.xlu2 %v1626_v12, %s7384_s11 }
 0xdfb   :  { %v1603_v25 = vpop.permute.xlu0 %1602 }
 0xdfc   :  { %v1604_v30 = vrot.slane %v1603_v25, 2 }
 0xdfe   :  { %v6369_v51 = vmul.f32 -1.442695, %v1604_v30 }
 0xe01   :  { %v1629_v40 = vpop.permute.xlu2 %1628 }
 0xe02   :  { %v8183_v21 = vadd.f32 %v1629_v40, %v1625_v39 }
 0xe04   :  { %6655 = vtanh.f32 %v8183_v21 }
 0xe05   :  { %6657 = vpow2.f32 %v6369_v51 }
 0xe0a   :  { %v6656_v23 = vpop.eup %6655 }
 0xe0b   :  { %1634 = vrot.lane.b32.xlu1 %v6656_v23, %s7384_s11  ;;  %v6658_v50 = vpop.eup %6657 }
 0xe0c   :  { %v1609_v36 = vadd.f32 1.0, %v6658_v50 }
 0xe0e   :  { %6659 = vrcp.f32 %v1609_v36  ;;  %v1621_v43 = vand.u32 2147483648, %v1609_v36  ;;  %vm1615_vm14 = vweird.f32 %v1609_v36  ;;  %v1619_v44 = vand.u32 2147483647, %v1609_v36 }
 0xe10   :  { %v1622_v45 = vor.u32 1.1754944e-38, %v1621_v43  ;;  %vm1620_vm2 = vcmp.eq.f32.partialorder %v1619_v44, 8.507059e+37 }
 0xe14   :  { %v6660_v37 = vpop.eup %6659 }
 0xe15   :  { %v1611_v38 = vmul.f32 %v6660_v37, %v1609_v36  ;;  %vm1616_vm13 = vweird.f32 %v6660_v37 }
 0xe16   :  { %vm1617_vm1 = vmor %vm1615_vm14, %vm1616_vm13 }
 0xe17   :  { %v1612_v42 = vsub.f32 1.0, %v1611_v38 }
 0xe19   :  { %v1613_v13 = vmul.f32 %v6660_v37, %v1612_v42 }
 0xe1b   :  { %v1614_v46 = vadd.f32 %v6660_v37, %v1613_v13 }
 0xe1d   :  { %v1618_v27 = vsel %vm1617_vm1, %v6660_v37, %v1614_v46 }
 0xe1e   :  { %v1623_v47 = vsel %vm1620_vm2, %v1622_v45, %v1618_v27 }
 0xe7d   :  { %v1635_v26 = vpop.permute.xlu1 %1634 }
 0xe7e   :  { %v1637_v2 = vmul.f32 %v1635_v26, %v1623_v47 }
 0xe80   :  { %1639 = vst.msk [vmem:[#allocation3 + $0x2] sm:$0x3] %vm492_vm15, %v1637_v2  ;;  %6370 = vmatmul.msk.f32.vlgmr.msra.gmra.mxu0 %vm379_vm0, %v1637_v2  ;;  %6371 = vmatmul.msk.f32.vlgmr.msra.gmra.mxu1 %vm379_vm0, %v1637_v2 }
 0xe81   :  { %2091 = vmatpush.msra.mxu0 %v7990_v0  ;;  %2111 = vmatpush.msra.mxu1 %v7988_v54 }
 0xe83   :  { %2092 = vmatpush.msra.mxu0 %v7996_v49  ;;  %2112 = vmatpush.msra.mxu1 %v7992_v48 }
 0xe85   :  { %2093 = vmatpush.msra.mxu0 %v8015_v16  ;;  %2113 = vmatpush.msra.mxu1 %v7998_v1 }
 0xe87   :  { %v2301_v3 = vld [vmem:[#allocation3 + $0x2] sm:$0x3]  ;;  %2094 = vmatpush.msra.mxu0 %v8022_v52  ;;  %2114 = vmatpush.msra.mxu1 %v8017_v17 }
 0xe88   :  { %2360 = vst [vmem:[#allocation1 + $0x1] ss:$4 sm:$0xff] %v2301_v3 }
 0xe89   :  { %2095 = vmatpush.msra.mxu0 %v8030_v19  ;;  %2115 = vmatpush.msra.mxu1 %v8024_v18 }
 0xe8b   :  { %2096 = vmatpush.msra.mxu0 %v8038_v41  ;;  %2116 = vmatpush.msra.mxu1 %v8032_v20 }
 0xe8d   :  { %2097 = vmatpush.msra.mxu0 %v8046_v57  ;;  %2117 = vmatpush.msra.mxu1 %v8040_v55 }
 0xe8f   :  { %2098 = vmatpush.msra.mxu0 %v8054_v59  ;;  %2118 = vmatpush.msra.mxu1 %v8048_v58 }
 0xefd   :  { %v1680_v5 = vpop.f32.mrf.mxu1  ;;  %v1660_v14 = vpop.f32.mrf.mxu0 }
 0xefe   :  { %v1685_v22 = vrot.slane %v1680_v5, 6 }
 0xf00   :  { %v1686_v6 = vsel %vm353_vm3, %v1660_v14, %v1685_v22 }
 0xf01   :  { %v1688_v7 = vadd.f32 %v1686_v6, %v1399_v24 }
 0xf03   :  { %1712 = vrot.lane.b32.xlu0 %v1688_v7, %s7384_s11  ;;  %v6372_v8 = vmul.f32 -1.442695, %v1688_v7  ;;  %v1709_v15 = vrot.slane %v1688_v7, 2 }
 0xf05   :  { %6661 = vpow2.f32 %v6372_v8 }
 0xf0b   :  { %v6662_v10 = vpop.eup %6661 }
 0xf0c   :  { %v1692_v31 = vadd.f32 1.0, %v6662_v10 }
 0xf0e   :  { %6663 = vrcp.f32 %v1692_v31  ;;  %v1704_v61 = vand.u32 2147483648, %v1692_v31  ;;  %v1702_v62 = vand.u32 2147483647, %v1692_v31  ;;  %vm1698_vm8 = vweird.f32 %v1692_v31 }
 0xf0f   :  { %6665 = vtanh.f32 %v1709_v15 }
 0xf10   :  { %v1705_v63 = vor.u32 1.1754944e-38, %v1704_v61  ;;  %vm1703_vm10 = vcmp.eq.f32.partialorder %v1702_v62, 8.507059e+37 }
 0xf14   :  { %v6664_v32 = vpop.eup %6663 }
 0xf15   :  { %v1694_v56 = vmul.f32 %v6664_v32, %v1692_v31  ;;  %vm1699_vm7 = vweird.f32 %v6664_v32  ;;  %v6666_v11 = vpop.eup %6665 }
 0xf16   :  { %vm1700_vm9 = vmor %vm1698_vm8, %vm1699_vm7 }
 0xf17   :  { %v1695_v60 = vsub.f32 1.0, %v1694_v56 }
 0xf19   :  { %v1696_v33 = vmul.f32 %v6664_v32, %v1695_v60 }
 0xf1b   :  { %v1697_v34 = vadd.f32 %v6664_v32, %v1696_v33 }
 0xf1d   :  { %v1701_v9 = vsel %vm1700_vm9, %v6664_v32, %v1697_v34 }
 0xf1e   :  { %v1706_v12 = vsel %vm1703_vm10, %v1705_v63, %v1701_v9 }
 0xf1f   :  { %v1736_v39 = vmul.f32 %v6666_v11, %v1706_v12  ;;  %v1735_v40 = vmul.f32 %v1706_v12, %v8183_v21 }
 0xf21   :  { %1738 = vrot.lane.b32.xlu2 %v1736_v39, %s7384_s11 }
 0xf75   :  { %v1713_v51 = vpop.permute.xlu0 %1712 }
 0xf76   :  { %v1714_v50 = vrot.slane %v1713_v51, 2 }
 0xf78   :  { %v6373_v36 = vmul.f32 -1.442695, %v1714_v50 }
 0xf7b   :  { %v1739_v23 = vpop.permute.xlu2 %1738 }
 0xf7c   :  { %v8211_v25 = vadd.f32 %v1739_v23, %v1735_v40 }
 0xf7e   :  { %6667 = vtanh.f32 %v8211_v25 }
 0xf7f   :  { %6669 = vpow2.f32 %v6373_v36 }
 0xf84   :  { %v6668_v30 = vpop.eup %6667 }
 0xf85   :  { %1744 = vrot.lane.b32.xlu1 %v6668_v30, %s7384_s11  ;;  %v6670_v37 = vpop.eup %6669 }
 0xf86   :  { %v1719_v38 = vadd.f32 1.0, %v6670_v37 }
 0xf88   :  { %6671 = vrcp.f32 %v1719_v38  ;;  %v1731_v44 = vand.u32 2147483648, %v1719_v38  ;;  %vm1725_vm12 = vweird.f32 %v1719_v38  ;;  %v1729_v27 = vand.u32 2147483647, %v1719_v38 }
 0xf8a   :  { %v1732_v47 = vor.u32 1.1754944e-38, %v1731_v44  ;;  %vm1730_vm14 = vcmp.eq.f32.partialorder %v1729_v27, 8.507059e+37 }
 0xf8e   :  { %v6672_v42 = vpop.eup %6671 }
 0xf8f   :  { %v1721_v13 = vmul.f32 %v6672_v42, %v1719_v38  ;;  %vm1726_vm11 = vweird.f32 %v6672_v42 }
 0xf90   :  { %vm1727_vm13 = vmor %vm1725_vm12, %vm1726_vm11 }
 0xf91   :  { %v1722_v46 = vsub.f32 1.0, %v1721_v13 }
 0xf93   :  { %v1723_v43 = vmul.f32 %v6672_v42, %v1722_v46 }
 0xf95   :  { %v1724_v21 = vadd.f32 %v6672_v42, %v1723_v43 }
 0xf97   :  { %v1728_v45 = vsel %vm1727_vm13, %v6672_v42, %v1724_v21 }
 0xf98   :  { %v1733_v26 = vsel %vm1730_vm14, %v1732_v47, %v1728_v45 }
 0xff7   :  { %v1745_v2 = vpop.permute.xlu1 %1744 }
 0xff8   :  { %v1747_v3 = vmul.f32 %v1745_v2, %v1733_v26 }
 0xffa   :  { %1749 = vst.msk [vmem:[#allocation3 + $0x4] sm:$0x3] %vm492_vm15, %v1747_v3  ;;  %6374 = vmatmul.msk.f32.vlgmr.msra.gmra.mxu2 %vm379_vm0, %v1747_v3  ;;  %6375 = vmatmul.msk.f32.vlgmr.msra.gmra.mxu3 %vm379_vm0, %v1747_v3 }
 0xffb   :  { %2221 = vmatpush.msra.mxu3 %v7988_v54  ;;  %2201 = vmatpush.msra.mxu2 %v7990_v0 }
 0xffd   :  { %2222 = vmatpush.msra.mxu3 %v7992_v48  ;;  %2202 = vmatpush.msra.mxu2 %v7996_v49  ;;  %v1401_v49 = vrot.slane %v7985_v35, 6 }
 0xfff   :  { %2223 = vmatpush.msra.mxu3 %v7998_v1  ;;  %2203 = vmatpush.msra.mxu2 %v8015_v16 }
0x1001   :  { %v2302_v5 = vld [vmem:[#allocation3 + $0x4] sm:$0x3]  ;;  %2224 = vmatpush.msra.mxu3 %v8017_v17  ;;  %2204 = vmatpush.msra.mxu2 %v8022_v52 }
0x1002   :  { %2362 = vst [vmem:[#allocation1 + $0x2] ss:$4 sm:$0xff] %v2302_v5 }
0x1003   :  { %2225 = vmatpush.msra.mxu3 %v8024_v18  ;;  %2205 = vmatpush.msra.mxu2 %v8030_v19 }
0x1005   :  { %2226 = vmatpush.msra.mxu3 %v8032_v20  ;;  %2206 = vmatpush.msra.mxu2 %v8038_v41 }
0x1007   :  { %2227 = vmatpush.msra.mxu3 %v8040_v55  ;;  %2207 = vmatpush.msra.mxu2 %v8046_v57 }
0x1009   :  { %2228 = vmatpush.msra.mxu3 %v8048_v58  ;;  %2208 = vmatpush.msra.mxu2 %v8054_v59 }
0x107d   :  { %v1790_v54 = vpop.f32.mrf.mxu3  ;;  %v1770_v48 = vpop.f32.mrf.mxu2 }
0x107e   :  { %v1795_v0 = vrot.slane %v1790_v54, 6 }
0x1080   :  { %v1796_v1 = vsel %vm353_vm3, %v1770_v48, %v1795_v0 }
0x1081   :  { %v1798_v16 = vadd.f32 %v1796_v1, %v1401_v49 }
0x1083   :  { %1822 = vrot.lane.b32.xlu0 %v1798_v16, %s7384_s11  ;;  %v6376_v17 = vmul.f32 -1.442695, %v1798_v16  ;;  %v1819_v20 = vrot.slane %v1798_v16, 2 }
0x1085   :  { %6673 = vpow2.f32 %v6376_v17 }
0x108b   :  { %v6674_v52 = vpop.eup %6673 }
0x108c   :  { %v1802_v18 = vadd.f32 1.0, %v6674_v52 }
0x108e   :  { %6675 = vrcp.f32 %v1802_v18  ;;  %v1814_v57 = vand.u32 2147483648, %v1802_v18  ;;  %v1812_v59 = vand.u32 2147483647, %v1802_v18  ;;  %vm1808_vm2 = vweird.f32 %v1802_v18 }
0x108f   :  { %6677 = vtanh.f32 %v1819_v20 }
0x1090   :  { %v1815_v22 = vor.u32 1.1754944e-38, %v1814_v57  ;;  %vm1813_vm8 = vcmp.eq.f32.partialorder %v1812_v59, 8.507059e+37 }
0x1094   :  { %v6676_v19 = vpop.eup %6675 }
0x1095   :  { %v1804_v41 = vmul.f32 %v6676_v19, %v1802_v18  ;;  %vm1809_vm1 = vweird.f32 %v6676_v19  ;;  %v6678_v24 = vpop.eup %6677 }
0x1096   :  { %vm1810_vm7 = vmor %vm1808_vm2, %vm1809_vm1 }
0x1097   :  { %v1805_v55 = vsub.f32 1.0, %v1804_v41 }
0x1099   :  { %v1806_v58 = vmul.f32 %v6676_v19, %v1805_v55 }
0x109b   :  { %v1807_v35 = vadd.f32 %v6676_v19, %v1806_v58 }
0x109d   :  { %v1811_v14 = vsel %vm1810_vm7, %v6676_v19, %v1807_v35 }
0x109e   :  { %v1816_v6 = vsel %vm1813_vm8, %v1815_v22, %v1811_v14 }
0x109f   :  { %v1846_v7 = vmul.f32 %v6678_v24, %v1816_v6  ;;  %v1845_v8 = vmul.f32 %v1816_v6, %v8211_v25 }
0x10a1   :  { %1848 = vrot.lane.b32.xlu2 %v1846_v7, %s7384_s11 }
0x10f5   :  { %v1823_v15 = vpop.permute.xlu0 %1822 }
0x10f6   :  { %v1824_v56 = vrot.slane %v1823_v15, 2 }
0x10f8   :  { %v6377_v60 = vmul.f32 -1.442695, %v1824_v56 }
0x10fb   :  { %v1849_v10 = vpop.permute.xlu2 %1848 }
0x10fc   :  { %v1851_v31 = vadd.f32 %v1849_v10, %v1845_v8 }
0x10fe   :  { %6679 = vtanh.f32 %v1851_v31 }
0x10ff   :  { %6681 = vpow2.f32 %v6377_v60 }
0x1104   :  { %v6680_v32 = vpop.eup %6679 }
0x1105   :  { %1854 = vrot.lane.b32.xlu1 %v6680_v32, %s7384_s11  ;;  %v6682_v61 = vpop.eup %6681 }
0x1106   :  { %v1829_v33 = vadd.f32 1.0, %v6682_v61  ;;  %v1404_v61 = vrot.slane %v8170_v53, 2 }
0x1108   :  { %6683 = vrcp.f32 %v1829_v33  ;;  %v1841_v12 = vand.u32 2147483648, %v1829_v33  ;;  %vm1835_vm10 = vweird.f32 %v1829_v33  ;;  %v1839_v39 = vand.u32 2147483647, %v1829_v33 }
0x110a   :  { %v1842_v23 = vor.u32 1.1754944e-38, %v1841_v12  ;;  %vm1840_vm12 = vcmp.eq.f32.partialorder %v1839_v39, 8.507059e+37 }
0x110e   :  { %v6684_v62 = vpop.eup %6683 }
0x110f   :  { %v1831_v34 = vmul.f32 %v6684_v62, %v1829_v33  ;;  %vm1836_vm9 = vweird.f32 %v6684_v62 }
0x1110   :  { %vm1837_vm11 = vmor %vm1835_vm10, %vm1836_vm9 }
0x1111   :  { %v1832_v63 = vsub.f32 1.0, %v1831_v34 }
0x1113   :  { %v1833_v9 = vmul.f32 %v6684_v62, %v1832_v63 }
0x1115   :  { %v1834_v11 = vadd.f32 %v6684_v62, %v1833_v9 }
0x1117   :  { %v1838_v40 = vsel %vm1837_vm11, %v6684_v62, %v1834_v11 }
0x1118   :  { %v1843_v25 = vsel %vm1840_vm12, %v1842_v23, %v1838_v40 }
0x1177   :  { %v1855_v30 = vpop.permute.xlu1 %1854 }
0x1178   :  { %v1857_v51 = vmul.f32 %v1855_v30, %v1843_v25 }
0x117a   :  { %1859 = vst.msk [vmem:[#allocation3 + $0x6] sm:$0x3] %vm492_vm15, %v1857_v51  ;;  %6378 = vmatmul.msk.f32.vlgmr.msrb.gmra.mxu0 %vm379_vm0, %v1857_v51  ;;  %6379 = vmatmul.msk.f32.vlgmr.msrb.gmra.mxu1 %vm379_vm0, %v1857_v51 }
0x1181   :  { %v2303_v50 = vld [vmem:[#allocation3 + $0x6] sm:$0x3] }
0x1182   :  { %2364 = vst [vmem:[#allocation1 + $0x3] ss:$4 sm:$0xff] %v2303_v50 }
0x11f7   :  { %v1900_v36 = vpop.f32.mrf.mxu1  ;;  %v1880_v38 = vpop.f32.mrf.mxu0 }
0x11f8   :  { %v1905_v37 = vrot.slane %v1900_v36, 6 }
0x11fa   :  { %v1906_v42 = vsel %vm353_vm3, %v1880_v38, %v1905_v37 }
0x11fb   :  { %v1908_v13 = vadd.f32 %v1906_v42, %v8167_v29  ;;  %v2342_v42 = vld [vmem:[#allocation10 + $0x70] sm:$0xff] }
0x11fc   :  { %2387 = vmatpush.msrb.mxu0 %v2342_v42 }
0x11fd   :  { %1932 = vrot.lane.b32.xlu0 %v1908_v13, %s7384_s11  ;;  %v6380_v46 = vmul.f32 -1.442695, %v1908_v13  ;;  %v1929_v27 = vrot.slane %v1908_v13, 2  ;;  %v2343_v13 = vld [vmem:[#allocation10 + $0x78] sm:$0xff] }
0x11fe   :  { %2410 = vmatpush.msrb.mxu1 %v2343_v13 }
0x11ff   :  { %6685 = vpow2.f32 %v6380_v46  ;;  %v2340_v46 = vld [vmem:[#allocation10 + $0x60] sm:$0xff] }
0x1200   :  { %2388 = vmatpush.msrb.mxu0 %v2340_v46 }
0x1205   :  { %v6686_v43 = vpop.eup %6685 }
0x1206   :  { %v1912_v21 = vadd.f32 1.0, %v6686_v43  ;;  %v2341_v43 = vld [vmem:[#allocation10 + $0x68] sm:$0xff] }
0x1207   :  { %2411 = vmatpush.msrb.mxu1 %v2341_v43 }
0x1208   :  { %6687 = vrcp.f32 %v1912_v21  ;;  %v1924_v26 = vand.u32 2147483648, %v1912_v21  ;;  %v1922_v3 = vand.u32 2147483647, %v1912_v21  ;;  %vm1918_vm14 = vweird.f32 %v1912_v21 }
0x1209   :  { %6689 = vtanh.f32 %v1929_v27 }
0x120a   :  { %v1925_v29 = vor.u32 1.1754944e-38, %v1924_v26  ;;  %vm1923_vm2 = vcmp.eq.f32.partialorder %v1922_v3, 8.507059e+37 }
0x120e   :  { %v6688_v44 = vpop.eup %6687 }
0x120f   :  { %v1914_v45 = vmul.f32 %v6688_v44, %v1912_v21  ;;  %vm1919_vm13 = vweird.f32 %v6688_v44  ;;  %v6690_v0 = vpop.eup %6689  ;;  %v2338_v21 = vld [vmem:[#allocation10 + $0x50] sm:$0xff] }
0x1210   :  { %vm1920_vm1 = vmor %vm1918_vm14, %vm1919_vm13  ;;  %2389 = vmatpush.msrb.mxu0 %v2338_v21 }
0x1211   :  { %v1915_v47 = vsub.f32 1.0, %v1914_v45 }
0x1213   :  { %v1916_v2 = vmul.f32 %v6688_v44, %v1915_v47 }
0x1215   :  { %v1917_v5 = vadd.f32 %v6688_v44, %v1916_v2 }
0x1217   :  { %v1921_v54 = vsel %vm1920_vm1, %v6688_v44, %v1917_v5  ;;  %v2339_v44 = vld [vmem:[#allocation10 + $0x58] sm:$0xff] }
0x1218   :  { %v1926_v48 = vsel %vm1923_vm2, %v1925_v29, %v1921_v54  ;;  %2412 = vmatpush.msrb.mxu1 %v2339_v44 }
0x1219   :  { %v1956_v49 = vmul.f32 %v6690_v0, %v1926_v48  ;;  %v1955_v1 = vmul.f32 %v1926_v48, %v1851_v31  ;;  %v2336_v0 = vld [vmem:[#allocation10 + $0x40] sm:$0xff]  ;;  %v2337_v48 = vld [vmem:[#allocation10 + $0x48] sm:$0xff] }
0x121a   :  { %2390 = vmatpush.msrb.mxu0 %v2336_v0  ;;  %2413 = vmatpush.msrb.mxu1 %v2337_v48 }
0x121b   :  { %1958 = vrot.lane.b32.xlu2 %v1956_v49, %s7384_s11  ;;  %v2334_v49 = vld [vmem:[#allocation10 + $0x30] sm:$0xff] }
0x121c   :  { %2391 = vmatpush.msrb.mxu0 %v2334_v49 }
0x126f   :  { %v1933_v18 = vpop.permute.xlu0 %1932 }
0x1270   :  { %v1934_v19 = vrot.slane %v1933_v18, 2  ;;  %v2331_v18 = vld [vmem:[#allocation10 + $0x18] sm:$0xff] }
0x1272   :  { %v6381_v20 = vmul.f32 -1.442695, %v1934_v19 }
0x1275   :  { %v1959_v16 = vpop.permute.xlu2 %1958 }
0x1276   :  { %v8247_v17 = vadd.f32 %v1959_v16, %v1955_v1  ;;  %v2335_v1 = vld [vmem:[#allocation10 + $0x38] sm:$0xff]  ;;  %v2332_v16 = vld [vmem:[#allocation10 + $0x20] sm:$0xff] }
0x1277   :  { %2414 = vmatpush.msrb.mxu1 %v2335_v1  ;;  %2392 = vmatpush.msrb.mxu0 %v2332_v16 }
0x1278   :  { %6691 = vtanh.f32 %v8247_v17 }
0x1279   :  { %6693 = vpow2.f32 %v6381_v20  ;;  %v2328_v20 = vld [vmem:[#allocation10] sm:$0xff] }
0x127e   :  { %v6692_v52 = vpop.eup %6691 }
0x127f   :  { %1964 = vrot.lane.b32.xlu1 %v6692_v52, %s7384_s11  ;;  %v6694_v41 = vpop.eup %6693  ;;  %v2330_v52 = vld [vmem:[#allocation10 + $0x10] sm:$0xff] }
0x1280   :  { %v1939_v55 = vadd.f32 1.0, %v6694_v41  ;;  %2393 = vmatpush.msrb.mxu0 %v2330_v52  ;;  %v2329_v41 = vld [vmem:[#allocation10 + $0x8] sm:$0xff] }
0x1282   :  { %6695 = vrcp.f32 %v1939_v55  ;;  %v1951_v14 = vand.u32 2147483648, %v1939_v55  ;;  %vm1945_vm8 = vweird.f32 %v1939_v55  ;;  %v1949_v24 = vand.u32 2147483647, %v1939_v55  ;;  %2394 = vmatpush.msrb.mxu0 %v2328_v20  ;;  %v8329_v20 = vld [vmem:[#allocation11 + $0x50] sm:$0xff] }
0x1284   :  { %v1952_v7 = vor.u32 1.1754944e-38, %v1951_v14  ;;  %vm1950_vm10 = vcmp.eq.f32.partialorder %v1949_v24, 8.507059e+37 }
0x1288   :  { %v6696_v57 = vpop.eup %6695 }
0x1289   :  { %v1941_v58 = vmul.f32 %v6696_v57, %v1939_v55  ;;  %vm1946_vm7 = vweird.f32 %v6696_v57 }
0x128a   :  { %vm1947_vm9 = vmor %vm1945_vm8, %vm1946_vm7 }
0x128b   :  { %v1942_v59 = vsub.f32 1.0, %v1941_v58 }
0x128d   :  { %v1943_v35 = vmul.f32 %v6696_v57, %v1942_v59 }
0x128f   :  { %v1944_v22 = vadd.f32 %v6696_v57, %v1943_v35 }
0x1291   :  { %v1948_v6 = vsel %vm1947_vm9, %v6696_v57, %v1944_v22 }
0x1292   :  { %v1953_v8 = vsel %vm1950_vm10, %v1952_v7, %v1948_v6 }
0x12f1   :  { %v1965_v10 = vpop.permute.xlu1 %1964 }
0x12f2   :  { %v1967_v31 = vmul.f32 %v1965_v10, %v1953_v8  ;;  %v2373_v10 = vld.sshfl [vmem:[#allocation1] sm:$0xff pattern:$0x73625140] }
0x12f4   :  { %1969 = vst.msk [vmem:[#allocation3 + $0x8] sm:$0x3] %vm492_vm15, %v1967_v31  ;;  %6382 = vmatmul.msk.f32.vlgmr.msrb.gmra.mxu2 %vm379_vm0, %v1967_v31  ;;  %6383 = vmatmul.msk.f32.vlgmr.msrb.gmra.mxu3 %vm379_vm0, %v1967_v31 }
0x12fb   :  { %v2304_v32 = vld [vmem:[#allocation3 + $0x8] sm:$0x3] }
0x12fc   :  { %2366 = vst [vmem:[#allocation1 + $0x20] ss:$4 sm:$0xff] %v2304_v32 }
0x1377   :  { %v2010_v15 = vpop.f32.mrf.mxu3  ;;  %v1990_v60 = vpop.f32.mrf.mxu2 }
0x1378   :  { %v2015_v56 = vrot.slane %v2010_v15, 6 }
0x137a   :  { %v2016_v33 = vsel %vm353_vm3, %v1990_v60, %v2015_v56  ;;  %v1406_v60 = vrot.slane %v8173_v4, 4 }
0x137b   :  { %v2018_v62 = vadd.f32 %v2016_v33, %v1404_v61  ;;  %v8272_v61 = vld [vmem:[%s9524_s28] sm:$0x3] }
0x137d   :  { %2042 = vrot.lane.b32.xlu0 %v2018_v62, %s7384_s11  ;;  %v6384_v34 = vmul.f32 -1.442695, %v2018_v62  ;;  %v2039_v12 = vrot.slane %v2018_v62, 2 }
0x137f   :  { %6697 = vpow2.f32 %v6384_v34  ;;  %v2347_v34 = vperm.slane %v8272_v61, 1 }
0x1385   :  { %v6698_v63 = vpop.eup %6697 }
0x1386   :  { %v2022_v9 = vadd.f32 1.0, %v6698_v63 }
0x1388   :  { %6699 = vrcp.f32 %v2022_v9  ;;  %v2034_v23 = vand.u32 2147483648, %v2022_v9  ;;  %v2032_v30 = vand.u32 2147483647, %v2022_v9  ;;  %vm2028_vm12 = vweird.f32 %v2022_v9 }
0x1389   :  { %6701 = vtanh.f32 %v2039_v12 }
0x138a   :  { %v2035_v51 = vor.u32 1.1754944e-38, %v2034_v23  ;;  %vm2033_vm14 = vcmp.eq.f32.partialorder %v2032_v30, 8.507059e+37 }
0x138e   :  { %v6700_v11 = vpop.eup %6699 }
0x138f   :  { %v2024_v39 = vmul.f32 %v6700_v11, %v2022_v9  ;;  %vm2029_vm11 = vweird.f32 %v6700_v11  ;;  %v6702_v36 = vpop.eup %6701  ;;  %v2346_v9 = vperm.slane %v8272_v61, 0 }
0x1390   :  { %vm2030_vm13 = vmor %vm2028_vm12, %vm2029_vm11 }
0x1391   :  { %v2025_v40 = vsub.f32 1.0, %v2024_v39 }
0x1393   :  { %v2026_v25 = vmul.f32 %v6700_v11, %v2025_v40 }
0x1395   :  { %v2027_v53 = vadd.f32 %v6700_v11, %v2026_v25 }
0x1397   :  { %v2031_v50 = vsel %vm2030_vm13, %v6700_v11, %v2027_v53 }
0x1398   :  { %v2036_v37 = vsel %vm2033_vm14, %v2035_v51, %v2031_v50 }
0x1399   :  { %v2066_v38 = vmul.f32 %v6702_v36, %v2036_v37  ;;  %v2065_v27 = vmul.f32 %v2036_v37, %v8247_v17  ;;  %v2333_v17 = vld [vmem:[#allocation10 + $0x28] sm:$0xff] }
0x139a   :  { %2415 = vmatpush.msrb.mxu1 %v2333_v17 }
0x139b   :  { %2068 = vrot.lane.b32.xlu2 %v2066_v38, %s7384_s11 }
0x139c   :  { %2416 = vmatpush.msrb.mxu1 %v2331_v18 }
0x139e   :  { %2417 = vmatpush.msrb.mxu1 %v2329_v41  ;;  %v8331_v41 = vld [vmem:[#allocation11 + $0x48] sm:$0xff] }
0x13ef   :  { %v2043_v2 = vpop.permute.xlu0 %2042 }
0x13f0   :  { %v2044_v3 = vrot.slane %v2043_v2, 2  ;;  %v8302_v2 = vld [vmem:[#allocation11 + $0x78] sm:$0xff] }
0x13f1   :  { %2484 = vmatpush.msrb.mxu3 %v8302_v2 }
0x13f2   :  { %v6385_v5 = vmul.f32 -1.442695, %v2044_v3  ;;  %v8304_v3 = vld [vmem:[#allocation11 + $0x70] sm:$0xff] }
0x13f3   :  { %2464 = vmatpush.msrb.mxu2 %v8304_v3 }
0x13f5   :  { %v2069_v45 = vpop.permute.xlu2 %2068 }
0x13f6   :  { %v8259_v47 = vadd.f32 %v2069_v45, %v2065_v27 }
0x13f8   :  { %6703 = vtanh.f32 %v8259_v47 }
0x13f9   :  { %6705 = vpow2.f32 %v6385_v5  ;;  %v8306_v5 = vld [vmem:[#allocation11 + $0x68] sm:$0xff] }
0x13fa   :  { %2485 = vmatpush.msrb.mxu3 %v8306_v5 }
0x13fe   :  { %v6704_v26 = vpop.eup %6703 }
0x13ff   :  { %2074 = vrot.lane.b32.xlu1 %v6704_v26, %s7384_s11  ;;  %v6706_v29 = vpop.eup %6705 }
0x1400   :  { %v2049_v54 = vadd.f32 1.0, %v6706_v29  ;;  %v8310_v29 = vld [vmem:[#allocation11 + $0x60] sm:$0xff] }
0x1401   :  { %2465 = vmatpush.msrb.mxu2 %v8310_v29 }
0x1402   :  { %6707 = vrcp.f32 %v2049_v54  ;;  %v2061_v35 = vand.u32 2147483648, %v2049_v54  ;;  %vm2055_vm2 = vweird.f32 %v2049_v54  ;;  %v2059_v22 = vand.u32 2147483647, %v2049_v54 }
0x1403   :  { %2466 = vmatpush.msrb.mxu2 %v8329_v20 }
0x1404   :  { %v2062_v24 = vor.u32 1.1754944e-38, %v2061_v35  ;;  %vm2060_vm8 = vcmp.eq.f32.partialorder %v2059_v22, 8.507059e+37  ;;  %v8354_v35 = vld [vmem:[#allocation11 + $0x18] sm:$0xff] }
0x1408   :  { %v6708_v19 = vpop.eup %6707 }
0x1409   :  { %v2051_v55 = vmul.f32 %v6708_v19, %v2049_v54  ;;  %vm2056_vm1 = vweird.f32 %v6708_v19  ;;  %v8312_v54 = vld [vmem:[#allocation11 + $0x58] sm:$0xff] }
0x140a   :  { %vm2057_vm7 = vmor %vm2055_vm2, %vm2056_vm1  ;;  %2486 = vmatpush.msrb.mxu3 %v8312_v54 }
0x140b   :  { %v2052_v57 = vsub.f32 1.0, %v2051_v55  ;;  %v8338_v55 = vld [vmem:[#allocation11 + $0x38] sm:$0xff] }
0x140c   :  { %2487 = vmatpush.msrb.mxu3 %v8331_v41 }
0x140d   :  { %v2053_v58 = vmul.f32 %v6708_v19, %v2052_v57  ;;  %v8344_v57 = vld [vmem:[#allocation11 + $0x30] sm:$0xff] }
0x140e   :  { %2488 = vmatpush.msrb.mxu3 %v8338_v55 }
0x140f   :  { %v2054_v59 = vadd.f32 %v6708_v19, %v2053_v58  ;;  %v8346_v58 = vld [vmem:[#allocation11 + $0x28] sm:$0xff] }
0x1410   :  { %2489 = vmatpush.msrb.mxu3 %v8346_v58 }
0x1411   :  { %v2058_v14 = vsel %vm2057_vm7, %v6708_v19, %v2054_v59  ;;  %v8352_v59 = vld [vmem:[#allocation11 + $0x20] sm:$0xff] }
0x1412   :  { %v2063_v6 = vsel %vm2060_vm8, %v2062_v24, %v2058_v14  ;;  %2490 = vmatpush.msrb.mxu3 %v8354_v35  ;;  %v8360_v14 = vld [vmem:[#allocation11 + $0x10] sm:$0xff]  ;;  %v8362_v24 = vld [vmem:[#allocation11 + $0x8] sm:$0xff] }
0x1414   :  { %2491 = vmatpush.msrb.mxu3 %v8362_v24 }
0x1471   :  { %v2075_v7 = vpop.permute.xlu1 %2074 }
0x1472   :  { %v2077_v8 = vmul.f32 %v2075_v7, %v2063_v6  ;;  %v8368_v6 = vld [vmem:[#allocation11] sm:$0xff]  ;;  %v6395_v7 = vld [vmem:[%s9484_s23 + $0x4] sm:$0x3] }
0x1474   :  { %2079 = vst.msk [vmem:[#allocation3 + $0xa] sm:$0x3] %vm492_vm15, %v2077_v8  ;;  %6386 = vmatmul.msk.f32.vlgmr.msra.gmra.mxu0 %vm379_vm0, %v2077_v8  ;;  %6387 = vmatmul.msk.f32.vlgmr.msra.gmra.mxu1 %vm379_vm0, %v2077_v8 }
0x1475   :  { %2597 = vmatpush.msra.mxu1 %v8302_v2  ;;  %2577 = vmatpush.msra.mxu0 %v8304_v3 }
0x1477   :  { %2598 = vmatpush.msra.mxu1 %v8306_v5  ;;  %2578 = vmatpush.msra.mxu0 %v8310_v29 }
0x1479   :  { %2599 = vmatpush.msra.mxu1 %v8312_v54  ;;  %2579 = vmatpush.msra.mxu0 %v8329_v20 }
0x147b   :  { %v2305_v31 = vld [vmem:[#allocation3 + $0xa] sm:$0x3]  ;;  %2600 = vmatpush.msra.mxu1 %v8331_v41 }
0x147c   :  { %2368 = vst [vmem:[#allocation1 + $0x21] ss:$4 sm:$0xff] %v2305_v31  ;;  %6396 = vmatmul.msk.f32.vlgmr.msrb.gmra.mxu0 %vm379_vm0, %v2373_v10  ;;  %6398 = vmatmul.msk.f32.vlgmr.msrb.gmra.mxu1 %vm379_vm0, %v2373_v10 }
0x147d   :  { %2601 = vmatpush.msra.mxu1 %v8338_v55 }
0x147f   :  { %2602 = vmatpush.msra.mxu1 %v8346_v58 }
0x1481   :  { %2603 = vmatpush.msra.mxu1 %v8354_v35 }
0x1483   :  { %2604 = vmatpush.msra.mxu1 %v8362_v24 }
0x1485   :  { %2815 = vmatpush.msrb.mxu1 %v8302_v2 }
0x1487   :  { %2816 = vmatpush.msrb.mxu1 %v8306_v5 }
0x1489   :  { %2817 = vmatpush.msrb.mxu1 %v8312_v54 }
0x148b   :  { %2818 = vmatpush.msrb.mxu1 %v8331_v41 }
0x148d   :  { %2819 = vmatpush.msrb.mxu1 %v8338_v55 }
0x148f   :  { %2820 = vmatpush.msrb.mxu1 %v8346_v58 }
0x1491   :  { %2821 = vmatpush.msrb.mxu1 %v8354_v35 }
0x1493   :  { %2822 = vmatpush.msrb.mxu1 %v8362_v24 }
0x14f1   :  { %v2100_v32 = vpop.f32.mrf.mxu0  ;;  %v2120_v15 = vpop.f32.mrf.mxu1 }
0x14f2   :  { %v2125_v56 = vrot.slane %v2120_v15, 6 }
0x14f4   :  { %v2126_v33 = vsel %vm353_vm3, %v2100_v32, %v2125_v56 }
0x14f5   :  { %v2128_v62 = vadd.f32 %v2126_v33, %v1406_v60 }
0x14f7   :  { %2152 = vrot.lane.b32.xlu0 %v2128_v62, %s7384_s11  ;;  %v6388_v63 = vmul.f32 -1.442695, %v2128_v62  ;;  %v2149_v36 = vrot.slane %v2128_v62, 2 }
0x14f9   :  { %6709 = vpow2.f32 %v6388_v63  ;;  %v2396_v11 = vpop.f32.mrf.mxu0  ;;  %v2419_v12 = vpop.f32.mrf.mxu1 }
0x14fa   :  { %v2420_v4 = vadd.f32 %v2419_v12, %v2347_v34  ;;  %v8282_v39 = vadd.f32 %v2396_v11, %v2346_v9  ;;  %v6394_v12 = vld [vmem:[%s9483_s22 + $0x4] sm:$0x3] }
0x14fc   :  { %v8284_v40 = vrot.slane %v2420_v4, 6 }
0x14fe   :  { %v8289_v23 = vsel %vm355_vm4, %v8282_v39, %v8284_v40  ;;  %v8294_v25 = vsel %vm358_vm5, %v8282_v39, %v8284_v40  ;;  %v8299_v30 = vsel %vm361_vm6, %v8284_v40, %v8282_v39 }
0x14ff   :  { %v6710_v53 = vpop.eup %6709 }
0x1500   :  { %v2132_v51 = vadd.f32 1.0, %v6710_v53 }
0x1502   :  { %6711 = vrcp.f32 %v2132_v51  ;;  %v2144_v42 = vand.u32 2147483648, %v2132_v51  ;;  %v2142_v46 = vand.u32 2147483647, %v2132_v51  ;;  %vm2138_vm10 = vweird.f32 %v2132_v51 }
0x1503   :  { %6713 = vtanh.f32 %v2149_v36  ;;  %v1408_v36 = vrot.slane %v8176_v28, 6 }
0x1504   :  { %v2145_v21 = vor.u32 1.1754944e-38, %v2144_v42  ;;  %vm2143_vm12 = vcmp.eq.f32.partialorder %v2142_v46, 8.507059e+37 }
0x1508   :  { %v6712_v50 = vpop.eup %6711 }
0x1509   :  { %v2134_v37 = vmul.f32 %v6712_v50, %v2132_v51  ;;  %vm2139_vm9 = vweird.f32 %v6712_v50  ;;  %v6714_v27 = vpop.eup %6713 }
0x150a   :  { %vm2140_vm11 = vmor %vm2138_vm10, %vm2139_vm9 }
0x150b   :  { %v2135_v38 = vsub.f32 1.0, %v2134_v37 }
0x150d   :  { %v2136_v13 = vmul.f32 %v6712_v50, %v2135_v38 }
0x150f   :  { %v2137_v43 = vadd.f32 %v6712_v50, %v2136_v13 }
0x1511   :  { %v2141_v44 = vsel %vm2140_vm11, %v6712_v50, %v2137_v43 }
0x1512   :  { %v2146_v45 = vsel %vm2143_vm12, %v2145_v21, %v2141_v44  ;;  %v2431_v21 = vsel %vm353_vm3, %v8282_v39, %v8284_v40 }
0x1513   :  { %v2176_v26 = vmul.f32 %v6714_v27, %v2146_v45  ;;  %v2175_v0 = vmul.f32 %v2146_v45, %v8259_v47  ;;  %v8336_v47 = vld [vmem:[#allocation11 + $0x40] sm:$0xff] }
0x1514   :  { %2467 = vmatpush.msrb.mxu2 %v8336_v47  ;;  %2580 = vmatpush.msra.mxu0 %v8336_v47 }
0x1515   :  { %2178 = vrot.lane.b32.xlu2 %v2176_v26, %s7384_s11 }
0x1516   :  { %2468 = vmatpush.msrb.mxu2 %v8344_v57  ;;  %2581 = vmatpush.msra.mxu0 %v8344_v57 }
0x1518   :  { %2469 = vmatpush.msrb.mxu2 %v8352_v59  ;;  %2582 = vmatpush.msra.mxu0 %v8352_v59 }
0x151a   :  { %2470 = vmatpush.msrb.mxu2 %v8360_v14  ;;  %2583 = vmatpush.msra.mxu0 %v8360_v14 }
0x151c   :  { %2471 = vmatpush.msrb.mxu2 %v8368_v6  ;;  %2584 = vmatpush.msra.mxu0 %v8368_v6 }
0x151e   :  { %2795 = vmatpush.msrb.mxu0 %v8304_v3 }
0x1520   :  { %2796 = vmatpush.msrb.mxu0 %v8310_v29 }
0x1522   :  { %2797 = vmatpush.msrb.mxu0 %v8329_v20 }
0x1524   :  { %2798 = vmatpush.msrb.mxu0 %v8336_v47 }
0x1526   :  { %2799 = vmatpush.msrb.mxu0 %v8344_v57 }
0x1528   :  { %2800 = vmatpush.msrb.mxu0 %v8352_v59 }
0x152a   :  { %2801 = vmatpush.msrb.mxu0 %v8360_v14 }
0x152c   :  { %2802 = vmatpush.msrb.mxu0 %v8368_v6 }
0x1569   :  { %v2153_v16 = vpop.permute.xlu0 %2152 }
0x156a   :  { %v2154_v17 = vrot.slane %v2153_v16, 2 }
0x156c   :  { %v6389_v52 = vmul.f32 -1.442695, %v2154_v17 }
0x156f   :  { %v2179_v48 = vpop.permute.xlu2 %2178 }
0x1570   :  { %v8323_v49 = vadd.f32 %v2179_v48, %v2175_v0 }
0x1572   :  { %6715 = vtanh.f32 %v8323_v49 }
0x1573   :  { %6717 = vpow2.f32 %v6389_v52 }
0x1578   :  { %v6716_v1 = vpop.eup %6715 }
0x1579   :  { %2184 = vrot.lane.b32.xlu1 %v6716_v1, %s7384_s11  ;;  %v6718_v18 = vpop.eup %6717 }
0x157a   :  { %v8327_v19 = vadd.f32 1.0, %v6718_v18 }
0x157c   :  { %6719 = vrcp.f32 %v8327_v19  ;;  %v2171_v15 = vand.u32 2147483648, %v8327_v19  ;;  %vm2165_vm14 = vweird.f32 %v8327_v19  ;;  %v2169_v56 = vand.u32 2147483647, %v8327_v19 }
0x157e   :  { %v2172_v33 = vor.u32 1.1754944e-38, %v2171_v15  ;;  %vm2170_vm2 = vcmp.eq.f32.partialorder %v2169_v56, 8.507059e+37 }
0x1581   :  { %2549 = vrot.lane.b32.xlu1 %v6395_v7, %s7384_s11 }
0x1582   :  { %v6720_v22 = vpop.eup %6719 }
0x1583   :  { %v2161_v8 = vmul.f32 %v6720_v22, %v8327_v19  ;;  %vm2166_vm13 = vweird.f32 %v6720_v22 }
0x1584   :  { %vm2167_vm1 = vmor %vm2165_vm14, %vm2166_vm13 }
0x1585   :  { %v2162_v10 = vsub.f32 1.0, %v2161_v8 }
0x1587   :  { %v2163_v31 = vmul.f32 %v6720_v22, %v2162_v10 }
0x1589   :  { %v2164_v32 = vadd.f32 %v6720_v22, %v2163_v31 }
0x158b   :  { %v2168_v60 = vsel %vm2167_vm1, %v6720_v22, %v2164_v32 }
0x158c   :  { %v2173_v62 = vsel %vm2170_vm2, %v2172_v33, %v2168_v60 }
0x15eb   :  { %v2185_v63 = vpop.permute.xlu1 %2184 }
0x15ec   :  { %v2187_v11 = vmul.f32 %v2185_v63, %v2173_v62 }
0x15ee   :  { %2189 = vst.msk [vmem:[#allocation3 + $0xc] sm:$0x3] %vm492_vm15, %v2187_v11  ;;  %6390 = vmatmul.msk.f32.vlgmr.msra.gmra.mxu2 %vm379_vm0, %v2187_v11  ;;  %6391 = vmatmul.msk.f32.vlgmr.msra.gmra.mxu3 %vm379_vm0, %v2187_v11 }
0x15ef   :  { %2686 = vmatpush.msra.mxu2 %v8304_v3  ;;  %2706 = vmatpush.msra.mxu3 %v8302_v2 }
0x15f1   :  { %2687 = vmatpush.msra.mxu2 %v8310_v29  ;;  %2707 = vmatpush.msra.mxu3 %v8306_v5 }
0x15f3   :  { %2688 = vmatpush.msra.mxu2 %v8329_v20  ;;  %2708 = vmatpush.msra.mxu3 %v8312_v54 }
0x15f5   :  { %v2306_v4 = vld [vmem:[#allocation3 + $0xc] sm:$0x3]  ;;  %2689 = vmatpush.msra.mxu2 %v8336_v47  ;;  %2709 = vmatpush.msra.mxu3 %v8331_v41 }
0x15f6   :  { %2370 = vst [vmem:[#allocation1 + $0x22] ss:$4 sm:$0xff] %v2306_v4  ;;  %6401 = vmatmul.msk.f32.vlgmr.msrb.gmra.mxu3 %vm379_vm0, %v6394_v12  ;;  %6400 = vmatmul.msk.f32.vlgmr.msrb.gmra.mxu2 %vm379_vm0, %v6394_v12 }
0x15f7   :  { %2690 = vmatpush.msra.mxu2 %v8344_v57  ;;  %2710 = vmatpush.msra.mxu3 %v8338_v55 }
0x15f9   :  { %2691 = vmatpush.msra.mxu2 %v8352_v59  ;;  %2711 = vmatpush.msra.mxu3 %v8346_v58 }
0x15fb   :  { %2692 = vmatpush.msra.mxu2 %v8360_v14  ;;  %2712 = vmatpush.msra.mxu3 %v8354_v35 }
0x15fd   :  { %2693 = vmatpush.msra.mxu2 %v8368_v6  ;;  %2713 = vmatpush.msra.mxu3 %v8362_v24 }
0x15ff   :  { %2904 = vmatpush.msrb.mxu2 %v8304_v3  ;;  %2924 = vmatpush.msrb.mxu3 %v8302_v2 }
0x1601   :  { %2905 = vmatpush.msrb.mxu2 %v8310_v29  ;;  %2925 = vmatpush.msrb.mxu3 %v8306_v5 }
0x1603   :  { %2906 = vmatpush.msrb.mxu2 %v8329_v20  ;;  %2926 = vmatpush.msrb.mxu3 %v8312_v54 }
0x1605   :  { %2907 = vmatpush.msrb.mxu2 %v8336_v47  ;;  %2927 = vmatpush.msrb.mxu3 %v8331_v41 }
0x1607   :  { %2908 = vmatpush.msrb.mxu2 %v8344_v57  ;;  %2928 = vmatpush.msrb.mxu3 %v8338_v55 }
0x1609   :  { %2909 = vmatpush.msrb.mxu2 %v8352_v59  ;;  %2929 = vmatpush.msrb.mxu3 %v8346_v58 }
0x160b   :  { %2910 = vmatpush.msrb.mxu2 %v8360_v14  ;;  %2930 = vmatpush.msrb.mxu3 %v8354_v35 }
0x160d   :  { %2911 = vmatpush.msrb.mxu2 %v8368_v6  ;;  %2931 = vmatpush.msrb.mxu3 %v8362_v24 }
0x1671   :  { %v2210_v53 = vpop.f32.mrf.mxu2  ;;  %v2230_v51 = vpop.f32.mrf.mxu3 }
0x1672   :  { %v2235_v50 = vrot.slane %v2230_v51, 6 }
0x1674   :  { %v2236_v37 = vsel %vm353_vm3, %v2210_v53, %v2235_v50 }
0x1675   :  { %v2238_v38 = vadd.f32 %v2236_v37, %v1408_v36 }
0x1677   :  { %2262 = vrot.lane.b32.xlu0 %v2238_v38, %s7384_s11  ;;  %v6392_v42 = vmul.f32 -1.442695, %v2238_v38  ;;  %v2259_v1 = vrot.slane %v2238_v38, 2 }
0x1679   :  { %6721 = vpow2.f32 %v6392_v42  ;;  %v2493_v13 = vpop.f32.mrf.mxu3  ;;  %v2473_v46 = vpop.f32.mrf.mxu2 }
0x167a   :  { %v2498_v43 = vrot.slane %v2493_v13, 6  ;;  %v2550_v42 = vpop.permute.xlu1 %2549 }
0x167c   :  { %v2499_v44 = vsel %vm353_vm3, %v2473_v46, %v2498_v43 }
0x167d   :  { %v2501_v27 = vadd.f32 %v2499_v44, %v2431_v21 }
0x167f   :  { %v6722_v45 = vpop.eup %6721  ;;  %v6402_v26 = vmul.f32 -1.442695, %v2501_v27  ;;  %2525 = vrot.lane.b32.xlu0 %v2501_v27, %s7384_s11  ;;  %v2522_v7 = vrot.slane %v2501_v27, 2 }
0x1680   :  { %v2242_v28 = vadd.f32 1.0, %v6722_v45 }
0x1681   :  { %6723 = vpow2.f32 %v6402_v26 }
0x1682   :  { %6725 = vrcp.f32 %v2242_v28  ;;  %v2254_v18 = vand.u32 2147483648, %v2242_v28  ;;  %v2252_v40 = vand.u32 2147483647, %v2242_v28  ;;  %vm2248_vm8 = vweird.f32 %v2242_v28 }
0x1684   :  { %v2255_v8 = vor.u32 1.1754944e-38, %v2254_v18  ;;  %vm2253_vm10 = vcmp.eq.f32.partialorder %v2252_v40, 8.507059e+37 }
0x1687   :  { %v6724_v0 = vpop.eup %6723 }
0x1688   :  { %v6726_v48 = vpop.eup %6725  ;;  %v2505_v16 = vadd.f32 1.0, %v6724_v0 }
0x1689   :  { %v2244_v17 = vmul.f32 %v6726_v48, %v2242_v28  ;;  %vm2249_vm7 = vweird.f32 %v6726_v48 }
0x168a   :  { %6727 = vrcp.f32 %v2505_v16  ;;  %vm2250_vm9 = vmor %vm2248_vm8, %vm2249_vm7  ;;  %v2517_v33 = vand.u32 2147483648, %v2505_v16  ;;  %v2515_v63 = vand.u32 2147483647, %v2505_v16  ;;  %vm2511_vm12 = vweird.f32 %v2505_v16 }
0x168b   :  { %v2245_v52 = vsub.f32 1.0, %v2244_v17  ;;  %6729 = vtanh.f32 %v2259_v1 }
0x168c   :  { %6731 = vtanh.f32 %v2522_v7  ;;  %v2518_v12 = vor.u32 1.1754944e-38, %v2517_v33  ;;  %vm2516_vm14 = vcmp.eq.f32.partialorder %v2515_v63, 8.507059e+37 }
0x168d   :  { %v2246_v39 = vmul.f32 %v6726_v48, %v2245_v52 }
0x168f   :  { %v2247_v19 = vadd.f32 %v6726_v48, %v2246_v39 }
0x1690   :  { %v6728_v22 = vpop.eup %6727 }
0x1691   :  { %v2251_v10 = vsel %vm2250_vm9, %v6726_v48, %v2247_v19  ;;  %v2507_v31 = vmul.f32 %v6728_v22, %v2505_v16  ;;  %v6730_v32 = vpop.eup %6729  ;;  %vm2512_vm11 = vweird.f32 %v6728_v22 }
0x1692   :  { %v2256_v15 = vsel %vm2253_vm10, %v2255_v8, %v2251_v10  ;;  %vm2513_vm13 = vmor %vm2511_vm12, %vm2512_vm11  ;;  %v6732_v53 = vpop.eup %6731 }
0x1693   :  { %v2286_v56 = vmul.f32 %v6730_v32, %v2256_v15  ;;  %v2508_v60 = vsub.f32 1.0, %v2507_v31  ;;  %v2285_v36 = vmul.f32 %v2256_v15, %v8323_v49 }
0x1695   :  { %2288 = vrot.lane.b32.xlu2 %v2286_v56, %s7384_s11  ;;  %v2509_v62 = vmul.f32 %v6728_v22, %v2508_v60 }
0x1697   :  { %v2510_v11 = vadd.f32 %v6728_v22, %v2509_v62 }
0x1699   :  { %v2514_v4 = vsel %vm2513_vm13, %v6728_v22, %v2510_v11 }
0x169a   :  { %v2519_v51 = vsel %vm2516_vm14, %v2518_v12, %v2514_v4 }
0x169b   :  { %v2553_v50 = vmul.f32 %v6732_v53, %v2519_v51  ;;  %v2552_v13 = vmul.f32 %v2550_v42, %v2519_v51 }
0x169d   :  { %2555 = vrot.lane.b32.xlu2 %v2553_v50, %s7384_s11 }
0x16e9   :  { %v2263_v27 = vpop.permute.xlu0 %2262 }
0x16ea   :  { %v2264_v0 = vrot.slane %v2263_v27, 2 }
0x16ec   :  { %v6393_v1 = vmul.f32 -1.442695, %v2264_v0 }
0x16ef   :  { %v2289_v37 = vpop.permute.xlu2 %2288 }
0x16f0   :  { %v2291_v38 = vadd.f32 %v2289_v37, %v2285_v36 }
0x16f1   :  { %v2526_v45 = vpop.permute.xlu0 %2525 }
0x16f2   :  { %6733 = vtanh.f32 %v2291_v38  ;;  %v2527_v26 = vrot.slane %v2526_v45, 2 }
0x16f4   :  { %v6403_v49 = vmul.f32 -1.442695, %v2527_v26 }
0x16f7   :  { %v2556_v46 = vpop.permute.xlu2 %2555 }
0x16f8   :  { %v6734_v43 = vpop.eup %6733  ;;  %v8449_v21 = vadd.f32 %v2556_v46, %v2552_v13 }
0x16f9   :  { %2294 = vrot.lane.b32.xlu1 %v6734_v43, %s7384_s11 }
0x16fa   :  { %6735 = vtanh.f32 %v8449_v21 }
0x16fb   :  { %6737 = vpow2.f32 %v6403_v49 }
0x1700   :  { %v6736_v44 = vpop.eup %6735 }
0x1701   :  { %2561 = vrot.lane.b32.xlu2 %v6736_v44, %s7384_s11  ;;  %v6738_v28 = vpop.eup %6737 }
0x1702   :  { %v2532_v48 = vadd.f32 1.0, %v6738_v28 }
0x1704   :  { %6739 = vrcp.f32 %v2532_v48  ;;  %v2544_v7 = vand.u32 2147483648, %v2532_v48  ;;  %vm2538_vm2 = vweird.f32 %v2532_v48  ;;  %v2542_v8 = vand.u32 2147483647, %v2532_v48 }
0x1705   :  { %6741 = vpow2.f32 %v6393_v1 }
0x1706   :  { %v2545_v32 = vor.u32 1.1754944e-38, %v2544_v7  ;;  %vm2543_vm8 = vcmp.eq.f32.partialorder %v2542_v8, 8.507059e+37 }
0x170a   :  { %v6740_v16 = vpop.eup %6739 }
0x170b   :  { %v6742_v17 = vpop.eup %6741  ;;  %v2534_v52 = vmul.f32 %v6740_v16, %v2532_v48  ;;  %vm2539_vm1 = vweird.f32 %v6740_v16 }
0x170c   :  { %v2269_v18 = vadd.f32 1.0, %v6742_v17  ;;  %vm2540_vm7 = vmor %vm2538_vm2, %vm2539_vm1 }
0x170d   :  { %v2535_v39 = vsub.f32 1.0, %v2534_v52 }
0x170e   :  { %6743 = vrcp.f32 %v2269_v18  ;;  %v2281_v12 = vand.u32 2147483648, %v2269_v18  ;;  %vm2275_vm10 = vweird.f32 %v2269_v18  ;;  %v2279_v4 = vand.u32 2147483647, %v2269_v18 }
0x170f   :  { %v2536_v40 = vmul.f32 %v6740_v16, %v2535_v39 }
0x1710   :  { %v2282_v51 = vor.u32 1.1754944e-38, %v2281_v12  ;;  %vm2280_vm12 = vcmp.eq.f32.partialorder %v2279_v4, 8.507059e+37 }
0x1711   :  { %v2537_v19 = vadd.f32 %v6740_v16, %v2536_v40 }
0x1713   :  { %v2541_v10 = vsel %vm2540_vm7, %v6740_v16, %v2537_v19 }
0x1714   :  { %v6744_v22 = vpop.eup %6743  ;;  %v2546_v15 = vsel %vm2543_vm8, %v2545_v32, %v2541_v10 }
0x1715   :  { %v2271_v31 = vmul.f32 %v6744_v22, %v2269_v18  ;;  %vm2276_vm9 = vweird.f32 %v6744_v22 }
0x1716   :  { %vm2277_vm11 = vmor %vm2275_vm10, %vm2276_vm9 }
0x1717   :  { %v2272_v33 = vsub.f32 1.0, %v2271_v31 }
0x1719   :  { %v2273_v62 = vmul.f32 %v6744_v22, %v2272_v33 }
0x171b   :  { %v2274_v63 = vadd.f32 %v6744_v22, %v2273_v62 }
0x171d   :  { %v2278_v53 = vsel %vm2277_vm11, %v6744_v22, %v2274_v63 }
0x171e   :  { %v2283_v50 = vsel %vm2280_vm12, %v2282_v51, %v2278_v53 }
0x175b   :  { %v2562_v56 = vpop.permute.xlu2 %2561 }
0x175c   :  { %v2564_v60 = vmul.f32 %v2562_v56, %v2546_v15 }
0x175e   :  { %2565 = vst.msk [vmem:[#allocation2] sm:$0x3] %vm492_vm15, %v2564_v60 }
0x1765   :  { %v3329_v11 = vld [vmem:[#allocation2] sm:$0x3] }
0x1766   :  { %3367 = vst [vmem:[#allocation1] ss:$4 sm:$0xff] %v3329_v11 }
0x176b   :  { %v2295_v36 = vpop.permute.xlu1 %2294 }
0x176c   :  { %v2297_v37 = vmul.f32 %v2295_v36, %v2283_v50 }
0x176e   :  { %2299 = vst.msk [vmem:[#allocation3 + $0xe] sm:$0x3] %vm492_vm15, %v2297_v37 }
0x1775   :  { %v2307_v38 = vld [vmem:[#allocation3 + $0xe] sm:$0x3] }
0x1776   :  { %2372 = vst [vmem:[#allocation1 + $0x23] ss:$4 sm:$0xff] %v2307_v38 }
0x177d   :  { %v2374_v42 = vld.sshfl [vmem:[#allocation1 + $0x20] sm:$0xff pattern:$0x73625140] }
0x177e   :  { %6397 = vmatmul.msk.f32.gmra.mxu0 %vm379_vm0, %v2374_v42  ;;  %6399 = vmatmul.msk.f32.gmra.mxu1 %vm379_vm0, %v2374_v42 }
0x1786   :  { %6404 = vmatmul.msk.f32.vlgmr.msra.gmra.mxu0 %vm379_vm0, %v2564_v60  ;;  %6405 = vmatmul.msk.f32.vlgmr.msra.gmra.mxu1 %vm379_vm0, %v2564_v60 }
0x1787   :  { %3013 = vmatpush.msra.mxu0 %v8304_v3  ;;  %3033 = vmatpush.msra.mxu1 %v8302_v2 }
0x1789   :  { %3014 = vmatpush.msra.mxu0 %v8310_v29  ;;  %3034 = vmatpush.msra.mxu1 %v8306_v5 }
0x178b   :  { %3015 = vmatpush.msra.mxu0 %v8329_v20  ;;  %3035 = vmatpush.msra.mxu1 %v8312_v54 }
0x178d   :  { %3016 = vmatpush.msra.mxu0 %v8336_v47  ;;  %3036 = vmatpush.msra.mxu1 %v8331_v41 }
0x178f   :  { %3017 = vmatpush.msra.mxu0 %v8344_v57  ;;  %3037 = vmatpush.msra.mxu1 %v8338_v55 }
0x1791   :  { %3018 = vmatpush.msra.mxu0 %v8352_v59  ;;  %3038 = vmatpush.msra.mxu1 %v8346_v58 }
0x1793   :  { %3019 = vmatpush.msra.mxu0 %v8360_v14  ;;  %3039 = vmatpush.msra.mxu1 %v8354_v35 }
0x1795   :  { %3020 = vmatpush.msra.mxu0 %v8368_v6  ;;  %3040 = vmatpush.msra.mxu1 %v8362_v24 }
0x17fb   :  { %v2399_v13 = vpop.f32.mrf.mxu0  ;;  %v2422_v46 = vpop.f32.mrf.mxu1 }
0x17fc   :  { %v2423_v43 = vadd.f32 %v2422_v46, %v2347_v34  ;;  %v2400_v44 = vadd.f32 %v2399_v13, %v2346_v9  ;;  %v2433_v34 = vrot.slane %v8289_v23, 2 }
0x17fe   :  { %v2430_v27 = vrot.slane %v2423_v43, 6 }
0x1800   :  { %v8481_v45 = vsel %vm353_vm3, %v2400_v44, %v2430_v27  ;;  %v8484_v26 = vsel %vm355_vm4, %v2400_v44, %v2430_v27  ;;  %v8487_v49 = vsel %vm358_vm5, %v2400_v44, %v2430_v27  ;;  %v8490_v28 = vsel %vm361_vm6, %v2430_v27, %v2400_v44 }
0x1803   :  { %v2606_v0 = vpop.f32.mrf.mxu1  ;;  %v2586_v1 = vpop.f32.mrf.mxu0 }
0x1804   :  { %v2611_v48 = vrot.slane %v2606_v0, 6 }
0x1806   :  { %v2612_v61 = vsel %vm353_vm3, %v2586_v1, %v2611_v48 }
0x1807   :  { %v2614_v9 = vadd.f32 %v2612_v61, %v2433_v34 }
0x1809   :  { %2638 = vrot.lane.b32.xlu1 %v2614_v9, %s7384_s11  ;;  %v6406_v16 = vmul.f32 -1.442695, %v2614_v9  ;;  %v2635_v39 = vrot.slane %v2614_v9, 2  ;;  %v2435_v9 = vrot.slane %v8294_v25, 4 }
0x180b   :  { %6745 = vpow2.f32 %v6406_v16 }
0x1811   :  { %v6746_v17 = vpop.eup %6745 }
0x1812   :  { %v2618_v52 = vadd.f32 1.0, %v6746_v17 }
0x1814   :  { %6747 = vrcp.f32 %v2618_v52  ;;  %v2630_v22 = vand.u32 2147483648, %v2618_v52  ;;  %v2628_v8 = vand.u32 2147483647, %v2618_v52  ;;  %vm2624_vm14 = vweird.f32 %v2618_v52 }
0x1815   :  { %6749 = vtanh.f32 %v2635_v39 }
0x1816   :  { %v2631_v10 = vor.u32 1.1754944e-38, %v2630_v22  ;;  %vm2629_vm2 = vcmp.eq.f32.partialorder %v2628_v8, 8.507059e+37 }
0x181a   :  { %v6748_v18 = vpop.eup %6747 }
0x181b   :  { %v2620_v40 = vmul.f32 %v6748_v18, %v2618_v52  ;;  %vm2625_vm13 = vweird.f32 %v6748_v18  ;;  %v6750_v32 = vpop.eup %6749 }
0x181c   :  { %vm2626_vm1 = vmor %vm2624_vm14, %vm2625_vm13 }
0x181d   :  { %v2621_v19 = vsub.f32 1.0, %v2620_v40 }
0x181f   :  { %v2622_v7 = vmul.f32 %v6748_v18, %v2621_v19 }
0x1821   :  { %v2623_v23 = vadd.f32 %v6748_v18, %v2622_v7 }
0x1823   :  { %v2627_v31 = vsel %vm2626_vm1, %v6748_v18, %v2623_v23 }
0x1824   :  { %v2632_v15 = vsel %vm2629_vm2, %v2631_v10, %v2627_v31 }
0x1825   :  { %v2662_v56 = vmul.f32 %v6750_v32, %v2632_v15  ;;  %v2661_v60 = vmul.f32 %v2632_v15, %v8449_v21 }
0x1827   :  { %2664 = vrot.lane.b32.xlu0 %v2662_v56, %s7384_s11 }
0x187b   :  { %v2639_v11 = vpop.permute.xlu1 %2638 }
0x187c   :  { %v2640_v12 = vrot.slane %v2639_v11, 2 }
0x187e   :  { %v6407_v4 = vmul.f32 -1.442695, %v2640_v12 }
0x1899   :  { %v2665_v33 = vpop.permute.xlu0 %2664 }
0x189a   :  { %v8497_v62 = vadd.f32 %v2665_v33, %v2661_v60 }
0x189c   :  { %6751 = vtanh.f32 %v8497_v62 }
0x189d   :  { %6753 = vpow2.f32 %v6407_v4 }
0x18a2   :  { %v6752_v63 = vpop.eup %6751 }
0x18a3   :  { %2670 = vrot.lane.b32.xlu2 %v6752_v63, %s7384_s11  ;;  %v6754_v53 = vpop.eup %6753 }
0x18a4   :  { %v2645_v51 = vadd.f32 1.0, %v6754_v53 }
0x18a6   :  { %6755 = vrcp.f32 %v2645_v51  ;;  %v2657_v42 = vand.u32 2147483648, %v2645_v51  ;;  %vm2651_vm8 = vweird.f32 %v2645_v51  ;;  %v2655_v13 = vand.u32 2147483647, %v2645_v51 }
0x18a8   :  { %v2658_v43 = vor.u32 1.1754944e-38, %v2657_v42  ;;  %vm2656_vm10 = vcmp.eq.f32.partialorder %v2655_v13, 8.507059e+37 }
0x18ac   :  { %v6756_v50 = vpop.eup %6755 }
0x18ad   :  { %v2647_v36 = vmul.f32 %v6756_v50, %v2645_v51  ;;  %vm2652_vm7 = vweird.f32 %v6756_v50 }
0x18ae   :  { %vm2653_vm9 = vmor %vm2651_vm8, %vm2652_vm7 }
0x18af   :  { %v2648_v37 = vsub.f32 1.0, %v2647_v36 }
0x18b1   :  { %v2649_v38 = vmul.f32 %v6756_v50, %v2648_v37 }
0x18b3   :  { %v2650_v21 = vadd.f32 %v6756_v50, %v2649_v38 }
0x18b5   :  { %v2654_v46 = vsel %vm2653_vm9, %v6756_v50, %v2650_v21 }
0x18b6   :  { %v2659_v44 = vsel %vm2656_vm10, %v2658_v43, %v2654_v46 }
0x18fd   :  { %v2671_v27 = vpop.permute.xlu2 %2670 }
0x18fe   :  { %v2673_v0 = vmul.f32 %v2671_v27, %v2659_v44 }
0x1900   :  { %2674 = vst.msk [vmem:[#allocation2 + $0x2] sm:$0x3] %vm492_vm15, %v2673_v0  ;;  %6408 = vmatmul.msk.f32.vlgmr.msra.gmra.mxu2 %vm379_vm0, %v2673_v0  ;;  %6409 = vmatmul.msk.f32.vlgmr.msra.gmra.mxu3 %vm379_vm0, %v2673_v0 }
0x1901   :  { %3122 = vmatpush.msra.mxu2 %v8304_v3  ;;  %3142 = vmatpush.msra.mxu3 %v8302_v2 }
0x1903   :  { %3123 = vmatpush.msra.mxu2 %v8310_v29  ;;  %3143 = vmatpush.msra.mxu3 %v8306_v5 }
0x1905   :  { %3124 = vmatpush.msra.mxu2 %v8329_v20  ;;  %3144 = vmatpush.msra.mxu3 %v8312_v54 }
0x1907   :  { %v3330_v48 = vld [vmem:[#allocation2 + $0x2] sm:$0x3]  ;;  %3125 = vmatpush.msra.mxu2 %v8336_v47  ;;  %3145 = vmatpush.msra.mxu3 %v8331_v41 }
0x1908   :  { %3369 = vst [vmem:[#allocation1 + $0x1] ss:$4 sm:$0xff] %v3330_v48 }
0x1909   :  { %3126 = vmatpush.msra.mxu2 %v8344_v57  ;;  %3146 = vmatpush.msra.mxu3 %v8338_v55 }
0x190b   :  { %3127 = vmatpush.msra.mxu2 %v8352_v59  ;;  %3147 = vmatpush.msra.mxu3 %v8346_v58 }
0x190d   :  { %3128 = vmatpush.msra.mxu2 %v8360_v14  ;;  %3148 = vmatpush.msra.mxu3 %v8354_v35 }
0x190f   :  { %3129 = vmatpush.msra.mxu2 %v8368_v6  ;;  %3149 = vmatpush.msra.mxu3 %v8362_v24 }
0x1983   :  { %v2715_v1 = vpop.f32.mrf.mxu3  ;;  %v2695_v61 = vpop.f32.mrf.mxu2 }
0x1984   :  { %v2720_v34 = vrot.slane %v2715_v1, 6 }
0x1986   :  { %v2721_v16 = vsel %vm353_vm3, %v2695_v61, %v2720_v34 }
0x1987   :  { %v2723_v17 = vadd.f32 %v2721_v16, %v2435_v9 }
0x1989   :  { %2747 = vrot.lane.b32.xlu1 %v2723_v17, %s7384_s11  ;;  %v6410_v52 = vmul.f32 -1.442695, %v2723_v17  ;;  %v2744_v19 = vrot.slane %v2723_v17, 2 }
0x198b   :  { %6757 = vpow2.f32 %v6410_v52 }
0x1991   :  { %v6758_v18 = vpop.eup %6757 }
0x1992   :  { %v2727_v39 = vadd.f32 1.0, %v6758_v18 }
0x1994   :  { %6759 = vrcp.f32 %v2727_v39  ;;  %v2739_v8 = vand.u32 2147483648, %v2727_v39  ;;  %v2737_v10 = vand.u32 2147483647, %v2727_v39  ;;  %vm2733_vm12 = vweird.f32 %v2727_v39 }
0x1995   :  { %6761 = vtanh.f32 %v2744_v19 }
0x1996   :  { %v2740_v31 = vor.u32 1.1754944e-38, %v2739_v8  ;;  %vm2738_vm14 = vcmp.eq.f32.partialorder %v2737_v10, 8.507059e+37 }
0x199a   :  { %v6760_v40 = vpop.eup %6759 }
0x199b   :  { %v2729_v22 = vmul.f32 %v6760_v40, %v2727_v39  ;;  %vm2734_vm11 = vweird.f32 %v6760_v40  ;;  %v6762_v15 = vpop.eup %6761 }
0x199c   :  { %vm2735_vm13 = vmor %vm2733_vm12, %vm2734_vm11 }
0x199d   :  { %v2730_v7 = vsub.f32 1.0, %v2729_v22 }
0x199f   :  { %v2731_v23 = vmul.f32 %v6760_v40, %v2730_v7 }
0x19a1   :  { %v2732_v25 = vadd.f32 %v6760_v40, %v2731_v23 }
0x19a3   :  { %v2736_v32 = vsel %vm2735_vm13, %v6760_v40, %v2732_v25 }
0x19a4   :  { %v2741_v56 = vsel %vm2738_vm14, %v2740_v31, %v2736_v32 }
0x19a5   :  { %v2771_v60 = vmul.f32 %v6762_v15, %v2741_v56  ;;  %v2770_v33 = vmul.f32 %v2741_v56, %v8497_v62 }
0x19a7   :  { %2773 = vrot.lane.b32.xlu0 %v2771_v60, %s7384_s11 }
0x19fb   :  { %v2748_v4 = vpop.permute.xlu1 %2747 }
0x19fc   :  { %v2749_v53 = vrot.slane %v2748_v4, 2 }
0x19fe   :  { %v6411_v51 = vmul.f32 -1.442695, %v2749_v53 }
0x1a19   :  { %v2774_v63 = vpop.permute.xlu0 %2773 }
0x1a1a   :  { %v8525_v11 = vadd.f32 %v2774_v63, %v2770_v33 }
0x1a1c   :  { %6763 = vtanh.f32 %v8525_v11 }
0x1a1d   :  { %6765 = vpow2.f32 %v6411_v51 }
0x1a22   :  { %v6764_v12 = vpop.eup %6763 }
0x1a23   :  { %2779 = vrot.lane.b32.xlu2 %v6764_v12, %s7384_s11  ;;  %v6766_v50 = vpop.eup %6765 }
0x1a24   :  { %v2754_v36 = vadd.f32 1.0, %v6766_v50 }
0x1a26   :  { %6767 = vrcp.f32 %v2754_v36  ;;  %v2766_v13 = vand.u32 2147483648, %v2754_v36  ;;  %vm2760_vm2 = vweird.f32 %v2754_v36  ;;  %v2764_v46 = vand.u32 2147483647, %v2754_v36 }
0x1a28   :  { %v2767_v44 = vor.u32 1.1754944e-38, %v2766_v13  ;;  %vm2765_vm8 = vcmp.eq.f32.partialorder %v2764_v46, 8.507059e+37 }
0x1a2c   :  { %v6768_v37 = vpop.eup %6767 }
0x1a2d   :  { %v2756_v38 = vmul.f32 %v6768_v37, %v2754_v36  ;;  %vm2761_vm1 = vweird.f32 %v6768_v37 }
0x1a2e   :  { %vm2762_vm7 = vmor %vm2760_vm2, %vm2761_vm1 }
0x1a2f   :  { %v2757_v21 = vsub.f32 1.0, %v2756_v38 }
0x1a31   :  { %v2758_v42 = vmul.f32 %v6768_v37, %v2757_v21 }
0x1a33   :  { %v2759_v62 = vadd.f32 %v6768_v37, %v2758_v42 }
0x1a35   :  { %v2763_v43 = vsel %vm2762_vm7, %v6768_v37, %v2759_v62 }
0x1a36   :  { %v2768_v27 = vsel %vm2765_vm8, %v2767_v44, %v2763_v43 }
0x1a7d   :  { %v2780_v0 = vpop.permute.xlu2 %2779 }
0x1a7e   :  { %v2782_v48 = vmul.f32 %v2780_v0, %v2768_v27 }
0x1a80   :  { %2783 = vst.msk [vmem:[#allocation2 + $0x4] sm:$0x3] %vm492_vm15, %v2782_v48  ;;  %6412 = vmatmul.msk.f32.vlgmr.msrb.gmra.mxu0 %vm379_vm0, %v2782_v48  ;;  %6413 = vmatmul.msk.f32.vlgmr.msrb.gmra.mxu1 %vm379_vm0, %v2782_v48 }
0x1a81   :  { %3231 = vmatpush.msrb.mxu0 %v8304_v3  ;;  %3251 = vmatpush.msrb.mxu1 %v8302_v2 }
0x1a83   :  { %3232 = vmatpush.msrb.mxu0 %v8310_v29  ;;  %3252 = vmatpush.msrb.mxu1 %v8306_v5  ;;  %v2437_v29 = vrot.slane %v8299_v30, 6 }
0x1a85   :  { %3233 = vmatpush.msrb.mxu0 %v8329_v20  ;;  %3253 = vmatpush.msrb.mxu1 %v8312_v54 }
0x1a87   :  { %v3331_v1 = vld [vmem:[#allocation2 + $0x4] sm:$0x3]  ;;  %3234 = vmatpush.msrb.mxu0 %v8336_v47  ;;  %3254 = vmatpush.msrb.mxu1 %v8331_v41 }
0x1a88   :  { %3371 = vst [vmem:[#allocation1 + $0x2] ss:$4 sm:$0xff] %v3331_v1 }
0x1a89   :  { %3235 = vmatpush.msrb.mxu0 %v8344_v57  ;;  %3255 = vmatpush.msrb.mxu1 %v8338_v55 }
0x1a8b   :  { %3236 = vmatpush.msrb.mxu0 %v8352_v59  ;;  %3256 = vmatpush.msrb.mxu1 %v8346_v58 }
0x1a8d   :  { %3237 = vmatpush.msrb.mxu0 %v8360_v14  ;;  %3257 = vmatpush.msrb.mxu1 %v8354_v35 }
0x1a8f   :  { %3238 = vmatpush.msrb.mxu0 %v8368_v6  ;;  %3258 = vmatpush.msrb.mxu1 %v8362_v24 }
0x1afd   :  { %v2824_v2 = vpop.f32.mrf.mxu1  ;;  %v2804_v5 = vpop.f32.mrf.mxu0 }
0x1afe   :  { %v2829_v3 = vrot.slane %v2824_v2, 6 }
0x1b00   :  { %v2830_v54 = vsel %vm353_vm3, %v2804_v5, %v2829_v3 }
0x1b01   :  { %v2832_v20 = vadd.f32 %v2830_v54, %v2437_v29 }
0x1b03   :  { %2856 = vrot.lane.b32.xlu1 %v2832_v20, %s7384_s11  ;;  %v6414_v41 = vmul.f32 -1.442695, %v2832_v20  ;;  %v2853_v58 = vrot.slane %v2832_v20, 2 }
0x1b05   :  { %6769 = vpow2.f32 %v6414_v41 }
0x1b0b   :  { %v6770_v47 = vpop.eup %6769 }
0x1b0c   :  { %v2836_v55 = vadd.f32 1.0, %v6770_v47 }
0x1b0e   :  { %6771 = vrcp.f32 %v2836_v55  ;;  %v2848_v14 = vand.u32 2147483648, %v2836_v55  ;;  %v2846_v6 = vand.u32 2147483647, %v2836_v55  ;;  %vm2842_vm10 = vweird.f32 %v2836_v55 }
0x1b0f   :  { %6773 = vtanh.f32 %v2853_v58 }
0x1b10   :  { %v2849_v34 = vor.u32 1.1754944e-38, %v2848_v14  ;;  %vm2847_vm12 = vcmp.eq.f32.partialorder %v2846_v6, 8.507059e+37 }
0x1b14   :  { %v6772_v57 = vpop.eup %6771 }
0x1b15   :  { %v2838_v59 = vmul.f32 %v6772_v57, %v2836_v55  ;;  %vm2843_vm9 = vweird.f32 %v6772_v57  ;;  %v6774_v9 = vpop.eup %6773 }
0x1b16   :  { %vm2844_vm11 = vmor %vm2842_vm10, %vm2843_vm9 }
0x1b17   :  { %v2839_v35 = vsub.f32 1.0, %v2838_v59 }
0x1b19   :  { %v2840_v24 = vmul.f32 %v6772_v57, %v2839_v35 }
0x1b1b   :  { %v2841_v30 = vadd.f32 %v6772_v57, %v2840_v24 }
0x1b1d   :  { %v2845_v61 = vsel %vm2844_vm11, %v6772_v57, %v2841_v30 }
0x1b1e   :  { %v2850_v16 = vsel %vm2847_vm12, %v2849_v34, %v2845_v61 }
0x1b1f   :  { %v2880_v17 = vmul.f32 %v6774_v9, %v2850_v16  ;;  %v2879_v52 = vmul.f32 %v2850_v16, %v8525_v11 }
0x1b21   :  { %2882 = vrot.lane.b32.xlu0 %v2880_v17, %s7384_s11 }
0x1b75   :  { %v2857_v19 = vpop.permute.xlu1 %2856 }
0x1b76   :  { %v2858_v22 = vrot.slane %v2857_v19, 2 }
0x1b78   :  { %v6415_v7 = vmul.f32 -1.442695, %v2858_v22 }
0x1b93   :  { %v2883_v18 = vpop.permute.xlu0 %2882 }
0x1b94   :  { %v2885_v39 = vadd.f32 %v2883_v18, %v2879_v52 }
0x1b96   :  { %6775 = vtanh.f32 %v2885_v39 }
0x1b97   :  { %6777 = vpow2.f32 %v6415_v7 }
0x1b9c   :  { %v6776_v40 = vpop.eup %6775 }
0x1b9d   :  { %2888 = vrot.lane.b32.xlu2 %v6776_v40, %s7384_s11  ;;  %v6778_v8 = vpop.eup %6777 }
0x1b9e   :  { %v2863_v23 = vadd.f32 1.0, %v6778_v8  ;;  %v2440_v8 = vrot.slane %v8484_v26, 2 }
0x1ba0   :  { %6779 = vrcp.f32 %v2863_v23  ;;  %v2875_v56 = vand.u32 2147483648, %v2863_v23  ;;  %vm2869_vm14 = vweird.f32 %v2863_v23  ;;  %v2873_v60 = vand.u32 2147483647, %v2863_v23 }
0x1ba2   :  { %v2876_v63 = vor.u32 1.1754944e-38, %v2875_v56  ;;  %vm2874_vm2 = vcmp.eq.f32.partialorder %v2873_v60, 8.507059e+37 }
0x1ba6   :  { %v6780_v10 = vpop.eup %6779 }
0x1ba7   :  { %v2865_v25 = vmul.f32 %v6780_v10, %v2863_v23  ;;  %vm2870_vm13 = vweird.f32 %v6780_v10 }
0x1ba8   :  { %vm2871_vm1 = vmor %vm2869_vm14, %vm2870_vm13 }
0x1ba9   :  { %v2866_v31 = vsub.f32 1.0, %v2865_v25 }
0x1bab   :  { %v2867_v32 = vmul.f32 %v6780_v10, %v2866_v31 }
0x1bad   :  { %v2868_v15 = vadd.f32 %v6780_v10, %v2867_v32 }
0x1baf   :  { %v2872_v33 = vsel %vm2871_vm1, %v6780_v10, %v2868_v15 }
0x1bb0   :  { %v2877_v11 = vsel %vm2874_vm2, %v2876_v63, %v2872_v33 }
0x1bf7   :  { %v2889_v12 = vpop.permute.xlu2 %2888 }
0x1bf8   :  { %v2891_v4 = vmul.f32 %v2889_v12, %v2877_v11 }
0x1bfa   :  { %2892 = vst.msk [vmem:[#allocation2 + $0x6] sm:$0x3] %vm492_vm15, %v2891_v4  ;;  %6416 = vmatmul.msk.f32.vlgmr.msrb.gmra.mxu2 %vm379_vm0, %v2891_v4  ;;  %6417 = vmatmul.msk.f32.vlgmr.msrb.gmra.mxu3 %vm379_vm0, %v2891_v4 }
0x1c01   :  { %v3332_v53 = vld [vmem:[#allocation2 + $0x6] sm:$0x3] }
0x1c02   :  { %3373 = vst [vmem:[#allocation1 + $0x3] ss:$4 sm:$0xff] %v3332_v53 }
0x1c7d   :  { %v2933_v51 = vpop.f32.mrf.mxu3  ;;  %v2913_v36 = vpop.f32.mrf.mxu2 }
0x1c7e   :  { %v2938_v50 = vrot.slane %v2933_v51, 6 }
0x1c80   :  { %v2939_v37 = vsel %vm353_vm3, %v2913_v36, %v2938_v50 }
0x1c81   :  { %v2941_v38 = vadd.f32 %v2939_v37, %v8481_v45  ;;  %v3351_v37 = vld [vmem:[#allocation13 + $0x70] sm:$0xff] }
0x1c82   :  { %3396 = vmatpush.msrb.mxu2 %v3351_v37 }
0x1c83   :  { %2965 = vrot.lane.b32.xlu1 %v2941_v38, %s7384_s11  ;;  %v6418_v21 = vmul.f32 -1.442695, %v2941_v38  ;;  %v2962_v46 = vrot.slane %v2941_v38, 2  ;;  %v3352_v38 = vld [vmem:[#allocation13 + $0x78] sm:$0xff] }
0x1c84   :  { %3419 = vmatpush.msrb.mxu3 %v3352_v38 }
0x1c85   :  { %6781 = vpow2.f32 %v6418_v21  ;;  %v3349_v21 = vld [vmem:[#allocation13 + $0x60] sm:$0xff] }
0x1c86   :  { %3397 = vmatpush.msrb.mxu2 %v3349_v21 }
0x1c8b   :  { %v6782_v42 = vpop.eup %6781 }
0x1c8c   :  { %v2945_v62 = vadd.f32 1.0, %v6782_v42  ;;  %v3350_v42 = vld [vmem:[#allocation13 + $0x68] sm:$0xff] }
0x1c8d   :  { %3420 = vmatpush.msrb.mxu3 %v3350_v42 }
0x1c8e   :  { %6783 = vrcp.f32 %v2945_v62  ;;  %v2957_v27 = vand.u32 2147483648, %v2945_v62  ;;  %v2955_v48 = vand.u32 2147483647, %v2945_v62  ;;  %vm2951_vm8 = vweird.f32 %v2945_v62 }
0x1c8f   :  { %6785 = vtanh.f32 %v2962_v46 }
0x1c90   :  { %v2958_v45 = vor.u32 1.1754944e-38, %v2957_v27  ;;  %vm2956_vm10 = vcmp.eq.f32.partialorder %v2955_v48, 8.507059e+37 }
0x1c94   :  { %v6784_v13 = vpop.eup %6783 }
0x1c95   :  { %v2947_v43 = vmul.f32 %v6784_v13, %v2945_v62  ;;  %vm2952_vm7 = vweird.f32 %v6784_v13  ;;  %v6786_v3 = vpop.eup %6785  ;;  %v3347_v62 = vld [vmem:[#allocation13 + $0x50] sm:$0xff] }
0x1c96   :  { %vm2953_vm9 = vmor %vm2951_vm8, %vm2952_vm7  ;;  %3398 = vmatpush.msrb.mxu2 %v3347_v62 }
0x1c97   :  { %v2948_v44 = vsub.f32 1.0, %v2947_v43 }
0x1c99   :  { %v2949_v0 = vmul.f32 %v6784_v13, %v2948_v44 }
0x1c9b   :  { %v2950_v1 = vadd.f32 %v6784_v13, %v2949_v0 }
0x1c9d   :  { %v2954_v2 = vsel %vm2953_vm9, %v6784_v13, %v2950_v1  ;;  %v3348_v13 = vld [vmem:[#allocation13 + $0x58] sm:$0xff] }
0x1c9e   :  { %v2959_v5 = vsel %vm2956_vm10, %v2958_v45, %v2954_v2  ;;  %3421 = vmatpush.msrb.mxu3 %v3348_v13 }
0x1c9f   :  { %v2989_v29 = vmul.f32 %v6786_v3, %v2959_v5  ;;  %v2988_v54 = vmul.f32 %v2959_v5, %v2885_v39  ;;  %v3345_v3 = vld [vmem:[#allocation13 + $0x40] sm:$0xff]  ;;  %v3346_v5 = vld [vmem:[#allocation13 + $0x48] sm:$0xff] }
0x1ca0   :  { %3399 = vmatpush.msrb.mxu2 %v3345_v3  ;;  %3422 = vmatpush.msrb.mxu3 %v3346_v5 }
0x1ca1   :  { %2991 = vrot.lane.b32.xlu0 %v2989_v29, %s7384_s11  ;;  %v3343_v29 = vld [vmem:[#allocation13 + $0x30] sm:$0xff] }
0x1ca2   :  { %3400 = vmatpush.msrb.mxu2 %v3343_v29 }
0x1cf5   :  { %v2966_v55 = vpop.permute.xlu1 %2965 }
0x1cf6   :  { %v2967_v57 = vrot.slane %v2966_v55, 2  ;;  %v3340_v55 = vld [vmem:[#allocation13 + $0x18] sm:$0xff] }
0x1cf8   :  { %v6419_v58 = vmul.f32 -1.442695, %v2967_v57 }
0x1d13   :  { %v2992_v20 = vpop.permute.xlu0 %2991 }
0x1d14   :  { %v8561_v41 = vadd.f32 %v2992_v20, %v2988_v54  ;;  %v3344_v54 = vld [vmem:[#allocation13 + $0x38] sm:$0xff]  ;;  %v3341_v20 = vld [vmem:[#allocation13 + $0x20] sm:$0xff] }
0x1d15   :  { %3423 = vmatpush.msrb.mxu3 %v3344_v54  ;;  %3401 = vmatpush.msrb.mxu2 %v3341_v20  ;;  %v8624_v20 = vld [vmem:[%s9525_s10 + $0x18] sm:$0xff] }
0x1d16   :  { %6787 = vtanh.f32 %v8561_v41 }
0x1d17   :  { %6789 = vpow2.f32 %v6419_v58  ;;  %v3337_v58 = vld [vmem:[#allocation13] sm:$0xff] }
0x1d1c   :  { %v6788_v47 = vpop.eup %6787 }
0x1d1d   :  { %2997 = vrot.lane.b32.xlu2 %v6788_v47, %s7384_s11  ;;  %v6790_v59 = vpop.eup %6789  ;;  %v3339_v47 = vld [vmem:[#allocation13 + $0x10] sm:$0xff] }
0x1d1e   :  { %v2972_v35 = vadd.f32 1.0, %v6790_v59  ;;  %3402 = vmatpush.msrb.mxu2 %v3339_v47  ;;  %v3338_v59 = vld [vmem:[#allocation13 + $0x8] sm:$0xff]  ;;  %v8635_v47 = vld [vmem:[#allocation14 + $0x10] sm:$0xff] }
0x1d20   :  { %6791 = vrcp.f32 %v2972_v35  ;;  %v2984_v61 = vand.u32 2147483648, %v2972_v35  ;;  %vm2978_vm12 = vweird.f32 %v2972_v35  ;;  %v2982_v9 = vand.u32 2147483647, %v2972_v35  ;;  %3403 = vmatpush.msrb.mxu2 %v3337_v58 }
0x1d22   :  { %v2985_v17 = vor.u32 1.1754944e-38, %v2984_v61  ;;  %vm2983_vm14 = vcmp.eq.f32.partialorder %v2982_v9, 8.507059e+37 }
0x1d26   :  { %v6792_v14 = vpop.eup %6791 }
0x1d27   :  { %v2974_v24 = vmul.f32 %v6792_v14, %v2972_v35  ;;  %vm2979_vm11 = vweird.f32 %v6792_v14 }
0x1d28   :  { %vm2980_vm13 = vmor %vm2978_vm12, %vm2979_vm11 }
0x1d29   :  { %v2975_v6 = vsub.f32 1.0, %v2974_v24 }
0x1d2b   :  { %v2976_v30 = vmul.f32 %v6792_v14, %v2975_v6 }
0x1d2d   :  { %v2977_v34 = vadd.f32 %v6792_v14, %v2976_v30 }
0x1d2f   :  { %v2981_v16 = vsel %vm2980_vm13, %v6792_v14, %v2977_v34 }
0x1d30   :  { %v2986_v52 = vsel %vm2983_vm14, %v2985_v17, %v2981_v16 }
0x1d77   :  { %v2998_v18 = vpop.permute.xlu2 %2997 }
0x1d78   :  { %v3000_v39 = vmul.f32 %v2998_v18, %v2986_v52  ;;  %v3382_v18 = vld.sshfl [vmem:[#allocation1] sm:$0xff pattern:$0x73625140] }
0x1d7a   :  { %3001 = vst.msk [vmem:[#allocation2 + $0x8] sm:$0x3] %vm492_vm15, %v3000_v39  ;;  %6420 = vmatmul.msk.f32.vlgmr.msra.gmra.mxu0 %vm379_vm0, %v3000_v39  ;;  %6421 = vmatmul.msk.f32.vlgmr.msra.gmra.mxu1 %vm379_vm0, %v3000_v39 }
0x1d7b   :  { %3488 = vmatpush.msra.mxu0 %v8624_v20 }
0x1d81   :  { %v3333_v40 = vld [vmem:[#allocation2 + $0x8] sm:$0x3] }
0x1d82   :  { %3375 = vst [vmem:[#allocation1 + $0x20] ss:$4 sm:$0xff] %v3333_v40 }
0x1df7   :  { %v3042_v19 = vpop.f32.mrf.mxu1  ;;  %v3022_v7 = vpop.f32.mrf.mxu0 }
0x1df8   :  { %v3047_v22 = vrot.slane %v3042_v19, 6 }
0x1dfa   :  { %v3048_v23 = vsel %vm353_vm3, %v3022_v7, %v3047_v22  ;;  %v2442_v7 = vrot.slane %v8487_v49, 4 }
0x1dfb   :  { %v3050_v10 = vadd.f32 %v3048_v23, %v2440_v8  ;;  %v8586_v8 = vld [vmem:[%s9474_s13] sm:$0x3] }
0x1dfd   :  { %3074 = vrot.lane.b32.xlu1 %v3050_v10, %s7384_s11  ;;  %v6422_v25 = vmul.f32 -1.442695, %v3050_v10  ;;  %v3071_v56 = vrot.slane %v3050_v10, 2 }
0x1dff   :  { %6793 = vpow2.f32 %v6422_v25  ;;  %v3356_v25 = vperm.slane %v8586_v8, 1 }
0x1e05   :  { %v6794_v31 = vpop.eup %6793 }
0x1e06   :  { %v3054_v32 = vadd.f32 1.0, %v6794_v31 }
0x1e08   :  { %6795 = vrcp.f32 %v3054_v32  ;;  %v3066_v63 = vand.u32 2147483648, %v3054_v32  ;;  %v3064_v12 = vand.u32 2147483647, %v3054_v32  ;;  %vm3060_vm2 = vweird.f32 %v3054_v32 }
0x1e09   :  { %6797 = vtanh.f32 %v3071_v56 }
0x1e0a   :  { %v3067_v4 = vor.u32 1.1754944e-38, %v3066_v63  ;;  %vm3065_vm8 = vcmp.eq.f32.partialorder %v3064_v12, 8.507059e+37 }
0x1e0e   :  { %v6796_v15 = vpop.eup %6795 }
0x1e0f   :  { %v3056_v60 = vmul.f32 %v6796_v15, %v3054_v32  ;;  %vm3061_vm1 = vweird.f32 %v6796_v15  ;;  %v6798_v51 = vpop.eup %6797  ;;  %v3355_v32 = vperm.slane %v8586_v8, 0 }
0x1e10   :  { %vm3062_vm7 = vmor %vm3060_vm2, %vm3061_vm1 }
0x1e11   :  { %v3057_v33 = vsub.f32 1.0, %v3056_v60 }
0x1e13   :  { %v3058_v11 = vmul.f32 %v6796_v15, %v3057_v33 }
0x1e15   :  { %v3059_v26 = vadd.f32 %v6796_v15, %v3058_v11 }
0x1e17   :  { %v3063_v53 = vsel %vm3062_vm7, %v6796_v15, %v3059_v26 }
0x1e18   :  { %v3068_v50 = vsel %vm3065_vm8, %v3067_v4, %v3063_v53 }
0x1e19   :  { %v3098_v36 = vmul.f32 %v6798_v51, %v3068_v50  ;;  %v3097_v46 = vmul.f32 %v3068_v50, %v8561_v41  ;;  %v3342_v41 = vld [vmem:[#allocation13 + $0x28] sm:$0xff] }
0x1e1a   :  { %3424 = vmatpush.msrb.mxu3 %v3342_v41  ;;  %v8633_v41 = vld [vmem:[%s9525_s10 + $0x10] sm:$0xff] }
0x1e1b   :  { %3100 = vrot.lane.b32.xlu0 %v3098_v36, %s7384_s11  ;;  %3489 = vmatpush.msra.mxu0 %v8633_v41 }
0x1e1c   :  { %3425 = vmatpush.msrb.mxu3 %v3340_v55  ;;  %v8644_v55 = vld [vmem:[%s9525_s10 + $0x8] sm:$0xff] }
0x1e1d   :  { %3490 = vmatpush.msra.mxu0 %v8644_v55 }
0x1e1e   :  { %3426 = vmatpush.msrb.mxu3 %v3338_v59  ;;  %v8655_v59 = vld [vmem:[%s9525_s10] sm:$0xff]  ;;  %s9527_s10 = sld [smem:[#allocation41_spill]] }
0x1e1f   :  { %3491 = vmatpush.msra.mxu0 %v8655_v59 }
0x1e6f   :  { %v3075_v0 = vpop.permute.xlu1 %3074 }
0x1e70   :  { %v3076_v48 = vrot.slane %v3075_v0, 2 }
0x1e72   :  { %v6423_v1 = vmul.f32 -1.442695, %v3076_v48 }
0x1e8d   :  { %v3101_v43 = vpop.permute.xlu0 %3100 }
0x1e8e   :  { %v8573_v44 = vadd.f32 %v3101_v43, %v3097_v46 }
0x1e90   :  { %6799 = vtanh.f32 %v8573_v44 }
0x1e91   :  { %6801 = vpow2.f32 %v6423_v1 }
0x1e96   :  { %v6800_v27 = vpop.eup %6799 }
0x1e97   :  { %3106 = vrot.lane.b32.xlu2 %v6800_v27, %s7384_s11  ;;  %v6802_v45 = vpop.eup %6801 }
0x1e98   :  { %v3081_v2 = vadd.f32 1.0, %v6802_v45 }
0x1e9a   :  { %6803 = vrcp.f32 %v3081_v2  ;;  %v3093_v30 = vand.u32 2147483648, %v3081_v2  ;;  %vm3087_vm10 = vweird.f32 %v3081_v2  ;;  %v3091_v34 = vand.u32 2147483647, %v3081_v2 }
0x1e9c   :  { %v3094_v9 = vor.u32 1.1754944e-38, %v3093_v30  ;;  %vm3092_vm12 = vcmp.eq.f32.partialorder %v3091_v34, 8.507059e+37 }
0x1ea0   :  { %v6804_v57 = vpop.eup %6803 }
0x1ea1   :  { %v3083_v35 = vmul.f32 %v6804_v57, %v3081_v2  ;;  %vm3088_vm9 = vweird.f32 %v6804_v57 }
0x1ea2   :  { %vm3089_vm11 = vmor %vm3087_vm10, %vm3088_vm9 }
0x1ea3   :  { %v3084_v14 = vsub.f32 1.0, %v3083_v35  ;;  %v8657_v35 = vld [vmem:[#allocation14] sm:$0xff] }
0x1ea5   :  { %v3085_v24 = vmul.f32 %v6804_v57, %v3084_v14  ;;  %v3471_v14 = vld [vmem:[%s9486_s25] sm:$0x3] }
0x1ea7   :  { %v3086_v6 = vadd.f32 %v6804_v57, %v3085_v24 }
0x1ea9   :  { %v3090_v61 = vsel %vm3089_vm11, %v6804_v57, %v3086_v6  ;;  %v8646_v57 = vld [vmem:[#allocation14 + $0x8] sm:$0xff]  ;;  %vm3472_vm11 = vcmask 261120  }
0x1eaa   :  { %v3095_v16 = vsel %vm3092_vm12, %v3094_v9, %v3090_v61 }
0x1ef1   :  { %v3107_v17 = vpop.permute.xlu2 %3106 }
0x1ef2   :  { %v3109_v52 = vmul.f32 %v3107_v17, %v3095_v16 }
0x1ef4   :  { %3110 = vst.msk [vmem:[#allocation2 + $0xa] sm:$0x3] %vm492_vm15, %v3109_v52  ;;  %6424 = vmatmul.msk.f32.vlgmr.msra.gmra.mxu2 %vm379_vm0, %v3109_v52  ;;  %6425 = vmatmul.msk.f32.vlgmr.msra.gmra.mxu3 %vm379_vm0, %v3109_v52 }
0x1ef5   :  { %3881 = vmatpush.msra.mxu2 %v8624_v20 }
0x1ef7   :  { %3882 = vmatpush.msra.mxu2 %v8633_v41 }
0x1ef9   :  { %3883 = vmatpush.msra.mxu2 %v8644_v55 }
0x1efb   :  { %v3334_v39 = vld [vmem:[#allocation2 + $0xa] sm:$0x3]  ;;  %3884 = vmatpush.msra.mxu2 %v8655_v59 }
0x1efc   :  { %3377 = vst [vmem:[#allocation1 + $0x21] ss:$4 sm:$0xff] %v3334_v39  ;;  %6432 = vmatmul.msk.f32.vlgmr.msrb.gmra.mxu2 %vm379_vm0, %v3382_v18  ;;  %6434 = vmatmul.msk.f32.vlgmr.msrb.gmra.mxu3 %vm379_vm0, %v3382_v18 }
0x1efd   :  { %4145 = vmatpush.msrb.mxu2 %v8624_v20 }
0x1eff   :  { %4146 = vmatpush.msrb.mxu2 %v8633_v41 }
0x1f01   :  { %4147 = vmatpush.msrb.mxu2 %v8644_v55 }
0x1f03   :  { %4148 = vmatpush.msrb.mxu2 %v8655_v59 }
0x1f77   :  { %v3131_v40 = vpop.f32.mrf.mxu2  ;;  %v3151_v19 = vpop.f32.mrf.mxu3 }
0x1f78   :  { %v3156_v22 = vrot.slane %v3151_v19, 6 }
0x1f7a   :  { %v3157_v23 = vsel %vm353_vm3, %v3131_v40, %v3156_v22  ;;  %v3470_v40 = vld [vmem:[%s9485_s24] sm:$0x3] }
0x1f7b   :  { %v3159_v10 = vadd.f32 %v3157_v23, %v2442_v7 }
0x1f7d   :  { %3183 = vrot.lane.b32.xlu1 %v3159_v10, %s7384_s11  ;;  %v6426_v31 = vmul.f32 -1.442695, %v3159_v10  ;;  %v3180_v51 = vrot.slane %v3159_v10, 2  ;;  %v2444_v10 = vrot.slane %v8490_v28, 6 }
0x1f7f   :  { %6805 = vpow2.f32 %v6426_v31  ;;  %v3405_v15 = vpop.f32.mrf.mxu2  ;;  %v3428_v56 = vpop.f32.mrf.mxu3 }
0x1f80   :  { %v3429_v49 = vadd.f32 %v3428_v56, %v3356_v25  ;;  %v8596_v60 = vadd.f32 %v3405_v15, %v3355_v32 }
0x1f82   :  { %v8598_v33 = vrot.slane %v3429_v49, 6 }
0x1f84   :  { %v8603_v63 = vsel %vm355_vm4, %v8596_v60, %v8598_v33  ;;  %v8608_v11 = vsel %vm358_vm5, %v8596_v60, %v8598_v33  ;;  %v8613_v12 = vsel %vm361_vm6, %v8598_v33, %v8596_v60  ;;  %v3440_v56 = vsel %vm353_vm3, %v8596_v60, %v8598_v33 }
0x1f85   :  { %v6806_v26 = vpop.eup %6805  ;;  %v3517_v49 = vrot.slane %v3440_v56, 2 }
0x1f86   :  { %v3163_v4 = vadd.f32 1.0, %v6806_v26 }
0x1f88   :  { %6807 = vrcp.f32 %v3163_v4  ;;  %v3175_v37 = vand.u32 2147483648, %v3163_v4  ;;  %v3173_v21 = vand.u32 2147483647, %v3163_v4  ;;  %vm3169_vm14 = vweird.f32 %v3163_v4 }
0x1f89   :  { %6809 = vtanh.f32 %v3180_v51 }
0x1f8a   :  { %v3176_v62 = vor.u32 1.1754944e-38, %v3175_v37  ;;  %vm3174_vm2 = vcmp.eq.f32.partialorder %v3173_v21, 8.507059e+37 }
0x1f8e   :  { %v6808_v53 = vpop.eup %6807 }
0x1f8f   :  { %v3165_v50 = vmul.f32 %v6808_v53, %v3163_v4  ;;  %vm3170_vm13 = vweird.f32 %v6808_v53  ;;  %v6810_v46 = vpop.eup %6809 }
0x1f90   :  { %vm3171_vm1 = vmor %vm3169_vm14, %vm3170_vm13 }
0x1f91   :  { %v3166_v36 = vsub.f32 1.0, %v3165_v50 }
0x1f93   :  { %v3167_v38 = vmul.f32 %v6808_v53, %v3166_v36 }
0x1f95   :  { %v3168_v42 = vadd.f32 %v6808_v53, %v3167_v38 }
0x1f97   :  { %v3172_v13 = vsel %vm3171_vm1, %v6808_v53, %v3168_v42 }
0x1f98   :  { %v3177_v43 = vsel %vm3174_vm2, %v3176_v62, %v3172_v13 }
0x1f99   :  { %v3207_v27 = vmul.f32 %v6810_v46, %v3177_v43  ;;  %v3206_v0 = vmul.f32 %v3177_v43, %v8573_v44  ;;  %v8626_v44 = vld [vmem:[#allocation14 + $0x18] sm:$0xff] }
0x1f9a   :  { %3509 = vmatpush.msra.mxu1 %v8626_v44  ;;  %3909 = vmatpush.msra.mxu3 %v8626_v44 }
0x1f9b   :  { %3209 = vrot.lane.b32.xlu0 %v3207_v27, %s7384_s11 }
0x1f9c   :  { %3510 = vmatpush.msra.mxu1 %v8635_v47  ;;  %3910 = vmatpush.msra.mxu3 %v8635_v47 }
0x1f9e   :  { %3511 = vmatpush.msra.mxu1 %v8646_v57  ;;  %3911 = vmatpush.msra.mxu3 %v8646_v57 }
0x1fa0   :  { %3512 = vmatpush.msra.mxu1 %v8657_v35  ;;  %3912 = vmatpush.msra.mxu3 %v8657_v35 }
0x1fa2   :  { %4173 = vmatpush.msrb.mxu3 %v8626_v44 }
0x1fa4   :  { %4174 = vmatpush.msrb.mxu3 %v8635_v47 }
0x1fa6   :  { %4175 = vmatpush.msrb.mxu3 %v8646_v57 }
0x1fa8   :  { %4176 = vmatpush.msrb.mxu3 %v8657_v35 }
0x1fef   :  { %v3184_v2 = vpop.permute.xlu1 %3183 }
0x1ff0   :  { %v3185_v3 = vrot.slane %v3184_v2, 2 }
0x1ff2   :  { %v6427_v5 = vmul.f32 -1.442695, %v3185_v3 }
0x200d   :  { %v3210_v48 = vpop.permute.xlu0 %3209 }
0x200e   :  { %v8617_v1 = vadd.f32 %v3210_v48, %v3206_v0 }
0x2010   :  { %6811 = vtanh.f32 %v8617_v1 }
0x2011   :  { %6813 = vpow2.f32 %v6427_v5 }
0x2016   :  { %v6812_v45 = vpop.eup %6811 }
0x2017   :  { %3215 = vrot.lane.b32.xlu2 %v6812_v45, %s7384_s11  ;;  %v6814_v29 = vpop.eup %6813 }
0x2018   :  { %v3190_v54 = vadd.f32 1.0, %v6814_v29 }
0x201a   :  { %6815 = vrcp.f32 %v3190_v54  ;;  %v3202_v61 = vand.u32 2147483648, %v3190_v54  ;;  %vm3196_vm8 = vweird.f32 %v3190_v54  ;;  %v3200_v9 = vand.u32 2147483647, %v3190_v54 }
0x201c   :  { %v3203_v17 = vor.u32 1.1754944e-38, %v3202_v61  ;;  %vm3201_vm10 = vcmp.eq.f32.partialorder %v3200_v9, 8.507059e+37 }
0x201f   :  { %3541 = vrot.lane.b32.xlu2 %v3471_v14, %s7385_s9 }
0x2020   :  { %v6816_v58 = vpop.eup %6815 }
0x2021   :  { %v3192_v24 = vmul.f32 %v6816_v58, %v3190_v54  ;;  %vm3197_vm7 = vweird.f32 %v6816_v58 }
0x2022   :  { %vm3198_vm9 = vmor %vm3196_vm8, %vm3197_vm7 }
0x2023   :  { %v3193_v6 = vsub.f32 1.0, %v3192_v24 }
0x2025   :  { %v3194_v30 = vmul.f32 %v6816_v58, %v3193_v6 }
0x2027   :  { %v3195_v34 = vadd.f32 %v6816_v58, %v3194_v30 }
0x2029   :  { %v3199_v16 = vsel %vm3198_vm9, %v6816_v58, %v3195_v34 }
0x202a   :  { %v3204_v52 = vsel %vm3201_vm10, %v3203_v17, %v3199_v16 }
0x2071   :  { %v3216_v18 = vpop.permute.xlu2 %3215 }
0x2072   :  { %v3218_v39 = vmul.f32 %v3216_v18, %v3204_v52 }
0x2074   :  { %3219 = vst.msk [vmem:[#allocation2 + $0xc] sm:$0x3] %vm492_vm15, %v3218_v39  ;;  %6428 = vmatmul.msk.f32.vlgmr.msrb.gmra.mxu0 %vm379_vm0, %v3218_v39  ;;  %6429 = vmatmul.msk.f32.vlgmr.msrb.gmra.mxu1 %vm379_vm0, %v3218_v39 }
0x2075   :  { %3617 = vmatpush.msrb.mxu0 %v8624_v20  ;;  %3645 = vmatpush.msrb.mxu1 %v8626_v44 }
0x2077   :  { %3618 = vmatpush.msrb.mxu0 %v8633_v41  ;;  %3646 = vmatpush.msrb.mxu1 %v8635_v47 }
0x2079   :  { %3619 = vmatpush.msrb.mxu0 %v8644_v55  ;;  %3647 = vmatpush.msrb.mxu1 %v8646_v57  ;;  %v3542_v52 = vpop.permute.xlu2 %3541 }
0x207b   :  { %v3335_v19 = vld [vmem:[#allocation2 + $0xc] sm:$0x3]  ;;  %3620 = vmatpush.msrb.mxu0 %v8655_v59  ;;  %3648 = vmatpush.msrb.mxu1 %v8657_v35 }
0x207c   :  { %3379 = vst [vmem:[#allocation1 + $0x22] ss:$4 sm:$0xff] %v3335_v19  ;;  %6436 = vmatmul.msk.f32.vlgmr.msra.gmra.mxu0 %vm3472_vm11, %v3470_v40  ;;  %6437 = vmatmul.msk.f32.vlgmr.msra.gmra.mxu1 %vm3472_vm11, %v3470_v40 }
0x207d   :  { %3749 = vmatpush.msra.mxu0 %v8624_v20  ;;  %3777 = vmatpush.msra.mxu1 %v8626_v44 }
0x207f   :  { %3750 = vmatpush.msra.mxu0 %v8633_v41  ;;  %3778 = vmatpush.msra.mxu1 %v8635_v47 }
0x2081   :  { %3751 = vmatpush.msra.mxu0 %v8644_v55  ;;  %3779 = vmatpush.msra.mxu1 %v8646_v57 }
0x2083   :  { %3752 = vmatpush.msra.mxu0 %v8655_v59  ;;  %3780 = vmatpush.msra.mxu1 %v8657_v35 }
0x20f1   :  { %v3240_v22 = vpop.f32.mrf.mxu0  ;;  %v3260_v7 = vpop.f32.mrf.mxu1 }
0x20f2   :  { %v3265_v23 = vrot.slane %v3260_v7, 6 }
0x20f4   :  { %v3266_v31 = vsel %vm353_vm3, %v3240_v22, %v3265_v23 }
0x20f5   :  { %v8703_v15 = vadd.f32 %v3266_v31, %v2444_v10 }
0x20f9   :  { %v3493_v26 = vpop.f32.mrf.mxu0  ;;  %v3514_v4 = vpop.f32.mrf.mxu1 }
0x20fa   :  { %v3496_v53 = vadd.f32 %v3493_v26, %v3440_v56  ;;  %v3519_v51 = vadd.f32 %v3517_v49, %v3514_v4 }
0x20fc   :  { %6817 = vtanh.f32 %v3496_v53  ;;  %v6438_v28 = vmul.f32 -1.442695, %v3496_v53  ;;  %v6439_v37 = vmul.f32 -1.442695, %v3519_v51 }
0x20fd   :  { %6819 = vtanh.f32 %v3519_v51 }
0x20fe   :  { %6821 = vpow2.f32 %v6438_v28 }
0x20ff   :  { %6823 = vpow2.f32 %v6439_v37 }
0x2102   :  { %v6818_v50 = vpop.eup %6817 }
0x2103   :  { %v6820_v36 = vpop.eup %6819  ;;  %3546 = vrot.lane.b32.xlu0 %v6818_v50, %s7384_s11 }
0x2104   :  { %3583 = vrot.lane.b32.xlu1 %v6820_v36, %s7384_s11  ;;  %v6822_v38 = vpop.eup %6821  ;;  %v3442_v36 = vrot.slane %v8603_v63, 2 }
0x2105   :  { %v6824_v21 = vpop.eup %6823  ;;  %v3523_v60 = vadd.f32 1.0, %v6822_v38 }
0x2106   :  { %v3564_v33 = vadd.f32 1.0, %v6824_v21  ;;  %v3653_v37 = vrot.slane %v3442_v36, 2 }
0x2107   :  { %6825 = vrcp.f32 %v3523_v60  ;;  %v3535_v2 = vand.u32 2147483648, %v3523_v60  ;;  %vm3529_vm14 = vweird.f32 %v3523_v60  ;;  %v3533_v5 = vand.u32 2147483647, %v3523_v60 }
0x2108   :  { %6827 = vrcp.f32 %v3564_v33  ;;  %v3576_v29 = vand.u32 2147483648, %v3564_v33  ;;  %vm3570_vm2 = vweird.f32 %v3564_v33  ;;  %v3574_v54 = vand.u32 2147483647, %v3564_v33 }
0x2109   :  { %v3536_v14 = vor.u32 1.1754944e-38, %v3535_v2  ;;  %vm3534_vm8 = vcmp.eq.f32.partialorder %v3533_v5, 8.507059e+37 }
0x210a   :  { %v3577_v6 = vor.u32 1.1754944e-38, %v3576_v29  ;;  %vm3575_vm9 = vcmp.eq.f32.partialorder %v3574_v54, 8.507059e+37 }
0x210d   :  { %v6826_v42 = vpop.eup %6825 }
0x210e   :  { %v6828_v62 = vpop.eup %6827  ;;  %v3525_v13 = vmul.f32 %v6826_v42, %v3523_v60  ;;  %vm3530_vm12 = vweird.f32 %v6826_v42 }
0x210f   :  { %v3566_v46 = vmul.f32 %v6828_v62, %v3564_v33  ;;  %vm3571_vm13 = vweird.f32 %v6828_v62  ;;  %vm3531_vm1 = vmor %vm3529_vm14, %vm3530_vm12 }
0x2110   :  { %v3526_v43 = vsub.f32 1.0, %v3525_v13  ;;  %vm3572_vm7 = vmor %vm3570_vm2, %vm3571_vm13 }
0x2111   :  { %v3567_v27 = vsub.f32 1.0, %v3566_v46 }
0x2112   :  { %v3527_v0 = vmul.f32 %v6826_v42, %v3526_v43 }
0x2113   :  { %v3568_v48 = vmul.f32 %v6828_v62, %v3567_v27 }
0x2114   :  { %v3528_v45 = vadd.f32 %v6826_v42, %v3527_v0 }
0x2115   :  { %v3569_v3 = vadd.f32 %v6828_v62, %v3568_v48 }
0x2116   :  { %v3532_v58 = vsel %vm3531_vm1, %v6826_v42, %v3528_v45 }
0x2117   :  { %v3573_v24 = vsel %vm3572_vm7, %v6828_v62, %v3569_v3  ;;  %v3537_v30 = vsel %vm3534_vm8, %v3536_v14, %v3532_v58 }
0x2118   :  { %v3578_v61 = vsel %vm3575_vm9, %v3577_v6, %v3573_v24  ;;  %v3544_v18 = vmul.f32 %v3542_v52, %v3537_v30 }
0x2119   :  { %v3581_v39 = vmul.f32 %v3578_v61, %v3542_v52 }
0x2175   :  { %v3547_v34 = vpop.permute.xlu0 %3546 }
0x2176   :  { %v3584_v9 = vpop.permute.xlu1 %3583  ;;  %v3549_v16 = vmul.f32 %v3547_v34, %v3537_v30 }
0x2177   :  { %v3586_v17 = vmul.f32 %v3584_v9, %v3578_v61 }
0x2178   :  { %3551 = vrot.lane.b32.xlu0 %v3549_v16, %s7385_s9 }
0x2179   :  { %3588 = vrot.lane.b32.xlu1 %v3586_v17, %s7385_s9 }
0x21ea   :  { %v3552_v40 = vpop.permute.xlu0 %3551 }
0x21eb   :  { %v3589_v19 = vpop.permute.xlu1 %3588  ;;  %v8712_v22 = vadd.f32 %v3552_v40, %v3544_v18 }
0x21ec   :  { %v8714_v7 = vadd.f32 %v3589_v19, %v3581_v39 }
0x21ed   :  { %6829 = vtanh.f32 %v8712_v22 }
0x21ee   :  { %6831 = vtanh.f32 %v8714_v7 }
0x21f3   :  { %v6830_v23 = vpop.eup %6829 }
0x21f4   :  { %v6832_v10 = vpop.eup %6831  ;;  %3557 = vrot.lane.b32.xlu2 %v6830_v23, %s7384_s11 }
0x21f5   :  { %3594 = vrot.lane.b32.xlu0 %v6832_v10, %s7384_s11 }
0x224e   :  { %v3558_v31 = vpop.permute.xlu2 %3557 }
0x224f   :  { %v3560_v56 = vmul.f32 %v3558_v31, %v3537_v30 }
0x2251   :  { %3599 = vst [vmem:[#allocation1] ss:$4 sm:$0xff] %v3560_v56 }
0x2258   :  { %v3600_v49 = vld.sshfl [vmem:[#allocation1] sm:$0xff pattern:$0x73625140] }
0x2259   :  { %3601 = vrot.lane.b32.xlu1 %v3600_v49, %s7385_s9 }
0x2267   :  { %v3595_v26 = vpop.permute.xlu0 %3594 }
0x2268   :  { %v3597_v4 = vmul.f32 %v3595_v26, %v3578_v61 }
0x226a   :  { %3627 = vst [vmem:[#allocation1] ss:$4 sm:$0xff] %v3597_v4 }
0x2271   :  { %v3628_v53 = vld.sshfl [vmem:[#allocation1] sm:$0xff pattern:$0x73625140] }
0x2272   :  { %3629 = vrot.lane.b32.xlu2 %v3628_v53, %s7385_s9 }
0x22cb   :  { %v3602_v51 = vpop.permute.xlu1 %3601 }
0x22cc   :  { %v3630_v50 = vpop.permute.xlu2 %3629  ;;  %6440 = vmatmul.msk.f32.vlgmr.msrb.gmra.mxu0 %vm3472_vm11, %v3602_v51 }
0x22cd   :  { %6441 = vmatmul.msk.f32.vlgmr.msrb.gmra.mxu1 %vm3472_vm11, %v3630_v50  ;;  %4013 = vmatpush.msrb.mxu0 %v8624_v20 }
0x22ce   :  { %4041 = vmatpush.msrb.mxu1 %v8626_v44 }
0x22cf   :  { %4014 = vmatpush.msrb.mxu0 %v8633_v41 }
0x22d0   :  { %4042 = vmatpush.msrb.mxu1 %v8635_v47 }
0x22d1   :  { %4015 = vmatpush.msrb.mxu0 %v8644_v55 }
0x22d2   :  { %4043 = vmatpush.msrb.mxu1 %v8646_v57 }
0x22d3   :  { %4016 = vmatpush.msrb.mxu0 %v8655_v59 }
0x22d4   :  { %4044 = vmatpush.msrb.mxu1 %v8657_v35 }
0x2349   :  { %v3622_v28 = vpop.f32.mrf.mxu0 }
0x234a   :  { %v3625_v38 = vadd.f32 %v3622_v28, %v3442_v36  ;;  %v3650_v21 = vpop.f32.mrf.mxu1 }
0x234b   :  { %v3655_v60 = vadd.f32 %v3653_v37, %v3650_v21 }
0x234c   :  { %6833 = vtanh.f32 %v3625_v38  ;;  %v6442_v62 = vmul.f32 -1.442695, %v3625_v38 }
0x234d   :  { %6835 = vtanh.f32 %v3655_v60  ;;  %v6443_v13 = vmul.f32 -1.442695, %v3655_v60  ;;  %v6430_v60 = vmul.f32 -1.442695, %v8703_v15 }
0x234e   :  { %6837 = vpow2.f32 %v6442_v62 }
0x234f   :  { %6839 = vpow2.f32 %v6443_v13  ;;  %v3444_v13 = vrot.slane %v8608_v11, 4 }
0x2352   :  { %v6834_v33 = vpop.eup %6833 }
0x2353   :  { %v6836_v42 = vpop.eup %6835  ;;  %3678 = vrot.lane.b32.xlu0 %v6834_v33, %s7384_s11 }
0x2354   :  { %3715 = vrot.lane.b32.xlu1 %v6836_v42, %s7384_s11  ;;  %v6838_v46 = vpop.eup %6837 }
0x2355   :  { %v6840_v43 = vpop.eup %6839  ;;  %v3659_v63 = vadd.f32 1.0, %v6838_v46 }
0x2356   :  { %v3696_v27 = vadd.f32 1.0, %v6840_v43 }
0x2357   :  { %6841 = vrcp.f32 %v3659_v63  ;;  %v3671_v14 = vand.u32 2147483648, %v3659_v63  ;;  %vm3665_vm13 = vweird.f32 %v3659_v63  ;;  %v3669_v6 = vand.u32 2147483647, %v3659_v63 }
0x2358   :  { %6843 = vrcp.f32 %v3696_v27  ;;  %v3708_v30 = vand.u32 2147483648, %v3696_v27  ;;  %vm3702_vm1 = vweird.f32 %v3696_v27  ;;  %v3706_v34 = vand.u32 2147483647, %v3696_v27 }
0x2359   :  { %v3672_v9 = vor.u32 1.1754944e-38, %v3671_v14  ;;  %vm3670_vm7 = vcmp.eq.f32.partialorder %v3669_v6, 8.507059e+37 }
0x235a   :  { %v3709_v17 = vor.u32 1.1754944e-38, %v3708_v30  ;;  %vm3707_vm8 = vcmp.eq.f32.partialorder %v3706_v34, 8.507059e+37 }
0x235d   :  { %v6842_v0 = vpop.eup %6841 }
0x235e   :  { %v6844_v48 = vpop.eup %6843  ;;  %v3661_v45 = vmul.f32 %v6842_v0, %v3659_v63  ;;  %vm3666_vm10 = vweird.f32 %v6842_v0 }
0x235f   :  { %v3698_v2 = vmul.f32 %v6844_v48, %v3696_v27  ;;  %vm3703_vm12 = vweird.f32 %v6844_v48  ;;  %vm3667_vm14 = vmor %vm3665_vm13, %vm3666_vm10 }
0x2360   :  { %v3662_v3 = vsub.f32 1.0, %v3661_v45  ;;  %vm3704_vm2 = vmor %vm3702_vm1, %vm3703_vm12 }
0x2361   :  { %v3699_v5 = vsub.f32 1.0, %v3698_v2 }
0x2362   :  { %v3663_v29 = vmul.f32 %v6842_v0, %v3662_v3 }
0x2363   :  { %v3700_v54 = vmul.f32 %v6844_v48, %v3699_v5  ;;  %v3289_v5 = vrot.slane %v8703_v15, 2 }
0x2364   :  { %v3664_v58 = vadd.f32 %v6842_v0, %v3663_v29 }
0x2365   :  { %v3701_v24 = vadd.f32 %v6844_v48, %v3700_v54 }
0x2366   :  { %v3668_v61 = vsel %vm3667_vm14, %v6842_v0, %v3664_v58  ;;  %v3785_v0 = vrot.slane %v3444_v13, 2 }
0x2367   :  { %v3705_v16 = vsel %vm3704_vm2, %v6844_v48, %v3701_v24  ;;  %v3673_v18 = vsel %vm3670_vm7, %v3672_v9, %v3668_v61 }
0x2368   :  { %v3710_v19 = vsel %vm3707_vm8, %v3709_v17, %v3705_v16  ;;  %v3676_v10 = vmul.f32 %v3673_v18, %v8712_v22 }
0x2369   :  { %v3713_v26 = vmul.f32 %v3710_v19, %v8714_v7 }
0x23c5   :  { %v3679_v52 = vpop.permute.xlu0 %3678 }
0x23c6   :  { %v3681_v39 = vmul.f32 %v3679_v52, %v3673_v18  ;;  %v3716_v40 = vpop.permute.xlu1 %3715 }
0x23c7   :  { %v3718_v23 = vmul.f32 %v3716_v40, %v3710_v19 }
0x23c8   :  { %3683 = vrot.lane.b32.xlu2 %v3681_v39, %s7385_s9 }
0x23c9   :  { %3720 = vrot.lane.b32.xlu0 %v3718_v23, %s7385_s9 }
0x2422   :  { %v3684_v31 = vpop.permute.xlu2 %3683 }
0x2423   :  { %v8738_v56 = vadd.f32 %v3684_v31, %v3676_v10 }
0x2425   :  { %6845 = vtanh.f32 %v8738_v56 }
0x242b   :  { %v6846_v49 = vpop.eup %6845 }
0x242c   :  { %3689 = vrot.lane.b32.xlu1 %v6846_v49, %s7384_s11 }
0x243b   :  { %v3721_v4 = vpop.permute.xlu0 %3720 }
0x243c   :  { %v8743_v53 = vadd.f32 %v3721_v4, %v3713_v26 }
0x243e   :  { %6847 = vtanh.f32 %v8743_v53 }
0x243f   :  { %6849 = vpow2.f32 %v6430_v60 }
0x2444   :  { %v6848_v51 = vpop.eup %6847 }
0x2445   :  { %3726 = vrot.lane.b32.xlu2 %v6848_v51, %s7384_s11  ;;  %v6850_v33 = vpop.eup %6849 }
0x2446   :  { %v3272_v42 = vadd.f32 1.0, %v6850_v33 }
0x2448   :  { %6851 = vrcp.f32 %v3272_v42  ;;  %v3284_v54 = vand.u32 2147483648, %v3272_v42  ;;  %vm3278_vm10 = vweird.f32 %v3272_v42  ;;  %v3282_v11 = vand.u32 2147483647, %v3272_v42 }
0x244a   :  { %v3285_v24 = vor.u32 1.1754944e-38, %v3284_v54  ;;  %vm3283_vm13 = vcmp.eq.f32.partialorder %v3282_v11, 8.507059e+37 }
0x244e   :  { %v6852_v62 = vpop.eup %6851 }
0x244f   :  { %v3274_v63 = vmul.f32 %v6852_v62, %v3272_v42  ;;  %vm3279_vm9 = vweird.f32 %v6852_v62 }
0x2450   :  { %vm3280_vm12 = vmor %vm3278_vm10, %vm3279_vm9 }
0x2451   :  { %v3275_v27 = vsub.f32 1.0, %v3274_v63 }
0x2453   :  { %v3276_v3 = vmul.f32 %v6852_v62, %v3275_v27 }
0x2455   :  { %v3277_v29 = vadd.f32 %v6852_v62, %v3276_v3 }
0x2457   :  { %v3281_v14 = vsel %vm3280_vm12, %v6852_v62, %v3277_v29 }
0x2458   :  { %v3286_v6 = vsel %vm3283_vm13, %v3285_v24, %v3281_v14 }
0x249e   :  { %v3690_v50 = vpop.permute.xlu1 %3689 }
0x249f   :  { %v3692_v22 = vmul.f32 %v3690_v50, %v3673_v18  ;;  %v3727_v36 = vpop.permute.xlu2 %3726 }
0x24a0   :  { %v3729_v28 = vmul.f32 %v3727_v36, %v3710_v19 }
0x24a1   :  { %3731 = vst [vmem:[#allocation1] ss:$4 sm:$0xff] %v3692_v22 }
0x24a8   :  { %v3732_v37 = vld.sshfl [vmem:[#allocation1] sm:$0xff pattern:$0x73625140] }
0x24a9   :  { %3759 = vst [vmem:[#allocation1] ss:$4 sm:$0xff] %v3729_v28  ;;  %3733 = vrot.lane.b32.xlu0 %v3732_v37, %s7385_s9 }
0x24b0   :  { %v3760_v38 = vld.sshfl [vmem:[#allocation1] sm:$0xff pattern:$0x73625140] }
0x24b1   :  { %3761 = vrot.lane.b32.xlu1 %v3760_v38, %s7385_s9 }
0x251b   :  { %v3734_v7 = vpop.permute.xlu0 %3733 }
0x251c   :  { %6444 = vmatmul.msk.f32.vlgmr.msra.gmra.mxu0 %vm3472_vm11, %v3734_v7 }
0x251d   :  { %4277 = vmatpush.msra.mxu0 %v8624_v20 }
0x251f   :  { %4278 = vmatpush.msra.mxu0 %v8633_v41 }
0x2521   :  { %4279 = vmatpush.msra.mxu0 %v8644_v55 }
0x2523   :  { %v3762_v21 = vpop.permute.xlu1 %3761  ;;  %4280 = vmatpush.msra.mxu0 %v8655_v59 }
0x2524   :  { %6445 = vmatmul.msk.f32.vlgmr.msra.gmra.mxu1 %vm3472_vm11, %v3762_v21 }
0x2525   :  { %4305 = vmatpush.msra.mxu1 %v8626_v44 }
0x2527   :  { %4306 = vmatpush.msra.mxu1 %v8635_v47 }
0x2529   :  { %4307 = vmatpush.msra.mxu1 %v8646_v57 }
0x252b   :  { %4308 = vmatpush.msra.mxu1 %v8657_v35 }
0x2599   :  { %v3754_v46 = vpop.f32.mrf.mxu0 }
0x259a   :  { %v3757_v43 = vadd.f32 %v3754_v46, %v3444_v13 }
0x259c   :  { %6853 = vtanh.f32 %v3757_v43  ;;  %v6446_v61 = vmul.f32 -1.442695, %v3757_v43  ;;  %v3315_v43 = vmul.f32 %v3286_v6, %v8617_v1 }
0x25a1   :  { %v3782_v48 = vpop.f32.mrf.mxu1 }
0x25a2   :  { %v6854_v45 = vpop.eup %6853  ;;  %v3787_v2 = vadd.f32 %v3785_v0, %v3782_v48 }
0x25a3   :  { %3810 = vrot.lane.b32.xlu2 %v6854_v45, %s7384_s11 }
0x25a4   :  { %6855 = vtanh.f32 %v3787_v2  ;;  %v6447_v39 = vmul.f32 -1.442695, %v3787_v2 }
0x25a5   :  { %6857 = vtanh.f32 %v3289_v5 }
0x25a6   :  { %6859 = vpow2.f32 %v6446_v61 }
0x25aa   :  { %v6856_v58 = vpop.eup %6855 }
0x25ab   :  { %3847 = vrot.lane.b32.xlu0 %v6856_v58, %s7384_s11  ;;  %v6858_v30 = vpop.eup %6857 }
0x25ac   :  { %v3316_v34 = vmul.f32 %v6858_v30, %v3286_v6  ;;  %v6860_v9 = vpop.eup %6859 }
0x25ad   :  { %v3791_v16 = vadd.f32 1.0, %v6860_v9 }
0x25af   :  { %6861 = vrcp.f32 %v3791_v16  ;;  %v3803_v23 = vand.u32 2147483648, %v3791_v16  ;;  %vm3797_vm1 = vweird.f32 %v3791_v16  ;;  %v3801_v10 = vand.u32 2147483647, %v3791_v16 }
0x25b0   :  { %6863 = vpow2.f32 %v6447_v39 }
0x25b1   :  { %v3804_v26 = vor.u32 1.1754944e-38, %v3803_v23  ;;  %vm3802_vm7 = vcmp.eq.f32.partialorder %v3801_v10, 8.507059e+37 }
0x25b3   :  { %3318 = vrot.lane.b32.xlu0 %v3316_v34, %s7384_s11 }
0x25b5   :  { %v6862_v17 = vpop.eup %6861 }
0x25b6   :  { %v3793_v52 = vmul.f32 %v6862_v17, %v3791_v16  ;;  %vm3798_vm14 = vweird.f32 %v6862_v17  ;;  %v6864_v31 = vpop.eup %6863 }
0x25b7   :  { %vm3799_vm2 = vmor %vm3797_vm1, %vm3798_vm14  ;;  %v3828_v4 = vadd.f32 1.0, %v6864_v31 }
0x25b8   :  { %v3794_v18 = vsub.f32 1.0, %v3793_v52 }
0x25b9   :  { %6865 = vrcp.f32 %v3828_v4  ;;  %v3840_v21 = vand.u32 2147483648, %v3828_v4  ;;  %vm3834_vm9 = vweird.f32 %v3828_v4  ;;  %v3838_v60 = vand.u32 2147483647, %v3828_v4 }
0x25ba   :  { %v3795_v40 = vmul.f32 %v6862_v17, %v3794_v18 }
0x25bb   :  { %v3841_v42 = vor.u32 1.1754944e-38, %v3840_v21  ;;  %vm3839_vm12 = vcmp.eq.f32.partialorder %v3838_v60, 8.507059e+37 }
0x25bc   :  { %v3796_v19 = vadd.f32 %v6862_v17, %v3795_v40 }
0x25be   :  { %v3800_v49 = vsel %vm3799_vm2, %v6862_v17, %v3796_v19 }
0x25bf   :  { %v8765_v51 = vsel %vm3802_vm7, %v3804_v26, %v3800_v49  ;;  %v6866_v36 = vpop.eup %6865 }
0x25c0   :  { %v3830_v28 = vmul.f32 %v6866_v36, %v3828_v4  ;;  %vm3835_vm8 = vweird.f32 %v6866_v36  ;;  %v3808_v0 = vmul.f32 %v8765_v51, %v8738_v56 }
0x25c1   :  { %vm3836_vm10 = vmor %vm3834_vm9, %vm3835_vm8 }
0x25c2   :  { %v3831_v37 = vsub.f32 1.0, %v3830_v28 }
0x25c4   :  { %v3832_v38 = vmul.f32 %v6866_v36, %v3831_v37 }
0x25c6   :  { %v3833_v7 = vadd.f32 %v6866_v36, %v3832_v38 }
0x25c8   :  { %v3837_v33 = vsel %vm3836_vm10, %v6866_v36, %v3833_v7 }
0x25c9   :  { %v3842_v13 = vsel %vm3839_vm12, %v3841_v42, %v3837_v33 }
0x25ca   :  { %v3845_v2 = vmul.f32 %v3842_v13, %v8743_v53 }
0x25fd   :  { %v3811_v50 = vpop.permute.xlu2 %3810 }
0x25fe   :  { %v3813_v22 = vmul.f32 %v3811_v50, %v8765_v51 }
0x2600   :  { %3815 = vrot.lane.b32.xlu1 %v3813_v22, %s7385_s9 }
0x2608   :  { %3292 = vrot.lane.b32.xlu1 %v8703_v15, %s7384_s11 }
0x261d   :  { %v3848_v62 = vpop.permute.xlu0 %3847 }
0x261e   :  { %v3850_v46 = vmul.f32 %v3848_v62, %v3842_v13 }
0x2620   :  { %3852 = vrot.lane.b32.xlu2 %v3850_v46, %s7385_s9 }
0x2625   :  { %v3319_v15 = vpop.permute.xlu0 %3318 }
0x2626   :  { %v3321_v63 = vadd.f32 %v3319_v15, %v3315_v43 }
0x2628   :  { %6867 = vtanh.f32 %v3321_v63 }
0x262e   :  { %v6868_v27 = vpop.eup %6867 }
0x262f   :  { %3324 = vrot.lane.b32.xlu1 %v6868_v27, %s7384_s11 }
0x2672   :  { %v3816_v48 = vpop.permute.xlu1 %3815 }
0x2673   :  { %v8776_v45 = vadd.f32 %v3816_v48, %v3808_v0 }
0x2675   :  { %6869 = vtanh.f32 %v8776_v45 }
0x267a   :  { %v3293_v3 = vpop.permute.xlu1 %3292  ;;  %v3853_v5 = vpop.permute.xlu2 %3852 }
0x267b   :  { %v6870_v29 = vpop.eup %6869  ;;  %v3294_v1 = vrot.slane %v3293_v3, 2  ;;  %v8780_v54 = vadd.f32 %v3853_v5, %v3845_v2 }
0x267c   :  { %3821 = vrot.lane.b32.xlu2 %v6870_v29, %s7384_s11 }
0x267d   :  { %v6431_v11 = vmul.f32 -1.442695, %v3294_v1  ;;  %6871 = vtanh.f32 %v8780_v54 }
0x267f   :  { %6873 = vpow2.f32 %v6431_v11 }
0x2683   :  { %v6872_v56 = vpop.eup %6871 }
0x2684   :  { %3858 = vrot.lane.b32.xlu0 %v6872_v56, %s7384_s11 }
0x2685   :  { %v6874_v58 = vpop.eup %6873 }
0x2686   :  { %v3299_v14 = vadd.f32 1.0, %v6874_v58 }
0x2688   :  { %6875 = vrcp.f32 %v3299_v14  ;;  %v3311_v61 = vand.u32 2147483648, %v3299_v14  ;;  %vm3305_vm14 = vweird.f32 %v3299_v14  ;;  %v3309_v9 = vand.u32 2147483647, %v3299_v14 }
0x268a   :  { %v3312_v17 = vor.u32 1.1754944e-38, %v3311_v61  ;;  %vm3310_vm2 = vcmp.eq.f32.partialorder %v3309_v9, 8.507059e+37 }
0x268e   :  { %v6876_v24 = vpop.eup %6875 }
0x268f   :  { %v3301_v53 = vmul.f32 %v6876_v24, %v3299_v14  ;;  %vm3306_vm13 = vweird.f32 %v6876_v24 }
0x2690   :  { %vm3307_vm1 = vmor %vm3305_vm14, %vm3306_vm13 }
0x2691   :  { %v3302_v6 = vsub.f32 1.0, %v3301_v53 }
0x2693   :  { %v3303_v30 = vmul.f32 %v6876_v24, %v3302_v6 }
0x2695   :  { %v3304_v34 = vadd.f32 %v6876_v24, %v3303_v30 }
0x2697   :  { %v3308_v16 = vsel %vm3307_vm1, %v6876_v24, %v3304_v34 }
0x2698   :  { %v3313_v52 = vsel %vm3310_vm2, %v3312_v17, %v3308_v16 }
0x26a1   :  { %v3325_v18 = vpop.permute.xlu1 %3324 }
0x26a2   :  { %v3327_v39 = vmul.f32 %v3325_v18, %v3313_v52 }
0x26a4   :  { %3328 = vst.msk [vmem:[#allocation2 + $0xe] sm:$0x3] %vm492_vm15, %v3327_v39 }
0x26ab   :  { %v3336_v40 = vld [vmem:[#allocation2 + $0xe] sm:$0x3] }
0x26ac   :  { %3381 = vst [vmem:[#allocation1 + $0x23] ss:$4 sm:$0xff] %v3336_v40 }
0x26b3   :  { %v3383_v19 = vld.sshfl [vmem:[#allocation1 + $0x20] sm:$0xff pattern:$0x73625140] }
0x26b4   :  { %6433 = vmatmul.msk.f32.gmra.mxu2 %vm379_vm0, %v3383_v19  ;;  %6435 = vmatmul.msk.f32.gmra.mxu3 %vm379_vm0, %v3383_v19 }
0x26d6   :  { %v3822_v23 = vpop.permute.xlu2 %3821 }
0x26d7   :  { %v3824_v10 = vmul.f32 %v3822_v23, %v8765_v51 }
0x26d9   :  { %3863 = vst [vmem:[#allocation1] ss:$4 sm:$0xff] %v3824_v10 }
0x26e0   :  { %v3864_v31 = vld.sshfl [vmem:[#allocation1] sm:$0xff pattern:$0x73625140] }
0x26e1   :  { %3865 = vrot.lane.b32.xlu2 %v3864_v31, %s7385_s9 }
0x26f6   :  { %v3859_v49 = vpop.permute.xlu0 %3858 }
0x26f7   :  { %v3861_v26 = vmul.f32 %v3859_v49, %v3842_v13 }
0x26f9   :  { %3891 = vst [vmem:[#allocation1] ss:$4 sm:$0xff] %v3861_v26 }
0x2700   :  { %v3892_v4 = vld.sshfl [vmem:[#allocation1] sm:$0xff pattern:$0x73625140] }
0x2701   :  { %3893 = vrot.lane.b32.xlu0 %v3892_v4, %s7385_s9 }
0x2737   :  { %v3408_v50 = vpop.f32.mrf.mxu2  ;;  %v3431_v22 = vpop.f32.mrf.mxu3 }
0x2738   :  { %v3432_v36 = vadd.f32 %v3431_v22, %v3356_v25  ;;  %v8795_v28 = vadd.f32 %v3408_v50, %v3355_v32  ;;  %v3446_v32 = vrot.slane %v8613_v12, 6 }
0x273a   :  { %v8797_v51 = vrot.slane %v3432_v36, 6 }
0x273b   :  { %v3866_v37 = vpop.permute.xlu2 %3865 }
0x273c   :  { %6448 = vmatmul.msk.f32.vlgmr.msra.gmra.mxu2 %vm3472_vm11, %v3866_v37  ;;  %v8803_v38 = vsel %vm355_vm4, %v8795_v28, %v8797_v51  ;;  %v8808_v7 = vsel %vm358_vm5, %v8795_v28, %v8797_v51  ;;  %v8813_v8 = vsel %vm361_vm6, %v8797_v51, %v8795_v28  ;;  %v3447_v50 = vsel %vm353_vm3, %v8795_v28, %v8797_v51 }
0x273d   :  { %4409 = vmatpush.msra.mxu2 %v8624_v20 }
0x273f   :  { %4410 = vmatpush.msra.mxu2 %v8633_v41 }
0x2741   :  { %4411 = vmatpush.msra.mxu2 %v8644_v55  ;;  %v3917_v55 = vrot.slane %v3446_v32, 2 }
0x2743   :  { %4412 = vmatpush.msra.mxu2 %v8655_v59 }
0x2773   :  { %v3894_v25 = vpop.permute.xlu0 %3893 }
0x2774   :  { %6449 = vmatmul.msk.f32.vlgmr.msra.gmra.mxu3 %vm3472_vm11, %v3894_v25  ;;  %v4049_v25 = vrot.slane %v3447_v50, 2 }
0x2775   :  { %4437 = vmatpush.msra.mxu3 %v8626_v44 }
0x2777   :  { %4438 = vmatpush.msra.mxu3 %v8635_v47 }
0x2779   :  { %4439 = vmatpush.msra.mxu3 %v8646_v57 }
0x277b   :  { %4440 = vmatpush.msra.mxu3 %v8657_v35 }
0x27bf   :  { %v3886_v20 = vpop.f32.mrf.mxu2 }
0x27c0   :  { %v3889_v21 = vadd.f32 %v3886_v20, %v3446_v32 }
0x27c2   :  { %6877 = vtanh.f32 %v3889_v21  ;;  %v6450_v44 = vmul.f32 -1.442695, %v3889_v21 }
0x27c8   :  { %v6878_v41 = vpop.eup %6877 }
0x27c9   :  { %3942 = vrot.lane.b32.xlu1 %v6878_v41, %s7384_s11 }
0x27f7   :  { %v3914_v59 = vpop.f32.mrf.mxu3 }
0x27f8   :  { %v3919_v60 = vadd.f32 %v3917_v55, %v3914_v59 }
0x27fa   :  { %6879 = vtanh.f32 %v3919_v60  ;;  %v6451_v62 = vmul.f32 -1.442695, %v3919_v60 }
0x27fb   :  { %6881 = vpow2.f32 %v6450_v44 }
0x2800   :  { %v6880_v33 = vpop.eup %6879 }
0x2801   :  { %3979 = vrot.lane.b32.xlu2 %v6880_v33, %s7384_s11  ;;  %v6882_v47 = vpop.eup %6881 }
0x2802   :  { %v3923_v57 = vadd.f32 1.0, %v6882_v47 }
0x2804   :  { %6883 = vrcp.f32 %v3923_v57  ;;  %v3935_v43 = vand.u32 2147483648, %v3923_v57  ;;  %vm3929_vm8 = vweird.f32 %v3923_v57  ;;  %v3933_v15 = vand.u32 2147483647, %v3923_v57 }
0x2805   :  { %6885 = vpow2.f32 %v6451_v62 }
0x2806   :  { %v3936_v0 = vor.u32 1.1754944e-38, %v3935_v43  ;;  %vm3934_vm10 = vcmp.eq.f32.partialorder %v3933_v15, 8.507059e+37 }
0x280a   :  { %v6884_v35 = vpop.eup %6883 }
0x280b   :  { %v3925_v12 = vmul.f32 %v6884_v35, %v3923_v57  ;;  %vm3930_vm7 = vweird.f32 %v6884_v35  ;;  %v6886_v63 = vpop.eup %6885 }
0x280c   :  { %vm3931_vm9 = vmor %vm3929_vm8, %vm3930_vm7  ;;  %v3960_v48 = vadd.f32 1.0, %v6886_v63 }
0x280d   :  { %v3926_v42 = vsub.f32 1.0, %v3925_v12 }
0x280e   :  { %6887 = vrcp.f32 %v3960_v48  ;;  %v3972_v14 = vand.u32 2147483648, %v3960_v48  ;;  %vm3966_vm13 = vweird.f32 %v3960_v48  ;;  %v3970_v24 = vand.u32 2147483647, %v3960_v48 }
0x280f   :  { %v3927_v13 = vmul.f32 %v6884_v35, %v3926_v42 }
0x2810   :  { %v3973_v6 = vor.u32 1.1754944e-38, %v3972_v14  ;;  %vm3971_vm1 = vcmp.eq.f32.partialorder %v3970_v24, 8.507059e+37 }
0x2811   :  { %v3928_v46 = vadd.f32 %v6884_v35, %v3927_v13 }
0x2813   :  { %v3932_v27 = vsel %vm3931_vm9, %v6884_v35, %v3928_v46 }
0x2814   :  { %v3937_v3 = vsel %vm3934_vm10, %v3936_v0, %v3932_v27  ;;  %v6888_v29 = vpop.eup %6887 }
0x2815   :  { %v3962_v1 = vmul.f32 %v6888_v29, %v3960_v48  ;;  %vm3967_vm12 = vweird.f32 %v6888_v29  ;;  %v3940_v9 = vmul.f32 %v3937_v3, %v8776_v45 }
0x2816   :  { %vm3968_vm14 = vmor %vm3966_vm13, %vm3967_vm12 }
0x2817   :  { %v3963_v11 = vsub.f32 1.0, %v3962_v1 }
0x2819   :  { %v3964_v56 = vmul.f32 %v6888_v29, %v3963_v11 }
0x281b   :  { %v3965_v58 = vadd.f32 %v6888_v29, %v3964_v56 }
0x281d   :  { %v3969_v53 = vsel %vm3968_vm14, %v6888_v29, %v3965_v58 }
0x281e   :  { %v3974_v34 = vsel %vm3971_vm1, %v3973_v6, %v3969_v53 }
0x281f   :  { %v3977_v18 = vmul.f32 %v3974_v34, %v8780_v54 }
0x283b   :  { %v3943_v2 = vpop.permute.xlu1 %3942 }
0x283c   :  { %v3945_v5 = vmul.f32 %v3943_v2, %v3937_v3 }
0x283e   :  { %3947 = vrot.lane.b32.xlu0 %v3945_v5, %s7385_s9 }
0x285b   :  { %v3980_v30 = vpop.permute.xlu2 %3979 }
0x285c   :  { %v3982_v61 = vmul.f32 %v3980_v30, %v3974_v34 }
0x285e   :  { %3984 = vrot.lane.b32.xlu1 %v3982_v61, %s7385_s9 }
0x28b0   :  { %v3948_v16 = vpop.permute.xlu0 %3947 }
0x28b1   :  { %v8830_v17 = vadd.f32 %v3948_v16, %v3940_v9 }
0x28b3   :  { %6889 = vtanh.f32 %v8830_v17 }
0x28b9   :  { %v6890_v52 = vpop.eup %6889 }
0x28ba   :  { %3953 = vrot.lane.b32.xlu2 %v6890_v52, %s7384_s11 }
0x28d0   :  { %v3985_v39 = vpop.permute.xlu1 %3984 }
0x28d1   :  { %v8835_v40 = vadd.f32 %v3985_v39, %v3977_v18 }
0x28d3   :  { %6891 = vtanh.f32 %v8835_v40 }
0x28d9   :  { %v6892_v19 = vpop.eup %6891 }
0x28da   :  { %3990 = vrot.lane.b32.xlu0 %v6892_v19, %s7384_s11 }
0x2914   :  { %v3954_v23 = vpop.permute.xlu2 %3953 }
0x2915   :  { %v3956_v45 = vmul.f32 %v3954_v23, %v3937_v3 }
0x2917   :  { %3995 = vst [vmem:[#allocation1] ss:$4 sm:$0xff] %v3956_v45  ;;  %v3449_v45 = vrot.slane %v8803_v38, 2 }
0x291e   :  { %v3996_v10 = vld.sshfl [vmem:[#allocation1] sm:$0xff pattern:$0x73625140] }
0x291f   :  { %3997 = vrot.lane.b32.xlu1 %v3996_v10, %s7385_s9 }
0x294c   :  { %v3991_v31 = vpop.permute.xlu0 %3990 }
0x294d   :  { %v3993_v49 = vmul.f32 %v3991_v31, %v3974_v34 }
0x294f   :  { %4023 = vst [vmem:[#allocation1] ss:$4 sm:$0xff] %v3993_v49 }
0x2956   :  { %v4024_v26 = vld.sshfl [vmem:[#allocation1] sm:$0xff pattern:$0x73625140] }
0x2957   :  { %4025 = vrot.lane.b32.xlu2 %v4024_v26, %s7385_s9  ;;  %v4181_v26 = vrot.slane %v3449_v45, 2 }
0x2991   :  { %v3998_v54 = vpop.permute.xlu1 %3997 }
0x2992   :  { %6452 = vmatmul.msk.f32.vlgmr.msrb.gmra.mxu0 %vm3472_vm11, %v3998_v54 }
0x29b1   :  { %v4026_v4 = vpop.permute.xlu2 %4025 }
0x29b2   :  { %6453 = vmatmul.msk.f32.vlgmr.msrb.gmra.mxu1 %vm3472_vm11, %v4026_v4 }
0x2a0f   :  { %v4018_v22 = vpop.f32.mrf.mxu0 }
0x2a10   :  { %v4021_v36 = vadd.f32 %v4018_v22, %v3447_v50 }
0x2a12   :  { %6893 = vtanh.f32 %v4021_v36  ;;  %v6454_v41 = vmul.f32 -1.442695, %v4021_v36 }
0x2a18   :  { %v6894_v37 = vpop.eup %6893 }
0x2a19   :  { %4074 = vrot.lane.b32.xlu0 %v6894_v37, %s7384_s11 }
0x2a2f   :  { %v4046_v32 = vpop.f32.mrf.mxu1 }
0x2a30   :  { %v4051_v20 = vadd.f32 %v4049_v25, %v4046_v32 }
0x2a32   :  { %6895 = vtanh.f32 %v4051_v20  ;;  %v6455_v33 = vmul.f32 -1.442695, %v4051_v20 }
0x2a33   :  { %6897 = vpow2.f32 %v6454_v41 }
0x2a38   :  { %v6896_v21 = vpop.eup %6895 }
0x2a39   :  { %4111 = vrot.lane.b32.xlu1 %v6896_v21, %s7384_s11  ;;  %v6898_v55 = vpop.eup %6897 }
0x2a3a   :  { %v4055_v59 = vadd.f32 1.0, %v6898_v55 }
0x2a3c   :  { %6899 = vrcp.f32 %v4055_v59  ;;  %v4067_v57 = vand.u32 2147483648, %v4055_v59  ;;  %vm4061_vm7 = vweird.f32 %v4055_v59  ;;  %v4065_v35 = vand.u32 2147483647, %v4055_v59 }
0x2a3d   :  { %6901 = vpow2.f32 %v6455_v33 }
0x2a3e   :  { %v4068_v62 = vor.u32 1.1754944e-38, %v4067_v57  ;;  %vm4066_vm9 = vcmp.eq.f32.partialorder %v4065_v35, 8.507059e+37 }
0x2a42   :  { %v6900_v60 = vpop.eup %6899 }
0x2a43   :  { %v4057_v28 = vmul.f32 %v6900_v60, %v4055_v59  ;;  %vm4062_vm2 = vweird.f32 %v6900_v60  ;;  %v6902_v12 = vpop.eup %6901 }
0x2a44   :  { %vm4063_vm8 = vmor %vm4061_vm7, %vm4062_vm2  ;;  %v4092_v13 = vadd.f32 1.0, %v6902_v12 }
0x2a45   :  { %v4058_v51 = vsub.f32 1.0, %v4057_v28 }
0x2a46   :  { %6903 = vrcp.f32 %v4092_v13  ;;  %v4104_v3 = vand.u32 2147483648, %v4092_v13  ;;  %vm4098_vm12 = vweird.f32 %v4092_v13  ;;  %v4102_v5 = vand.u32 2147483647, %v4092_v13 }
0x2a47   :  { %v4059_v44 = vmul.f32 %v6900_v60, %v4058_v51 }
0x2a48   :  { %v4105_v1 = vor.u32 1.1754944e-38, %v4104_v3  ;;  %vm4103_vm14 = vcmp.eq.f32.partialorder %v4102_v5, 8.507059e+37 }
0x2a49   :  { %v4060_v47 = vadd.f32 %v6900_v60, %v4059_v44 }
0x2a4b   :  { %v4064_v42 = vsel %vm4063_vm8, %v6900_v60, %v4060_v47 }
0x2a4c   :  { %v4069_v46 = vsel %vm4066_vm9, %v4068_v62, %v4064_v42  ;;  %v6904_v63 = vpop.eup %6903 }
0x2a4d   :  { %v4094_v27 = vmul.f32 %v6904_v63, %v4092_v13  ;;  %vm4099_vm10 = vweird.f32 %v6904_v63  ;;  %v4072_v14 = vmul.f32 %v4069_v46, %v8830_v17 }
0x2a4e   :  { %vm4100_vm13 = vmor %vm4098_vm12, %vm4099_vm10 }
0x2a4f   :  { %v4095_v0 = vsub.f32 1.0, %v4094_v27 }
0x2a51   :  { %v4096_v48 = vmul.f32 %v6904_v63, %v4095_v0 }
0x2a53   :  { %v4097_v2 = vadd.f32 %v6904_v63, %v4096_v48 }
0x2a55   :  { %v4101_v29 = vsel %vm4100_vm13, %v6904_v63, %v4097_v2 }
0x2a56   :  { %v4106_v56 = vsel %vm4103_vm14, %v4105_v1, %v4101_v29 }
0x2a57   :  { %v4109_v30 = vmul.f32 %v4106_v56, %v8835_v40 }
0x2a8b   :  { %v4075_v43 = vpop.permute.xlu0 %4074 }
0x2a8c   :  { %v4077_v15 = vmul.f32 %v4075_v43, %v4069_v46 }
0x2a8e   :  { %4079 = vrot.lane.b32.xlu2 %v4077_v15, %s7385_s9 }
0x2aab   :  { %v4112_v11 = vpop.permute.xlu1 %4111 }
0x2aac   :  { %v4114_v58 = vmul.f32 %v4112_v11, %v4106_v56 }
0x2aae   :  { %4116 = vrot.lane.b32.xlu0 %v4114_v58, %s7385_s9 }
0x2ae8   :  { %v4080_v24 = vpop.permute.xlu2 %4079 }
0x2ae9   :  { %v8851_v53 = vadd.f32 %v4080_v24, %v4072_v14 }
0x2aeb   :  { %6905 = vtanh.f32 %v8851_v53 }
0x2af1   :  { %v6906_v6 = vpop.eup %6905 }
0x2af2   :  { %4085 = vrot.lane.b32.xlu1 %v6906_v6, %s7384_s11 }
0x2b20   :  { %v4117_v34 = vpop.permute.xlu0 %4116 }
0x2b21   :  { %v8856_v61 = vadd.f32 %v4117_v34, %v4109_v30 }
0x2b23   :  { %6907 = vtanh.f32 %v8856_v61 }
0x2b29   :  { %v6908_v9 = vpop.eup %6907 }
0x2b2a   :  { %4122 = vrot.lane.b32.xlu2 %v6908_v9, %s7384_s11 }
0x2b64   :  { %v4086_v16 = vpop.permute.xlu1 %4085 }
0x2b65   :  { %v4088_v17 = vmul.f32 %v4086_v16, %v4069_v46  ;;  %v3451_v16 = vrot.slane %v8808_v7, 4 }
0x2b67   :  { %4127 = vst [vmem:[#allocation1] ss:$4 sm:$0xff] %v4088_v17 }
0x2b6e   :  { %v4128_v52 = vld.sshfl [vmem:[#allocation1] sm:$0xff pattern:$0x73625140] }
0x2b6f   :  { %4129 = vrot.lane.b32.xlu0 %v4128_v52, %s7385_s9 }
0x2b84   :  { %v4123_v18 = vpop.permute.xlu2 %4122 }
0x2b85   :  { %v4125_v39 = vmul.f32 %v4123_v18, %v4106_v56 }
0x2b87   :  { %4155 = vst [vmem:[#allocation1] ss:$4 sm:$0xff] %v4125_v39  ;;  %v4313_v39 = vrot.slane %v3451_v16, 2 }
0x2b8e   :  { %v4156_v19 = vld.sshfl [vmem:[#allocation1] sm:$0xff pattern:$0x73625140] }
0x2b8f   :  { %4157 = vrot.lane.b32.xlu1 %v4156_v19, %s7385_s9 }
0x2be1   :  { %v4130_v40 = vpop.permute.xlu0 %4129 }
0x2be2   :  { %6456 = vmatmul.msk.f32.vlgmr.msrb.gmra.mxu2 %vm3472_vm11, %v4130_v40 }
0x2c01   :  { %v4158_v23 = vpop.permute.xlu1 %4157 }
0x2c02   :  { %6457 = vmatmul.msk.f32.vlgmr.msrb.gmra.mxu3 %vm3472_vm11, %v4158_v23 }
0x2c65   :  { %v4150_v10 = vpop.f32.mrf.mxu2 }
0x2c66   :  { %v4153_v31 = vadd.f32 %v4150_v10, %v3449_v45 }
0x2c68   :  { %6909 = vtanh.f32 %v4153_v31  ;;  %v6458_v22 = vmul.f32 -1.442695, %v4153_v31 }
0x2c6e   :  { %v6910_v49 = vpop.eup %6909 }
0x2c6f   :  { %4206 = vrot.lane.b32.xlu2 %v6910_v49, %s7384_s11 }
0x2c85   :  { %v4178_v54 = vpop.f32.mrf.mxu3 }
0x2c86   :  { %v4183_v4 = vadd.f32 %v4181_v26, %v4178_v54 }
0x2c88   :  { %6911 = vtanh.f32 %v4183_v4  ;;  %v6459_v44 = vmul.f32 -1.442695, %v4183_v4 }
0x2c89   :  { %6913 = vpow2.f32 %v6458_v22 }
0x2c8e   :  { %v6912_v50 = vpop.eup %6911 }
0x2c8f   :  { %4243 = vrot.lane.b32.xlu0 %v6912_v50, %s7384_s11  ;;  %v6914_v36 = vpop.eup %6913 }
0x2c90   :  { %v4187_v37 = vadd.f32 1.0, %v6914_v36 }
0x2c92   :  { %6915 = vrcp.f32 %v4187_v37  ;;  %v4199_v41 = vand.u32 2147483648, %v4187_v37  ;;  %vm4193_vm2 = vweird.f32 %v4187_v37  ;;  %v4197_v55 = vand.u32 2147483647, %v4187_v37 }
0x2c93   :  { %6917 = vpow2.f32 %v6459_v44 }
0x2c94   :  { %v4200_v60 = vor.u32 1.1754944e-38, %v4199_v41  ;;  %vm4198_vm8 = vcmp.eq.f32.partialorder %v4197_v55, 8.507059e+37 }
0x2c98   :  { %v6916_v25 = vpop.eup %6915 }
0x2c99   :  { %v4189_v38 = vmul.f32 %v6916_v25, %v4187_v37  ;;  %vm4194_vm1 = vweird.f32 %v6916_v25  ;;  %v6918_v47 = vpop.eup %6917 }
0x2c9a   :  { %vm4195_vm7 = vmor %vm4193_vm2, %vm4194_vm1  ;;  %v4224_v57 = vadd.f32 1.0, %v6918_v47 }
0x2c9b   :  { %v4190_v32 = vsub.f32 1.0, %v4189_v38 }
0x2c9c   :  { %6919 = vrcp.f32 %v4224_v57  ;;  %v4236_v46 = vand.u32 2147483648, %v4224_v57  ;;  %vm4230_vm10 = vweird.f32 %v4224_v57  ;;  %v4234_v43 = vand.u32 2147483647, %v4224_v57 }
0x2c9d   :  { %v4191_v20 = vmul.f32 %v6916_v25, %v4190_v32 }
0x2c9e   :  { %v4237_v63 = vor.u32 1.1754944e-38, %v4236_v46  ;;  %vm4235_vm13 = vcmp.eq.f32.partialorder %v4234_v43, 8.507059e+37 }
0x2c9f   :  { %v4192_v21 = vadd.f32 %v6916_v25, %v4191_v20 }
0x2ca1   :  { %v4196_v59 = vsel %vm4195_vm7, %v6916_v25, %v4192_v21 }
0x2ca2   :  { %v4201_v51 = vsel %vm4198_vm8, %v4200_v60, %v4196_v59  ;;  %v6920_v35 = vpop.eup %6919 }
0x2ca3   :  { %v4226_v12 = vmul.f32 %v6920_v35, %v4224_v57  ;;  %vm4231_vm9 = vweird.f32 %v6920_v35  ;;  %v4204_v2 = vmul.f32 %v4201_v51, %v8851_v53 }
0x2ca4   :  { %vm4232_vm12 = vmor %vm4230_vm10, %vm4231_vm9 }
0x2ca5   :  { %v4227_v42 = vsub.f32 1.0, %v4226_v12 }
0x2ca7   :  { %v4228_v62 = vmul.f32 %v6920_v35, %v4227_v42 }
0x2ca9   :  { %v4229_v13 = vadd.f32 %v6920_v35, %v4228_v62 }
0x2cab   :  { %v4233_v15 = vsel %vm4232_vm12, %v6920_v35, %v4229_v13 }
0x2cac   :  { %v4238_v27 = vsel %vm4235_vm13, %v4237_v63, %v4233_v15 }
0x2cad   :  { %v4241_v1 = vmul.f32 %v4238_v27, %v8856_v61 }
0x2cc9   :  { %v4207_v28 = vpop.permute.xlu2 %4206 }
0x2cca   :  { %v4209_v33 = vmul.f32 %v4207_v28, %v4201_v51 }
0x2ccc   :  { %4211 = vrot.lane.b32.xlu1 %v4209_v33, %s7385_s9 }
0x2d01   :  { %v4244_v0 = vpop.permute.xlu0 %4243 }
0x2d02   :  { %v4246_v48 = vmul.f32 %v4244_v0, %v4238_v27 }
0x2d04   :  { %4248 = vrot.lane.b32.xlu2 %v4246_v48, %s7385_s9 }
0x2d3e   :  { %v4212_v3 = vpop.permute.xlu1 %4211 }
0x2d3f   :  { %v8870_v5 = vadd.f32 %v4212_v3, %v4204_v2 }
0x2d41   :  { %6921 = vtanh.f32 %v8870_v5 }
0x2d47   :  { %v6922_v29 = vpop.eup %6921 }
0x2d48   :  { %4217 = vrot.lane.b32.xlu0 %v6922_v29, %s7384_s11 }
0x2d5e   :  { %v4249_v11 = vpop.permute.xlu2 %4248 }
0x2d5f   :  { %v8875_v56 = vadd.f32 %v4249_v11, %v4241_v1 }
0x2d61   :  { %6923 = vtanh.f32 %v8875_v56 }
0x2d67   :  { %v6924_v58 = vpop.eup %6923 }
0x2d68   :  { %4254 = vrot.lane.b32.xlu1 %v6924_v58, %s7384_s11  ;;  %v3453_v58 = vrot.slane %v8813_v8, 6 }
0x2dba   :  { %v4218_v14 = vpop.permute.xlu0 %4217 }
0x2dbb   :  { %v4220_v24 = vmul.f32 %v4218_v14, %v4201_v51 }
0x2dbd   :  { %4259 = vst [vmem:[#allocation1] ss:$4 sm:$0xff] %v4220_v24 }
0x2dc4   :  { %v4260_v53 = vld.sshfl [vmem:[#allocation1] sm:$0xff pattern:$0x73625140] }
0x2dc5   :  { %4261 = vrot.lane.b32.xlu2 %v4260_v53, %s7385_s9 }
0x2dda   :  { %v4255_v6 = vpop.permute.xlu1 %4254 }
0x2ddb   :  { %v4257_v30 = vmul.f32 %v4255_v6, %v4238_v27 }
0x2ddd   :  { %4287 = vst [vmem:[#allocation1] ss:$4 sm:$0xff] %v4257_v30  ;;  %v4445_v30 = vrot.slane %v3453_v58, 2 }
0x2de4   :  { %v4288_v34 = vld.sshfl [vmem:[#allocation1] sm:$0xff pattern:$0x73625140] }
0x2de5   :  { %4289 = vrot.lane.b32.xlu0 %v4288_v34, %s7385_s9 }
0x2e1f   :  { %v4262_v61 = vpop.permute.xlu2 %4261 }
0x2e20   :  { %6460 = vmatmul.msk.f32.vlgmr.msra.gmra.mxu0 %vm3472_vm11, %v4262_v61 }
0x2e57   :  { %v4290_v9 = vpop.permute.xlu0 %4289 }
0x2e58   :  { %6461 = vmatmul.msk.f32.vlgmr.msra.gmra.mxu1 %vm3472_vm11, %v4290_v9 }
0x2e9d   :  { %v4282_v17 = vpop.f32.mrf.mxu0 }
0x2e9e   :  { %v4285_v52 = vadd.f32 %v4282_v17, %v3451_v16 }
0x2ea0   :  { %6925 = vtanh.f32 %v4285_v52  ;;  %v6462_v45 = vmul.f32 -1.442695, %v4285_v52 }
0x2ea6   :  { %v6926_v18 = vpop.eup %6925 }
0x2ea7   :  { %4338 = vrot.lane.b32.xlu1 %v6926_v18, %s7384_s11 }
0x2ed5   :  { %v4310_v19 = vpop.f32.mrf.mxu1 }
0x2ed6   :  { %v4315_v40 = vadd.f32 %v4313_v39, %v4310_v19 }
0x2ed8   :  { %6927 = vtanh.f32 %v4315_v40  ;;  %v6463_v54 = vmul.f32 -1.442695, %v4315_v40 }
0x2ed9   :  { %6929 = vpow2.f32 %v6462_v45 }
0x2ede   :  { %v6928_v23 = vpop.eup %6927 }
0x2edf   :  { %4375 = vrot.lane.b32.xlu2 %v6928_v23, %s7384_s11  ;;  %v6930_v10 = vpop.eup %6929 }
0x2ee0   :  { %v4319_v31 = vadd.f32 1.0, %v6930_v10 }
0x2ee2   :  { %6931 = vrcp.f32 %v4319_v31  ;;  %v4331_v22 = vand.u32 2147483648, %v4319_v31  ;;  %vm4325_vm1 = vweird.f32 %v4319_v31  ;;  %v4329_v36 = vand.u32 2147483647, %v4319_v31 }
0x2ee3   :  { %6933 = vpow2.f32 %v6463_v54 }
0x2ee4   :  { %v4332_v38 = vor.u32 1.1754944e-38, %v4331_v22  ;;  %vm4330_vm7 = vcmp.eq.f32.partialorder %v4329_v36, 8.507059e+37 }
0x2ee8   :  { %v6932_v49 = vpop.eup %6931 }
0x2ee9   :  { %v4321_v7 = vmul.f32 %v6932_v49, %v4319_v31  ;;  %vm4326_vm14 = vweird.f32 %v6932_v49  ;;  %v6934_v37 = vpop.eup %6933 }
0x2eea   :  { %vm4327_vm2 = vmor %vm4325_vm1, %vm4326_vm14  ;;  %v4356_v32 = vadd.f32 1.0, %v6934_v37 }
0x2eeb   :  { %v4322_v26 = vsub.f32 1.0, %v4321_v7 }
0x2eec   :  { %6935 = vrcp.f32 %v4356_v32  ;;  %v4368_v33 = vand.u32 2147483648, %v4356_v32  ;;  %vm4362_vm9 = vweird.f32 %v4356_v32  ;;  %v4366_v44 = vand.u32 2147483647, %v4356_v32 }
0x2eed   :  { %v4323_v4 = vmul.f32 %v6932_v49, %v4322_v26 }
0x2eee   :  { %v4369_v57 = vor.u32 1.1754944e-38, %v4368_v33  ;;  %vm4367_vm12 = vcmp.eq.f32.partialorder %v4366_v44, 8.507059e+37  ;;  %v4525_v44 = vld [vmem:[%s9487_s26] sm:$0x3] }
0x2eef   :  { %v4324_v50 = vadd.f32 %v6932_v49, %v4323_v4 }
0x2ef1   :  { %v4328_v25 = vsel %vm4327_vm2, %v6932_v49, %v4324_v50 }
0x2ef2   :  { %v4333_v21 = vsel %vm4330_vm7, %v4332_v38, %v4328_v25  ;;  %v6936_v55 = vpop.eup %6935 }
0x2ef3   :  { %v4358_v59 = vmul.f32 %v6936_v55, %v4356_v32  ;;  %vm4363_vm8 = vweird.f32 %v6936_v55  ;;  %v4336_v62 = vmul.f32 %v4333_v21, %v8870_v5 }
0x2ef4   :  { %vm4364_vm10 = vmor %vm4362_vm9, %vm4363_vm8 }
0x2ef5   :  { %v4359_v60 = vsub.f32 1.0, %v4358_v59 }
0x2ef7   :  { %v4360_v28 = vmul.f32 %v6936_v55, %v4359_v60 }
0x2ef9   :  { %v4361_v51 = vadd.f32 %v6936_v55, %v4360_v28 }
0x2efb   :  { %v4365_v47 = vsel %vm4364_vm10, %v6936_v55, %v4361_v51 }
0x2efc   :  { %v4370_v12 = vsel %vm4367_vm12, %v4369_v57, %v4365_v47 }
0x2efd   :  { %v4373_v15 = vmul.f32 %v4370_v12, %v8875_v56 }
0x2f19   :  { %v4339_v20 = vpop.permute.xlu1 %4338 }
0x2f1a   :  { %v4341_v41 = vmul.f32 %v4339_v20, %v4333_v21 }
0x2f1c   :  { %4343 = vrot.lane.b32.xlu0 %v4341_v41, %s7385_s9 }
0x2f39   :  { %v4376_v35 = vpop.permute.xlu2 %4375 }
0x2f3a   :  { %v4378_v42 = vmul.f32 %v4376_v35, %v4370_v12 }
0x2f3c   :  { %4380 = vrot.lane.b32.xlu1 %v4378_v42, %s7385_s9 }
0x2f8e   :  { %v4344_v13 = vpop.permute.xlu0 %4343 }
0x2f8f   :  { %v8889_v46 = vadd.f32 %v4344_v13, %v4336_v62 }
0x2f91   :  { %6937 = vtanh.f32 %v8889_v46 }
0x2f97   :  { %v6938_v43 = vpop.eup %6937 }
0x2f98   :  { %4349 = vrot.lane.b32.xlu2 %v6938_v43, %s7384_s11  ;;  %v4547_v43 = vld [vmem:[#allocation16 + $0x18] sm:$0xff] }
0x2f99   :  { %4589 = vmatpush.msrb.mxu0 %v4547_v43 }
0x2fae   :  { %v4381_v63 = vpop.permute.xlu1 %4380 }
0x2faf   :  { %v8894_v27 = vadd.f32 %v4381_v63, %v4373_v15  ;;  %v4546_v15 = vld [vmem:[#allocation16 + $0x10] sm:$0xff]  ;;  %v8918_v63 = vld [vmem:[#allocation17 + $0x18] sm:$0xff] }
0x2fb0   :  { %4629 = vmatpush.msrb.mxu1 %v8918_v63  ;;  %4700 = vmatpush.msrb.mxu2 %v8918_v63 }
0x2fb1   :  { %6939 = vtanh.f32 %v8894_v27  ;;  %4772 = vmatpush.msrb.mxu3 %v8918_v63  ;;  %4590 = vmatpush.msrb.mxu0 %v4546_v15 }
0x2fb7   :  { %v6940_v0 = vpop.eup %6939 }
0x2fb8   :  { %4386 = vrot.lane.b32.xlu0 %v6940_v0, %s7384_s11  ;;  %v8921_v0 = vld [vmem:[#allocation17 + $0x10] sm:$0xff] }
0x2fb9   :  { %4630 = vmatpush.msrb.mxu1 %v8921_v0  ;;  %4701 = vmatpush.msrb.mxu2 %v8921_v0 }
0x2fba   :  { %4773 = vmatpush.msrb.mxu3 %v8921_v0 }
0x2ff2   :  { %v4350_v48 = vpop.permute.xlu2 %4349 }
0x2ff3   :  { %v4352_v2 = vmul.f32 %v4350_v48, %v4333_v21  ;;  %v8923_v48 = vld [vmem:[#allocation17 + $0x8] sm:$0xff] }
0x2ff4   :  { %4631 = vmatpush.msrb.mxu1 %v8923_v48  ;;  %4702 = vmatpush.msrb.mxu2 %v8923_v48 }
0x2ff5   :  { %4391 = vst [vmem:[#allocation1] ss:$4 sm:$0xff] %v4352_v2  ;;  %v4544_v2 = vld [vmem:[#allocation16] sm:$0xff]  ;;  %4774 = vmatpush.msrb.mxu3 %v8923_v48 }
0x2ffc   :  { %v4392_v3 = vld.sshfl [vmem:[#allocation1] sm:$0xff pattern:$0x73625140] }
0x2ffd   :  { %4393 = vrot.lane.b32.xlu2 %v4392_v3, %s7385_s9 }
0x302a   :  { %v4387_v5 = vpop.permute.xlu0 %4386 }
0x302b   :  { %v4389_v29 = vmul.f32 %v4387_v5, %v4370_v12 }
0x302d   :  { %4419 = vst [vmem:[#allocation1] ss:$4 sm:$0xff] %v4389_v29 }
0x3034   :  { %v4420_v1 = vld.sshfl [vmem:[#allocation1] sm:$0xff pattern:$0x73625140] }
0x3035   :  { %4421 = vrot.lane.b32.xlu1 %v4420_v1, %s7385_s9 }
0x3057   :  { %v4394_v11 = vpop.permute.xlu2 %4393 }
0x3058   :  { %6464 = vmatmul.msk.f32.vlgmr.msra.gmra.mxu2 %vm3472_vm11, %v4394_v11 }
0x30a7   :  { %v4422_v56 = vpop.permute.xlu1 %4421 }
0x30a8   :  { %6465 = vmatmul.msk.f32.vlgmr.msra.gmra.mxu3 %vm3472_vm11, %v4422_v56 }
0x30db   :  { %v4414_v14 = vpop.f32.mrf.mxu2 }
0x30dc   :  { %v4417_v24 = vadd.f32 %v4414_v14, %v3453_v58 }
0x30de   :  { %6941 = vtanh.f32 %v4417_v24  ;;  %v6466_v6 = vmul.f32 -1.442695, %v4417_v24  ;;  %v8937_v24 = vld [vmem:[#allocation17] sm:$0xff] }
0x30df   :  { %4632 = vmatpush.msrb.mxu1 %v8937_v24  ;;  %4703 = vmatpush.msrb.mxu2 %v8937_v24 }
0x30e0   :  { %6943 = vpow2.f32 %v6466_v6  ;;  %4775 = vmatpush.msrb.mxu3 %v8937_v24 }
0x30e1   :  { %4844 = vmatpush.msra.mxu1 %v8918_v63  ;;  %4916 = vmatpush.msra.mxu2 %v8918_v63 }
0x30e2   :  { %4988 = vmatpush.msra.mxu3 %v8918_v63 }
0x30e3   :  { %4845 = vmatpush.msra.mxu1 %v8921_v0  ;;  %4917 = vmatpush.msra.mxu2 %v8921_v0 }
0x30e4   :  { %v6942_v53 = vpop.eup %6941  ;;  %4989 = vmatpush.msra.mxu3 %v8921_v0 }
0x30e5   :  { %4470 = vrot.lane.b32.xlu1 %v6942_v53, %s7384_s11  ;;  %v7387_v53 = vmov 0.0   ;;  %4846 = vmatpush.msra.mxu1 %v8923_v48 }
0x30e6   :  { %v6944_v9 = vpop.eup %6943  ;;  %4633 = vmatmul.f32.vlgmr.msrb.gmra.mxu1 %v7387_v53  ;;  %4918 = vmatpush.msra.mxu2 %v8923_v48 }
0x30e7   :  { %v4451_v17 = vadd.f32 1.0, %v6944_v9  ;;  %4990 = vmatpush.msra.mxu3 %v8923_v48  ;;  %4847 = vmatpush.msra.mxu1 %v8937_v24 }
0x30e8   :  { %4919 = vmatpush.msra.mxu2 %v8937_v24 }
0x30e9   :  { %v4463_v40 = vand.u32 2147483648, %v4451_v17  ;;  %vm4457_vm14 = vweird.f32 %v4451_v17  ;;  %v4461_v23 = vand.u32 2147483647, %v4451_v17  ;;  %4991 = vmatpush.msra.mxu3 %v8937_v24  ;;  %5060 = vmatpush.msrb.mxu1 %v8918_v63 }
0x30eb   :  { %v4464_v10 = vor.u32 1.1754944e-38, %v4463_v40  ;;  %vm4462_vm2 = vcmp.eq.f32.partialorder %v4461_v23, 8.507059e+37  ;;  %5061 = vmatpush.msrb.mxu1 %v8921_v0 }
0x30ed   :  { %5062 = vmatpush.msrb.mxu1 %v8923_v48 }
0x30ef   :  { %5063 = vmatpush.msrb.mxu1 %v8937_v24 }
0x312b   :  { %v4442_v34 = vpop.f32.mrf.mxu3 }
0x312c   :  { %v4447_v61 = vadd.f32 %v4445_v30, %v4442_v34  ;;  %v8963_v30 = vld [vmem:[%s9477_s16] ss:$0 sm:$0xff] }
0x312e   :  { %6945 = vtanh.f32 %v4447_v61  ;;  %v6467_v26 = vmul.f32 -1.442695, %v4447_v61 }
0x312f   :  { %6947 = vrcp.f32 %v4451_v17 }
0x3130   :  { %6949 = vpow2.f32 %v6467_v26 }
0x3134   :  { %v6946_v16 = vpop.eup %6945 }
0x3135   :  { %4507 = vrot.lane.b32.xlu0 %v6946_v16, %s7384_s11  ;;  %v6948_v52 = vpop.eup %6947 }
0x3136   :  { %v4453_v8 = vmul.f32 %v6948_v52, %v4451_v17  ;;  %vm4458_vm13 = vweird.f32 %v6948_v52  ;;  %v6950_v54 = vpop.eup %6949 }
0x3137   :  { %vm4459_vm1 = vmor %vm4457_vm14, %vm4458_vm13  ;;  %v4488_v4 = vadd.f32 1.0, %v6950_v54 }
0x3138   :  { %v4454_v18 = vsub.f32 1.0, %v4453_v8 }
0x3139   :  { %6951 = vrcp.f32 %v4488_v4  ;;  %v4500_v38 = vand.u32 2147483648, %v4488_v4  ;;  %vm4494_vm8 = vweird.f32 %v4488_v4  ;;  %v4498_v32 = vand.u32 2147483647, %v4488_v4 }
0x313a   :  { %v4455_v39 = vmul.f32 %v6948_v52, %v4454_v18 }
0x313b   :  { %v4501_v21 = vor.u32 1.1754944e-38, %v4500_v38  ;;  %vm4499_vm10 = vcmp.eq.f32.partialorder %v4498_v32, 8.507059e+37 }
0x313c   :  { %v4456_v19 = vadd.f32 %v6948_v52, %v4455_v39 }
0x313e   :  { %v4460_v45 = vsel %vm4459_vm1, %v6948_v52, %v4456_v19 }
0x313f   :  { %v8905_v31 = vsel %vm4462_vm2, %v4464_v10, %v4460_v45  ;;  %v6952_v50 = vpop.eup %6951 }
0x3140   :  { %v4490_v22 = vmul.f32 %v6952_v50, %v4488_v4  ;;  %vm4495_vm7 = vweird.f32 %v6952_v50  ;;  %v4468_v60 = vmul.f32 %v8905_v31, %v8889_v46 }
0x3141   :  { %vm4496_vm9 = vmor %vm4494_vm8, %vm4495_vm7 }
0x3142   :  { %v4491_v36 = vsub.f32 1.0, %v4490_v22 }
0x3144   :  { %v4492_v37 = vmul.f32 %v6952_v50, %v4491_v36 }
0x3146   :  { %v4493_v25 = vadd.f32 %v6952_v50, %v4492_v37 }
0x3148   :  { %v4497_v20 = vsel %vm4496_vm9, %v6952_v50, %v4493_v25 }
0x3149   :  { %v4502_v55 = vsel %vm4499_vm10, %v4501_v21, %v4497_v20 }
0x314a   :  { %v4505_v47 = vmul.f32 %v4502_v55, %v8894_v27  ;;  %v4545_v27 = vld [vmem:[#allocation16 + $0x8] sm:$0xff] }
0x314b   :  { %4591 = vmatpush.msrb.mxu0 %v4545_v27 }
0x314d   :  { %4592 = vmatpush.msrb.mxu0 %v4544_v2 }
0x3157   :  { %v4471_v49 = vpop.permute.xlu1 %4470 }
0x3158   :  { %v4473_v7 = vmul.f32 %v4471_v49, %v8905_v31 }
0x315a   :  { %4475 = vrot.lane.b32.xlu0 %v4473_v7, %s7385_s9 }
0x3162   :  { %4527 = vrot.lane.b32.xlu0 %v4525_v44, %s7386_s30 }
0x3163   :  { %v4634_v61 = vpop.f32.mrf.mxu1 }
0x31a7   :  { %v4508_v41 = vpop.permute.xlu0 %4507 }
0x31a8   :  { %v4510_v59 = vmul.f32 %v4508_v41, %v4502_v55 }
0x31aa   :  { %4512 = vrot.lane.b32.xlu2 %v4510_v59, %s7385_s9 }
0x31cc   :  { %v4476_v28 = vpop.permute.xlu0 %4475 }
0x31cd   :  { %v4478_v51 = vadd.f32 %v4476_v28, %v4468_v60 }
0x31cf   :  { %6953 = vtanh.f32 %v4478_v51 }
0x31d4   :  { %v4528_v5 = vpop.permute.xlu0 %4527 }
0x31d5   :  { %v6954_v33 = vpop.eup %6953 }
0x31d6   :  { %4481 = vrot.lane.b32.xlu2 %v6954_v33, %s7384_s11 }
0x3204   :  { %v4513_v57 = vpop.permute.xlu2 %4512 }
0x3205   :  { %v4515_v35 = vadd.f32 %v4513_v57, %v4505_v47 }
0x3207   :  { %6955 = vtanh.f32 %v4515_v35 }
0x320d   :  { %v6956_v12 = vpop.eup %6955 }
0x320e   :  { %4518 = vrot.lane.b32.xlu1 %v6956_v12, %s7384_s11 }
0x3230   :  { %v4482_v3 = vpop.permute.xlu2 %4481 }
0x3231   :  { %v4484_v1 = vmul.f32 %v4482_v3, %v8905_v31 }
0x3280   :  { %v4519_v42 = vpop.permute.xlu1 %4518 }
0x3281   :  { %v4521_v62 = vmul.f32 %v4519_v42, %v4502_v55 }
0x3283   :  { %v4522_v13 = vmul.f32 0.5, %v4521_v62 }
0x3285   :  { %v4523_v46 = vmul.f32 1.442695, %v4522_v13 }
0x3287   :  { %6957 = vpow2.f32 %v4523_v46 }
0x328d   :  { %v6958_v29 = vpop.eup %6957 }
0x328e   :  { %v4530_v11 = vmul.f32 %v6958_v29, %v4528_v5 }
0x3290   :  { %v4531_v56 = vadd.f32 %v4530_v11, %v4484_v1 }
0x3292   :  { %4533 = vst [vmem:[#allocation1] ss:$4 sm:$0xff] %v4531_v56 }
0x3293   :  { %4560 = vst [vmem:[#allocation1 + $0x20] ss:$4 sm:$0xff] %v4531_v56 }
0x3294   :  { %4562 = vst [vmem:[#allocation1 + $0x21] ss:$4 sm:$0xff] %v4531_v56 }
0x3295   :  { %4564 = vst [vmem:[#allocation1 + $0x22] ss:$4 sm:$0xff] %v4531_v56 }
0x3296   :  { %4566 = vst [vmem:[#allocation1 + $0x23] ss:$4 sm:$0xff] %v4531_v56 }
0x3299   :  { %v8934_v58 = vld.sshfl [vmem:[#allocation1] sm:$0xff pattern:$0x73625140] }
0x329a   :  { %4552 = vst [vmem:[#allocation1] ss:$4 sm:$0xff] %v4531_v56 }
0x329b   :  { %4554 = vst [vmem:[#allocation1 + $0x1] ss:$4 sm:$0xff] %v4531_v56 }
0x329c   :  { %4556 = vst [vmem:[#allocation1 + $0x2] ss:$4 sm:$0xff] %v4531_v56 }
0x329d   :  { %4558 = vst [vmem:[#allocation1 + $0x3] ss:$4 sm:$0xff] %v4531_v56 }
0x32a4   :  { %v4567_v14 = vld.sshfl [vmem:[#allocation1] sm:$0xff pattern:$0x73625140] }
0x32a5   :  { %4569 = vrot.lane.b32.xlu1 %v4567_v14, %s7385_s9 }
0x3317   :  { %v4570_v6 = vpop.permute.xlu1 %4569 }
0x3318   :  { %6468 = vmatmul.msk.f32.vlgmr.msrb.gmra.mxu0 %vm3472_vm11, %v4570_v6 }
0x3395   :  { %v4594_v34 = vpop.f32.mrf.mxu0 }
0x3396   :  { %v8966_v9 = vadd.f32 %v8963_v30, %v4594_v34 }
0x3398   :  { %v4637_v16 = vadd.f32 %v4634_v61, %v8966_v9  ;;  %v4602_v41 = vrot.slane %v8966_v9, 2  ;;  %v4603_v34 = vrot.slane %v8966_v9, 4 }
0x339a   :  { %6959 = vtanh.f32 %v4637_v16  ;;  %v6470_v52 = vmul.f32 -1.442695, %v4637_v16 }
0x339c   :  { %6961 = vpow2.f32 %v6470_v52 }
0x33a0   :  { %v6960_v17 = vpop.eup %6959 }
0x33a1   :  { %4660 = vrot.lane.b32.xlu2 %v6960_v17, %s7384_s11 }
0x33a2   :  { %v6962_v8 = vpop.eup %6961 }
0x33a3   :  { %v4641_v18 = vadd.f32 1.0, %v6962_v8 }
0x33a5   :  { %6963 = vrcp.f32 %v4641_v18  ;;  %v4653_v10 = vand.u32 2147483648, %v4641_v18  ;;  %vm4647_vm13 = vweird.f32 %v4641_v18  ;;  %v4651_v31 = vand.u32 2147483647, %v4641_v18 }
0x33a7   :  { %v4654_v7 = vor.u32 1.1754944e-38, %v4653_v10  ;;  %vm4652_vm1 = vcmp.eq.f32.partialorder %v4651_v31, 8.507059e+37 }
0x33ab   :  { %v6964_v39 = vpop.eup %6963 }
0x33ac   :  { %v4643_v19 = vmul.f32 %v6964_v39, %v4641_v18  ;;  %vm4648_vm12 = vweird.f32 %v6964_v39 }
0x33ad   :  { %vm4649_vm14 = vmor %vm4647_vm13, %vm4648_vm12 }
0x33ae   :  { %v4644_v40 = vsub.f32 1.0, %v4643_v19 }
0x33b0   :  { %v4645_v23 = vmul.f32 %v6964_v39, %v4644_v40 }
0x33b2   :  { %v4646_v45 = vadd.f32 %v6964_v39, %v4645_v23 }
0x33b4   :  { %v4650_v49 = vsel %vm4649_vm14, %v6964_v39, %v4646_v45 }
0x33b5   :  { %v4655_v54 = vsel %vm4652_vm1, %v4654_v7, %v4650_v49 }
0x33b6   :  { %v4658_v50 = vmul.f32 0.0, %v4655_v54 }
0x33fb   :  { %v4661_v26 = vpop.permute.xlu2 %4660 }
0x33fc   :  { %v4663_v4 = vmul.f32 %v4661_v26, %v4655_v54 }
0x33fe   :  { %4665 = vrot.lane.b32.xlu0 %v4663_v4, %s7385_s9 }
0x3470   :  { %v4666_v22 = vpop.permute.xlu0 %4665 }
0x3471   :  { %v4668_v36 = vadd.f32 %v4666_v22, %v4658_v50 }
0x3473   :  { %6965 = vtanh.f32 %v4668_v36 }
0x3479   :  { %v6966_v37 = vpop.eup %6965 }
0x347a   :  { %4671 = vrot.lane.b32.xlu1 %v6966_v37, %s7384_s11 }
0x34ec   :  { %v4672_v25 = vpop.permute.xlu1 %4671 }
0x34ed   :  { %v4674_v38 = vmul.f32 %v4672_v25, %v4655_v54 }
0x34ef   :  { %4676 = vst [vmem:[#allocation1] ss:$4 sm:$0xff] %v4674_v38 }
0x34f6   :  { %v8972_v32 = vld.sshfl [vmem:[#allocation1] sm:$0xff pattern:$0x73625140] }
0x34f7   :  { %4682 = vst [vmem:[#allocation1] ss:$4 sm:$0xff] %v4674_v38 }
0x34fe   :  { %v4683_v20 = vld.sshfl [vmem:[#allocation1] sm:$0xff pattern:$0x73625140] }
0x34ff   :  { %4684 = vrot.lane.b32.xlu2 %v4683_v20, %s7385_s9 }
0x3559   :  { %v4685_v21 = vpop.permute.xlu2 %4684 }
0x355a   :  { %6471 = vmatmul.msk.f32.vlgmr.msrb.gmra.mxu2 %vm3472_vm11, %v4685_v21 }
0x35dd   :  { %v4705_v55 = vpop.f32.mrf.mxu2 }
0x35de   :  { %v4708_v59 = vadd.f32 %v4705_v55, %v4602_v41  ;;  %v4604_v55 = vrot.slane %v8966_v9, 6 }
0x35e0   :  { %6967 = vtanh.f32 %v4708_v59  ;;  %v6472_v28 = vmul.f32 -1.442695, %v4708_v59 }
0x35e2   :  { %6969 = vpow2.f32 %v6472_v28 }
0x35e6   :  { %v6968_v60 = vpop.eup %6967 }
0x35e7   :  { %4731 = vrot.lane.b32.xlu0 %v6968_v60, %s7384_s11 }
0x35e8   :  { %v6970_v51 = vpop.eup %6969 }
0x35e9   :  { %v4712_v33 = vadd.f32 1.0, %v6970_v51 }
0x35eb   :  { %6971 = vrcp.f32 %v4712_v33  ;;  %v4724_v42 = vand.u32 2147483648, %v4712_v33  ;;  %vm4718_vm7 = vweird.f32 %v4712_v33  ;;  %v4722_v62 = vand.u32 2147483647, %v4712_v33 }
0x35ed   :  { %v4725_v46 = vor.u32 1.1754944e-38, %v4724_v42  ;;  %vm4723_vm9 = vcmp.eq.f32.partialorder %v4722_v62, 8.507059e+37 }
0x35f1   :  { %v6972_v44 = vpop.eup %6971 }
0x35f2   :  { %v4714_v47 = vmul.f32 %v6972_v44, %v4712_v33  ;;  %vm4719_vm2 = vweird.f32 %v6972_v44 }
0x35f3   :  { %vm4720_vm8 = vmor %vm4718_vm7, %vm4719_vm2 }
0x35f4   :  { %v4715_v57 = vsub.f32 1.0, %v4714_v47 }
0x35f6   :  { %v4716_v35 = vmul.f32 %v6972_v44, %v4715_v57 }
0x35f8   :  { %v4717_v12 = vadd.f32 %v6972_v44, %v4716_v35 }
0x35fa   :  { %v4721_v13 = vsel %vm4720_vm8, %v6972_v44, %v4717_v12 }
0x35fb   :  { %v4726_v15 = vsel %vm4723_vm9, %v4725_v46, %v4721_v13  ;;  %v4568_v46 = vld.sshfl [vmem:[#allocation1 + $0x20] sm:$0xff pattern:$0x73625140] }
0x35fc   :  { %v4729_v2 = vmul.f32 %v4726_v15, %v4668_v36 }
0x3659   :  { %v4732_v43 = vpop.permute.xlu0 %4731 }
0x365a   :  { %v4734_v27 = vmul.f32 %v4732_v43, %v4726_v15 }
0x365c   :  { %4736 = vrot.lane.b32.xlu1 %v4734_v27, %s7385_s9 }
0x36ce   :  { %v4737_v3 = vpop.permute.xlu1 %4736 }
0x36cf   :  { %v4739_v5 = vadd.f32 %v4737_v3, %v4729_v2 }
0x36d1   :  { %6973 = vtanh.f32 %v4739_v5 }
0x36d7   :  { %v6974_v29 = vpop.eup %6973 }
0x36d8   :  { %4742 = vrot.lane.b32.xlu2 %v6974_v29, %s7384_s11 }
0x3732   :  { %v4743_v1 = vpop.permute.xlu2 %4742 }
0x3733   :  { %v4745_v11 = vmul.f32 %v4743_v1, %v4726_v15 }
0x3735   :  { %4747 = vst [vmem:[#allocation1] ss:$4 sm:$0xff] %v4745_v11 }
0x373c   :  { %v8980_v56 = vld.sshfl [vmem:[#allocation1] sm:$0xff pattern:$0x73625140] }
0x373d   :  { %4754 = vst [vmem:[#allocation1] ss:$4 sm:$0xff] %v4745_v11 }
0x3744   :  { %v4755_v14 = vld.sshfl [vmem:[#allocation1] sm:$0xff pattern:$0x73625140] }
0x3745   :  { %4756 = vrot.lane.b32.xlu0 %v4755_v14, %s7385_s9 }
0x37b7   :  { %v4757_v6 = vpop.permute.xlu0 %4756 }
0x37b8   :  { %6473 = vmatmul.msk.f32.vlgmr.msrb.gmra.mxu3 %vm3472_vm11, %v4757_v6 }
0x383b   :  { %v4777_v61 = vpop.f32.mrf.mxu3 }
0x383c   :  { %v4780_v16 = vadd.f32 %v4777_v61, %v4603_v34 }
0x383e   :  { %6975 = vtanh.f32 %v4780_v16  ;;  %v6474_v52 = vmul.f32 -1.442695, %v4780_v16 }
0x3840   :  { %6977 = vpow2.f32 %v6474_v52 }
0x3844   :  { %v6976_v17 = vpop.eup %6975 }
0x3845   :  { %4803 = vrot.lane.b32.xlu1 %v6976_v17, %s7384_s11 }
0x3846   :  { %v6978_v8 = vpop.eup %6977 }
0x3847   :  { %v4784_v18 = vadd.f32 1.0, %v6978_v8 }
0x3849   :  { %6979 = vrcp.f32 %v4784_v18  ;;  %v4796_v10 = vand.u32 2147483648, %v4784_v18  ;;  %vm4790_vm12 = vweird.f32 %v4784_v18  ;;  %v4794_v31 = vand.u32 2147483647, %v4784_v18 }
0x384b   :  { %v4797_v7 = vor.u32 1.1754944e-38, %v4796_v10  ;;  %vm4795_vm14 = vcmp.eq.f32.partialorder %v4794_v31, 8.507059e+37 }
0x384f   :  { %v6980_v39 = vpop.eup %6979 }
0x3850   :  { %v4786_v19 = vmul.f32 %v6980_v39, %v4784_v18  ;;  %vm4791_vm10 = vweird.f32 %v6980_v39 }
0x3851   :  { %vm4792_vm13 = vmor %vm4790_vm12, %vm4791_vm10 }
0x3852   :  { %v4787_v40 = vsub.f32 1.0, %v4786_v19 }
0x3854   :  { %v4788_v23 = vmul.f32 %v6980_v39, %v4787_v40 }
0x3856   :  { %v4789_v45 = vadd.f32 %v6980_v39, %v4788_v23 }
0x3858   :  { %v4793_v49 = vsel %vm4792_vm13, %v6980_v39, %v4789_v45 }
0x3859   :  { %v4798_v54 = vsel %vm4795_vm14, %v4797_v7, %v4793_v49 }
0x385a   :  { %v4801_v50 = vmul.f32 %v4798_v54, %v4739_v5 }
0x38b7   :  { %v4804_v26 = vpop.permute.xlu1 %4803 }
0x38b8   :  { %v4806_v4 = vmul.f32 %v4804_v26, %v4798_v54 }
0x38ba   :  { %4808 = vrot.lane.b32.xlu2 %v4806_v4, %s7385_s9 }
0x3914   :  { %v4809_v22 = vpop.permute.xlu2 %4808 }
0x3915   :  { %v4811_v36 = vadd.f32 %v4809_v22, %v4801_v50 }
0x3917   :  { %6981 = vtanh.f32 %v4811_v36 }
0x391d   :  { %v6982_v37 = vpop.eup %6981 }
0x391e   :  { %4814 = vrot.lane.b32.xlu0 %v6982_v37, %s7384_s11 }
0x3990   :  { %v4815_v25 = vpop.permute.xlu0 %4814 }
0x3991   :  { %v4817_v38 = vmul.f32 %v4815_v25, %v4798_v54 }
0x3993   :  { %4819 = vst [vmem:[#allocation1] ss:$4 sm:$0xff] %v4817_v38 }
0x399a   :  { %v8988_v20 = vld.sshfl [vmem:[#allocation1] sm:$0xff pattern:$0x73625140] }
0x399b   :  { %4826 = vst [vmem:[#allocation1] ss:$4 sm:$0xff] %v4817_v38 }
0x39a2   :  { %v4827_v21 = vld.sshfl [vmem:[#allocation1] sm:$0xff pattern:$0x73625140] }
0x39a3   :  { %4828 = vrot.lane.b32.xlu1 %v4827_v21, %s7385_s9 }
0x3a15   :  { %v4829_v41 = vpop.permute.xlu1 %4828 }
0x3a16   :  { %6475 = vmatmul.msk.f32.vlgmr.msra.gmra.mxu1 %vm3472_vm11, %v4829_v41 }
0x3a17   :  { %5132 = vmatpush.msra.mxu1 %v8918_v63 }
0x3a19   :  { %5133 = vmatpush.msra.mxu1 %v8921_v0 }
0x3a1b   :  { %5134 = vmatpush.msra.mxu1 %v8923_v48 }
0x3a1d   :  { %5135 = vmatpush.msra.mxu1 %v8937_v24 }
0x3a93   :  { %v4849_v59 = vpop.f32.mrf.mxu1 }
0x3a94   :  { %v4852_v60 = vadd.f32 %v4849_v59, %v4604_v55 }
0x3a96   :  { %6983 = vtanh.f32 %v4852_v60  ;;  %v6476_v51 = vmul.f32 -1.442695, %v4852_v60 }
0x3a98   :  { %6985 = vpow2.f32 %v6476_v51 }
0x3a9c   :  { %v6984_v28 = vpop.eup %6983 }
0x3a9d   :  { %4875 = vrot.lane.b32.xlu2 %v6984_v28, %s7384_s11 }
0x3a9e   :  { %v6986_v33 = vpop.eup %6985 }
0x3a9f   :  { %v4856_v44 = vadd.f32 1.0, %v6986_v33 }
0x3aa1   :  { %6987 = vrcp.f32 %v4856_v44  ;;  %v4868_v24 = vand.u32 2147483648, %v4856_v44  ;;  %vm4862_vm2 = vweird.f32 %v4856_v44  ;;  %v4866_v9 = vand.u32 2147483647, %v4856_v44 }
0x3aa3   :  { %v4869_v12 = vor.u32 1.1754944e-38, %v4868_v24  ;;  %vm4867_vm8 = vcmp.eq.f32.partialorder %v4866_v9, 8.507059e+37 }
0x3aa7   :  { %v6988_v63 = vpop.eup %6987 }
0x3aa8   :  { %v4858_v47 = vmul.f32 %v6988_v63, %v4856_v44  ;;  %vm4863_vm1 = vweird.f32 %v6988_v63 }
0x3aa9   :  { %vm4864_vm7 = vmor %vm4862_vm2, %vm4863_vm1 }
0x3aaa   :  { %v4859_v0 = vsub.f32 1.0, %v4858_v47 }
0x3aac   :  { %v4860_v57 = vmul.f32 %v6988_v63, %v4859_v0 }
0x3aae   :  { %v4861_v48 = vadd.f32 %v6988_v63, %v4860_v57 }
0x3ab0   :  { %v4865_v35 = vsel %vm4864_vm7, %v6988_v63, %v4861_v48 }
0x3ab1   :  { %v4870_v62 = vsel %vm4867_vm8, %v4869_v12, %v4865_v35 }
0x3ab2   :  { %v4873_v43 = vmul.f32 %v4870_v62, %v4811_v36 }
0x3af7   :  { %v4876_v42 = vpop.permute.xlu2 %4875 }
0x3af8   :  { %v4878_v13 = vmul.f32 %v4876_v42, %v4870_v62 }
0x3afa   :  { %4880 = vrot.lane.b32.xlu0 %v4878_v13, %s7385_s9 }
0x3b02   :  { %4571 = vrot.lane.b32.xlu0 %v4568_v46, %s7385_s9 }
0x3b6c   :  { %v4881_v15 = vpop.permute.xlu0 %4880 }
0x3b6d   :  { %v4883_v27 = vadd.f32 %v4881_v15, %v4873_v43 }
0x3b6f   :  { %6989 = vtanh.f32 %v4883_v27 }
0x3b74   :  { %v4572_v2 = vpop.permute.xlu0 %4571 }
0x3b75   :  { %v6990_v3 = vpop.eup %6989  ;;  %6469 = vmatmul.msk.f32.gmra.mxu0 %vm3472_vm11, %v4572_v2 }
0x3b76   :  { %4886 = vrot.lane.b32.xlu1 %v6990_v3, %s7384_s11 }
0x3be8   :  { %v4887_v5 = vpop.permute.xlu1 %4886 }
0x3be9   :  { %v4889_v29 = vmul.f32 %v4887_v5, %v4870_v62 }
0x3beb   :  { %4891 = vst [vmem:[#allocation1] ss:$4 sm:$0xff] %v4889_v29 }
0x3bf2   :  { %v9002_v1 = vld.sshfl [vmem:[#allocation1] sm:$0xff pattern:$0x73625140]  ;;  %v4597_v6 = vpop.f32.mrf.mxu0 }
0x3bf3   :  { %4898 = vst [vmem:[#allocation1] ss:$4 sm:$0xff] %v4889_v29  ;;  %v9007_v34 = vadd.f32 %v8963_v30, %v4597_v6 }
0x3bf5   :  { %v4605_v55 = vrot.slane %v9007_v34, 2 }
0x3bfa   :  { %v4899_v11 = vld.sshfl [vmem:[#allocation1] sm:$0xff pattern:$0x73625140] }
0x3bfb   :  { %4900 = vrot.lane.b32.xlu2 %v4899_v11, %s7385_s9 }
0x3c55   :  { %v4901_v14 = vpop.permute.xlu2 %4900 }
0x3c56   :  { %6477 = vmatmul.msk.f32.vlgmr.msra.gmra.mxu2 %vm3472_vm11, %v4901_v14  ;;  %v4606_v14 = vrot.slane %v9007_v34, 4 }
0x3cd9   :  { %v4921_v61 = vpop.f32.mrf.mxu2 }
0x3cda   :  { %v4924_v16 = vadd.f32 %v4921_v61, %v9007_v34 }
0x3cdc   :  { %6991 = vtanh.f32 %v4924_v16  ;;  %v6478_v52 = vmul.f32 -1.442695, %v4924_v16 }
0x3cde   :  { %6993 = vpow2.f32 %v6478_v52 }
0x3ce2   :  { %v6992_v17 = vpop.eup %6991 }
0x3ce3   :  { %4947 = vrot.lane.b32.xlu1 %v6992_v17, %s7384_s11 }
0x3ce4   :  { %v6994_v8 = vpop.eup %6993 }
0x3ce5   :  { %v4928_v18 = vadd.f32 1.0, %v6994_v8 }
0x3ce7   :  { %6995 = vrcp.f32 %v4928_v18  ;;  %v4940_v30 = vand.u32 2147483648, %v4928_v18  ;;  %vm4934_vm10 = vweird.f32 %v4928_v18  ;;  %v4938_v10 = vand.u32 2147483647, %v4928_v18 }
0x3ce9   :  { %v4941_v49 = vor.u32 1.1754944e-38, %v4940_v30  ;;  %vm4939_vm13 = vcmp.eq.f32.partialorder %v4938_v10, 8.507059e+37 }
0x3ced   :  { %v6996_v39 = vpop.eup %6995 }
0x3cee   :  { %v4930_v19 = vmul.f32 %v6996_v39, %v4928_v18  ;;  %vm4935_vm9 = vweird.f32 %v6996_v39 }
0x3cef   :  { %vm4936_vm12 = vmor %vm4934_vm10, %vm4935_vm9 }
0x3cf0   :  { %v4931_v40 = vsub.f32 1.0, %v4930_v19 }
0x3cf2   :  { %v4932_v23 = vmul.f32 %v6996_v39, %v4931_v40 }
0x3cf4   :  { %v4933_v45 = vadd.f32 %v6996_v39, %v4932_v23 }
0x3cf6   :  { %v4937_v31 = vsel %vm4936_vm12, %v6996_v39, %v4933_v45 }
0x3cf7   :  { %v4942_v26 = vsel %vm4939_vm13, %v4941_v49, %v4937_v31 }
0x3cf8   :  { %v4945_v4 = vmul.f32 %v4942_v26, %v4883_v27 }
0x3d55   :  { %v4948_v7 = vpop.permute.xlu1 %4947 }
0x3d56   :  { %v4950_v54 = vmul.f32 %v4948_v7, %v4942_v26 }
0x3d58   :  { %4952 = vrot.lane.b32.xlu2 %v4950_v54, %s7385_s9 }
0x3db2   :  { %v4953_v50 = vpop.permute.xlu2 %4952 }
0x3db3   :  { %v4955_v22 = vadd.f32 %v4953_v50, %v4945_v4 }
0x3db5   :  { %6997 = vtanh.f32 %v4955_v22 }
0x3dbb   :  { %v6998_v36 = vpop.eup %6997 }
0x3dbc   :  { %4958 = vrot.lane.b32.xlu0 %v6998_v36, %s7384_s11 }
0x3e2e   :  { %v4959_v37 = vpop.permute.xlu0 %4958 }
0x3e2f   :  { %v4961_v25 = vmul.f32 %v4959_v37, %v4942_v26 }
0x3e31   :  { %4963 = vst [vmem:[#allocation1] ss:$4 sm:$0xff] %v4961_v25 }
0x3e38   :  { %v9013_v38 = vld.sshfl [vmem:[#allocation1] sm:$0xff pattern:$0x73625140] }
0x3e39   :  { %4970 = vst [vmem:[#allocation1] ss:$4 sm:$0xff] %v4961_v25 }
0x3e40   :  { %v4971_v21 = vld.sshfl [vmem:[#allocation1] sm:$0xff pattern:$0x73625140] }
0x3e41   :  { %4972 = vrot.lane.b32.xlu1 %v4971_v21, %s7385_s9 }
0x3eb3   :  { %v4973_v41 = vpop.permute.xlu1 %4972 }
0x3eb4   :  { %6479 = vmatmul.msk.f32.vlgmr.msra.gmra.mxu3 %vm3472_vm11, %v4973_v41 }
0x3f37   :  { %v4993_v59 = vpop.f32.mrf.mxu3 }
0x3f38   :  { %v4996_v60 = vadd.f32 %v4993_v59, %v4605_v55  ;;  %v4607_v55 = vrot.slane %v9007_v34, 6 }
0x3f3a   :  { %6999 = vtanh.f32 %v4996_v60  ;;  %v6480_v51 = vmul.f32 -1.442695, %v4996_v60 }
0x3f3c   :  { %7001 = vpow2.f32 %v6480_v51 }
0x3f40   :  { %v7000_v28 = vpop.eup %6999 }
0x3f41   :  { %5019 = vrot.lane.b32.xlu2 %v7000_v28, %s7384_s11 }
0x3f42   :  { %v7002_v33 = vpop.eup %7001 }
0x3f43   :  { %v5000_v44 = vadd.f32 1.0, %v7002_v33 }
0x3f45   :  { %7003 = vrcp.f32 %v5000_v44  ;;  %v5012_v24 = vand.u32 2147483648, %v5000_v44  ;;  %vm5006_vm1 = vweird.f32 %v5000_v44  ;;  %v5010_v9 = vand.u32 2147483647, %v5000_v44 }
0x3f47   :  { %v5013_v12 = vor.u32 1.1754944e-38, %v5012_v24  ;;  %vm5011_vm7 = vcmp.eq.f32.partialorder %v5010_v9, 8.507059e+37 }
0x3f4b   :  { %v7004_v63 = vpop.eup %7003 }
0x3f4c   :  { %v5002_v47 = vmul.f32 %v7004_v63, %v5000_v44  ;;  %vm5007_vm14 = vweird.f32 %v7004_v63 }
0x3f4d   :  { %vm5008_vm2 = vmor %vm5006_vm1, %vm5007_vm14 }
0x3f4e   :  { %v5003_v0 = vsub.f32 1.0, %v5002_v47 }
0x3f50   :  { %v5004_v57 = vmul.f32 %v7004_v63, %v5003_v0 }
0x3f52   :  { %v5005_v48 = vadd.f32 %v7004_v63, %v5004_v57 }
0x3f54   :  { %v5009_v35 = vsel %vm5008_vm2, %v7004_v63, %v5005_v48 }
0x3f55   :  { %v5014_v62 = vsel %vm5011_vm7, %v5013_v12, %v5009_v35  ;;  %vm4538_vm7 = vcmask 254976  }
0x3f56   :  { %v5017_v46 = vmul.f32 %v5014_v62, %v4955_v22 }
0x3f9b   :  { %v5020_v42 = vpop.permute.xlu2 %5019 }
0x3f9c   :  { %v5022_v13 = vmul.f32 %v5020_v42, %v5014_v62 }
0x3f9e   :  { %5024 = vrot.lane.b32.xlu0 %v5022_v13, %s7385_s9 }
0x4010   :  { %v5025_v43 = vpop.permute.xlu0 %5024 }
0x4011   :  { %v5027_v15 = vadd.f32 %v5025_v43, %v5017_v46 }
0x4013   :  { %7005 = vtanh.f32 %v5027_v15 }
0x4019   :  { %v7006_v27 = vpop.eup %7005 }
0x401a   :  { %5030 = vrot.lane.b32.xlu1 %v7006_v27, %s7384_s11 }
0x408c   :  { %v5031_v2 = vpop.permute.xlu1 %5030 }
0x408d   :  { %v5033_v3 = vmul.f32 %v5031_v2, %v5014_v62 }
0x408f   :  { %5035 = vst [vmem:[#allocation1] ss:$4 sm:$0xff] %v5033_v3 }
0x4096   :  { %v9021_v5 = vld.sshfl [vmem:[#allocation1] sm:$0xff pattern:$0x73625140] }
0x4097   :  { %5042 = vst [vmem:[#allocation1] ss:$4 sm:$0xff] %v5033_v3  ;;  %v5216_v3 = vld [vmem:[%s9478_s17 + $0x30] sm:$0xff] }
0x4098   :  { %5265 = vmatpush.msrb.mxu2 %v5216_v3 }
0x409e   :  { %v5043_v29 = vld.sshfl [vmem:[#allocation1] sm:$0xff pattern:$0x73625140] }
0x409f   :  { %5044 = vrot.lane.b32.xlu2 %v5043_v29, %s7385_s9  ;;  %v9061_v29 = vld [vmem:[#allocation19 + $0x78] sm:$0xff] }
0x40f9   :  { %v5045_v11 = vpop.permute.xlu2 %5044 }
0x40fa   :  { %6481 = vmatmul.msk.f32.vlgmr.msrb.gmra.mxu1 %vm3472_vm11, %v5045_v11  ;;  %v5215_v11 = vld [vmem:[%s9478_s17 + $0x28] sm:$0xff] }
0x40fb   :  { %5357 = vmatpush.msrb.mxu1 %v9061_v29 }
0x4177   :  { %v5065_v6 = vpop.f32.mrf.mxu1 }
0x4178   :  { %v5068_v61 = vadd.f32 %v5065_v6, %v4606_v14  ;;  %v9066_v14 = vld [vmem:[#allocation19 + $0x70] sm:$0xff]  ;;  %v9073_v6 = vld [vmem:[#allocation19 + $0x68] sm:$0xff] }
0x4179   :  { %5337 = vmatpush.msra.mxu0 %v9066_v14  ;;  %5358 = vmatpush.msrb.mxu1 %v9073_v6 }
0x417a   :  { %7007 = vtanh.f32 %v5068_v61  ;;  %v6482_v17 = vmul.f32 -1.442695, %v5068_v61  ;;  %v5213_v61 = vld [vmem:[%s9478_s17 + $0x18] sm:$0xff] }
0x417c   :  { %7009 = vpow2.f32 %v6482_v17  ;;  %v5212_v17 = vld [vmem:[%s9478_s17 + $0x10] sm:$0xff] }
0x4180   :  { %v7008_v16 = vpop.eup %7007 }
0x4181   :  { %5091 = vrot.lane.b32.xlu0 %v7008_v16, %s7384_s11  ;;  %v9078_v16 = vld [vmem:[#allocation19 + $0x60] sm:$0xff] }
0x4182   :  { %v7010_v52 = vpop.eup %7009  ;;  %5338 = vmatpush.msra.mxu0 %v9078_v16 }
0x4183   :  { %v5072_v8 = vadd.f32 1.0, %v7010_v52  ;;  %v9083_v52 = vld [vmem:[#allocation19 + $0x58] sm:$0xff] }
0x4184   :  { %5359 = vmatpush.msrb.mxu1 %v9083_v52 }
0x4185   :  { %7011 = vrcp.f32 %v5072_v8  ;;  %v5084_v45 = vand.u32 2147483648, %v5072_v8  ;;  %vm5078_vm9 = vweird.f32 %v5072_v8  ;;  %v5082_v30 = vand.u32 2147483647, %v5072_v8 }
0x4187   :  { %v5085_v31 = vor.u32 1.1754944e-38, %v5084_v45  ;;  %vm5083_vm12 = vcmp.eq.f32.partialorder %v5082_v30, 8.507059e+37  ;;  %v9104_v45 = vld [vmem:[#allocation19 + $0x30] sm:$0xff]  ;;  %v9108_v30 = vld [vmem:[#allocation19 + $0x28] sm:$0xff] }
0x418b   :  { %v7012_v18 = vpop.eup %7011 }
0x418c   :  { %v5074_v39 = vmul.f32 %v7012_v18, %v5072_v8  ;;  %vm5079_vm8 = vweird.f32 %v7012_v18  ;;  %v5211_v8 = vld [vmem:[%s9478_s17 + $0x8] sm:$0xff] }
0x418d   :  { %vm5080_vm10 = vmor %vm5078_vm9, %vm5079_vm8 }
0x418e   :  { %v5075_v19 = vsub.f32 1.0, %v5074_v39  ;;  %v5210_v39 = vld [vmem:[%s9478_s17] sm:$0xff] }
0x4190   :  { %v5076_v40 = vmul.f32 %v7012_v18, %v5075_v19  ;;  %v9095_v19 = vld [vmem:[#allocation19 + $0x48] sm:$0xff] }
0x4191   :  { %5360 = vmatpush.msrb.mxu1 %v9095_v19 }
0x4192   :  { %v5077_v23 = vadd.f32 %v7012_v18, %v5076_v40  ;;  %v9100_v40 = vld [vmem:[#allocation19 + $0x40] sm:$0xff] }
0x4194   :  { %v5081_v10 = vsel %vm5080_vm10, %v7012_v18, %v5077_v23  ;;  %v9090_v18 = vld [vmem:[#allocation19 + $0x50] sm:$0xff]  ;;  %v9102_v23 = vld [vmem:[#allocation19 + $0x38] sm:$0xff] }
0x4195   :  { %v5086_v7 = vsel %vm5083_vm12, %v5085_v31, %v5081_v10  ;;  %5339 = vmatpush.msra.mxu0 %v9090_v18  ;;  %5361 = vmatpush.msrb.mxu1 %v9102_v23  ;;  %v9112_v10 = vld [vmem:[#allocation19 + $0x20] sm:$0xff]  ;;  %v9116_v31 = vld [vmem:[#allocation19 + $0x18] sm:$0xff] }
0x4196   :  { %v5089_v54 = vmul.f32 %v5086_v7, %v5027_v15 }
0x4197   :  { %5340 = vmatpush.msra.mxu0 %v9100_v40  ;;  %5362 = vmatpush.msrb.mxu1 %v9108_v30 }
0x4199   :  { %5341 = vmatpush.msra.mxu0 %v9104_v45  ;;  %5363 = vmatpush.msrb.mxu1 %v9116_v31 }
0x419b   :  { %5342 = vmatpush.msra.mxu0 %v9112_v10 }
0x41f3   :  { %v5092_v49 = vpop.permute.xlu0 %5091 }
0x41f4   :  { %v5094_v26 = vmul.f32 %v5092_v49, %v5086_v7  ;;  %v9120_v49 = vld [vmem:[#allocation19 + $0x10] sm:$0xff] }
0x41f5   :  { %5343 = vmatpush.msra.mxu0 %v9120_v49 }
0x41f6   :  { %5096 = vrot.lane.b32.xlu1 %v5094_v26, %s7385_s9  ;;  %v9128_v26 = vld [vmem:[#allocation19] sm:$0xff] }
0x41f7   :  { %5344 = vmatpush.msra.mxu0 %v9128_v26 }
0x41f8   :  { %5345 = vmatmul.f32.vlgmr.msra.gmra.mxu0 %v7387_v53 }
0x41f9   :  { %5555 = vmatpush.msrb.mxu0 %v9066_v14 }
0x41fb   :  { %5556 = vmatpush.msrb.mxu0 %v9078_v16 }
0x41fd   :  { %5557 = vmatpush.msrb.mxu0 %v9090_v18 }
0x41ff   :  { %5558 = vmatpush.msrb.mxu0 %v9100_v40 }
0x4201   :  { %5559 = vmatpush.msrb.mxu0 %v9104_v45 }
0x4203   :  { %5560 = vmatpush.msrb.mxu0 %v9112_v10 }
0x4205   :  { %5561 = vmatpush.msrb.mxu0 %v9120_v49 }
0x4207   :  { %5562 = vmatpush.msrb.mxu0 %v9128_v26 }
0x4209   :  { %5773 = vmatpush.msra.mxu0 %v9066_v14 }
0x420b   :  { %5774 = vmatpush.msra.mxu0 %v9078_v16 }
0x420d   :  { %5775 = vmatpush.msra.mxu0 %v9090_v18 }
0x420f   :  { %5776 = vmatpush.msra.mxu0 %v9100_v40 }
0x4211   :  { %5777 = vmatpush.msra.mxu0 %v9104_v45 }
0x4213   :  { %5778 = vmatpush.msra.mxu0 %v9112_v10 }
0x4215   :  { %5779 = vmatpush.msra.mxu0 %v9120_v49 }
0x4217   :  { %5780 = vmatpush.msra.mxu0 %v9128_v26 }
0x4268   :  { %v5097_v4 = vpop.permute.xlu1 %5096 }
0x4269   :  { %v5099_v50 = vadd.f32 %v5097_v4, %v5089_v54 }
0x426b   :  { %7013 = vtanh.f32 %v5099_v50 }
0x4271   :  { %v7014_v22 = vpop.eup %7013 }
0x4272   :  { %5102 = vrot.lane.b32.xlu2 %v7014_v22, %s7384_s11 }
0x42cc   :  { %v5103_v36 = vpop.permute.xlu2 %5102 }
0x42cd   :  { %v5105_v37 = vmul.f32 %v5103_v36, %v5086_v7  ;;  %v9124_v7 = vld [vmem:[#allocation19 + $0x8] sm:$0xff] }
0x42ce   :  { %5364 = vmatpush.msrb.mxu1 %v9124_v7 }
0x42cf   :  { %5107 = vst [vmem:[#allocation1] ss:$4 sm:$0xff] %v5105_v37 }
0x42d6   :  { %v9029_v25 = vld.sshfl [vmem:[#allocation1] sm:$0xff pattern:$0x73625140] }
0x42d7   :  { %5114 = vst [vmem:[#allocation1] ss:$4 sm:$0xff] %v5105_v37 }
0x42de   :  { %v5115_v21 = vld.sshfl [vmem:[#allocation1] sm:$0xff pattern:$0x73625140] }
0x42df   :  { %5116 = vrot.lane.b32.xlu0 %v5115_v21, %s7385_s9 }
0x4351   :  { %v5117_v41 = vpop.permute.xlu0 %5116 }
0x4352   :  { %6483 = vmatmul.msk.f32.vlgmr.msra.gmra.mxu1 %vm3472_vm11, %v5117_v41 }
0x4353   :  { %5575 = vmatpush.msra.mxu1 %v9061_v29 }
0x4355   :  { %5576 = vmatpush.msra.mxu1 %v9073_v6 }
0x4357   :  { %5577 = vmatpush.msra.mxu1 %v9083_v52 }
0x4359   :  { %5578 = vmatpush.msra.mxu1 %v9095_v19 }
0x435a   :  { %5365 = vmatmul.f32.vlgmr.msrb.gmra.mxu1 %v7387_v53 }
0x435b   :  { %5579 = vmatpush.msra.mxu1 %v9102_v23 }
0x435d   :  { %5580 = vmatpush.msra.mxu1 %v9108_v30 }
0x435f   :  { %5581 = vmatpush.msra.mxu1 %v9116_v31 }
0x4361   :  { %5582 = vmatpush.msra.mxu1 %v9124_v7 }
0x4363   :  { %5793 = vmatpush.msrb.mxu1 %v9061_v29 }
0x4365   :  { %5794 = vmatpush.msrb.mxu1 %v9073_v6 }
0x4367   :  { %5795 = vmatpush.msrb.mxu1 %v9083_v52 }
0x4369   :  { %5796 = vmatpush.msrb.mxu1 %v9095_v19 }
0x436b   :  { %5797 = vmatpush.msrb.mxu1 %v9102_v23 }
0x436d   :  { %5798 = vmatpush.msrb.mxu1 %v9108_v30 }
0x436f   :  { %5799 = vmatpush.msrb.mxu1 %v9116_v31 }
0x4371   :  { %5800 = vmatpush.msrb.mxu1 %v9124_v7 }
0x43cf   :  { %v5137_v59 = vpop.f32.mrf.mxu1 }
0x43d0   :  { %v5140_v60 = vadd.f32 %v5137_v59, %v4607_v55 }
0x43d2   :  { %7015 = vtanh.f32 %v5140_v60  ;;  %v6484_v51 = vmul.f32 -1.442695, %v5140_v60  ;;  %v9202_v60 = vld [vmem:[%s9480_s19] sm:$0x3] }
0x43d4   :  { %7017 = vpow2.f32 %v6484_v51  ;;  %v5221_v51 = vperm.slane %v9202_v60, 1 }
0x43d8   :  { %v7016_v28 = vpop.eup %7015 }
0x43d9   :  { %5163 = vrot.lane.b32.xlu1 %v7016_v28, %s7384_s11  ;;  %v5366_v28 = vpop.f32.mrf.mxu1 }
0x43da   :  { %v7018_v33 = vpop.eup %7017 }
0x43db   :  { %v5144_v44 = vadd.f32 1.0, %v7018_v33  ;;  %v5220_v33 = vperm.slane %v9202_v60, 0 }
0x43dd   :  { %7019 = vrcp.f32 %v5144_v44  ;;  %v5156_v48 = vand.u32 2147483648, %v5144_v44  ;;  %vm5150_vm14 = vweird.f32 %v5144_v44 }
0x43e1   :  { %4678 = vrot.lane.b32.xlu1 %v8972_v32, %s7385_s9  ;;  %v5154_v32 = vand.u32 2147483647, %v5144_v44 }
0x43e3   :  { %v7020_v34 = vpop.eup %7019  ;;  %vm5155_vm2 = vcmp.eq.f32.partialorder %v5154_v32, 8.507059e+37 }
0x43e4   :  { %v5146_v63 = vmul.f32 %v7020_v34, %v5144_v44  ;;  %vm5151_vm13 = vweird.f32 %v7020_v34  ;;  %v5371_v44 = vrot.slane %v5366_v28, 6 }
0x43e5   :  { %vm5152_vm1 = vmor %vm5150_vm14, %vm5151_vm13 }
0x43e6   :  { %v5147_v47 = vsub.f32 1.0, %v5146_v63 }
0x43e8   :  { %v5148_v0 = vmul.f32 %v7020_v34, %v5147_v47 }
0x43e9   :  { %4893 = vrot.lane.b32.xlu1 %v9002_v1, %s7385_s9  ;;  %v5157_v1 = vor.u32 1.1754944e-38, %v5156_v48 }
0x43ea   :  { %v5149_v57 = vadd.f32 %v7020_v34, %v5148_v0 }
0x43ec   :  { %v5153_v24 = vsel %vm5152_vm1, %v7020_v34, %v5149_v57  ;;  %v5346_v34 = vpop.f32.mrf.mxu0 }
0x43ed   :  { %v5372_v32 = vsel %vm353_vm3, %v5346_v34, %v5371_v44 }
0x43f1   :  { %4965 = vrot.lane.b32.xlu1 %v9013_v38, %s7385_s9  ;;  %v9041_v38 = vsel %vm5155_vm2, %v5157_v1, %v5153_v24 }
0x43f2   :  { %v5161_v46 = vmul.f32 %v9041_v38, %v5099_v50 }
0x444b   :  { %v5164_v9 = vpop.permute.xlu1 %5163 }
0x444c   :  { %v5166_v35 = vmul.f32 %v5164_v9, %v9041_v38 }
0x444e   :  { %5168 = vrot.lane.b32.xlu2 %v5166_v35, %s7385_s9 }
0x4453   :  { %v4679_v12 = vpop.permute.xlu1 %4678 }
0x4454   :  { %4681 = vst.msk [vmem:[#allocation4] sm:$0x3] %vm4538_vm7, %v4679_v12 }
0x4456   :  { %4749 = vrot.lane.b32.xlu2 %v8980_v56, %s7385_s9  ;;  %v5217_v56 = vld [vmem:[%s9478_s17 + $0x38] sm:$0xff] }
0x4457   :  { %5288 = vmatpush.msrb.mxu3 %v5217_v56 }
0x4459   :  { %5289 = vmatpush.msrb.mxu3 %v5215_v11 }
0x445b   :  { %v4894_v42 = vpop.permute.xlu1 %4893  ;;  %5290 = vmatpush.msrb.mxu3 %v5213_v61  ;;  %v5186_v53 = vld [vmem:[#allocation4] sm:$0x3] }
0x445c   :  { %4897 = vst.msk [vmem:[#allocation4 + $0x6] sm:$0x3] %vm4538_vm7, %v4894_v42 }
0x445d   :  { %5291 = vmatpush.msrb.mxu3 %v5211_v8 }
0x445f   :  { %5466 = vmatpush.msra.mxu3 %v9061_v29 }
0x4461   :  { %5467 = vmatpush.msra.mxu3 %v9073_v6 }
0x4463   :  { %v4966_v62 = vpop.permute.xlu1 %4965  ;;  %5468 = vmatpush.msra.mxu3 %v9083_v52  ;;  %v5189_v37 = vld [vmem:[#allocation4 + $0x6] sm:$0x3] }
0x4464   :  { %4969 = vst.msk [vmem:[#allocation4 + $0x8] sm:$0x3] %vm4538_vm7, %v4966_v62 }
0x4465   :  { %5469 = vmatpush.msra.mxu3 %v9095_v19 }
0x4467   :  { %5470 = vmatpush.msra.mxu3 %v9102_v23 }
0x4469   :  { %5471 = vmatpush.msra.mxu3 %v9108_v30 }
0x446b   :  { %v5190_v13 = vld [vmem:[#allocation4 + $0x8] sm:$0x3]  ;;  %5472 = vmatpush.msra.mxu3 %v9116_v31 }
0x446c   :  { %5240 = vst [vmem:[#allocation1 + $0x20] ss:$4 sm:$0xff] %v5190_v13 }
0x446d   :  { %5473 = vmatpush.msra.mxu3 %v9124_v7 }
0x44a8   :  { %v5169_v43 = vpop.permute.xlu2 %5168 }
0x44a9   :  { %v5171_v15 = vadd.f32 %v5169_v43, %v5161_v46 }
0x44ab   :  { %7021 = vtanh.f32 %v5171_v15 }
0x44b0   :  { %v4750_v27 = vpop.permute.xlu2 %4749 }
0x44b1   :  { %v7022_v2 = vpop.eup %7021  ;;  %4753 = vst.msk [vmem:[#allocation4 + $0x2] sm:$0x3] %vm4538_vm7, %v4750_v27 }
0x44b2   :  { %5174 = vrot.lane.b32.xlu0 %v7022_v2, %s7384_s11 }
0x44b8   :  { %v5187_v36 = vld [vmem:[#allocation4 + $0x2] sm:$0x3] }
0x44ba   :  { %4821 = vrot.lane.b32.xlu0 %v8988_v20, %s7385_s9  ;;  %v5214_v20 = vld [vmem:[%s9478_s17 + $0x20] sm:$0xff] }
0x44bb   :  { %5266 = vmatpush.msrb.mxu2 %v5214_v20 }
0x44bd   :  { %5267 = vmatpush.msrb.mxu2 %v5212_v17 }
0x44bf   :  { %5268 = vmatpush.msrb.mxu2 %v5210_v39 }
0x44c1   :  { %5446 = vmatpush.msra.mxu2 %v9066_v14 }
0x44c3   :  { %5447 = vmatpush.msra.mxu2 %v9078_v16 }
0x44c5   :  { %5448 = vmatpush.msra.mxu2 %v9090_v18 }
0x44c7   :  { %5449 = vmatpush.msra.mxu2 %v9100_v40 }
0x44c9   :  { %5450 = vmatpush.msra.mxu2 %v9104_v45 }
0x44cb   :  { %5451 = vmatpush.msra.mxu2 %v9112_v10 }
0x44cd   :  { %5452 = vmatpush.msra.mxu2 %v9120_v49 }
0x44cf   :  { %5453 = vmatpush.msra.mxu2 %v9128_v26 }
0x4524   :  { %v5175_v54 = vpop.permute.xlu0 %5174 }
0x4525   :  { %v5177_v4 = vmul.f32 %v5175_v54, %v9041_v38 }
0x4527   :  { %5179 = vst [vmem:[#allocation1] ss:$4 sm:$0xff] %v5177_v4 }
0x452c   :  { %v4822_v50 = vpop.permute.xlu0 %4821 }
0x452d   :  { %4825 = vst.msk [vmem:[#allocation4 + $0x4] sm:$0x3] %vm4538_vm7, %v4822_v50 }
0x452e   :  { %v5180_v22 = vld.sshfl [vmem:[#allocation1] sm:$0xff pattern:$0x73625140] }
0x452f   :  { %5181 = vrot.lane.b32.xlu1 %v5180_v22, %s7385_s9  ;;  %5232 = vst [vmem:[#allocation1] ss:$4 sm:$0xff] %v5186_v53 }
0x4530   :  { %5234 = vst [vmem:[#allocation1 + $0x1] ss:$4 sm:$0xff] %v5187_v36 }
0x4531   :  { %5238 = vst [vmem:[#allocation1 + $0x3] ss:$4 sm:$0xff] %v5189_v37 }
0x4534   :  { %v5188_v21 = vld [vmem:[#allocation4 + $0x4] sm:$0x3] }
0x4535   :  { %5236 = vst [vmem:[#allocation1 + $0x2] ss:$4 sm:$0xff] %v5188_v21 }
0x453c   :  { %v5247_v41 = vld.sshfl [vmem:[#allocation1] sm:$0xff pattern:$0x73625140] }
0x453d   :  { %6485 = vmatmul.msk.f32.vlgmr.msrb.gmra.mxu2 %vm3472_vm11, %v5247_v41  ;;  %6487 = vmatmul.msk.f32.vlgmr.msrb.gmra.mxu3 %vm3472_vm11, %v5247_v41 }
0x453e   :  { %5664 = vmatpush.msrb.mxu2 %v9066_v14  ;;  %5684 = vmatpush.msrb.mxu3 %v9061_v29 }
0x4540   :  { %5665 = vmatpush.msrb.mxu2 %v9078_v16  ;;  %5685 = vmatpush.msrb.mxu3 %v9073_v6 }
0x4542   :  { %5666 = vmatpush.msrb.mxu2 %v9090_v18  ;;  %5686 = vmatpush.msrb.mxu3 %v9083_v52 }
0x4544   :  { %5667 = vmatpush.msrb.mxu2 %v9100_v40  ;;  %5687 = vmatpush.msrb.mxu3 %v9095_v19 }
0x4546   :  { %5668 = vmatpush.msrb.mxu2 %v9104_v45  ;;  %5688 = vmatpush.msrb.mxu3 %v9102_v23 }
0x4548   :  { %5669 = vmatpush.msrb.mxu2 %v9112_v10  ;;  %5689 = vmatpush.msrb.mxu3 %v9108_v30 }
0x454a   :  { %5670 = vmatpush.msrb.mxu2 %v9120_v49  ;;  %5690 = vmatpush.msrb.mxu3 %v9116_v31 }
0x454c   :  { %5671 = vmatpush.msrb.mxu2 %v9128_v26  ;;  %5691 = vmatpush.msrb.mxu3 %v9124_v7 }
0x45a1   :  { %v5182_v55 = vpop.permute.xlu1 %5181 }
0x45a2   :  { %5185 = vst.msk [vmem:[#allocation4 + $0xe] sm:$0x3] %vm4538_vm7, %v5182_v55 }
0x45a9   :  { %v5193_v59 = vld [vmem:[#allocation4 + $0xe] sm:$0x3] }
0x45aa   :  { %5246 = vst [vmem:[#allocation1 + $0x23] ss:$4 sm:$0xff] %v5193_v59 }
0x45c0   :  { %v5270_v63 = vpop.f32.mrf.mxu2  ;;  %v5293_v47 = vpop.f32.mrf.mxu3 }
0x45c1   :  { %v5294_v0 = vadd.f32 %v5293_v47, %v5221_v51  ;;  %v5271_v57 = vadd.f32 %v5270_v63, %v5220_v33 }
0x45c3   :  { %v5303_v48 = vrot.slane %v5294_v0, 6 }
0x45c5   :  { %v5305_v24 = vsel %vm353_vm3, %v5271_v57, %v5303_v48  ;;  %v9213_v1 = vsel %vm355_vm4, %v5271_v57, %v5303_v48  ;;  %v9216_v9 = vsel %vm358_vm5, %v5271_v57, %v5303_v48  ;;  %v9219_v38 = vsel %vm361_vm6, %v5303_v48, %v5271_v57 }
0x45c6   :  { %v5374_v35 = vadd.f32 %v5372_v32, %v5305_v24 }
0x45c8   :  { %v6489_v12 = vmul.f32 -1.442695, %v5374_v35  ;;  %5398 = vrot.lane.b32.xlu0 %v5374_v35, %s7384_s11  ;;  %v5395_v46 = vrot.slane %v5374_v35, 2 }
0x45ca   :  { %7023 = vpow2.f32 %v6489_v12 }
0x45d0   :  { %v7024_v42 = vpop.eup %7023  ;;  %5109 = vrot.lane.b32.xlu0 %v9029_v25, %s7385_s9 }
0x45d1   :  { %v5378_v62 = vadd.f32 1.0, %v7024_v42 }
0x45d3   :  { %7025 = vrcp.f32 %v5378_v62  ;;  %v5390_v27 = vand.u32 2147483648, %v5378_v62  ;;  %v5388_v56 = vand.u32 2147483647, %v5378_v62  ;;  %vm5384_vm9 = vweird.f32 %v5378_v62 }
0x45d4   :  { %7027 = vtanh.f32 %v5395_v46 }
0x45d5   :  { %v5391_v11 = vor.u32 1.1754944e-38, %v5390_v27  ;;  %vm5389_vm12 = vcmp.eq.f32.partialorder %v5388_v56, 8.507059e+37 }
0x45d9   :  { %v7026_v13 = vpop.eup %7025 }
0x45da   :  { %v5380_v43 = vmul.f32 %v7026_v13, %v5378_v62  ;;  %vm5385_vm8 = vweird.f32 %v7026_v13  ;;  %v7028_v61 = vpop.eup %7027 }
0x45db   :  { %vm5386_vm10 = vmor %vm5384_vm9, %vm5385_vm8 }
0x45dc   :  { %v5381_v15 = vsub.f32 1.0, %v5380_v43 }
0x45de   :  { %v5382_v2 = vmul.f32 %v7026_v13, %v5381_v15 }
0x45e0   :  { %v5383_v3 = vadd.f32 %v7026_v13, %v5382_v2 }
0x45e2   :  { %v5387_v20 = vsel %vm5386_vm10, %v7026_v13, %v5383_v3  ;;  %v5307_v3 = vrot.slane %v9213_v1, 2 }
0x45e3   :  { %v5392_v17 = vsel %vm5389_vm12, %v5391_v11, %v5387_v20 }
0x45e4   :  { %v5422_v25 = vmul.f32 %v7028_v61, %v5392_v17  ;;  %v5421_v39 = vmul.f32 0.0, %v5392_v17 }
0x45e6   :  { %5424 = vrot.lane.b32.xlu2 %v5422_v25, %s7384_s11 }
0x45ee   :  { %5037 = vrot.lane.b32.xlu2 %v9021_v5, %s7385_s9 }
0x463a   :  { %v5399_v8 = vpop.permute.xlu0 %5398 }
0x463b   :  { %v5400_v21 = vrot.slane %v5399_v8, 2 }
0x463d   :  { %v6490_v41 = vmul.f32 -1.442695, %v5400_v21 }
0x4640   :  { %v5425_v54 = vpop.permute.xlu2 %5424 }
0x4641   :  { %v9227_v4 = vadd.f32 %v5425_v54, %v5421_v39 }
0x4642   :  { %v5110_v50 = vpop.permute.xlu0 %5109 }
0x4643   :  { %7029 = vtanh.f32 %v9227_v4  ;;  %5113 = vst.msk [vmem:[#allocation4 + $0xc] sm:$0x3] %vm4538_vm7, %v5110_v50 }
0x4644   :  { %7031 = vpow2.f32 %v6490_v41 }
0x4648   :  { %v5038_v53 = vpop.permute.xlu2 %5037 }
0x4649   :  { %v7030_v22 = vpop.eup %7029  ;;  %5041 = vst.msk [vmem:[#allocation4 + $0xa] sm:$0x3] %vm4538_vm7, %v5038_v53 }
0x464a   :  { %v5192_v36 = vld [vmem:[#allocation4 + $0xc] sm:$0x3]  ;;  %5430 = vrot.lane.b32.xlu2 %v7030_v22, %s7384_s11  ;;  %v7032_v55 = vpop.eup %7031 }
0x464b   :  { %5244 = vst [vmem:[#allocation1 + $0x22] ss:$4 sm:$0xff] %v5192_v36  ;;  %v5405_v59 = vadd.f32 1.0, %v7032_v55 }
0x464d   :  { %7033 = vrcp.f32 %v5405_v59  ;;  %v5417_v0 = vand.u32 2147483648, %v5405_v59  ;;  %vm5411_vm14 = vweird.f32 %v5405_v59  ;;  %v5415_v57 = vand.u32 2147483647, %v5405_v59 }
0x464f   :  { %v5418_v32 = vor.u32 1.1754944e-38, %v5417_v0  ;;  %vm5416_vm2 = vcmp.eq.f32.partialorder %v5415_v57, 8.507059e+37 }
0x4650   :  { %v5191_v37 = vld [vmem:[#allocation4 + $0xa] sm:$0x3] }
0x4651   :  { %5242 = vst [vmem:[#allocation1 + $0x21] ss:$4 sm:$0xff] %v5191_v37 }
0x4653   :  { %v7034_v28 = vpop.eup %7033 }
0x4654   :  { %v5407_v44 = vmul.f32 %v7034_v28, %v5405_v59  ;;  %vm5412_vm13 = vweird.f32 %v7034_v28 }
0x4655   :  { %vm5413_vm1 = vmor %vm5411_vm14, %vm5412_vm13 }
0x4656   :  { %v5408_v34 = vsub.f32 1.0, %v5407_v44 }
0x4658   :  { %v5248_v5 = vld.sshfl [vmem:[#allocation1 + $0x20] sm:$0xff pattern:$0x73625140]  ;;  %v5409_v63 = vmul.f32 %v7034_v28, %v5408_v34 }
0x4659   :  { %6486 = vmatmul.msk.f32.gmra.mxu2 %vm3472_vm11, %v5248_v5  ;;  %6488 = vmatmul.msk.f32.gmra.mxu3 %vm3472_vm11, %v5248_v5 }
0x465a   :  { %v5410_v47 = vadd.f32 %v7034_v28, %v5409_v63 }
0x465c   :  { %v5414_v48 = vsel %vm5413_vm1, %v7034_v28, %v5410_v47 }
0x465d   :  { %v5419_v24 = vsel %vm5416_vm2, %v5418_v32, %v5414_v48 }
0x46a4   :  { %v5431_v35 = vpop.permute.xlu2 %5430 }
0x46a5   :  { %v5433_v12 = vmul.f32 %v5431_v35, %v5419_v24 }
0x46a7   :  { %5434 = vst.msk [vmem:[#allocation3] sm:$0x3] %vm492_vm15, %v5433_v12  ;;  %6491 = vmatmul.msk.f32.vlgmr.msra.gmra.mxu2 %vm379_vm0, %v5433_v12  ;;  %6492 = vmatmul.msk.f32.vlgmr.msra.gmra.mxu3 %vm379_vm0, %v5433_v12 }
0x46a8   :  { %5882 = vmatpush.msra.mxu2 %v9066_v14  ;;  %5902 = vmatpush.msra.mxu3 %v9061_v29 }
0x46aa   :  { %5883 = vmatpush.msra.mxu2 %v9078_v16  ;;  %5903 = vmatpush.msra.mxu3 %v9073_v6 }
0x46ac   :  { %5884 = vmatpush.msra.mxu2 %v9090_v18  ;;  %5904 = vmatpush.msra.mxu3 %v9083_v52 }
0x46ae   :  { %v6198_v42 = vld [vmem:[#allocation3] sm:$0x3]  ;;  %5885 = vmatpush.msra.mxu2 %v9100_v40  ;;  %5905 = vmatpush.msra.mxu3 %v9095_v19 }
0x46af   :  { %6226 = vst [vmem:[#allocation1] ss:$4 sm:$0xff] %v6198_v42 }
0x46b0   :  { %5886 = vmatpush.msra.mxu2 %v9104_v45  ;;  %5906 = vmatpush.msra.mxu3 %v9102_v23 }
0x46b2   :  { %5887 = vmatpush.msra.mxu2 %v9112_v10  ;;  %5907 = vmatpush.msra.mxu3 %v9108_v30 }
0x46b4   :  { %5888 = vmatpush.msra.mxu2 %v9120_v49  ;;  %5908 = vmatpush.msra.mxu3 %v9116_v31 }
0x46b6   :  { %5889 = vmatpush.msra.mxu2 %v9128_v26  ;;  %5909 = vmatpush.msra.mxu3 %v9124_v7 }
0x46dc   :  { %v5273_v62 = vpop.f32.mrf.mxu2  ;;  %v5296_v13 = vpop.f32.mrf.mxu3 }
0x46dd   :  { %v5297_v46 = vadd.f32 %v5296_v13, %v5221_v51  ;;  %v9258_v43 = vadd.f32 %v5273_v62, %v5220_v33 }
0x46df   :  { %v9260_v15 = vrot.slane %v5297_v46, 6 }
0x46e1   :  { %v9265_v27 = vsel %vm355_vm4, %v9258_v43, %v9260_v15  ;;  %v9270_v2 = vsel %vm358_vm5, %v9258_v43, %v9260_v15  ;;  %v9275_v51 = vsel %vm361_vm6, %v9260_v15, %v9258_v43 }
0x472a   :  { %v5475_v60 = vpop.f32.mrf.mxu3  ;;  %v5455_v56 = vpop.f32.mrf.mxu2 }
0x472b   :  { %v5480_v33 = vrot.slane %v5475_v60, 6 }
0x472d   :  { %v5481_v11 = vsel %vm353_vm3, %v5455_v56, %v5480_v33 }
0x472e   :  { %v5483_v20 = vadd.f32 %v5481_v11, %v5307_v3 }
0x4730   :  { %v6493_v61 = vmul.f32 -1.442695, %v5483_v20  ;;  %5507 = vrot.lane.b32.xlu1 %v5483_v20, %s7384_s11  ;;  %v5504_v39 = vrot.slane %v5483_v20, 2 }
0x4732   :  { %7035 = vpow2.f32 %v6493_v61 }
0x4738   :  { %v7036_v17 = vpop.eup %7035 }
0x4739   :  { %v5487_v25 = vadd.f32 1.0, %v7036_v17  ;;  %v5309_v17 = vrot.slane %v9216_v9, 4 }
0x473b   :  { %7037 = vrcp.f32 %v5487_v25  ;;  %v5499_v53 = vand.u32 2147483648, %v5487_v25  ;;  %v5497_v36 = vand.u32 2147483647, %v5487_v25  ;;  %vm5493_vm5 = vweird.f32 %v5487_v25 }
0x473c   :  { %7039 = vtanh.f32 %v5504_v39 }
0x473d   :  { %v5500_v37 = vor.u32 1.1754944e-38, %v5499_v53  ;;  %vm5498_vm11 = vcmp.eq.f32.partialorder %v5497_v36, 8.507059e+37 }
0x4741   :  { %v7038_v8 = vpop.eup %7037 }
0x4742   :  { %v5489_v54 = vmul.f32 %v7038_v8, %v5487_v25  ;;  %vm5494_vm4 = vweird.f32 %v7038_v8  ;;  %v7040_v21 = vpop.eup %7039 }
0x4743   :  { %vm5495_vm6 = vmor %vm5493_vm5, %vm5494_vm4 }
0x4744   :  { %v5490_v50 = vsub.f32 1.0, %v5489_v54 }
0x4746   :  { %v5491_v22 = vmul.f32 %v7038_v8, %v5490_v50 }
0x4748   :  { %v5492_v1 = vadd.f32 %v7038_v8, %v5491_v22 }
0x474a   :  { %v5496_v5 = vsel %vm5495_vm6, %v7038_v8, %v5492_v1 }
0x474b   :  { %v5501_v41 = vsel %vm5498_vm11, %v5500_v37, %v5496_v5 }
0x474c   :  { %v5531_v55 = vmul.f32 %v7040_v21, %v5501_v41  ;;  %v5530_v59 = vmul.f32 %v5501_v41, %v9227_v4 }
0x474e   :  { %5533 = vrot.lane.b32.xlu0 %v5531_v55, %s7384_s11 }
0x47a2   :  { %v5508_v63 = vpop.permute.xlu1 %5507 }
0x47a3   :  { %v5509_v47 = vrot.slane %v5508_v63, 2 }
0x47a5   :  { %v6494_v0 = vmul.f32 -1.442695, %v5509_v47 }
0x47c0   :  { %v5534_v28 = vpop.permute.xlu0 %5533 }
0x47c1   :  { %v9282_v44 = vadd.f32 %v5534_v28, %v5530_v59 }
0x47c3   :  { %7041 = vtanh.f32 %v9282_v44 }
0x47c4   :  { %7043 = vpow2.f32 %v6494_v0 }
0x47c9   :  { %v7042_v34 = vpop.eup %7041 }
0x47ca   :  { %5539 = vrot.lane.b32.xlu2 %v7042_v34, %s7384_s11  ;;  %v7044_v57 = vpop.eup %7043 }
0x47cb   :  { %v5514_v48 = vadd.f32 1.0, %v7044_v57 }
0x47cd   :  { %7045 = vrcp.f32 %v5514_v48  ;;  %v5526_v42 = vand.u32 2147483648, %v5514_v48  ;;  %vm5520_vm9 = vweird.f32 %v5514_v48  ;;  %v5524_v62 = vand.u32 2147483647, %v5514_v48 }
0x47cf   :  { %v5527_v46 = vor.u32 1.1754944e-38, %v5526_v42  ;;  %vm5525_vm12 = vcmp.eq.f32.partialorder %v5524_v62, 8.507059e+37 }
0x47d3   :  { %v7046_v32 = vpop.eup %7045 }
0x47d4   :  { %v5516_v24 = vmul.f32 %v7046_v32, %v5514_v48  ;;  %vm5521_vm8 = vweird.f32 %v7046_v32 }
0x47d5   :  { %vm5522_vm10 = vmor %vm5520_vm9, %vm5521_vm8 }
0x47d6   :  { %v5517_v35 = vsub.f32 1.0, %v5516_v24 }
0x47d8   :  { %v5518_v12 = vmul.f32 %v7046_v32, %v5517_v35 }
0x47da   :  { %v5519_v4 = vadd.f32 %v7046_v32, %v5518_v12 }
0x47dc   :  { %v5523_v13 = vsel %vm5522_vm10, %v7046_v32, %v5519_v4 }
0x47dd   :  { %v5528_v60 = vsel %vm5525_vm12, %v5527_v46, %v5523_v13 }
0x4824   :  { %v5540_v33 = vpop.permute.xlu2 %5539 }
0x4825   :  { %v5542_v56 = vmul.f32 %v5540_v33, %v5528_v60 }
0x4827   :  { %5543 = vst.msk [vmem:[#allocation3 + $0x2] sm:$0x3] %vm492_vm15, %v5542_v56  ;;  %6495 = vmatmul.msk.f32.vlgmr.msrb.gmra.mxu0 %vm379_vm0, %v5542_v56  ;;  %6496 = vmatmul.msk.f32.vlgmr.msra.gmra.mxu1 %vm379_vm0, %v5542_v56 }
0x4828   :  { %5991 = vmatpush.msrb.mxu0 %v9066_v14  ;;  %6011 = vmatpush.msra.mxu1 %v9061_v29 }
0x482a   :  { %5992 = vmatpush.msrb.mxu0 %v9078_v16  ;;  %6012 = vmatpush.msra.mxu1 %v9073_v6 }
0x482c   :  { %5993 = vmatpush.msrb.mxu0 %v9090_v18  ;;  %6013 = vmatpush.msra.mxu1 %v9083_v52 }
0x482e   :  { %v6199_v3 = vld [vmem:[#allocation3 + $0x2] sm:$0x3]  ;;  %5994 = vmatpush.msrb.mxu0 %v9100_v40  ;;  %6014 = vmatpush.msra.mxu1 %v9095_v19 }
0x482f   :  { %6228 = vst [vmem:[#allocation1 + $0x1] ss:$4 sm:$0xff] %v6199_v3 }
0x4830   :  { %5995 = vmatpush.msrb.mxu0 %v9104_v45  ;;  %6015 = vmatpush.msra.mxu1 %v9102_v23 }
0x4832   :  { %5996 = vmatpush.msrb.mxu0 %v9112_v10  ;;  %6016 = vmatpush.msra.mxu1 %v9108_v30 }
0x4834   :  { %5997 = vmatpush.msrb.mxu0 %v9120_v49  ;;  %6017 = vmatpush.msra.mxu1 %v9116_v31 }
0x4836   :  { %5998 = vmatpush.msrb.mxu0 %v9128_v26  ;;  %6018 = vmatpush.msra.mxu1 %v9124_v7 }
0x48a4   :  { %v5584_v11 = vpop.f32.mrf.mxu1  ;;  %v5564_v61 = vpop.f32.mrf.mxu0 }
0x48a5   :  { %v5589_v20 = vrot.slane %v5584_v11, 6 }
0x48a7   :  { %v5590_v25 = vsel %vm353_vm3, %v5564_v61, %v5589_v20 }
0x48a8   :  { %v5592_v8 = vadd.f32 %v5590_v25, %v5309_v17 }
0x48aa   :  { %v6497_v39 = vmul.f32 -1.442695, %v5592_v8  ;;  %5616 = vrot.lane.b32.xlu1 %v5592_v8, %s7384_s11  ;;  %v5613_v22 = vrot.slane %v5592_v8, 2 }
0x48ac   :  { %7047 = vpow2.f32 %v6497_v39 }
0x48b2   :  { %v7048_v54 = vpop.eup %7047 }
0x48b3   :  { %v5596_v50 = vadd.f32 1.0, %v7048_v54 }
0x48b5   :  { %7049 = vrcp.f32 %v5596_v50  ;;  %v5608_v37 = vand.u32 2147483648, %v5596_v50  ;;  %v5606_v21 = vand.u32 2147483647, %v5596_v50  ;;  %vm5602_vm14 = vweird.f32 %v5596_v50 }
0x48b6   :  { %7051 = vtanh.f32 %v5613_v22 }
0x48b7   :  { %v5609_v41 = vor.u32 1.1754944e-38, %v5608_v37  ;;  %vm5607_vm2 = vcmp.eq.f32.partialorder %v5606_v21, 8.507059e+37 }
0x48bb   :  { %v7050_v53 = vpop.eup %7049 }
0x48bc   :  { %v5598_v36 = vmul.f32 %v7050_v53, %v5596_v50  ;;  %vm5603_vm13 = vweird.f32 %v7050_v53  ;;  %v7052_v59 = vpop.eup %7051 }
0x48bd   :  { %vm5604_vm1 = vmor %vm5602_vm14, %vm5603_vm13 }
0x48be   :  { %v5599_v1 = vsub.f32 1.0, %v5598_v36 }
0x48c0   :  { %v5600_v5 = vmul.f32 %v7050_v53, %v5599_v1 }
0x48c2   :  { %v5601_v9 = vadd.f32 %v7050_v53, %v5600_v5 }
0x48c4   :  { %v5605_v55 = vsel %vm5604_vm1, %v7050_v53, %v5601_v9 }
0x48c5   :  { %v5610_v28 = vsel %vm5607_vm2, %v5609_v41, %v5605_v55 }
0x48c6   :  { %v5640_v34 = vmul.f32 %v7052_v59, %v5610_v28  ;;  %v5639_v63 = vmul.f32 %v5610_v28, %v9282_v44 }
0x48c8   :  { %5642 = vrot.lane.b32.xlu0 %v5640_v34, %s7384_s11 }
0x491c   :  { %v5617_v48 = vpop.permute.xlu1 %5616 }
0x491d   :  { %v5618_v32 = vrot.slane %v5617_v48, 2 }
0x491f   :  { %v6498_v24 = vmul.f32 -1.442695, %v5618_v32 }
0x493a   :  { %v5643_v47 = vpop.permute.xlu0 %5642 }
0x493b   :  { %v9310_v0 = vadd.f32 %v5643_v47, %v5639_v63 }
0x493d   :  { %7053 = vtanh.f32 %v9310_v0 }
0x493e   :  { %7055 = vpow2.f32 %v6498_v24 }
0x4943   :  { %v7054_v57 = vpop.eup %7053 }
0x4944   :  { %5648 = vrot.lane.b32.xlu2 %v7054_v57, %s7384_s11  ;;  %v7056_v35 = vpop.eup %7055 }
0x4945   :  { %v5623_v12 = vadd.f32 1.0, %v7056_v35 }
0x4947   :  { %7057 = vrcp.f32 %v5623_v12  ;;  %v5635_v46 = vand.u32 2147483648, %v5623_v12  ;;  %vm5629_vm5 = vweird.f32 %v5623_v12  ;;  %v5633_v60 = vand.u32 2147483647, %v5623_v12 }
0x4949   :  { %v5636_v56 = vor.u32 1.1754944e-38, %v5635_v46  ;;  %vm5634_vm11 = vcmp.eq.f32.partialorder %v5633_v60, 8.507059e+37 }
0x494d   :  { %v7058_v4 = vpop.eup %7057 }
0x494e   :  { %v5625_v42 = vmul.f32 %v7058_v4, %v5623_v12  ;;  %vm5630_vm4 = vweird.f32 %v7058_v4 }
0x494f   :  { %vm5631_vm6 = vmor %vm5629_vm5, %vm5630_vm4 }
0x4950   :  { %v5626_v62 = vsub.f32 1.0, %v5625_v42 }
0x4952   :  { %v5627_v13 = vmul.f32 %v7058_v4, %v5626_v62  ;;  %v5312_v62 = vsel %vm353_vm3, %v9258_v43, %v9260_v15 }
0x4954   :  { %v5628_v44 = vadd.f32 %v7058_v4, %v5627_v13 }
0x4956   :  { %v5632_v33 = vsel %vm5631_vm6, %v7058_v4, %v5628_v44 }
0x4957   :  { %v5637_v3 = vsel %vm5634_vm11, %v5636_v56, %v5632_v33 }
0x499e   :  { %v5649_v11 = vpop.permute.xlu2 %5648 }
0x499f   :  { %v5651_v20 = vmul.f32 %v5649_v11, %v5637_v3 }
0x49a1   :  { %5652 = vst.msk [vmem:[#allocation3 + $0x4] sm:$0x3] %vm492_vm15, %v5651_v20  ;;  %6499 = vmatmul.msk.f32.vlgmr.msrb.gmra.mxu2 %vm379_vm0, %v5651_v20  ;;  %6500 = vmatmul.msk.f32.vlgmr.msrb.gmra.mxu3 %vm379_vm0, %v5651_v20 }
0x49a2   :  { %6100 = vmatpush.msrb.mxu2 %v9066_v14  ;;  %6120 = vmatpush.msrb.mxu3 %v9061_v29 }
0x49a4   :  { %6101 = vmatpush.msrb.mxu2 %v9078_v16  ;;  %6121 = vmatpush.msrb.mxu3 %v9073_v6  ;;  %v5311_v16 = vrot.slane %v9219_v38, 6 }
0x49a6   :  { %6102 = vmatpush.msrb.mxu2 %v9090_v18  ;;  %6122 = vmatpush.msrb.mxu3 %v9083_v52 }
0x49a8   :  { %v6200_v61 = vld [vmem:[#allocation3 + $0x4] sm:$0x3]  ;;  %6103 = vmatpush.msrb.mxu2 %v9100_v40  ;;  %6123 = vmatpush.msrb.mxu3 %v9095_v19 }
0x49a9   :  { %6230 = vst [vmem:[#allocation1 + $0x2] ss:$4 sm:$0xff] %v6200_v61 }
0x49aa   :  { %6104 = vmatpush.msrb.mxu2 %v9104_v45  ;;  %6124 = vmatpush.msrb.mxu3 %v9102_v23 }
0x49ac   :  { %6105 = vmatpush.msrb.mxu2 %v9112_v10  ;;  %6125 = vmatpush.msrb.mxu3 %v9108_v30 }
0x49ae   :  { %6106 = vmatpush.msrb.mxu2 %v9120_v49  ;;  %6126 = vmatpush.msrb.mxu3 %v9116_v31 }
0x49b0   :  { %6107 = vmatpush.msrb.mxu2 %v9128_v26  ;;  %6127 = vmatpush.msrb.mxu3 %v9124_v7 }
0x4a24   :  { %v5693_v29 = vpop.f32.mrf.mxu3  ;;  %v5673_v6 = vpop.f32.mrf.mxu2 }
0x4a25   :  { %v5698_v14 = vrot.slane %v5693_v29, 6 }
0x4a27   :  { %v5699_v52 = vsel %vm353_vm3, %v5673_v6, %v5698_v14 }
0x4a28   :  { %v5701_v18 = vadd.f32 %v5699_v52, %v5311_v16 }
0x4a2a   :  { %v6501_v19 = vmul.f32 -1.442695, %v5701_v18  ;;  %5725 = vrot.lane.b32.xlu1 %v5701_v18, %s7384_s11  ;;  %v5722_v30 = vrot.slane %v5701_v18, 2 }
0x4a2c   :  { %7059 = vpow2.f32 %v6501_v19 }
0x4a32   :  { %v7060_v40 = vpop.eup %7059 }
0x4a33   :  { %v5705_v23 = vadd.f32 1.0, %v7060_v40 }
0x4a35   :  { %7061 = vrcp.f32 %v5705_v23  ;;  %v5717_v49 = vand.u32 2147483648, %v5705_v23  ;;  %v5715_v26 = vand.u32 2147483647, %v5705_v23  ;;  %vm5711_vm9 = vweird.f32 %v5705_v23 }
0x4a36   :  { %7063 = vtanh.f32 %v5722_v30 }
0x4a37   :  { %v5718_v17 = vor.u32 1.1754944e-38, %v5717_v49  ;;  %vm5716_vm12 = vcmp.eq.f32.partialorder %v5715_v26, 8.507059e+37 }
0x4a3b   :  { %v7062_v45 = vpop.eup %7061 }
0x4a3c   :  { %v5707_v10 = vmul.f32 %v7062_v45, %v5705_v23  ;;  %vm5712_vm8 = vweird.f32 %v7062_v45  ;;  %v7064_v8 = vpop.eup %7063 }
0x4a3d   :  { %vm5713_vm10 = vmor %vm5711_vm9, %vm5712_vm8 }
0x4a3e   :  { %v5708_v31 = vsub.f32 1.0, %v5707_v10 }
0x4a40   :  { %v5709_v7 = vmul.f32 %v7062_v45, %v5708_v31 }
0x4a42   :  { %v5710_v38 = vadd.f32 %v7062_v45, %v5709_v7 }
0x4a44   :  { %v5714_v25 = vsel %vm5713_vm10, %v7062_v45, %v5710_v38 }
0x4a45   :  { %v5719_v39 = vsel %vm5716_vm12, %v5718_v17, %v5714_v25 }
0x4a46   :  { %v5749_v54 = vmul.f32 %v7064_v8, %v5719_v39  ;;  %v5748_v50 = vmul.f32 %v5719_v39, %v9310_v0 }
0x4a48   :  { %5751 = vrot.lane.b32.xlu0 %v5749_v54, %s7384_s11 }
0x4a9c   :  { %v5726_v1 = vpop.permute.xlu1 %5725 }
0x4a9d   :  { %v5727_v37 = vrot.slane %v5726_v1, 2 }
0x4a9f   :  { %v6502_v5 = vmul.f32 -1.442695, %v5727_v37 }
0x4aba   :  { %v5752_v53 = vpop.permute.xlu0 %5751 }
0x4abb   :  { %v9338_v22 = vadd.f32 %v5752_v53, %v5748_v50 }
0x4abd   :  { %7065 = vtanh.f32 %v9338_v22 }
0x4abe   :  { %7067 = vpow2.f32 %v6502_v5 }
0x4ac3   :  { %v7066_v36 = vpop.eup %7065 }
0x4ac4   :  { %5757 = vrot.lane.b32.xlu2 %v7066_v36, %s7384_s11  ;;  %v7068_v21 = vpop.eup %7067 }
0x4ac5   :  { %v5732_v9 = vadd.f32 1.0, %v7068_v21 }
0x4ac7   :  { %7069 = vrcp.f32 %v5732_v9  ;;  %v5744_v63 = vand.u32 2147483648, %v5732_v9  ;;  %vm5738_vm14 = vweird.f32 %v5732_v9  ;;  %v5742_v47 = vand.u32 2147483647, %v5732_v9 }
0x4ac9   :  { %v5745_v57 = vor.u32 1.1754944e-38, %v5744_v63  ;;  %vm5743_vm2 = vcmp.eq.f32.partialorder %v5742_v47, 8.507059e+37 }
0x4acd   :  { %v7070_v41 = vpop.eup %7069 }
0x4ace   :  { %v5734_v55 = vmul.f32 %v7070_v41, %v5732_v9  ;;  %vm5739_vm13 = vweird.f32 %v7070_v41 }
0x4acf   :  { %vm5740_vm1 = vmor %vm5738_vm14, %vm5739_vm13 }
0x4ad0   :  { %v5735_v59 = vsub.f32 1.0, %v5734_v55 }
0x4ad2   :  { %v5736_v28 = vmul.f32 %v7070_v41, %v5735_v59 }
0x4ad4   :  { %v5737_v34 = vadd.f32 %v7070_v41, %v5736_v28 }
0x4ad6   :  { %v5741_v0 = vsel %vm5740_vm1, %v7070_v41, %v5737_v34  ;;  %v5314_v41 = vrot.slane %v9265_v27, 2 }
0x4ad7   :  { %v5746_v48 = vsel %vm5743_vm2, %v5745_v57, %v5741_v0 }
0x4b1e   :  { %v5758_v32 = vpop.permute.xlu2 %5757 }
0x4b1f   :  { %v5760_v24 = vmul.f32 %v5758_v32, %v5746_v48 }
0x4b21   :  { %5761 = vst.msk [vmem:[#allocation3 + $0x6] sm:$0x3] %vm492_vm15, %v5760_v24  ;;  %6503 = vmatmul.msk.f32.vlgmr.msra.gmra.mxu0 %vm379_vm0, %v5760_v24  ;;  %6504 = vmatmul.msk.f32.vlgmr.msrb.gmra.mxu1 %vm379_vm0, %v5760_v24 }
0x4b28   :  { %v6201_v35 = vld [vmem:[#allocation3 + $0x6] sm:$0x3] }
0x4b29   :  { %6232 = vst [vmem:[#allocation1 + $0x3] ss:$4 sm:$0xff] %v6201_v35 }
0x4b9e   :  { %v5802_v12 = vpop.f32.mrf.mxu1  ;;  %v5782_v42 = vpop.f32.mrf.mxu0 }
0x4b9f   :  { %v5807_v4 = vrot.slane %v5802_v12, 6 }
0x4ba1   :  { %v5808_v13 = vsel %vm353_vm3, %v5782_v42, %v5807_v4 }
0x4ba2   :  { %v5810_v44 = vadd.f32 %v5808_v13, %v5312_v62 }
0x4ba4   :  { %v6505_v46 = vmul.f32 -1.442695, %v5810_v44  ;;  %5834 = vrot.lane.b32.xlu1 %v5810_v44, %s7384_s11  ;;  %v5831_v3 = vrot.slane %v5810_v44, 2  ;;  %v6213_v44 = vld [vmem:[%s9481_s20 + $0x38] sm:$0xff] }
0x4ba5   :  { %6255 = vmatpush.msra.mxu0 %v6213_v44 }
0x4ba6   :  { %7071 = vpow2.f32 %v6505_v46  ;;  %v6212_v46 = vld [vmem:[%s9481_s20 + $0x30] sm:$0xff] }
0x4ba7   :  { %6256 = vmatpush.msra.mxu0 %v6212_v46 }
0x4bac   :  { %v7072_v60 = vpop.eup %7071 }
0x4bad   :  { %v5814_v33 = vadd.f32 1.0, %v7072_v60  ;;  %v6211_v60 = vld [vmem:[%s9481_s20 + $0x28] sm:$0xff] }
0x4bae   :  { %6257 = vmatpush.msra.mxu0 %v6211_v60 }
0x4baf   :  { %7073 = vrcp.f32 %v5814_v33  ;;  %v5826_v61 = vand.u32 2147483648, %v5814_v33  ;;  %v5824_v14 = vand.u32 2147483647, %v5814_v33  ;;  %vm5820_vm5 = vweird.f32 %v5814_v33 }
0x4bb0   :  { %7075 = vtanh.f32 %v5831_v3 }
0x4bb1   :  { %v5827_v15 = vor.u32 1.1754944e-38, %v5826_v61  ;;  %vm5825_vm11 = vcmp.eq.f32.partialorder %v5824_v14, 8.507059e+37 }
0x4bb5   :  { %v7074_v56 = vpop.eup %7073 }
0x4bb6   :  { %v5816_v11 = vmul.f32 %v7074_v56, %v5814_v33  ;;  %vm5821_vm4 = vweird.f32 %v7074_v56  ;;  %v7076_v16 = vpop.eup %7075 }
0x4bb7   :  { %vm5822_vm6 = vmor %vm5820_vm5, %vm5821_vm4 }
0x4bb8   :  { %v5817_v20 = vsub.f32 1.0, %v5816_v11 }
0x4bba   :  { %v5818_v29 = vmul.f32 %v7074_v56, %v5817_v20 }
0x4bbc   :  { %v5819_v43 = vadd.f32 %v7074_v56, %v5818_v29 }
0x4bbe   :  { %v5823_v6 = vsel %vm5822_vm6, %v7074_v56, %v5819_v43 }
0x4bbf   :  { %v5828_v52 = vsel %vm5825_vm11, %v5827_v15, %v5823_v6  ;;  %v6210_v15 = vld [vmem:[%s9481_s20 + $0x20] sm:$0xff]  ;;  %v6209_v6 = vld [vmem:[%s9481_s20 + $0x18] sm:$0xff] }
0x4bc0   :  { %v5858_v18 = vmul.f32 %v7076_v16, %v5828_v52  ;;  %v5857_v19 = vmul.f32 %v5828_v52, %v9338_v22  ;;  %6258 = vmatpush.msra.mxu0 %v6210_v15  ;;  %v6208_v16 = vld [vmem:[%s9481_s20 + $0x10] sm:$0xff]  ;;  %v6207_v52 = vld [vmem:[%s9481_s20 + $0x8] sm:$0xff] }
0x4bc2   :  { %5860 = vrot.lane.b32.xlu0 %v5858_v18, %s7384_s11  ;;  %6259 = vmatpush.msra.mxu0 %v6209_v6 }
0x4bc4   :  { %6260 = vmatpush.msra.mxu0 %v6208_v16 }
0x4bc6   :  { %6261 = vmatpush.msra.mxu0 %v6207_v52 }
0x4c16   :  { %v5835_v30 = vpop.permute.xlu1 %5834 }
0x4c17   :  { %v5836_v10 = vrot.slane %v5835_v30, 2 }
0x4c19   :  { %v6506_v31 = vmul.f32 -1.442695, %v5836_v10 }
0x4c34   :  { %v5861_v40 = vpop.permute.xlu0 %5860 }
0x4c35   :  { %v9352_v23 = vadd.f32 %v5861_v40, %v5857_v19  ;;  %v6206_v19 = vld [vmem:[%s9481_s20] sm:$0xff] }
0x4c36   :  { %6262 = vmatpush.msra.mxu0 %v6206_v19 }
0x4c37   :  { %7077 = vtanh.f32 %v9352_v23 }
0x4c38   :  { %7079 = vpow2.f32 %v6506_v31 }
0x4c3d   :  { %v7078_v45 = vpop.eup %7077 }
0x4c3e   :  { %5866 = vrot.lane.b32.xlu2 %v7078_v45, %s7384_s11  ;;  %v7080_v49 = vpop.eup %7079 }
0x4c3f   :  { %v5841_v7 = vadd.f32 1.0, %v7080_v49 }
0x4c41   :  { %7081 = vrcp.f32 %v5841_v7  ;;  %v5853_v39 = vand.u32 2147483648, %v5841_v7  ;;  %vm5847_vm9 = vweird.f32 %v5841_v7  ;;  %v5851_v54 = vand.u32 2147483647, %v5841_v7 }
0x4c43   :  { %v5854_v53 = vor.u32 1.1754944e-38, %v5853_v39  ;;  %vm5852_vm12 = vcmp.eq.f32.partialorder %v5851_v54, 8.507059e+37 }
0x4c47   :  { %v7082_v26 = vpop.eup %7081 }
0x4c48   :  { %v5843_v38 = vmul.f32 %v7082_v26, %v5841_v7  ;;  %vm5848_vm8 = vweird.f32 %v7082_v26 }
0x4c49   :  { %vm5849_vm10 = vmor %vm5847_vm9, %vm5848_vm8  ;;  %vm6284_vm8 = vcmask 25600  }
0x4c4a   :  { %v5844_v17 = vsub.f32 1.0, %v5843_v38 }
0x4c4c   :  { %v5845_v25 = vmul.f32 %v7082_v26, %v5844_v17 }
0x4c4e   :  { %v5846_v8 = vadd.f32 %v7082_v26, %v5845_v25 }
0x4c50   :  { %v5850_v50 = vsel %vm5849_vm10, %v7082_v26, %v5846_v8  ;;  %v6241_v8 = vld.sshfl [vmem:[#allocation1] sm:$0xff pattern:$0x73625140] }
0x4c51   :  { %v5855_v22 = vsel %vm5852_vm12, %v5854_v53, %v5850_v50  ;;  %v5316_v53 = vrot.slane %v9270_v2, 4 }
0x4c98   :  { %v5867_v36 = vpop.permute.xlu2 %5866 }
0x4c99   :  { %v5869_v1 = vmul.f32 %v5867_v36, %v5855_v22 }
0x4c9b   :  { %5870 = vst.msk [vmem:[#allocation3 + $0x8] sm:$0x3] %vm492_vm15, %v5869_v1  ;;  %6507 = vmatmul.msk.f32.vlgmr.msra.gmra.mxu2 %vm379_vm0, %v5869_v1  ;;  %6508 = vmatmul.msk.f32.vlgmr.msra.gmra.mxu3 %vm379_vm0, %v5869_v1  ;;  %v9401_v1 = vld [vmem:[%s9526_s2] ss:$0 sm:$0xff] }
0x4ca2   :  { %v6202_v37 = vld [vmem:[#allocation3 + $0x8] sm:$0x3] }
0x4ca3   :  { %6234 = vst [vmem:[#allocation1 + $0x20] ss:$4 sm:$0xff] %v6202_v37 }
0x4d1e   :  { %v5911_v5 = vpop.f32.mrf.mxu3  ;;  %v5891_v9 = vpop.f32.mrf.mxu2 }
0x4d1f   :  { %v5916_v21 = vrot.slane %v5911_v5, 6 }
0x4d21   :  { %v5917_v55 = vsel %vm353_vm3, %v5891_v9, %v5916_v21 }
0x4d22   :  { %v5919_v59 = vadd.f32 %v5917_v55, %v5314_v41 }
0x4d24   :  { %v6509_v28 = vmul.f32 -1.442695, %v5919_v59  ;;  %5943 = vrot.lane.b32.xlu1 %v5919_v59, %s7384_s11  ;;  %v5940_v0 = vrot.slane %v5919_v59, 2 }
0x4d26   :  { %7083 = vpow2.f32 %v6509_v28 }
0x4d2c   :  { %v7084_v34 = vpop.eup %7083 }
0x4d2d   :  { %v5923_v63 = vadd.f32 1.0, %v7084_v34 }
0x4d2f   :  { %7085 = vrcp.f32 %v5923_v63  ;;  %v5935_v32 = vand.u32 2147483648, %v5923_v63  ;;  %v5933_v35 = vand.u32 2147483647, %v5923_v63  ;;  %vm5929_vm14 = vweird.f32 %v5923_v63 }
0x4d30   :  { %7087 = vtanh.f32 %v5940_v0 }
0x4d31   :  { %v5936_v12 = vor.u32 1.1754944e-38, %v5935_v32  ;;  %vm5934_vm2 = vcmp.eq.f32.partialorder %v5933_v35, 8.507059e+37 }
0x4d35   :  { %v7086_v47 = vpop.eup %7085 }
0x4d36   :  { %v5925_v57 = vmul.f32 %v7086_v47, %v5923_v63  ;;  %vm5930_vm13 = vweird.f32 %v7086_v47  ;;  %v7088_v42 = vpop.eup %7087 }
0x4d37   :  { %vm5931_vm1 = vmor %vm5929_vm14, %vm5930_vm13 }
0x4d38   :  { %v5926_v48 = vsub.f32 1.0, %v5925_v57 }
0x4d3a   :  { %v5927_v24 = vmul.f32 %v7086_v47, %v5926_v48 }
0x4d3c   :  { %v5928_v27 = vadd.f32 %v7086_v47, %v5927_v24 }
0x4d3e   :  { %v5932_v4 = vsel %vm5931_vm1, %v7086_v47, %v5928_v27 }
0x4d3f   :  { %v5937_v62 = vsel %vm5934_vm2, %v5936_v12, %v5932_v4 }
0x4d40   :  { %v5967_v13 = vmul.f32 %v7088_v42, %v5937_v62  ;;  %v5966_v33 = vmul.f32 %v5937_v62, %v9352_v23 }
0x4d42   :  { %5969 = vrot.lane.b32.xlu0 %v5967_v13, %s7384_s11 }
0x4d96   :  { %v5944_v20 = vpop.permute.xlu1 %5943 }
0x4d97   :  { %v5945_v61 = vrot.slane %v5944_v20, 2 }
0x4d99   :  { %v6510_v29 = vmul.f32 -1.442695, %v5945_v61 }
0x4db4   :  { %v5970_v56 = vpop.permute.xlu0 %5969 }
0x4db5   :  { %v9373_v3 = vadd.f32 %v5970_v56, %v5966_v33 }
0x4db7   :  { %7089 = vtanh.f32 %v9373_v3 }
0x4db8   :  { %7091 = vpow2.f32 %v6510_v29 }
0x4dbd   :  { %v7090_v11 = vpop.eup %7089 }
0x4dbe   :  { %5975 = vrot.lane.b32.xlu2 %v7090_v11, %s7384_s11  ;;  %v7092_v14 = vpop.eup %7091 }
0x4dbf   :  { %v5950_v43 = vadd.f32 1.0, %v7092_v14 }
0x4dc1   :  { %7093 = vrcp.f32 %v5950_v43  ;;  %v5962_v10 = vand.u32 2147483648, %v5950_v43  ;;  %vm5956_vm5 = vweird.f32 %v5950_v43  ;;  %v5960_v31 = vand.u32 2147483647, %v5950_v43 }
0x4dc3   :  { %v5963_v7 = vor.u32 1.1754944e-38, %v5962_v10  ;;  %vm5961_vm11 = vcmp.eq.f32.partialorder %v5960_v31, 8.507059e+37  ;;  %v5318_v10 = vrot.slane %v9275_v51, 6 }
0x4dc7   :  { %v7094_v18 = vpop.eup %7093 }
0x4dc8   :  { %v5952_v40 = vmul.f32 %v7094_v18, %v5950_v43  ;;  %vm5957_vm4 = vweird.f32 %v7094_v18 }
0x4dc9   :  { %vm5958_vm6 = vmor %vm5956_vm5, %vm5957_vm4 }
0x4dca   :  { %v5953_v23 = vsub.f32 1.0, %v5952_v40 }
0x4dcc   :  { %v5954_v45 = vmul.f32 %v7094_v18, %v5953_v23 }
0x4dce   :  { %v5955_v30 = vadd.f32 %v7094_v18, %v5954_v45 }
0x4dd0   :  { %v5959_v49 = vsel %vm5958_vm6, %v7094_v18, %v5955_v30 }
0x4dd1   :  { %v5964_v26 = vsel %vm5961_vm11, %v5963_v7, %v5959_v49 }
0x4e18   :  { %v5976_v38 = vpop.permute.xlu2 %5975 }
0x4e19   :  { %v5978_v17 = vmul.f32 %v5976_v38, %v5964_v26 }
0x4e1b   :  { %5979 = vst.msk [vmem:[#allocation3 + $0xa] sm:$0x3] %vm492_vm15, %v5978_v17  ;;  %6511 = vmatmul.msk.f32.vlgmr.msrb.gmra.mxu0 %vm379_vm0, %v5978_v17  ;;  %6512 = vmatmul.msk.f32.vlgmr.msra.gmra.mxu1 %vm379_vm0, %v5978_v17 }
0x4e22   :  { %v6203_v25 = vld [vmem:[#allocation3 + $0xa] sm:$0x3] }
0x4e23   :  { %6236 = vst [vmem:[#allocation1 + $0x21] ss:$4 sm:$0xff] %v6203_v25  ;;  %6519 = vmatmul.msk.f32.vlgmr.msra.gmra.mxu0 %vm379_vm0, %v6241_v8 }
0x4e98   :  { %v6000_v39 = vpop.f32.mrf.mxu0  ;;  %v6020_v54 = vpop.f32.mrf.mxu1 }
0x4e99   :  { %v6025_v50 = vrot.slane %v6020_v54, 6 }
0x4e9b   :  { %v6026_v22 = vsel %vm353_vm3, %v6000_v39, %v6025_v50 }
0x4e9c   :  { %v6028_v36 = vadd.f32 %v6026_v22, %v5316_v53 }
0x4e9e   :  { %v6513_v37 = vmul.f32 -1.442695, %v6028_v36  ;;  %6052 = vrot.lane.b32.xlu1 %v6028_v36, %s7384_s11  ;;  %v6049_v34 = vrot.slane %v6028_v36, 2 }
0x4ea0   :  { %7095 = vpow2.f32 %v6513_v37  ;;  %v6264_v5 = vpop.f32.mrf.mxu0 }
0x4ea1   :  { %v6265_v21 = vadd.f32 %v9401_v1, %v6264_v5 }
0x4ea3   :  { %v6272_v9 = vrot.slane %v6265_v21, 2  ;;  %v6273_v41 = vrot.slane %v6265_v21, 4  ;;  %v6274_v55 = vrot.slane %v6265_v21, 6  ;;  %6285 = vst.msk [vmem:[%s9527_s10] sm:$0x3] %vm6284_vm8, %v6265_v21 }
0x4ea5   :  { %6286 = vst.msk [vmem:[%s9527_s10 + $0x2] sm:$0x3] %vm6284_vm8, %v6272_v9 }
0x4ea6   :  { %v7096_v2 = vpop.eup %7095  ;;  %6287 = vst.msk [vmem:[%s9527_s10 + $0x4] sm:$0x3] %vm6284_vm8, %v6273_v41 }
0x4ea7   :  { %v6032_v59 = vadd.f32 1.0, %v7096_v2  ;;  %6288 = vst.msk [vmem:[%s9527_s10 + $0x6] sm:$0x3] %vm6284_vm8, %v6274_v55 }
0x4ea9   :  { %7097 = vrcp.f32 %v6032_v59  ;;  %v6044_v0 = vand.u32 2147483648, %v6032_v59  ;;  %v6042_v48 = vand.u32 2147483647, %v6032_v59  ;;  %vm6038_vm10 = vweird.f32 %v6032_v59 }
0x4eaa   :  { %7099 = vtanh.f32 %v6049_v34 }
0x4eab   :  { %v6045_v24 = vor.u32 1.1754944e-38, %v6044_v0  ;;  %vm6043_vm13 = vcmp.eq.f32.partialorder %v6042_v48, 8.507059e+37 }
0x4eaf   :  { %v7098_v28 = vpop.eup %7097 }
0x4eb0   :  { %v6034_v63 = vmul.f32 %v7098_v28, %v6032_v59  ;;  %vm6039_vm9 = vweird.f32 %v7098_v28  ;;  %v7100_v27 = vpop.eup %7099 }
0x4eb1   :  { %vm6040_vm12 = vmor %vm6038_vm10, %vm6039_vm9 }
0x4eb2   :  { %v6035_v47 = vsub.f32 1.0, %v6034_v63 }
0x4eb4   :  { %v6036_v57 = vmul.f32 %v7098_v28, %v6035_v47 }
0x4eb6   :  { %v6037_v32 = vadd.f32 %v7098_v28, %v6036_v57 }
0x4eb8   :  { %v6041_v35 = vsel %vm6040_vm12, %v7098_v28, %v6037_v32 }
0x4eb9   :  { %v6046_v12 = vsel %vm6043_vm13, %v6045_v24, %v6041_v35 }
0x4eba   :  { %v6076_v4 = vmul.f32 %v7100_v27, %v6046_v12  ;;  %v6075_v42 = vmul.f32 %v6046_v12, %v9373_v3 }
0x4ebc   :  { %6078 = vrot.lane.b32.xlu0 %v6076_v4, %s7384_s11 }
0x4f10   :  { %v6053_v46 = vpop.permute.xlu1 %6052 }
0x4f11   :  { %v6054_v60 = vrot.slane %v6053_v46, 2 }
0x4f13   :  { %v6514_v33 = vmul.f32 -1.442695, %v6054_v60 }
0x4f2e   :  { %v6079_v62 = vpop.permute.xlu0 %6078 }
0x4f2f   :  { %v9423_v13 = vadd.f32 %v6079_v62, %v6075_v42 }
0x4f31   :  { %7101 = vtanh.f32 %v9423_v13 }
0x4f32   :  { %7103 = vpow2.f32 %v6514_v33 }
0x4f37   :  { %v7102_v44 = vpop.eup %7101 }
0x4f38   :  { %6084 = vrot.lane.b32.xlu2 %v7102_v44, %s7384_s11  ;;  %v7104_v56 = vpop.eup %7103 }
0x4f39   :  { %v6059_v11 = vadd.f32 1.0, %v7104_v56 }
0x4f3b   :  { %7105 = vrcp.f32 %v6059_v11  ;;  %v6071_v43 = vand.u32 2147483648, %v6059_v11  ;;  %vm6065_vm1 = vweird.f32 %v6059_v11  ;;  %v6069_v15 = vand.u32 2147483647, %v6059_v11 }
0x4f3d   :  { %v6072_v16 = vor.u32 1.1754944e-38, %v6071_v43  ;;  %vm6070_vm4 = vcmp.eq.f32.partialorder %v6069_v15, 8.507059e+37 }
0x4f41   :  { %v7106_v20 = vpop.eup %7105 }
0x4f42   :  { %v6061_v61 = vmul.f32 %v7106_v20, %v6059_v11  ;;  %vm6066_vm14 = vweird.f32 %v7106_v20 }
0x4f43   :  { %vm6067_vm2 = vmor %vm6065_vm1, %vm6066_vm14 }
0x4f44   :  { %v6062_v29 = vsub.f32 1.0, %v6061_v61 }
0x4f46   :  { %v6063_v14 = vmul.f32 %v7106_v20, %v6062_v29 }
0x4f48   :  { %v6064_v3 = vadd.f32 %v7106_v20, %v6063_v14 }
0x4f4a   :  { %v6068_v6 = vsel %vm6067_vm2, %v7106_v20, %v6064_v3 }
0x4f4b   :  { %v6073_v52 = vsel %vm6070_vm4, %v6072_v16, %v6068_v6 }
0x4f92   :  { %v6085_v18 = vpop.permute.xlu2 %6084 }
0x4f93   :  { %v6087_v19 = vmul.f32 %v6085_v18, %v6073_v52 }
0x4f95   :  { %6088 = vst.msk [vmem:[#allocation3 + $0xc] sm:$0x3] %vm492_vm15, %v6087_v19  ;;  %6515 = vmatmul.msk.f32.vlgmr.msrb.gmra.mxu2 %vm379_vm0, %v6087_v19  ;;  %6516 = vmatmul.msk.f32.vlgmr.msrb.gmra.mxu3 %vm379_vm0, %v6087_v19 }
0x4f9c   :  { %v6204_v40 = vld [vmem:[#allocation3 + $0xc] sm:$0x3] }
0x4f9d   :  { %6238 = vst [vmem:[#allocation1 + $0x22] ss:$4 sm:$0xff] %v6204_v40 }
0x5018   :  { %v6129_v23 = vpop.f32.mrf.mxu3  ;;  %v6109_v30 = vpop.f32.mrf.mxu2 }
0x5019   :  { %v6134_v45 = vrot.slane %v6129_v23, 6 }
0x501b   :  { %v6135_v31 = vsel %vm353_vm3, %v6109_v30, %v6134_v45 }
0x501c   :  { %v6137_v49 = vadd.f32 %v6135_v31, %v5318_v10 }
0x501e   :  { %v6517_v7 = vmul.f32 -1.442695, %v6137_v49  ;;  %6161 = vrot.lane.b32.xlu1 %v6137_v49, %s7384_s11  ;;  %v6158_v25 = vrot.slane %v6137_v49, 2 }
0x5020   :  { %7107 = vpow2.f32 %v6517_v7 }
0x5026   :  { %v7108_v26 = vpop.eup %7107 }
0x5027   :  { %v6141_v38 = vadd.f32 1.0, %v7108_v26 }
0x5029   :  { %7109 = vrcp.f32 %v6141_v38  ;;  %v6153_v54 = vand.u32 2147483648, %v6141_v38  ;;  %v6151_v53 = vand.u32 2147483647, %v6141_v38  ;;  %vm6147_vm6 = vweird.f32 %v6141_v38 }
0x502a   :  { %7111 = vtanh.f32 %v6158_v25 }
0x502b   :  { %v6154_v22 = vor.u32 1.1754944e-38, %v6153_v54  ;;  %vm6152_vm11 = vcmp.eq.f32.partialorder %v6151_v53, 8.507059e+37 }
0x502f   :  { %v7110_v17 = vpop.eup %7109 }
0x5030   :  { %v6143_v8 = vmul.f32 %v7110_v17, %v6141_v38  ;;  %vm6148_vm5 = vweird.f32 %v7110_v17  ;;  %v7112_v37 = vpop.eup %7111 }
0x5031   :  { %vm6149_vm3 = vmor %vm6147_vm6, %vm6148_vm5 }
0x5032   :  { %v6144_v39 = vsub.f32 1.0, %v6143_v8 }
0x5034   :  { %v6145_v50 = vmul.f32 %v7110_v17, %v6144_v39 }
0x5036   :  { %v6146_v51 = vadd.f32 %v7110_v17, %v6145_v50 }
0x5038   :  { %v6150_v36 = vsel %vm6149_vm3, %v7110_v17, %v6146_v51 }
0x5039   :  { %v6155_v5 = vsel %vm6152_vm11, %v6154_v22, %v6150_v36 }
0x503a   :  { %v6185_v21 = vmul.f32 %v7112_v37, %v6155_v5  ;;  %v6184_v9 = vmul.f32 %v6155_v5, %v9423_v13 }
0x503c   :  { %6187 = vrot.lane.b32.xlu0 %v6185_v21, %s7384_s11 }
0x5044   :  { %4535 = vrot.lane.b32.xlu0 %v8934_v58, %s7385_s9 }
0x5090   :  { %v6162_v28 = vpop.permute.xlu1 %6161 }
0x5091   :  { %v6163_v34 = vrot.slane %v6162_v28, 2 }
0x5093   :  { %v6518_v63 = vmul.f32 -1.442695, %v6163_v34 }
0x50ae   :  { %v6188_v41 = vpop.permute.xlu0 %6187 }
0x50af   :  { %v6190_v55 = vadd.f32 %v6188_v41, %v6184_v9 }
0x50b1   :  { %7113 = vtanh.f32 %v6190_v55 }
0x50b2   :  { %7115 = vpow2.f32 %v6518_v63 }
0x50b6   :  { %v4536_v2 = vpop.permute.xlu0 %4535 }
0x50b7   :  { %v7114_v59 = vpop.eup %7113  ;;  %4539 = vst.msk [vmem:[#allocation20] sm:$0x3] %vm4538_vm7, %v4536_v2 }
0x50b8   :  { %6193 = vrot.lane.b32.xlu2 %v7114_v59, %s7384_s11  ;;  %v7116_v47 = vpop.eup %7115  ;;  %s7388_s11 = smov [#allocation20]  }
0x50b9   :  { %v6168_v0 = vadd.f32 1.0, %v7116_v47  ;;  %s6300_s9 = sshll.u32 %s7388_s11, 4  ;;  %s6301_s9 = int_to_ptr.vmem [resolvable:$true] %s6300_s9 }
0x50ba   :  { %6305 = dma.vmem_to_hbm [thread:$0]  %s6301_s9, 32, %s6303_s7, [#allocation7]  }
0x50bb   :  { %7117 = vrcp.f32 %v6168_v0  ;;  %v6180_v35 = vand.u32 2147483648, %v6168_v0  ;;  %vm6174_vm10 = vweird.f32 %v6168_v0  ;;  %v6178_v27 = vand.u32 2147483647, %v6168_v0 }
0x50bd   :  { %v6181_v4 = vor.u32 1.1754944e-38, %v6180_v35  ;;  %vm6179_vm7 = vcmp.eq.f32.partialorder %v6178_v27, 8.507059e+37 }
0x50c1   :  { %v7118_v57 = vpop.eup %7117 }
0x50c2   :  { %v6170_v58 = vmul.f32 %v7118_v57, %v6168_v0  ;;  %vm6175_vm9 = vweird.f32 %v7118_v57 }
0x50c3   :  { %vm6176_vm12 = vmor %vm6174_vm10, %vm6175_vm9 }
0x50c4   :  { %v6171_v48 = vsub.f32 1.0, %v6170_v58 }
0x50c6   :  { %v6172_v32 = vmul.f32 %v7118_v57, %v6171_v48 }
0x50c8   :  { %v6173_v24 = vadd.f32 %v7118_v57, %v6172_v32 }
0x50ca   :  { %v6177_v12 = vsel %vm6176_vm12, %v7118_v57, %v6173_v24 }
0x50cb   :  { %v6182_v42 = vsel %vm6179_vm7, %v6181_v4, %v6177_v12 }
0x5112   :  { %v6194_v62 = vpop.permute.xlu2 %6193 }
0x5113   :  { %v6196_v13 = vmul.f32 %v6194_v62, %v6182_v42 }
0x5115   :  { %6197 = vst.msk [vmem:[#allocation3 + $0xe] sm:$0x3] %vm492_vm15, %v6196_v13 }
0x511c   :  { %v6205_v44 = vld [vmem:[#allocation3 + $0xe] sm:$0x3] }
0x511d   :  { %6240 = vst [vmem:[#allocation1 + $0x23] ss:$4 sm:$0xff] %v6205_v44 }
0x5124   :  { %v6242_v46 = vld.sshfl [vmem:[#allocation1 + $0x20] sm:$0xff pattern:$0x73625140] }
0x5125   :  { %6520 = vmatmul.msk.f32.gmra.mxu0 %vm379_vm0, %v6242_v46 }
0x51a2   :  { %v6267_v60 = vpop.f32.mrf.mxu0 }
0x51a3   :  { %v6268_v33 = vadd.f32 %v9401_v1, %v6267_v60 }
0x51a5   :  { %v6275_v56 = vrot.slane %v6268_v33, 2  ;;  %v6276_v11 = vrot.slane %v6268_v33, 4  ;;  %v6277_v20 = vrot.slane %v6268_v33, 6  ;;  %6289 = vst.msk [vmem:[%s9527_s10 + $0x8] sm:$0x3] %vm6284_vm8, %v6268_v33 }
0x51a7   :  { %6290 = vst.msk [vmem:[%s9527_s10 + $0xa] sm:$0x3] %vm6284_vm8, %v6275_v56 }
0x51a8   :  { %6291 = vst.msk [vmem:[%s9527_s10 + $0xc] sm:$0x3] %vm6284_vm8, %v6276_v11 }
0x51a9   :  { %6292 = vst.msk [vmem:[%s9527_s10 + $0xe] sm:$0x3] %vm6284_vm8, %v6277_v20 }
0x51aa   :  { %7369 = dma.done.wait [#allocation7], 32  }
0x51ab   :  { %7370 = vsyncadd [#allocation7], 4294967264 }
0x51ac   :  { %6312 = vsyncpa [#allocation6], 1 }
0x51ad   :  { %6313 = vsyncpa [#allocation9], 1 }
0x51ae   :  { %6314 = vsyncpa [#allocation12], 1 }
0x51af   :  { %6315 = vsyncpa [#allocation15], 1 }
0x51b0   :  { %6316 = vsyncpa [#allocation18], 1 }
0x51b1   :  { %6317 = vsyncpa [#allocation7], 1 }

</bundles_post_ra>
